<compile_context>
chip_gen: v5e
topology: v5e:2x2
jax: 0.10.0
libtpu: 0.0.40
codegen_flags: <defaults>
</compile_context>

<pallas_src>
import numpy as np

import jax
import jax.numpy as jnp
from jax import lax
from jax.experimental import pallas as pl
from jax.experimental.pallas import tpu as pltpu


# ------------------------------ fused kernel --------------------------------

def _lenet_kernel(p1_ref, w1_ref, b1_ref, pool1_ref, w2_ref, b2_ref,
                  pool2_ref, w3_ref, b3_ref, w4_ref, b4_ref, w5_ref, b5_ref,
                  out_ref, a1p_ref, a2p_ref):
    """One image per grid step.  All channel/feature dims padded to 128."""
    f32 = jnp.float32
    bf16 = jnp.bfloat16

    # ---- conv1 as im2col matmul: [784, 32] @ [32, 128] ---------------------
    p1 = p1_ref[0]                                               # [784, 32] bf16
    a1 = jnp.dot(p1, w1_ref[...], preferred_element_type=f32)    # [784, 128]
    a1 = jnp.maximum(a1 + b1_ref[...], 0.0)                      # bias + ReLU

    # ---- avg-pool 2x2 (28x28 -> 14x14) as a constant matmul ----------------
    # pool1: [200, 784] (196 real pooled rows + 4 zero pad rows so that the
    # shifted slices below never run out of bounds).
    a1p_ref[...] = jnp.dot(pool1_ref[...], a1.astype(bf16),
                           preferred_element_type=f32)           # [200, 128]

    # ---- conv2: 25 kernel taps as shifted contiguous row blocks ------------
    # Pooled map is row-major 14x14.  For tap (i, j) the rows needed by output
    # row r = 14*oh + ow are rows r + (14*i + j) of the pooled map; rows with
    # ow >= 10 are junk (they wrap into the next image row) and are discarded
    # by the pool2 matrix below.
    acc2 = jnp.zeros((140, 128), f32)
    for i in range(5):
        for j in range(5):
            shift = 14 * i + j
            sl = a1p_ref[pl.ds(shift, 140), :].astype(bf16)      # [140, 128]
            acc2 = acc2 + jnp.dot(sl, w2_ref[5 * i + j],
                                  preferred_element_type=f32)
    a2 = jnp.maximum(acc2 + b2_ref[...], 0.0).astype(bf16)       # [140, 128]

    # ---- avg-pool 2x2 (10x10 -> 5x5) + valid-row selection as a matmul -----
    a2p_ref[...] = jnp.dot(pool2_ref[...], a2,
                           preferred_element_type=f32)           # [25, 128]

    # ---- fc1: contract over (spatial, channel) as 25 row x [128,128] dots --
    y = jnp.zeros((1, 128), f32)
    for hw in range(25):
        y = y + jnp.dot(a2p_ref[pl.ds(hw, 1), :].astype(bf16), w3_ref[hw],
                        preferred_element_type=f32)
    y = jnp.maximum(y + b3_ref[...], 0.0).astype(bf16)           # [1, 128]

    # ---- fc2 / fc3 ----------------------------------------------------------
    y = jnp.dot(y, w4_ref[...], preferred_element_type=f32)
    y = jnp.maximum(y + b4_ref[...], 0.0).astype(bf16)
    y = jnp.dot(y, w5_ref[...], preferred_element_type=f32)
    out_ref[0] = y + b5_ref[...]                                 # [1, 128] f32


# --------------------------- constant pool matrices -------------------------

def _pool1_matrix():
    # [200, 784]: rows = pooled 14x14 positions (+4 zero pad rows),
    # cols = conv1 output 28x28 positions (row-major).
    m = np.zeros((200, 28 * 28), np.float32)
    for ph in range(14):
        for pw in range(14):
            for di in range(2):
                for dj in range(2):
                    m[ph * 14 + pw, (2 * ph + di) * 28 + (2 * pw + dj)] = 0.25
    return m


def _pool2_matrix():
    # [25, 140]: rows = pooled 5x5 positions,
    # cols = conv2 full-width accumulator rows r = 14*oh + ow (valid ow < 10).
    m = np.zeros((25, 140), np.float32)
    for ph in range(5):
        for pw in range(5):
            for di in range(2):
                for dj in range(2):
                    m[ph * 5 + pw, 14 * (2 * ph + di) + (2 * pw + dj)] = 0.25
    return m


# ------------------------ parameter prep (done once) ------------------------

def init_lenet_params(key):
    """PyTorch-layout parameters (same layout/semantics as nn.Module)."""
    ks = jax.random.split(key, 10)
    scale = 0.1
    return {
        "conv1_w": scale * jax.random.normal(ks[0], (6, 1, 5, 5), jnp.float32),
        "conv1_b": scale * jax.random.normal(ks[1], (6,), jnp.float32),
        "conv2_w": scale * jax.random.normal(ks[2], (16, 6, 5, 5), jnp.float32),
        "conv2_b": scale * jax.random.normal(ks[3], (16,), jnp.float32),
        "fc1_w": scale * jax.random.normal(ks[4], (120, 400), jnp.float32),
        "fc1_b": scale * jax.random.normal(ks[5], (120,), jnp.float32),
        "fc2_w": scale * jax.random.normal(ks[6], (84, 120), jnp.float32),
        "fc2_b": scale * jax.random.normal(ks[7], (84,), jnp.float32),
        "fc3_w": scale * jax.random.normal(ks[8], (10, 84), jnp.float32),
        "fc3_b": scale * jax.random.normal(ks[9], (10,), jnp.float32),
    }


def prepare_params(p):
    """Pre-transpose / pre-pad PyTorch-layout params into kernel constants."""
    bf16 = jnp.bfloat16
    f32 = jnp.float32

    # conv1: [6,1,5,5] -> [K=32(pad of 25), N=128(pad of 6)], row = kh*5+kw.
    w1 = p["conv1_w"].reshape(6, 25).T
    w1 = jnp.pad(w1, ((0, 7), (0, 122))).astype(bf16)
    b1 = jnp.pad(p["conv1_b"], (0, 122)).reshape(1, 128).astype(f32)

    # conv2: [16,6,5,5] -> [25, 128(cin pad), 128(cout pad)], tap index = 5i+j.
    w2 = jnp.transpose(p["conv2_w"], (2, 3, 1, 0))            # [5,5,6,16]
    w2 = jnp.pad(w2, ((0, 0), (0, 0), (0, 122), (0, 112)))
    w2 = w2.reshape(25, 128, 128).astype(bf16)
    b2 = jnp.pad(p["conv2_b"], (0, 112)).reshape(1, 128).astype(f32)

    # fc1: [120,400] with input index c*25 + h*5 + w  ->  [25(hw), 128(c), 128(n)].
    w3 = p["fc1_w"].reshape(120, 16, 25)                      # [n, c, hw]
    w3 = jnp.transpose(w3, (2, 1, 0))                         # [hw, c, n]
    w3 = jnp.pad(w3, ((0, 0), (0, 112), (0, 8))).astype(bf16)
    b3 = jnp.pad(p["fc1_b"], (0, 8)).reshape(1, 128).astype(f32)

    # fc2 / fc3: [out,in] -> [128,128] (zero-padded), stored as [K, N].
    w4 = jnp.pad(p["fc2_w"].T, ((0, 8), (0, 44))).astype(bf16)
    b4 = jnp.pad(p["fc2_b"], (0, 44)).reshape(1, 128).astype(f32)
    w5 = jnp.pad(p["fc3_w"].T, ((0, 44), (0, 118))).astype(bf16)
    b5 = jnp.pad(p["fc3_b"], (0, 118)).reshape(1, 128).astype(f32)

    pool1 = jnp.asarray(_pool1_matrix()).astype(bf16)         # [200, 784]
    pool2 = jnp.asarray(_pool2_matrix()).astype(bf16)         # [25, 140]

    return dict(w1=w1, b1=b1, pool1=pool1, w2=w2, b2=b2, pool2=pool2,
                w3=w3, b3=b3, w4=w4, b4=b4, w5=w5, b5=b5)


# --------------------------------- forward ----------------------------------

def _full_spec(shape):
    return pl.BlockSpec(shape, lambda b, _n=len(shape): (0,) * _n)


@jax.jit
def lenet_forward(kp, x):
    """x: [B, 1, 32, 32] (NCHW, like PyTorch).  Returns [B, 10] logits (f32)."""
    B = x.shape[0]

    # conv1 im2col patches, built once in the wrapper (1 channel, tiny):
    # [B, 25, 28, 28] -> [B, 784, 32] (K padded 25->32), bf16.
    patches = lax.conv_general_dilated_patches(
        x, filter_shape=(5, 5), window_strides=(1, 1), padding="VALID",
        dimension_numbers=("NCHW", "OIHW", "NCHW"))
    patches = patches.transpose(0, 2, 3, 1).reshape(B, 28 * 28, 25)
    patches = jnp.pad(patches, ((0, 0), (0, 0), (0, 7))).astype(jnp.bfloat16)

    out = pl.pallas_call(
        _lenet_kernel,
        out_shape=jax.ShapeDtypeStruct((B, 1, 128), jnp.float32),
        grid=(B,),
        in_specs=[
            pl.BlockSpec((1, 784, 32), lambda b: (b, 0, 0)),   # patches
            _full_spec((32, 128)), _full_spec((1, 128)),        # conv1 w, b
            _full_spec((200, 784)),                              # pool1 matrix
            _full_spec((25, 128, 128)), _full_spec((1, 128)),    # conv2 w, b
            _full_spec((25, 140)),                               # pool2 matrix
            _full_spec((25, 128, 128)), _full_spec((1, 128)),    # fc1 w, b
            _full_spec((128, 128)), _full_spec((1, 128)),        # fc2 w, b
            _full_spec((128, 128)), _full_spec((1, 128)),        # fc3 w, b
        ],
        out_specs=pl.BlockSpec((1, 1, 128), lambda b: (b, 0, 0)),
        scratch_shapes=[
            pltpu.VMEM((200, 128), jnp.float32),  # pooled conv1 map
            pltpu.VMEM((25, 128), jnp.float32),   # pooled conv2 map
        ],
        compiler_params=pltpu.CompilerParams(
            dimension_semantics=("parallel",),
            vmem_limit_bytes=32 * 1024 * 1024),
    )(patches, kp["w1"], kp["b1"], kp["pool1"], kp["w2"], kp["b2"],
      kp["pool2"], kp["w3"], kp["b3"], kp["w4"], kp["b4"], kp["w5"], kp["b5"])

    return out.reshape(B, 128)[:, :10]


if __name__ == "__main__":
    key = jax.random.PRNGKey(0)
    pkey, xkey = jax.random.split(key)
    torch_layout_params = init_lenet_params(pkey)
    kernel_params = prepare_params(torch_layout_params)   # one-time prep
    # LeNet's fc1 (16*5*5) forces 32x32 single-channel input; small batch of 2.
    x = jax.random.normal(xkey, (2, 1, 32, 32), jnp.float32)
    out = lenet_forward(kernel_params, x)
    out = jax.block_until_ready(out)
    assert out.shape == (2, 10), out.shape
    print("KERNEL_OK")
</pallas_src>

<mosaic_0001>
module attributes {stable_mosaic.version = 11 : i64} {
  func.func @_lenet_kernel(%arg0: i32, %arg1: memref<1x784x32xbf16, #tpu.memory_space<vmem>>, %arg2: memref<32x128xbf16, #tpu.memory_space<vmem>>, %arg3: memref<1x128xf32, #tpu.memory_space<vmem>>, %arg4: memref<200x784xbf16, #tpu.memory_space<vmem>>, %arg5: memref<25x128x128xbf16, #tpu.memory_space<vmem>>, %arg6: memref<1x128xf32, #tpu.memory_space<vmem>>, %arg7: memref<25x140xbf16, #tpu.memory_space<vmem>>, %arg8: memref<25x128x128xbf16, #tpu.memory_space<vmem>>, %arg9: memref<1x128xf32, #tpu.memory_space<vmem>>, %arg10: memref<128x128xbf16, #tpu.memory_space<vmem>>, %arg11: memref<1x128xf32, #tpu.memory_space<vmem>>, %arg12: memref<128x128xbf16, #tpu.memory_space<vmem>>, %arg13: memref<1x128xf32, #tpu.memory_space<vmem>>, %arg14: memref<1x1x128xf32, #tpu.memory_space<vmem>>, %arg15: memref<200x128xf32, #tpu.memory_space<vmem>>, %arg16: memref<25x128xf32, #tpu.memory_space<vmem>>) attributes {dimension_semantics = [#tpu.dimension_semantics<parallel>], iteration_bounds = array<i64: 2>, scalar_prefetch = 0 : i64, scratch_operands = 2 : i64, tpu.core_type = #tpu.core_type<tc>, window_params = [{transform_indices = @transform_0, window_bounds = array<i64: 1, 784, 32>}, {pipeline_mode = #tpu.pipeline_mode<synchronous>, transform_indices = @transform_1, window_bounds = array<i64: 32, 128>}, {pipeline_mode = #tpu.pipeline_mode<synchronous>, transform_indices = @transform_2, window_bounds = array<i64: 1, 128>}, {pipeline_mode = #tpu.pipeline_mode<synchronous>, transform_indices = @transform_3, window_bounds = array<i64: 200, 784>}, {pipeline_mode = #tpu.pipeline_mode<synchronous>, transform_indices = @transform_4, window_bounds = array<i64: 25, 128, 128>}, {pipeline_mode = #tpu.pipeline_mode<synchronous>, transform_indices = @transform_5, window_bounds = array<i64: 1, 128>}, {pipeline_mode = #tpu.pipeline_mode<synchronous>, transform_indices = @transform_6, window_bounds = array<i64: 25, 140>}, {pipeline_mode = #tpu.pipeline_mode<synchronous>, transform_indices = @transform_7, window_bounds = array<i64: 25, 128, 128>}, {pipeline_mode = #tpu.pipeline_mode<synchronous>, transform_indices = @transform_8, window_bounds = array<i64: 1, 128>}, {pipeline_mode = #tpu.pipeline_mode<synchronous>, transform_indices = @transform_9, window_bounds = array<i64: 128, 128>}, {pipeline_mode = #tpu.pipeline_mode<synchronous>, transform_indices = @transform_10, window_bounds = array<i64: 1, 128>}, {pipeline_mode = #tpu.pipeline_mode<synchronous>, transform_indices = @transform_11, window_bounds = array<i64: 128, 128>}, {pipeline_mode = #tpu.pipeline_mode<synchronous>, transform_indices = @transform_12, window_bounds = array<i64: 1, 128>}, {transform_indices = @transform_13, window_bounds = array<i64: 1, 1, 128>}]} {
    %c0 = arith.constant 0 : index
    %c0_0 = arith.constant 0 : index
    %c0_1 = arith.constant 0 : index
    %0 = vector.load %arg1[%c0, %c0_0, %c0_1] : memref<1x784x32xbf16, #tpu.memory_space<vmem>>, vector<1x784x32xbf16>
    %1 = vector.shape_cast %0 : vector<1x784x32xbf16> to vector<784x32xbf16>
    %c0_2 = arith.constant 0 : index
    %c0_3 = arith.constant 0 : index
    %2 = vector.load %arg2[%c0_2, %c0_3] : memref<32x128xbf16, #tpu.memory_space<vmem>>, vector<32x128xbf16>
    %cst = arith.constant dense<0.000000e+00> : vector<784x128xf32>
    %3 = tpu.matmul %1, %2, %cst {dimension_numbers = #tpu.dot_dimension_numbers<[1], [0], [0], [1], [0, 0, 1, 1], [], []>} : vector<784x32xbf16>, vector<32x128xbf16>, vector<784x128xf32> -> vector<784x128xf32>
    %c0_4 = arith.constant 0 : index
    %c0_5 = arith.constant 0 : index
    %4 = vector.load %arg3[%c0_4, %c0_5] : memref<1x128xf32, #tpu.memory_space<vmem>>, vector<1x128xf32>
    %5 = vector.broadcast %4 : vector<1x128xf32> to vector<784x128xf32>
    %6 = arith.addf %3, %5 : vector<784x128xf32>
    %cst_6 = arith.constant 0.000000e+00 : f32
    %7 = vector.broadcast %cst_6 : f32 to vector<784x128xf32>
    %8 = arith.maximumf %6, %7 : vector<784x128xf32>
    %c0_7 = arith.constant 0 : index
    %c0_8 = arith.constant 0 : index
    %9 = vector.load %arg4[%c0_7, %c0_8] : memref<200x784xbf16, #tpu.memory_space<vmem>>, vector<200x784xbf16>
    %10 = arith.truncf %8 : vector<784x128xf32> to vector<784x128xbf16>
    %cst_9 = arith.constant dense<0.000000e+00> : vector<200x128xf32>
    %11 = tpu.matmul %9, %10, %cst_9 {dimension_numbers = #tpu.dot_dimension_numbers<[1], [0], [0], [1], [0, 0, 1, 1], [], []>} : vector<200x784xbf16>, vector<784x128xbf16>, vector<200x128xf32> -> vector<200x128xf32>
    %c0_10 = arith.constant 0 : index
    %c0_11 = arith.constant 0 : index
    %12 = vector.load %arg15[%c0_10, %c0_11] : memref<200x128xf32, #tpu.memory_space<vmem>>, vector<200x128xf32>
    tpu.vector_store %arg15[%c0_10, %c0_11], %11 {strides = array<i32>} : memref<200x128xf32, #tpu.memory_space<vmem>>, vector<200x128xf32>,
    %cst_12 = arith.constant 0.000000e+00 : f32
    %13 = vector.broadcast %cst_12 : f32 to vector<140x128xf32>
    %c0_13 = arith.constant 0 : index
    %c0_14 = arith.constant 0 : index
    %14 = vector.load %arg15[%c0_13, %c0_14] : memref<200x128xf32, #tpu.memory_space<vmem>>, vector<140x128xf32>
    %15 = arith.truncf %14 : vector<140x128xf32> to vector<140x128xbf16>
    %c0_15 = arith.constant 0 : index
    %c0_16 = arith.constant 0 : index
    %c0_17 = arith.constant 0 : index
    %16 = vector.load %arg5[%c0_15, %c0_16, %c0_17] : memref<25x128x128xbf16, #tpu.memory_space<vmem>>, vector<1x128x128xbf16>
    %17 = vector.shape_cast %16 : vector<1x128x128xbf16> to vector<128x128xbf16>
    %cst_18 = arith.constant dense<0.000000e+00> : vector<140x128xf32>
    %18 = tpu.matmul %15, %17, %cst_18 {dimension_numbers = #tpu.dot_dimension_numbers<[1], [0], [0], [1], [0, 0, 1, 1], [], []>} : vector<140x128xbf16>, vector<128x128xbf16>, vector<140x128xf32> -> vector<140x128xf32>
    %19 = arith.addf %13, %18 : vector<140x128xf32>
    %c1 = arith.constant 1 : index
    %c0_19 = arith.constant 0 : index
    %20 = vector.load %arg15[%c1, %c0_19] : memref<200x128xf32, #tpu.memory_space<vmem>>, vector<140x128xf32>
    %21 = arith.truncf %20 : vector<140x128xf32> to vector<140x128xbf16>
    %c1_20 = arith.constant 1 : index
    %c0_21 = arith.constant 0 : index
    %c0_22 = arith.constant 0 : index
    %22 = vector.load %arg5[%c1_20, %c0_21, %c0_22] : memref<25x128x128xbf16, #tpu.memory_space<vmem>>, vector<1x128x128xbf16>
    %23 = vector.shape_cast %22 : vector<1x128x128xbf16> to vector<128x128xbf16>
    %cst_23 = arith.constant dense<0.000000e+00> : vector<140x128xf32>
    %24 = tpu.matmul %21, %23, %cst_23 {dimension_numbers = #tpu.dot_dimension_numbers<[1], [0], [0], [1], [0, 0, 1, 1], [], []>} : vector<140x128xbf16>, vector<128x128xbf16>, vector<140x128xf32> -> vector<140x128xf32>
    %25 = arith.addf %19, %24 : vector<140x128xf32>
    %c2 = arith.constant 2 : index
    %c0_24 = arith.constant 0 : index
    %26 = vector.load %arg15[%c2, %c0_24] : memref<200x128xf32, #tpu.memory_space<vmem>>, vector<140x128xf32>
    %27 = arith.truncf %26 : vector<140x128xf32> to vector<140x128xbf16>
    %c2_25 = arith.constant 2 : index
    %c0_26 = arith.constant 0 : index
    %c0_27 = arith.constant 0 : index
    %28 = vector.load %arg5[%c2_25, %c0_26, %c0_27] : memref<25x128x128xbf16, #tpu.memory_space<vmem>>, vector<1x128x128xbf16>
    %29 = vector.shape_cast %28 : vector<1x128x128xbf16> to vector<128x128xbf16>
    %cst_28 = arith.constant dense<0.000000e+00> : vector<140x128xf32>
    %30 = tpu.matmul %27, %29, %cst_28 {dimension_numbers = #tpu.dot_dimension_numbers<[1], [0], [0], [1], [0, 0, 1, 1], [], []>} : vector<140x128xbf16>, vector<128x128xbf16>, vector<140x128xf32> -> vector<140x128xf32>
    %31 = arith.addf %25, %30 : vector<140x128xf32>
    %c3 = arith.constant 3 : index
    %c0_29 = arith.constant 0 : index
    %32 = vector.load %arg15[%c3, %c0_29] : memref<200x128xf32, #tpu.memory_space<vmem>>, vector<140x128xf32>
    %33 = arith.truncf %32 : vector<140x128xf32> to vector<140x128xbf16>
    %c3_30 = arith.constant 3 : index
    %c0_31 = arith.constant 0 : index
    %c0_32 = arith.constant 0 : index
    %34 = vector.load %arg5[%c3_30, %c0_31, %c0_32] : memref<25x128x128xbf16, #tpu.memory_space<vmem>>, vector<1x128x128xbf16>
    %35 = vector.shape_cast %34 : vector<1x128x128xbf16> to vector<128x128xbf16>
    %cst_33 = arith.constant dense<0.000000e+00> : vector<140x128xf32>
    %36 = tpu.matmul %33, %35, %cst_33 {dimension_numbers = #tpu.dot_dimension_numbers<[1], [0], [0], [1], [0, 0, 1, 1], [], []>} : vector<140x128xbf16>, vector<128x128xbf16>, vector<140x128xf32> -> vector<140x128xf32>
    %37 = arith.addf %31, %36 : vector<140x128xf32>
    %c4 = arith.constant 4 : index
    %c0_34 = arith.constant 0 : index
    %38 = vector.load %arg15[%c4, %c0_34] : memref<200x128xf32, #tpu.memory_space<vmem>>, vector<140x128xf32>
    %39 = arith.truncf %38 : vector<140x128xf32> to vector<140x128xbf16>
    %c4_35 = arith.constant 4 : index
    %c0_36 = arith.constant 0 : index
    %c0_37 = arith.constant 0 : index
    %40 = vector.load %arg5[%c4_35, %c0_36, %c0_37] : memref<25x128x128xbf16, #tpu.memory_space<vmem>>, vector<1x128x128xbf16>
    %41 = vector.shape_cast %40 : vector<1x128x128xbf16> to vector<128x128xbf16>
    %cst_38 = arith.constant dense<0.000000e+00> : vector<140x128xf32>
    %42 = tpu.matmul %39, %41, %cst_38 {dimension_numbers = #tpu.dot_dimension_numbers<[1], [0], [0], [1], [0, 0, 1, 1], [], []>} : vector<140x128xbf16>, vector<128x128xbf16>, vector<140x128xf32> -> vector<140x128xf32>
    %43 = arith.addf %37, %42 : vector<140x128xf32>
    %c14 = arith.constant 14 : index
    %c0_39 = arith.constant 0 : index
    %44 = vector.load %arg15[%c14, %c0_39] : memref<200x128xf32, #tpu.memory_space<vmem>>, vector<140x128xf32>
    %45 = arith.truncf %44 : vector<140x128xf32> to vector<140x128xbf16>
    %c5 = arith.constant 5 : index
    %c0_40 = arith.constant 0 : index
    %c0_41 = arith.constant 0 : index
    %46 = vector.load %arg5[%c5, %c0_40, %c0_41] : memref<25x128x128xbf16, #tpu.memory_space<vmem>>, vector<1x128x128xbf16>
    %47 = vector.shape_cast %46 : vector<1x128x128xbf16> to vector<128x128xbf16>
    %cst_42 = arith.constant dense<0.000000e+00> : vector<140x128xf32>
    %48 = tpu.matmul %45, %47, %cst_42 {dimension_numbers = #tpu.dot_dimension_numbers<[1], [0], [0], [1], [0, 0, 1, 1], [], []>} : vector<140x128xbf16>, vector<128x128xbf16>, vector<140x128xf32> -> vector<140x128xf32>
    %49 = arith.addf %43, %48 : vector<140x128xf32>
    %c15 = arith.constant 15 : index
    %c0_43 = arith.constant 0 : index
    %50 = vector.load %arg15[%c15, %c0_43] : memref<200x128xf32, #tpu.memory_space<vmem>>, vector<140x128xf32>
    %51 = arith.truncf %50 : vector<140x128xf32> to vector<140x128xbf16>
    %c6 = arith.constant 6 : index
    %c0_44 = arith.constant 0 : index
    %c0_45 = arith.constant 0 : index
    %52 = vector.load %arg5[%c6, %c0_44, %c0_45] : memref<25x128x128xbf16, #tpu.memory_space<vmem>>, vector<1x128x128xbf16>
    %53 = vector.shape_cast %52 : vector<1x128x128xbf16> to vector<128x128xbf16>
    %cst_46 = arith.constant dense<0.000000e+00> : vector<140x128xf32>
    %54 = tpu.matmul %51, %53, %cst_46 {dimension_numbers = #tpu.dot_dimension_numbers<[1], [0], [0], [1], [0, 0, 1, 1], [], []>} : vector<140x128xbf16>, vector<128x128xbf16>, vector<140x128xf32> -> vector<140x128xf32>
    %55 = arith.addf %49, %54 : vector<140x128xf32>
    %c16 = arith.constant 16 : index
    %c0_47 = arith.constant 0 : index
    %56 = vector.load %arg15[%c16, %c0_47] : memref<200x128xf32, #tpu.memory_space<vmem>>, vector<140x128xf32>
    %57 = arith.truncf %56 : vector<140x128xf32> to vector<140x128xbf16>
    %c7 = arith.constant 7 : index
    %c0_48 = arith.constant 0 : index
    %c0_49 = arith.constant 0 : index
    %58 = vector.load %arg5[%c7, %c0_48, %c0_49] : memref<25x128x128xbf16, #tpu.memory_space<vmem>>, vector<1x128x128xbf16>
    %59 = vector.shape_cast %58 : vector<1x128x128xbf16> to vector<128x128xbf16>
    %cst_50 = arith.constant dense<0.000000e+00> : vector<140x128xf32>
    %60 = tpu.matmul %57, %59, %cst_50 {dimension_numbers = #tpu.dot_dimension_numbers<[1], [0], [0], [1], [0, 0, 1, 1], [], []>} : vector<140x128xbf16>, vector<128x128xbf16>, vector<140x128xf32> -> vector<140x128xf32>
    %61 = arith.addf %55, %60 : vector<140x128xf32>
    %c17 = arith.constant 17 : index
    %c0_51 = arith.constant 0 : index
    %62 = vector.load %arg15[%c17, %c0_51] : memref<200x128xf32, #tpu.memory_space<vmem>>, vector<140x128xf32>
    %63 = arith.truncf %62 : vector<140x128xf32> to vector<140x128xbf16>
    %c8 = arith.constant 8 : index
    %c0_52 = arith.constant 0 : index
    %c0_53 = arith.constant 0 : index
    %64 = vector.load %arg5[%c8, %c0_52, %c0_53] : memref<25x128x128xbf16, #tpu.memory_space<vmem>>, vector<1x128x128xbf16>
    %65 = vector.shape_cast %64 : vector<1x128x128xbf16> to vector<128x128xbf16>
    %cst_54 = arith.constant dense<0.000000e+00> : vector<140x128xf32>
    %66 = tpu.matmul %63, %65, %cst_54 {dimension_numbers = #tpu.dot_dimension_numbers<[1], [0], [0], [1], [0, 0, 1, 1], [], []>} : vector<140x128xbf16>, vector<128x128xbf16>, vector<140x128xf32> -> vector<140x128xf32>
    %67 = arith.addf %61, %66 : vector<140x128xf32>
    %c18 = arith.constant 18 : index
    %c0_55 = arith.constant 0 : index
    %68 = vector.load %arg15[%c18, %c0_55] : memref<200x128xf32, #tpu.memory_space<vmem>>, vector<140x128xf32>
    %69 = arith.truncf %68 : vector<140x128xf32> to vector<140x128xbf16>
    %c9 = arith.constant 9 : index
    %c0_56 = arith.constant 0 : index
    %c0_57 = arith.constant 0 : index
    %70 = vector.load %arg5[%c9, %c0_56, %c0_57] : memref<25x128x128xbf16, #tpu.memory_space<vmem>>, vector<1x128x128xbf16>
    %71 = vector.shape_cast %70 : vector<1x128x128xbf16> to vector<128x128xbf16>
    %cst_58 = arith.constant dense<0.000000e+00> : vector<140x128xf32>
    %72 = tpu.matmul %69, %71, %cst_58 {dimension_numbers = #tpu.dot_dimension_numbers<[1], [0], [0], [1], [0, 0, 1, 1], [], []>} : vector<140x128xbf16>, vector<128x128xbf16>, vector<140x128xf32> -> vector<140x128xf32>
    %73 = arith.addf %67, %72 : vector<140x128xf32>
    %c28 = arith.constant 28 : index
    %c0_59 = arith.constant 0 : index
    %74 = vector.load %arg15[%c28, %c0_59] : memref<200x128xf32, #tpu.memory_space<vmem>>, vector<140x128xf32>
    %75 = arith.truncf %74 : vector<140x128xf32> to vector<140x128xbf16>
    %c10 = arith.constant 10 : index
    %c0_60 = arith.constant 0 : index
    %c0_61 = arith.constant 0 : index
    %76 = vector.load %arg5[%c10, %c0_60, %c0_61] : memref<25x128x128xbf16, #tpu.memory_space<vmem>>, vector<1x128x128xbf16>
    %77 = vector.shape_cast %76 : vector<1x128x128xbf16> to vector<128x128xbf16>
    %cst_62 = arith.constant dense<0.000000e+00> : vector<140x128xf32>
    %78 = tpu.matmul %75, %77, %cst_62 {dimension_numbers = #tpu.dot_dimension_numbers<[1], [0], [0], [1], [0, 0, 1, 1], [], []>} : vector<140x128xbf16>, vector<128x128xbf16>, vector<140x128xf32> -> vector<140x128xf32>
    %79 = arith.addf %73, %78 : vector<140x128xf32>
    %c29 = arith.constant 29 : index
    %c0_63 = arith.constant 0 : index
    %80 = vector.load %arg15[%c29, %c0_63] : memref<200x128xf32, #tpu.memory_space<vmem>>, vector<140x128xf32>
    %81 = arith.truncf %80 : vector<140x128xf32> to vector<140x128xbf16>
    %c11 = arith.constant 11 : index
    %c0_64 = arith.constant 0 : index
    %c0_65 = arith.constant 0 : index
    %82 = vector.load %arg5[%c11, %c0_64, %c0_65] : memref<25x128x128xbf16, #tpu.memory_space<vmem>>, vector<1x128x128xbf16>
    %83 = vector.shape_cast %82 : vector<1x128x128xbf16> to vector<128x128xbf16>
    %cst_66 = arith.constant dense<0.000000e+00> : vector<140x128xf32>
    %84 = tpu.matmul %81, %83, %cst_66 {dimension_numbers = #tpu.dot_dimension_numbers<[1], [0], [0], [1], [0, 0, 1, 1], [], []>} : vector<140x128xbf16>, vector<128x128xbf16>, vector<140x128xf32> -> vector<140x128xf32>
    %85 = arith.addf %79, %84 : vector<140x128xf32>
    %c30 = arith.constant 30 : index
    %c0_67 = arith.constant 0 : index
    %86 = vector.load %arg15[%c30, %c0_67] : memref<200x128xf32, #tpu.memory_space<vmem>>, vector<140x128xf32>
    %87 = arith.truncf %86 : vector<140x128xf32> to vector<140x128xbf16>
    %c12 = arith.constant 12 : index
    %c0_68 = arith.constant 0 : index
    %c0_69 = arith.constant 0 : index
    %88 = vector.load %arg5[%c12, %c0_68, %c0_69] : memref<25x128x128xbf16, #tpu.memory_space<vmem>>, vector<1x128x128xbf16>
    %89 = vector.shape_cast %88 : vector<1x128x128xbf16> to vector<128x128xbf16>
    %cst_70 = arith.constant dense<0.000000e+00> : vector<140x128xf32>
    %90 = tpu.matmul %87, %89, %cst_70 {dimension_numbers = #tpu.dot_dimension_numbers<[1], [0], [0], [1], [0, 0, 1, 1], [], []>} : vector<140x128xbf16>, vector<128x128xbf16>, vector<140x128xf32> -> vector<140x128xf32>
    %91 = arith.addf %85, %90 : vector<140x128xf32>
    %c31 = arith.constant 31 : index
    %c0_71 = arith.constant 0 : index
    %92 = vector.load %arg15[%c31, %c0_71] : memref<200x128xf32, #tpu.memory_space<vmem>>, vector<140x128xf32>
    %93 = arith.truncf %92 : vector<140x128xf32> to vector<140x128xbf16>
    %c13 = arith.constant 13 : index
    %c0_72 = arith.constant 0 : index
    %c0_73 = arith.constant 0 : index
    %94 = vector.load %arg5[%c13, %c0_72, %c0_73] : memref<25x128x128xbf16, #tpu.memory_space<vmem>>, vector<1x128x128xbf16>
    %95 = vector.shape_cast %94 : vector<1x128x128xbf16> to vector<128x128xbf16>
    %cst_74 = arith.constant dense<0.000000e+00> : vector<140x128xf32>
    %96 = tpu.matmul %93, %95, %cst_74 {dimension_numbers = #tpu.dot_dimension_numbers<[1], [0], [0], [1], [0, 0, 1, 1], [], []>} : vector<140x128xbf16>, vector<128x128xbf16>, vector<140x128xf32> -> vector<140x128xf32>
    %97 = arith.addf %91, %96 : vector<140x128xf32>
    %c32 = arith.constant 32 : index
    %c0_75 = arith.constant 0 : index
    %98 = vector.load %arg15[%c32, %c0_75] : memref<200x128xf32, #tpu.memory_space<vmem>>, vector<140x128xf32>
    %99 = arith.truncf %98 : vector<140x128xf32> to vector<140x128xbf16>
    %c14_76 = arith.constant 14 : index
    %c0_77 = arith.constant 0 : index
    %c0_78 = arith.constant 0 : index
    %100 = vector.load %arg5[%c14_76, %c0_77, %c0_78] : memref<25x128x128xbf16, #tpu.memory_space<vmem>>, vector<1x128x128xbf16>
    %101 = vector.shape_cast %100 : vector<1x128x128xbf16> to vector<128x128xbf16>
    %cst_79 = arith.constant dense<0.000000e+00> : vector<140x128xf32>
    %102 = tpu.matmul %99, %101, %cst_79 {dimension_numbers = #tpu.dot_dimension_numbers<[1], [0], [0], [1], [0, 0, 1, 1], [], []>} : vector<140x128xbf16>, vector<128x128xbf16>, vector<140x128xf32> -> vector<140x128xf32>
    %103 = arith.addf %97, %102 : vector<140x128xf32>
    %c42 = arith.constant 42 : index
    %c0_80 = arith.constant 0 : index
    %104 = vector.load %arg15[%c42, %c0_80] : memref<200x128xf32, #tpu.memory_space<vmem>>, vector<140x128xf32>
    %105 = arith.truncf %104 : vector<140x128xf32> to vector<140x128xbf16>
    %c15_81 = arith.constant 15 : index
    %c0_82 = arith.constant 0 : index
    %c0_83 = arith.constant 0 : index
    %106 = vector.load %arg5[%c15_81, %c0_82, %c0_83] : memref<25x128x128xbf16, #tpu.memory_space<vmem>>, vector<1x128x128xbf16>
    %107 = vector.shape_cast %106 : vector<1x128x128xbf16> to vector<128x128xbf16>
    %cst_84 = arith.constant dense<0.000000e+00> : vector<140x128xf32>
    %108 = tpu.matmul %105, %107, %cst_84 {dimension_numbers = #tpu.dot_dimension_numbers<[1], [0], [0], [1], [0, 0, 1, 1], [], []>} : vector<140x128xbf16>, vector<128x128xbf16>, vector<140x128xf32> -> vector<140x128xf32>
    %109 = arith.addf %103, %108 : vector<140x128xf32>
    %c43 = arith.constant 43 : index
    %c0_85 = arith.constant 0 : index
    %110 = vector.load %arg15[%c43, %c0_85] : memref<200x128xf32, #tpu.memory_space<vmem>>, vector<140x128xf32>
    %111 = arith.truncf %110 : vector<140x128xf32> to vector<140x128xbf16>
    %c16_86 = arith.constant 16 : index
    %c0_87 = arith.constant 0 : index
    %c0_88 = arith.constant 0 : index
    %112 = vector.load %arg5[%c16_86, %c0_87, %c0_88] : memref<25x128x128xbf16, #tpu.memory_space<vmem>>, vector<1x128x128xbf16>
    %113 = vector.shape_cast %112 : vector<1x128x128xbf16> to vector<128x128xbf16>
    %cst_89 = arith.constant dense<0.000000e+00> : vector<140x128xf32>
    %114 = tpu.matmul %111, %113, %cst_89 {dimension_numbers = #tpu.dot_dimension_numbers<[1], [0], [0], [1], [0, 0, 1, 1], [], []>} : vector<140x128xbf16>, vector<128x128xbf16>, vector<140x128xf32> -> vector<140x128xf32>
    %115 = arith.addf %109, %114 : vector<140x128xf32>
    %c44 = arith.constant 44 : index
    %c0_90 = arith.constant 0 : index
    %116 = vector.load %arg15[%c44, %c0_90] : memref<200x128xf32, #tpu.memory_space<vmem>>, vector<140x128xf32>
    %117 = arith.truncf %116 : vector<140x128xf32> to vector<140x128xbf16>
    %c17_91 = arith.constant 17 : index
    %c0_92 = arith.constant 0 : index
    %c0_93 = arith.constant 0 : index
    %118 = vector.load %arg5[%c17_91, %c0_92, %c0_93] : memref<25x128x128xbf16, #tpu.memory_space<vmem>>, vector<1x128x128xbf16>
    %119 = vector.shape_cast %118 : vector<1x128x128xbf16> to vector<128x128xbf16>
    %cst_94 = arith.constant dense<0.000000e+00> : vector<140x128xf32>
    %120 = tpu.matmul %117, %119, %cst_94 {dimension_numbers = #tpu.dot_dimension_numbers<[1], [0], [0], [1], [0, 0, 1, 1], [], []>} : vector<140x128xbf16>, vector<128x128xbf16>, vector<140x128xf32> -> vector<140x128xf32>
    %121 = arith.addf %115, %120 : vector<140x128xf32>
    %c45 = arith.constant 45 : index
    %c0_95 = arith.constant 0 : index
    %122 = vector.load %arg15[%c45, %c0_95] : memref<200x128xf32, #tpu.memory_space<vmem>>, vector<140x128xf32>
    %123 = arith.truncf %122 : vector<140x128xf32> to vector<140x128xbf16>
    %c18_96 = arith.constant 18 : index
    %c0_97 = arith.constant 0 : index
    %c0_98 = arith.constant 0 : index
    %124 = vector.load %arg5[%c18_96, %c0_97, %c0_98] : memref<25x128x128xbf16, #tpu.memory_space<vmem>>, vector<1x128x128xbf16>
    %125 = vector.shape_cast %124 : vector<1x128x128xbf16> to vector<128x128xbf16>
    %cst_99 = arith.constant dense<0.000000e+00> : vector<140x128xf32>
    %126 = tpu.matmul %123, %125, %cst_99 {dimension_numbers = #tpu.dot_dimension_numbers<[1], [0], [0], [1], [0, 0, 1, 1], [], []>} : vector<140x128xbf16>, vector<128x128xbf16>, vector<140x128xf32> -> vector<140x128xf32>
    %127 = arith.addf %121, %126 : vector<140x128xf32>
    %c46 = arith.constant 46 : index
    %c0_100 = arith.constant 0 : index
    %128 = vector.load %arg15[%c46, %c0_100] : memref<200x128xf32, #tpu.memory_space<vmem>>, vector<140x128xf32>
    %129 = arith.truncf %128 : vector<140x128xf32> to vector<140x128xbf16>
    %c19 = arith.constant 19 : index
    %c0_101 = arith.constant 0 : index
    %c0_102 = arith.constant 0 : index
    %130 = vector.load %arg5[%c19, %c0_101, %c0_102] : memref<25x128x128xbf16, #tpu.memory_space<vmem>>, vector<1x128x128xbf16>
    %131 = vector.shape_cast %130 : vector<1x128x128xbf16> to vector<128x128xbf16>
    %cst_103 = arith.constant dense<0.000000e+00> : vector<140x128xf32>
    %132 = tpu.matmul %129, %131, %cst_103 {dimension_numbers = #tpu.dot_dimension_numbers<[1], [0], [0], [1], [0, 0, 1, 1], [], []>} : vector<140x128xbf16>, vector<128x128xbf16>, vector<140x128xf32> -> vector<140x128xf32>
    %133 = arith.addf %127, %132 : vector<140x128xf32>
    %c56 = arith.constant 56 : index
    %c0_104 = arith.constant 0 : index
    %134 = vector.load %arg15[%c56, %c0_104] : memref<200x128xf32, #tpu.memory_space<vmem>>, vector<140x128xf32>
    %135 = arith.truncf %134 : vector<140x128xf32> to vector<140x128xbf16>
    %c20 = arith.constant 20 : index
    %c0_105 = arith.constant 0 : index
    %c0_106 = arith.constant 0 : index
    %136 = vector.load %arg5[%c20, %c0_105, %c0_106] : memref<25x128x128xbf16, #tpu.memory_space<vmem>>, vector<1x128x128xbf16>
    %137 = vector.shape_cast %136 : vector<1x128x128xbf16> to vector<128x128xbf16>
    %cst_107 = arith.constant dense<0.000000e+00> : vector<140x128xf32>
    %138 = tpu.matmul %135, %137, %cst_107 {dimension_numbers = #tpu.dot_dimension_numbers<[1], [0], [0], [1], [0, 0, 1, 1], [], []>} : vector<140x128xbf16>, vector<128x128xbf16>, vector<140x128xf32> -> vector<140x128xf32>
    %139 = arith.addf %133, %138 : vector<140x128xf32>
    %c57 = arith.constant 57 : index
    %c0_108 = arith.constant 0 : index
    %140 = vector.load %arg15[%c57, %c0_108] : memref<200x128xf32, #tpu.memory_space<vmem>>, vector<140x128xf32>
    %141 = arith.truncf %140 : vector<140x128xf32> to vector<140x128xbf16>
    %c21 = arith.constant 21 : index
    %c0_109 = arith.constant 0 : index
    %c0_110 = arith.constant 0 : index
    %142 = vector.load %arg5[%c21, %c0_109, %c0_110] : memref<25x128x128xbf16, #tpu.memory_space<vmem>>, vector<1x128x128xbf16>
    %143 = vector.shape_cast %142 : vector<1x128x128xbf16> to vector<128x128xbf16>
    %cst_111 = arith.constant dense<0.000000e+00> : vector<140x128xf32>
    %144 = tpu.matmul %141, %143, %cst_111 {dimension_numbers = #tpu.dot_dimension_numbers<[1], [0], [0], [1], [0, 0, 1, 1], [], []>} : vector<140x128xbf16>, vector<128x128xbf16>, vector<140x128xf32> -> vector<140x128xf32>
    %145 = arith.addf %139, %144 : vector<140x128xf32>
    %c58 = arith.constant 58 : index
    %c0_112 = arith.constant 0 : index
    %146 = vector.load %arg15[%c58, %c0_112] : memref<200x128xf32, #tpu.memory_space<vmem>>, vector<140x128xf32>
    %147 = arith.truncf %146 : vector<140x128xf32> to vector<140x128xbf16>
    %c22 = arith.constant 22 : index
    %c0_113 = arith.constant 0 : index
    %c0_114 = arith.constant 0 : index
    %148 = vector.load %arg5[%c22, %c0_113, %c0_114] : memref<25x128x128xbf16, #tpu.memory_space<vmem>>, vector<1x128x128xbf16>
    %149 = vector.shape_cast %148 : vector<1x128x128xbf16> to vector<128x128xbf16>
    %cst_115 = arith.constant dense<0.000000e+00> : vector<140x128xf32>
    %150 = tpu.matmul %147, %149, %cst_115 {dimension_numbers = #tpu.dot_dimension_numbers<[1], [0], [0], [1], [0, 0, 1, 1], [], []>} : vector<140x128xbf16>, vector<128x128xbf16>, vector<140x128xf32> -> vector<140x128xf32>
    %151 = arith.addf %145, %150 : vector<140x128xf32>
    %c59 = arith.constant 59 : index
    %c0_116 = arith.constant 0 : index
    %152 = vector.load %arg15[%c59, %c0_116] : memref<200x128xf32, #tpu.memory_space<vmem>>, vector<140x128xf32>
    %153 = arith.truncf %152 : vector<140x128xf32> to vector<140x128xbf16>
    %c23 = arith.constant 23 : index
    %c0_117 = arith.constant 0 : index
    %c0_118 = arith.constant 0 : index
    %154 = vector.load %arg5[%c23, %c0_117, %c0_118] : memref<25x128x128xbf16, #tpu.memory_space<vmem>>, vector<1x128x128xbf16>
    %155 = vector.shape_cast %154 : vector<1x128x128xbf16> to vector<128x128xbf16>
    %cst_119 = arith.constant dense<0.000000e+00> : vector<140x128xf32>
    %156 = tpu.matmul %153, %155, %cst_119 {dimension_numbers = #tpu.dot_dimension_numbers<[1], [0], [0], [1], [0, 0, 1, 1], [], []>} : vector<140x128xbf16>, vector<128x128xbf16>, vector<140x128xf32> -> vector<140x128xf32>
    %157 = arith.addf %151, %156 : vector<140x128xf32>
    %c60 = arith.constant 60 : index
    %c0_120 = arith.constant 0 : index
    %158 = vector.load %arg15[%c60, %c0_120] : memref<200x128xf32, #tpu.memory_space<vmem>>, vector<140x128xf32>
    %159 = arith.truncf %158 : vector<140x128xf32> to vector<140x128xbf16>
    %c24 = arith.constant 24 : index
    %c0_121 = arith.constant 0 : index
    %c0_122 = arith.constant 0 : index
    %160 = vector.load %arg5[%c24, %c0_121, %c0_122] : memref<25x128x128xbf16, #tpu.memory_space<vmem>>, vector<1x128x128xbf16>
    %161 = vector.shape_cast %160 : vector<1x128x128xbf16> to vector<128x128xbf16>
    %cst_123 = arith.constant dense<0.000000e+00> : vector<140x128xf32>
    %162 = tpu.matmul %159, %161, %cst_123 {dimension_numbers = #tpu.dot_dimension_numbers<[1], [0], [0], [1], [0, 0, 1, 1], [], []>} : vector<140x128xbf16>, vector<128x128xbf16>, vector<140x128xf32> -> vector<140x128xf32>
    %163 = arith.addf %157, %162 : vector<140x128xf32>
    %c0_124 = arith.constant 0 : index
    %c0_125 = arith.constant 0 : index
    %164 = vector.load %arg6[%c0_124, %c0_125] : memref<1x128xf32, #tpu.memory_space<vmem>>, vector<1x128xf32>
    %165 = vector.broadcast %164 : vector<1x128xf32> to vector<140x128xf32>
    %166 = arith.addf %163, %165 : vector<140x128xf32>
    %cst_126 = arith.constant 0.000000e+00 : f32
    %167 = vector.broadcast %cst_126 : f32 to vector<140x128xf32>
    %168 = arith.maximumf %166, %167 : vector<140x128xf32>
    %169 = arith.truncf %168 : vector<140x128xf32> to vector<140x128xbf16>
    %c0_127 = arith.constant 0 : index
    %c0_128 = arith.constant 0 : index
    %170 = vector.load %arg7[%c0_127, %c0_128] : memref<25x140xbf16, #tpu.memory_space<vmem>>, vector<25x140xbf16>
    %cst_129 = arith.constant dense<0.000000e+00> : vector<25x128xf32>
    %171 = tpu.matmul %170, %169, %cst_129 {dimension_numbers = #tpu.dot_dimension_numbers<[1], [0], [0], [1], [0, 0, 1, 1], [], []>} : vector<25x140xbf16>, vector<140x128xbf16>, vector<25x128xf32> -> vector<25x128xf32>
    %c0_130 = arith.constant 0 : index
    %c0_131 = arith.constant 0 : index
    %172 = vector.load %arg16[%c0_130, %c0_131] : memref<25x128xf32, #tpu.memory_space<vmem>>, vector<25x128xf32>
    tpu.vector_store %arg16[%c0_130, %c0_131], %171 {strides = array<i32>} : memref<25x128xf32, #tpu.memory_space<vmem>>, vector<25x128xf32>,
    %cst_132 = arith.constant 0.000000e+00 : f32
    %173 = vector.broadcast %cst_132 : f32 to vector<1x128xf32>
    %c0_133 = arith.constant 0 : index
    %c0_134 = arith.constant 0 : index
    %174 = vector.load %arg16[%c0_133, %c0_134] : memref<25x128xf32, #tpu.memory_space<vmem>>, vector<1x128xf32>
    %175 = arith.truncf %174 : vector<1x128xf32> to vector<1x128xbf16>
    %c0_135 = arith.constant 0 : index
    %c0_136 = arith.constant 0 : index
    %c0_137 = arith.constant 0 : index
    %176 = vector.load %arg8[%c0_135, %c0_136, %c0_137] : memref<25x128x128xbf16, #tpu.memory_space<vmem>>, vector<1x128x128xbf16>
    %177 = vector.shape_cast %176 : vector<1x128x128xbf16> to vector<128x128xbf16>
    %cst_138 = arith.constant dense<0.000000e+00> : vector<1x128xf32>
    %178 = tpu.matmul %175, %177, %cst_138 {dimension_numbers = #tpu.dot_dimension_numbers<[1], [0], [0], [1], [0, 0, 1, 1], [], []>} : vector<1x128xbf16>, vector<128x128xbf16>, vector<1x128xf32> -> vector<1x128xf32>
    %179 = arith.addf %173, %178 : vector<1x128xf32>
    %c1_139 = arith.constant 1 : index
    %c0_140 = arith.constant 0 : index
    %180 = vector.load %arg16[%c1_139, %c0_140] : memref<25x128xf32, #tpu.memory_space<vmem>>, vector<1x128xf32>
    %181 = arith.truncf %180 : vector<1x128xf32> to vector<1x128xbf16>
    %c1_141 = arith.constant 1 : index
    %c0_142 = arith.constant 0 : index
    %c0_143 = arith.constant 0 : index
    %182 = vector.load %arg8[%c1_141, %c0_142, %c0_143] : memref<25x128x128xbf16, #tpu.memory_space<vmem>>, vector<1x128x128xbf16>
    %183 = vector.shape_cast %182 : vector<1x128x128xbf16> to vector<128x128xbf16>
    %cst_144 = arith.constant dense<0.000000e+00> : vector<1x128xf32>
    %184 = tpu.matmul %181, %183, %cst_144 {dimension_numbers = #tpu.dot_dimension_numbers<[1], [0], [0], [1], [0, 0, 1, 1], [], []>} : vector<1x128xbf16>, vector<128x128xbf16>, vector<1x128xf32> -> vector<1x128xf32>
    %185 = arith.addf %179, %184 : vector<1x128xf32>
    %c2_145 = arith.constant 2 : index
    %c0_146 = arith.constant 0 : index
    %186 = vector.load %arg16[%c2_145, %c0_146] : memref<25x128xf32, #tpu.memory_space<vmem>>, vector<1x128xf32>
    %187 = arith.truncf %186 : vector<1x128xf32> to vector<1x128xbf16>
    %c2_147 = arith.constant 2 : index
    %c0_148 = arith.constant 0 : index
    %c0_149 = arith.constant 0 : index
    %188 = vector.load %arg8[%c2_147, %c0_148, %c0_149] : memref<25x128x128xbf16, #tpu.memory_space<vmem>>, vector<1x128x128xbf16>
    %189 = vector.shape_cast %188 : vector<1x128x128xbf16> to vector<128x128xbf16>
    %cst_150 = arith.constant dense<0.000000e+00> : vector<1x128xf32>
    %190 = tpu.matmul %187, %189, %cst_150 {dimension_numbers = #tpu.dot_dimension_numbers<[1], [0], [0], [1], [0, 0, 1, 1], [], []>} : vector<1x128xbf16>, vector<128x128xbf16>, vector<1x128xf32> -> vector<1x128xf32>
    %191 = arith.addf %185, %190 : vector<1x128xf32>
    %c3_151 = arith.constant 3 : index
    %c0_152 = arith.constant 0 : index
    %192 = vector.load %arg16[%c3_151, %c0_152] : memref<25x128xf32, #tpu.memory_space<vmem>>, vector<1x128xf32>
    %193 = arith.truncf %192 : vector<1x128xf32> to vector<1x128xbf16>
    %c3_153 = arith.constant 3 : index
    %c0_154 = arith.constant 0 : index
    %c0_155 = arith.constant 0 : index
    %194 = vector.load %arg8[%c3_153, %c0_154, %c0_155] : memref<25x128x128xbf16, #tpu.memory_space<vmem>>, vector<1x128x128xbf16>
    %195 = vector.shape_cast %194 : vector<1x128x128xbf16> to vector<128x128xbf16>
    %cst_156 = arith.constant dense<0.000000e+00> : vector<1x128xf32>
    %196 = tpu.matmul %193, %195, %cst_156 {dimension_numbers = #tpu.dot_dimension_numbers<[1], [0], [0], [1], [0, 0, 1, 1], [], []>} : vector<1x128xbf16>, vector<128x128xbf16>, vector<1x128xf32> -> vector<1x128xf32>
    %197 = arith.addf %191, %196 : vector<1x128xf32>
    %c4_157 = arith.constant 4 : index
    %c0_158 = arith.constant 0 : index
    %198 = vector.load %arg16[%c4_157, %c0_158] : memref<25x128xf32, #tpu.memory_space<vmem>>, vector<1x128xf32>
    %199 = arith.truncf %198 : vector<1x128xf32> to vector<1x128xbf16>
    %c4_159 = arith.constant 4 : index
    %c0_160 = arith.constant 0 : index
    %c0_161 = arith.constant 0 : index
    %200 = vector.load %arg8[%c4_159, %c0_160, %c0_161] : memref<25x128x128xbf16, #tpu.memory_space<vmem>>, vector<1x128x128xbf16>
    %201 = vector.shape_cast %200 : vector<1x128x128xbf16> to vector<128x128xbf16>
    %cst_162 = arith.constant dense<0.000000e+00> : vector<1x128xf32>
    %202 = tpu.matmul %199, %201, %cst_162 {dimension_numbers = #tpu.dot_dimension_numbers<[1], [0], [0], [1], [0, 0, 1, 1], [], []>} : vector<1x128xbf16>, vector<128x128xbf16>, vector<1x128xf32> -> vector<1x128xf32>
    %203 = arith.addf %197, %202 : vector<1x128xf32>
    %c5_163 = arith.constant 5 : index
    %c0_164 = arith.constant 0 : index
    %204 = vector.load %arg16[%c5_163, %c0_164] : memref<25x128xf32, #tpu.memory_space<vmem>>, vector<1x128xf32>
    %205 = arith.truncf %204 : vector<1x128xf32> to vector<1x128xbf16>
    %c5_165 = arith.constant 5 : index
    %c0_166 = arith.constant 0 : index
    %c0_167 = arith.constant 0 : index
    %206 = vector.load %arg8[%c5_165, %c0_166, %c0_167] : memref<25x128x128xbf16, #tpu.memory_space<vmem>>, vector<1x128x128xbf16>
    %207 = vector.shape_cast %206 : vector<1x128x128xbf16> to vector<128x128xbf16>
    %cst_168 = arith.constant dense<0.000000e+00> : vector<1x128xf32>
    %208 = tpu.matmul %205, %207, %cst_168 {dimension_numbers = #tpu.dot_dimension_numbers<[1], [0], [0], [1], [0, 0, 1, 1], [], []>} : vector<1x128xbf16>, vector<128x128xbf16>, vector<1x128xf32> -> vector<1x128xf32>
    %209 = arith.addf %203, %208 : vector<1x128xf32>
    %c6_169 = arith.constant 6 : index
    %c0_170 = arith.constant 0 : index
    %210 = vector.load %arg16[%c6_169, %c0_170] : memref<25x128xf32, #tpu.memory_space<vmem>>, vector<1x128xf32>
    %211 = arith.truncf %210 : vector<1x128xf32> to vector<1x128xbf16>
    %c6_171 = arith.constant 6 : index
    %c0_172 = arith.constant 0 : index
    %c0_173 = arith.constant 0 : index
    %212 = vector.load %arg8[%c6_171, %c0_172, %c0_173] : memref<25x128x128xbf16, #tpu.memory_space<vmem>>, vector<1x128x128xbf16>
    %213 = vector.shape_cast %212 : vector<1x128x128xbf16> to vector<128x128xbf16>
    %cst_174 = arith.constant dense<0.000000e+00> : vector<1x128xf32>
    %214 = tpu.matmul %211, %213, %cst_174 {dimension_numbers = #tpu.dot_dimension_numbers<[1], [0], [0], [1], [0, 0, 1, 1], [], []>} : vector<1x128xbf16>, vector<128x128xbf16>, vector<1x128xf32> -> vector<1x128xf32>
    %215 = arith.addf %209, %214 : vector<1x128xf32>
    %c7_175 = arith.constant 7 : index
    %c0_176 = arith.constant 0 : index
    %216 = vector.load %arg16[%c7_175, %c0_176] : memref<25x128xf32, #tpu.memory_space<vmem>>, vector<1x128xf32>
    %217 = arith.truncf %216 : vector<1x128xf32> to vector<1x128xbf16>
    %c7_177 = arith.constant 7 : index
    %c0_178 = arith.constant 0 : index
    %c0_179 = arith.constant 0 : index
    %218 = vector.load %arg8[%c7_177, %c0_178, %c0_179] : memref<25x128x128xbf16, #tpu.memory_space<vmem>>, vector<1x128x128xbf16>
    %219 = vector.shape_cast %218 : vector<1x128x128xbf16> to vector<128x128xbf16>
    %cst_180 = arith.constant dense<0.000000e+00> : vector<1x128xf32>
    %220 = tpu.matmul %217, %219, %cst_180 {dimension_numbers = #tpu.dot_dimension_numbers<[1], [0], [0], [1], [0, 0, 1, 1], [], []>} : vector<1x128xbf16>, vector<128x128xbf16>, vector<1x128xf32> -> vector<1x128xf32>
    %221 = arith.addf %215, %220 : vector<1x128xf32>
    %c8_181 = arith.constant 8 : index
    %c0_182 = arith.constant 0 : index
    %222 = vector.load %arg16[%c8_181, %c0_182] : memref<25x128xf32, #tpu.memory_space<vmem>>, vector<1x128xf32>
    %223 = arith.truncf %222 : vector<1x128xf32> to vector<1x128xbf16>
    %c8_183 = arith.constant 8 : index
    %c0_184 = arith.constant 0 : index
    %c0_185 = arith.constant 0 : index
    %224 = vector.load %arg8[%c8_183, %c0_184, %c0_185] : memref<25x128x128xbf16, #tpu.memory_space<vmem>>, vector<1x128x128xbf16>
    %225 = vector.shape_cast %224 : vector<1x128x128xbf16> to vector<128x128xbf16>
    %cst_186 = arith.constant dense<0.000000e+00> : vector<1x128xf32>
    %226 = tpu.matmul %223, %225, %cst_186 {dimension_numbers = #tpu.dot_dimension_numbers<[1], [0], [0], [1], [0, 0, 1, 1], [], []>} : vector<1x128xbf16>, vector<128x128xbf16>, vector<1x128xf32> -> vector<1x128xf32>
    %227 = arith.addf %221, %226 : vector<1x128xf32>
    %c9_187 = arith.constant 9 : index
    %c0_188 = arith.constant 0 : index
    %228 = vector.load %arg16[%c9_187, %c0_188] : memref<25x128xf32, #tpu.memory_space<vmem>>, vector<1x128xf32>
    %229 = arith.truncf %228 : vector<1x128xf32> to vector<1x128xbf16>
    %c9_189 = arith.constant 9 : index
    %c0_190 = arith.constant 0 : index
    %c0_191 = arith.constant 0 : index
    %230 = vector.load %arg8[%c9_189, %c0_190, %c0_191] : memref<25x128x128xbf16, #tpu.memory_space<vmem>>, vector<1x128x128xbf16>
    %231 = vector.shape_cast %230 : vector<1x128x128xbf16> to vector<128x128xbf16>
    %cst_192 = arith.constant dense<0.000000e+00> : vector<1x128xf32>
    %232 = tpu.matmul %229, %231, %cst_192 {dimension_numbers = #tpu.dot_dimension_numbers<[1], [0], [0], [1], [0, 0, 1, 1], [], []>} : vector<1x128xbf16>, vector<128x128xbf16>, vector<1x128xf32> -> vector<1x128xf32>
    %233 = arith.addf %227, %232 : vector<1x128xf32>
    %c10_193 = arith.constant 10 : index
    %c0_194 = arith.constant 0 : index
    %234 = vector.load %arg16[%c10_193, %c0_194] : memref<25x128xf32, #tpu.memory_space<vmem>>, vector<1x128xf32>
    %235 = arith.truncf %234 : vector<1x128xf32> to vector<1x128xbf16>
    %c10_195 = arith.constant 10 : index
    %c0_196 = arith.constant 0 : index
    %c0_197 = arith.constant 0 : index
    %236 = vector.load %arg8[%c10_195, %c0_196, %c0_197] : memref<25x128x128xbf16, #tpu.memory_space<vmem>>, vector<1x128x128xbf16>
    %237 = vector.shape_cast %236 : vector<1x128x128xbf16> to vector<128x128xbf16>
    %cst_198 = arith.constant dense<0.000000e+00> : vector<1x128xf32>
    %238 = tpu.matmul %235, %237, %cst_198 {dimension_numbers = #tpu.dot_dimension_numbers<[1], [0], [0], [1], [0, 0, 1, 1], [], []>} : vector<1x128xbf16>, vector<128x128xbf16>, vector<1x128xf32> -> vector<1x128xf32>
    %239 = arith.addf %233, %238 : vector<1x128xf32>
    %c11_199 = arith.constant 11 : index
    %c0_200 = arith.constant 0 : index
    %240 = vector.load %arg16[%c11_199, %c0_200] : memref<25x128xf32, #tpu.memory_space<vmem>>, vector<1x128xf32>
    %241 = arith.truncf %240 : vector<1x128xf32> to vector<1x128xbf16>
    %c11_201 = arith.constant 11 : index
    %c0_202 = arith.constant 0 : index
    %c0_203 = arith.constant 0 : index
    %242 = vector.load %arg8[%c11_201, %c0_202, %c0_203] : memref<25x128x128xbf16, #tpu.memory_space<vmem>>, vector<1x128x128xbf16>
    %243 = vector.shape_cast %242 : vector<1x128x128xbf16> to vector<128x128xbf16>
    %cst_204 = arith.constant dense<0.000000e+00> : vector<1x128xf32>
    %244 = tpu.matmul %241, %243, %cst_204 {dimension_numbers = #tpu.dot_dimension_numbers<[1], [0], [0], [1], [0, 0, 1, 1], [], []>} : vector<1x128xbf16>, vector<128x128xbf16>, vector<1x128xf32> -> vector<1x128xf32>
    %245 = arith.addf %239, %244 : vector<1x128xf32>
    %c12_205 = arith.constant 12 : index
    %c0_206 = arith.constant 0 : index
    %246 = vector.load %arg16[%c12_205, %c0_206] : memref<25x128xf32, #tpu.memory_space<vmem>>, vector<1x128xf32>
    %247 = arith.truncf %246 : vector<1x128xf32> to vector<1x128xbf16>
    %c12_207 = arith.constant 12 : index
    %c0_208 = arith.constant 0 : index
    %c0_209 = arith.constant 0 : index
    %248 = vector.load %arg8[%c12_207, %c0_208, %c0_209] : memref<25x128x128xbf16, #tpu.memory_space<vmem>>, vector<1x128x128xbf16>
    %249 = vector.shape_cast %248 : vector<1x128x128xbf16> to vector<128x128xbf16>
    %cst_210 = arith.constant dense<0.000000e+00> : vector<1x128xf32>
    %250 = tpu.matmul %247, %249, %cst_210 {dimension_numbers = #tpu.dot_dimension_numbers<[1], [0], [0], [1], [0, 0, 1, 1], [], []>} : vector<1x128xbf16>, vector<128x128xbf16>, vector<1x128xf32> -> vector<1x128xf32>
    %251 = arith.addf %245, %250 : vector<1x128xf32>
    %c13_211 = arith.constant 13 : index
    %c0_212 = arith.constant 0 : index
    %252 = vector.load %arg16[%c13_211, %c0_212] : memref<25x128xf32, #tpu.memory_space<vmem>>, vector<1x128xf32>
    %253 = arith.truncf %252 : vector<1x128xf32> to vector<1x128xbf16>
    %c13_213 = arith.constant 13 : index
    %c0_214 = arith.constant 0 : index
    %c0_215 = arith.constant 0 : index
    %254 = vector.load %arg8[%c13_213, %c0_214, %c0_215] : memref<25x128x128xbf16, #tpu.memory_space<vmem>>, vector<1x128x128xbf16>
    %255 = vector.shape_cast %254 : vector<1x128x128xbf16> to vector<128x128xbf16>
    %cst_216 = arith.constant dense<0.000000e+00> : vector<1x128xf32>
    %256 = tpu.matmul %253, %255, %cst_216 {dimension_numbers = #tpu.dot_dimension_numbers<[1], [0], [0], [1], [0, 0, 1, 1], [], []>} : vector<1x128xbf16>, vector<128x128xbf16>, vector<1x128xf32> -> vector<1x128xf32>
    %257 = arith.addf %251, %256 : vector<1x128xf32>
    %c14_217 = arith.constant 14 : index
    %c0_218 = arith.constant 0 : index
    %258 = vector.load %arg16[%c14_217, %c0_218] : memref<25x128xf32, #tpu.memory_space<vmem>>, vector<1x128xf32>
    %259 = arith.truncf %258 : vector<1x128xf32> to vector<1x128xbf16>
    %c14_219 = arith.constant 14 : index
    %c0_220 = arith.constant 0 : index
    %c0_221 = arith.constant 0 : index
    %260 = vector.load %arg8[%c14_219, %c0_220, %c0_221] : memref<25x128x128xbf16, #tpu.memory_space<vmem>>, vector<1x128x128xbf16>
    %261 = vector.shape_cast %260 : vector<1x128x128xbf16> to vector<128x128xbf16>
    %cst_222 = arith.constant dense<0.000000e+00> : vector<1x128xf32>
    %262 = tpu.matmul %259, %261, %cst_222 {dimension_numbers = #tpu.dot_dimension_numbers<[1], [0], [0], [1], [0, 0, 1, 1], [], []>} : vector<1x128xbf16>, vector<128x128xbf16>, vector<1x128xf32> -> vector<1x128xf32>
    %263 = arith.addf %257, %262 : vector<1x128xf32>
    %c15_223 = arith.constant 15 : index
    %c0_224 = arith.constant 0 : index
    %264 = vector.load %arg16[%c15_223, %c0_224] : memref<25x128xf32, #tpu.memory_space<vmem>>, vector<1x128xf32>
    %265 = arith.truncf %264 : vector<1x128xf32> to vector<1x128xbf16>
    %c15_225 = arith.constant 15 : index
    %c0_226 = arith.constant 0 : index
    %c0_227 = arith.constant 0 : index
    %266 = vector.load %arg8[%c15_225, %c0_226, %c0_227] : memref<25x128x128xbf16, #tpu.memory_space<vmem>>, vector<1x128x128xbf16>
    %267 = vector.shape_cast %266 : vector<1x128x128xbf16> to vector<128x128xbf16>
    %cst_228 = arith.constant dense<0.000000e+00> : vector<1x128xf32>
    %268 = tpu.matmul %265, %267, %cst_228 {dimension_numbers = #tpu.dot_dimension_numbers<[1], [0], [0], [1], [0, 0, 1, 1], [], []>} : vector<1x128xbf16>, vector<128x128xbf16>, vector<1x128xf32> -> vector<1x128xf32>
    %269 = arith.addf %263, %268 : vector<1x128xf32>
    %c16_229 = arith.constant 16 : index
    %c0_230 = arith.constant 0 : index
    %270 = vector.load %arg16[%c16_229, %c0_230] : memref<25x128xf32, #tpu.memory_space<vmem>>, vector<1x128xf32>
    %271 = arith.truncf %270 : vector<1x128xf32> to vector<1x128xbf16>
    %c16_231 = arith.constant 16 : index
    %c0_232 = arith.constant 0 : index
    %c0_233 = arith.constant 0 : index
    %272 = vector.load %arg8[%c16_231, %c0_232, %c0_233] : memref<25x128x128xbf16, #tpu.memory_space<vmem>>, vector<1x128x128xbf16>
    %273 = vector.shape_cast %272 : vector<1x128x128xbf16> to vector<128x128xbf16>
    %cst_234 = arith.constant dense<0.000000e+00> : vector<1x128xf32>
    %274 = tpu.matmul %271, %273, %cst_234 {dimension_numbers = #tpu.dot_dimension_numbers<[1], [0], [0], [1], [0, 0, 1, 1], [], []>} : vector<1x128xbf16>, vector<128x128xbf16>, vector<1x128xf32> -> vector<1x128xf32>
    %275 = arith.addf %269, %274 : vector<1x128xf32>
    %c17_235 = arith.constant 17 : index
    %c0_236 = arith.constant 0 : index
    %276 = vector.load %arg16[%c17_235, %c0_236] : memref<25x128xf32, #tpu.memory_space<vmem>>, vector<1x128xf32>
    %277 = arith.truncf %276 : vector<1x128xf32> to vector<1x128xbf16>
    %c17_237 = arith.constant 17 : index
    %c0_238 = arith.constant 0 : index
    %c0_239 = arith.constant 0 : index
    %278 = vector.load %arg8[%c17_237, %c0_238, %c0_239] : memref<25x128x128xbf16, #tpu.memory_space<vmem>>, vector<1x128x128xbf16>
    %279 = vector.shape_cast %278 : vector<1x128x128xbf16> to vector<128x128xbf16>
    %cst_240 = arith.constant dense<0.000000e+00> : vector<1x128xf32>
    %280 = tpu.matmul %277, %279, %cst_240 {dimension_numbers = #tpu.dot_dimension_numbers<[1], [0], [0], [1], [0, 0, 1, 1], [], []>} : vector<1x128xbf16>, vector<128x128xbf16>, vector<1x128xf32> -> vector<1x128xf32>
    %281 = arith.addf %275, %280 : vector<1x128xf32>
    %c18_241 = arith.constant 18 : index
    %c0_242 = arith.constant 0 : index
    %282 = vector.load %arg16[%c18_241, %c0_242] : memref<25x128xf32, #tpu.memory_space<vmem>>, vector<1x128xf32>
    %283 = arith.truncf %282 : vector<1x128xf32> to vector<1x128xbf16>
    %c18_243 = arith.constant 18 : index
    %c0_244 = arith.constant 0 : index
    %c0_245 = arith.constant 0 : index
    %284 = vector.load %arg8[%c18_243, %c0_244, %c0_245] : memref<25x128x128xbf16, #tpu.memory_space<vmem>>, vector<1x128x128xbf16>
    %285 = vector.shape_cast %284 : vector<1x128x128xbf16> to vector<128x128xbf16>
    %cst_246 = arith.constant dense<0.000000e+00> : vector<1x128xf32>
    %286 = tpu.matmul %283, %285, %cst_246 {dimension_numbers = #tpu.dot_dimension_numbers<[1], [0], [0], [1], [0, 0, 1, 1], [], []>} : vector<1x128xbf16>, vector<128x128xbf16>, vector<1x128xf32> -> vector<1x128xf32>
    %287 = arith.addf %281, %286 : vector<1x128xf32>
    %c19_247 = arith.constant 19 : index
    %c0_248 = arith.constant 0 : index
    %288 = vector.load %arg16[%c19_247, %c0_248] : memref<25x128xf32, #tpu.memory_space<vmem>>, vector<1x128xf32>
    %289 = arith.truncf %288 : vector<1x128xf32> to vector<1x128xbf16>
    %c19_249 = arith.constant 19 : index
    %c0_250 = arith.constant 0 : index
    %c0_251 = arith.constant 0 : index
    %290 = vector.load %arg8[%c19_249, %c0_250, %c0_251] : memref<25x128x128xbf16, #tpu.memory_space<vmem>>, vector<1x128x128xbf16>
    %291 = vector.shape_cast %290 : vector<1x128x128xbf16> to vector<128x128xbf16>
    %cst_252 = arith.constant dense<0.000000e+00> : vector<1x128xf32>
    %292 = tpu.matmul %289, %291, %cst_252 {dimension_numbers = #tpu.dot_dimension_numbers<[1], [0], [0], [1], [0, 0, 1, 1], [], []>} : vector<1x128xbf16>, vector<128x128xbf16>, vector<1x128xf32> -> vector<1x128xf32>
    %293 = arith.addf %287, %292 : vector<1x128xf32>
    %c20_253 = arith.constant 20 : index
    %c0_254 = arith.constant 0 : index
    %294 = vector.load %arg16[%c20_253, %c0_254] : memref<25x128xf32, #tpu.memory_space<vmem>>, vector<1x128xf32>
    %295 = arith.truncf %294 : vector<1x128xf32> to vector<1x128xbf16>
    %c20_255 = arith.constant 20 : index
    %c0_256 = arith.constant 0 : index
    %c0_257 = arith.constant 0 : index
    %296 = vector.load %arg8[%c20_255, %c0_256, %c0_257] : memref<25x128x128xbf16, #tpu.memory_space<vmem>>, vector<1x128x128xbf16>
    %297 = vector.shape_cast %296 : vector<1x128x128xbf16> to vector<128x128xbf16>
    %cst_258 = arith.constant dense<0.000000e+00> : vector<1x128xf32>
    %298 = tpu.matmul %295, %297, %cst_258 {dimension_numbers = #tpu.dot_dimension_numbers<[1], [0], [0], [1], [0, 0, 1, 1], [], []>} : vector<1x128xbf16>, vector<128x128xbf16>, vector<1x128xf32> -> vector<1x128xf32>
    %299 = arith.addf %293, %298 : vector<1x128xf32>
    %c21_259 = arith.constant 21 : index
    %c0_260 = arith.constant 0 : index
    %300 = vector.load %arg16[%c21_259, %c0_260] : memref<25x128xf32, #tpu.memory_space<vmem>>, vector<1x128xf32>
    %301 = arith.truncf %300 : vector<1x128xf32> to vector<1x128xbf16>
    %c21_261 = arith.constant 21 : index
    %c0_262 = arith.constant 0 : index
    %c0_263 = arith.constant 0 : index
    %302 = vector.load %arg8[%c21_261, %c0_262, %c0_263] : memref<25x128x128xbf16, #tpu.memory_space<vmem>>, vector<1x128x128xbf16>
    %303 = vector.shape_cast %302 : vector<1x128x128xbf16> to vector<128x128xbf16>
    %cst_264 = arith.constant dense<0.000000e+00> : vector<1x128xf32>
    %304 = tpu.matmul %301, %303, %cst_264 {dimension_numbers = #tpu.dot_dimension_numbers<[1], [0], [0], [1], [0, 0, 1, 1], [], []>} : vector<1x128xbf16>, vector<128x128xbf16>, vector<1x128xf32> -> vector<1x128xf32>
    %305 = arith.addf %299, %304 : vector<1x128xf32>
    %c22_265 = arith.constant 22 : index
    %c0_266 = arith.constant 0 : index
    %306 = vector.load %arg16[%c22_265, %c0_266] : memref<25x128xf32, #tpu.memory_space<vmem>>, vector<1x128xf32>
    %307 = arith.truncf %306 : vector<1x128xf32> to vector<1x128xbf16>
    %c22_267 = arith.constant 22 : index
    %c0_268 = arith.constant 0 : index
    %c0_269 = arith.constant 0 : index
    %308 = vector.load %arg8[%c22_267, %c0_268, %c0_269] : memref<25x128x128xbf16, #tpu.memory_space<vmem>>, vector<1x128x128xbf16>
    %309 = vector.shape_cast %308 : vector<1x128x128xbf16> to vector<128x128xbf16>
    %cst_270 = arith.constant dense<0.000000e+00> : vector<1x128xf32>
    %310 = tpu.matmul %307, %309, %cst_270 {dimension_numbers = #tpu.dot_dimension_numbers<[1], [0], [0], [1], [0, 0, 1, 1], [], []>} : vector<1x128xbf16>, vector<128x128xbf16>, vector<1x128xf32> -> vector<1x128xf32>
    %311 = arith.addf %305, %310 : vector<1x128xf32>
    %c23_271 = arith.constant 23 : index
    %c0_272 = arith.constant 0 : index
    %312 = vector.load %arg16[%c23_271, %c0_272] : memref<25x128xf32, #tpu.memory_space<vmem>>, vector<1x128xf32>
    %313 = arith.truncf %312 : vector<1x128xf32> to vector<1x128xbf16>
    %c23_273 = arith.constant 23 : index
    %c0_274 = arith.constant 0 : index
    %c0_275 = arith.constant 0 : index
    %314 = vector.load %arg8[%c23_273, %c0_274, %c0_275] : memref<25x128x128xbf16, #tpu.memory_space<vmem>>, vector<1x128x128xbf16>
    %315 = vector.shape_cast %314 : vector<1x128x128xbf16> to vector<128x128xbf16>
    %cst_276 = arith.constant dense<0.000000e+00> : vector<1x128xf32>
    %316 = tpu.matmul %313, %315, %cst_276 {dimension_numbers = #tpu.dot_dimension_numbers<[1], [0], [0], [1], [0, 0, 1, 1], [], []>} : vector<1x128xbf16>, vector<128x128xbf16>, vector<1x128xf32> -> vector<1x128xf32>
    %317 = arith.addf %311, %316 : vector<1x128xf32>
    %c24_277 = arith.constant 24 : index
    %c0_278 = arith.constant 0 : index
    %318 = vector.load %arg16[%c24_277, %c0_278] : memref<25x128xf32, #tpu.memory_space<vmem>>, vector<1x128xf32>
    %319 = arith.truncf %318 : vector<1x128xf32> to vector<1x128xbf16>
    %c24_279 = arith.constant 24 : index
    %c0_280 = arith.constant 0 : index
    %c0_281 = arith.constant 0 : index
    %320 = vector.load %arg8[%c24_279, %c0_280, %c0_281] : memref<25x128x128xbf16, #tpu.memory_space<vmem>>, vector<1x128x128xbf16>
    %321 = vector.shape_cast %320 : vector<1x128x128xbf16> to vector<128x128xbf16>
    %cst_282 = arith.constant dense<0.000000e+00> : vector<1x128xf32>
    %322 = tpu.matmul %319, %321, %cst_282 {dimension_numbers = #tpu.dot_dimension_numbers<[1], [0], [0], [1], [0, 0, 1, 1], [], []>} : vector<1x128xbf16>, vector<128x128xbf16>, vector<1x128xf32> -> vector<1x128xf32>
    %323 = arith.addf %317, %322 : vector<1x128xf32>
    %c0_283 = arith.constant 0 : index
    %c0_284 = arith.constant 0 : index
    %324 = vector.load %arg9[%c0_283, %c0_284] : memref<1x128xf32, #tpu.memory_space<vmem>>, vector<1x128xf32>
    %325 = arith.addf %323, %324 : vector<1x128xf32>
    %cst_285 = arith.constant 0.000000e+00 : f32
    %326 = vector.broadcast %cst_285 : f32 to vector<1x128xf32>
    %327 = arith.maximumf %325, %326 : vector<1x128xf32>
    %328 = arith.truncf %327 : vector<1x128xf32> to vector<1x128xbf16>
    %c0_286 = arith.constant 0 : index
    %c0_287 = arith.constant 0 : index
    %329 = vector.load %arg10[%c0_286, %c0_287] : memref<128x128xbf16, #tpu.memory_space<vmem>>, vector<128x128xbf16>
    %cst_288 = arith.constant dense<0.000000e+00> : vector<1x128xf32>
    %330 = tpu.matmul %328, %329, %cst_288 {dimension_numbers = #tpu.dot_dimension_numbers<[1], [0], [0], [1], [0, 0, 1, 1], [], []>} : vector<1x128xbf16>, vector<128x128xbf16>, vector<1x128xf32> -> vector<1x128xf32>
    %c0_289 = arith.constant 0 : index
    %c0_290 = arith.constant 0 : index
    %331 = vector.load %arg11[%c0_289, %c0_290] : memref<1x128xf32, #tpu.memory_space<vmem>>, vector<1x128xf32>
    %332 = arith.addf %330, %331 : vector<1x128xf32>
    %cst_291 = arith.constant 0.000000e+00 : f32
    %333 = vector.broadcast %cst_291 : f32 to vector<1x128xf32>
    %334 = arith.maximumf %332, %333 : vector<1x128xf32>
    %335 = arith.truncf %334 : vector<1x128xf32> to vector<1x128xbf16>
    %c0_292 = arith.constant 0 : index
    %c0_293 = arith.constant 0 : index
    %336 = vector.load %arg12[%c0_292, %c0_293] : memref<128x128xbf16, #tpu.memory_space<vmem>>, vector<128x128xbf16>
    %cst_294 = arith.constant dense<0.000000e+00> : vector<1x128xf32>
    %337 = tpu.matmul %335, %336, %cst_294 {dimension_numbers = #tpu.dot_dimension_numbers<[1], [0], [0], [1], [0, 0, 1, 1], [], []>} : vector<1x128xbf16>, vector<128x128xbf16>, vector<1x128xf32> -> vector<1x128xf32>
    %c0_295 = arith.constant 0 : index
    %c0_296 = arith.constant 0 : index
    %338 = vector.load %arg13[%c0_295, %c0_296] : memref<1x128xf32, #tpu.memory_space<vmem>>, vector<1x128xf32>
    %339 = arith.addf %337, %338 : vector<1x128xf32>
    %c0_297 = arith.constant 0 : index
    %c0_298 = arith.constant 0 : index
    %c0_299 = arith.constant 0 : index
    %340 = vector.load %arg14[%c0_297, %c0_298, %c0_299] : memref<1x1x128xf32, #tpu.memory_space<vmem>>, vector<1x1x128xf32>
    %341 = vector.shape_cast %340 : vector<1x1x128xf32> to vector<1x128xf32>
    %342 = vector.shape_cast %339 : vector<1x128xf32> to vector<1x1x128xf32>
    tpu.vector_store %arg14[%c0_297, %c0_298, %c0_299], %342 {strides = array<i32>} : memref<1x1x128xf32, #tpu.memory_space<vmem>>, vector<1x1x128xf32>,
    return
  }
  func.func @transform_0(%arg0: i32) -> (i32, i32, i32) {
    %c0_i32 = arith.constant 0 : i32
    %c0_i32_0 = arith.constant 0 : i32
    %c0_i32_1 = arith.constant 0 : i32
    return %arg0, %c0_i32, %c0_i32_0 : i32, i32, i32
  }
  func.func @transform_1(%arg0: i32) -> (i32, i32) {
    %c0_i32 = arith.constant 0 : i32
    %c0_i32_0 = arith.constant 0 : i32
    %c0_i32_1 = arith.constant 0 : i32
    return %c0_i32, %c0_i32_0 : i32, i32
  }
  func.func @transform_2(%arg0: i32) -> (i32, i32) {
    %c0_i32 = arith.constant 0 : i32
    %c0_i32_0 = arith.constant 0 : i32
    %c0_i32_1 = arith.constant 0 : i32
    return %c0_i32, %c0_i32_0 : i32, i32
  }
  func.func @transform_3(%arg0: i32) -> (i32, i32) {
    %c0_i32 = arith.constant 0 : i32
    %c0_i32_0 = arith.constant 0 : i32
    %c0_i32_1 = arith.constant 0 : i32
    return %c0_i32, %c0_i32_0 : i32, i32
  }
  func.func @transform_4(%arg0: i32) -> (i32, i32, i32) {
    %c0_i32 = arith.constant 0 : i32
    %c0_i32_0 = arith.constant 0 : i32
    %c0_i32_1 = arith.constant 0 : i32
    %c0_i32_2 = arith.constant 0 : i32
    return %c0_i32, %c0_i32_0, %c0_i32_1 : i32, i32, i32
  }
  func.func @transform_5(%arg0: i32) -> (i32, i32) {
    %c0_i32 = arith.constant 0 : i32
    %c0_i32_0 = arith.constant 0 : i32
    %c0_i32_1 = arith.constant 0 : i32
    return %c0_i32, %c0_i32_0 : i32, i32
  }
  func.func @transform_6(%arg0: i32) -> (i32, i32) {
    %c0_i32 = arith.constant 0 : i32
    %c0_i32_0 = arith.constant 0 : i32
    %c0_i32_1 = arith.constant 0 : i32
    return %c0_i32, %c0_i32_0 : i32, i32
  }
  func.func @transform_7(%arg0: i32) -> (i32, i32, i32) {
    %c0_i32 = arith.constant 0 : i32
    %c0_i32_0 = arith.constant 0 : i32
    %c0_i32_1 = arith.constant 0 : i32
    %c0_i32_2 = arith.constant 0 : i32
    return %c0_i32, %c0_i32_0, %c0_i32_1 : i32, i32, i32
  }
  func.func @transform_8(%arg0: i32) -> (i32, i32) {
    %c0_i32 = arith.constant 0 : i32
    %c0_i32_0 = arith.constant 0 : i32
    %c0_i32_1 = arith.constant 0 : i32
    return %c0_i32, %c0_i32_0 : i32, i32
  }
  func.func @transform_9(%arg0: i32) -> (i32, i32) {
    %c0_i32 = arith.constant 0 : i32
    %c0_i32_0 = arith.constant 0 : i32
    %c0_i32_1 = arith.constant 0 : i32
    return %c0_i32, %c0_i32_0 : i32, i32
  }
  func.func @transform_10(%arg0: i32) -> (i32, i32) {
    %c0_i32 = arith.constant 0 : i32
    %c0_i32_0 = arith.constant 0 : i32
    %c0_i32_1 = arith.constant 0 : i32
    return %c0_i32, %c0_i32_0 : i32, i32
  }
  func.func @transform_11(%arg0: i32) -> (i32, i32) {
    %c0_i32 = arith.constant 0 : i32
    %c0_i32_0 = arith.constant 0 : i32
    %c0_i32_1 = arith.constant 0 : i32
    return %c0_i32, %c0_i32_0 : i32, i32
  }
  func.func @transform_12(%arg0: i32) -> (i32, i32) {
    %c0_i32 = arith.constant 0 : i32
    %c0_i32_0 = arith.constant 0 : i32
    %c0_i32_1 = arith.constant 0 : i32
    return %c0_i32, %c0_i32_0 : i32, i32
  }
  func.func @transform_13(%arg0: i32) -> (i32, i32, i32) {
    %c0_i32 = arith.constant 0 : i32
    %c0_i32_0 = arith.constant 0 : i32
    %c0_i32_1 = arith.constant 0 : i32
    return %arg0, %c0_i32, %c0_i32_0 : i32, i32, i32
  }
}

</mosaic_0001>

<bundles_post_ra>
// kernel: lenet_forward.1
= control target key start
LH: loop header
LB: loop body
LE: loop exit
PB: predicated region body
PF: predicated region fallthrough
CT: control target
= control target key end

     0   :  { %s16645_s0 = inlined_call_operand.vmem [shape: bf16[2,784,32], index: 0, kind: input, shape index: {}]   ;;  %s16646_s1 = inlined_call_operand.vmem [shape: bf16[32,128], index: 1, kind: input, shape index: {}]   ;;  %s16647_s2 = inlined_call_operand.vmem [shape: f32[1,128], index: 2, kind: input, shape index: {}]   ;;  %s16648_s3 = inlined_call_operand.vmem [shape: bf16[200,784], index: 3, kind: input, shape index: {}]   ;;  %s16649_s4 = inlined_call_operand.vmem [shape: bf16[25,128,128], index: 4, kind: input, shape index: {}]   ;;  %s16650_s5 = inlined_call_operand.vmem [shape: f32[1,128], index: 5, kind: input, shape index: {}]   ;;  %s16651_s6 = inlined_call_operand.vmem [shape: bf16[25,140], index: 6, kind: input, shape index: {}]   ;;  %s16652_s7 = inlined_call_operand.vmem [shape: bf16[25,128,128], index: 7, kind: input, shape index: {}]   ;;  %s16653_s8 = inlined_call_operand.vmem [shape: f32[1,128], index: 8, kind: input, shape index: {}]   ;;  %s16654_s9 = inlined_call_operand.vmem [shape: bf16[128,128], index: 9, kind: input, shape index: {}]   ;;  %s16655_s10 = inlined_call_operand.vmem [shape: f32[1,128], index: 10, kind: input, shape index: {}]   ;;  %s16656_s11 = inlined_call_operand.vmem [shape: bf16[128,128], index: 11, kind: input, shape index: {}]   ;;  %s16657_s12 = inlined_call_operand.vmem [shape: f32[1,128], index: 12, kind: input, shape index: {}]   ;;  %s16658_s13 = inlined_call_operand.hbm [shape: f32[2,1,128], index: 13, kind: output, shape index: {}]  }
   0x1   :  { %16659 = sst [smem:[#allocation70_spill]] %s16645_s0 }
   0x2   :  { %16660 = sst [smem:[#allocation71_spill]] %s16646_s1 }
   0x3   :  { %16661 = sst [smem:[#allocation72_spill]] %s16647_s2 }
   0x4   :  { %18 = vsyncpa [#allocation5], 0 }
   0x5   :  { %20 = vsyncpa [#allocation5 + $0x1], 0  ;;  %s12702_s25 = smov 0   ;;  %s12704_s26 = smov 0  }
   0x6   :  { %s12706_s27 = smov 0   ;;  %s12708_s28 = smov 0  }
   0x7 LB: > { %s12723_s29 = sadd.s32 4294967295, %s12630_s28   ;;  %s8911_s30 = sadd.s32 4294967294, %s12630_s28   ;;  %s12630_s28 = sphi %s12708_s28, %s16894_s28   ;;  %s12626_s27 = sphi %s12706_s27, %s16893_s27   ;;  %s12622_s26 = sphi %s12704_s26, %s16892_s26   ;;  %s12618_s25 = sphi %s12702_s25, %s16891_s25  }
   0x8   : > { %s12727_s14 = sadd.s32 1, %s12630_s28   ;;  %s311_s15 = sadd.s32 1, %s12626_s27 }
   0x9   : > { %s308_s16 = ssub.s32 %s12630_s28, %s12727_s14  ;;  %p321_p0 = scmp.ne.s32.totalorder %s12626_s27, %s12622_s26 }
   0xa   : > { %p309_p1 = scmp.eq.s32.totalorder %s308_s16, 0  ;;  %p322_p2 = scmp.eq.s32.totalorder %s12723_s29, 1 }
   0xb   : > { %p327_p3 = scmp.ne.s32.totalorder %s12622_s26, %s12618_s25  ;;  %p328_p4 = scmp.eq.s32.totalorder %s8911_s30, 1 }
   0xc   : > { %s12738_s17 = scalar_select %p309_p1, %s12626_s27, %s311_s15  }
   0xd   : > { %p12740_p5 = por %p322_p2, %p321_p0  ;;  %p12744_p6 = por %p328_p4, %p327_p3 }
   0xe   : > { %16662 = sst [smem:[#allocation7_spill]] %s12738_s17  ;;  %p8914_p7 = scmp.ge.s32.totalorder %s12630_s28, 1 }
   0xf   : > { %p390_p8 = scmp.lt.s32.totalorder %s12630_s28, 3 }
  0x11   : > { %p391_p9 = pnand %p8914_p7, %p390_p8 }
  0x13   : > { %394 = sbr.rel (%p391_p9) target bundleno = 3044 (0xbe4), region = 72 }
  0x18   : > { %s16665_s1 = sld [smem:[#allocation71_spill]]  ;;  %p433_p10 = scmp.lt.s32.totalorder %s12723_s29, 1  ;;  %vm802_vm0 = vcmask 261120   ;;  %vm1895_vm1 = vcmask 130048   ;;  %vm6612_vm2 = vcmask 1045504   ;;  %vm6605_vm3 = vcmask 97280  }
  0x19   : > { %s16666_s0 = sld [smem:[#allocation70_spill]] }
  0x1a   : > { %s434_s24 = scalar_select %p433_p10, %s12723_s29, 1 }
  0x1b   : > { %s16667_s2 = sld [smem:[#allocation72_spill]] }
  0x1c   : > { %s12525_s30 = smul.u32 392, %s434_s24  ;;  %s12588_s24 = scalar_lea.hbm %s16658_s13, 2 }
  0x1e   : > { %v12020_v0 = vld [vmem:[%s16665_s1 + $0x8] sm:$0xff]  ;;  %v12019_v1 = vld [vmem:[%s16665_s1] sm:$0xff]  ;;  %s431_s1 = sand.u32 1, %s12622_s26  }
  0x1f   : > { %956 = vmatpush.bf16.msra.mxu0 %v12020_v0  ;;  %s12761_s17 = scalar_lea.vmem %s16666_s0, %s12525_s30  ;;  %s8852_s30 = scalar_lea.hbm %s16658_s13, %s12723_s29 }
  0x20   : > { %v11970_v2 = vld [vmem:[%s12761_s17] sm:$0xff]  ;;  %v11971_v3 = vld [vmem:[%s12761_s17 + $0x8] sm:$0xff]  ;;  %v11972_v4 = vld [vmem:[%s12761_s17 + $0x10] sm:$0xff]  ;;  %s432_s20 = scalar_lea.vmem [#allocation4], %s431_s1  ;;  %s8856_s22 = sshll.u32 %s8852_s30, 4  ;;  %s8857_s22 = int_to_ptr.hbm [resolvable:$true] %s8856_s22 }
  0x21   : > { %v11973_v5 = vld [vmem:[%s12761_s17 + $0x18] sm:$0xff]  ;;  %v11974_v6 = vld [vmem:[%s12761_s17 + $0x20] sm:$0xff]  ;;  %v11975_v7 = vld [vmem:[%s12761_s17 + $0x28] sm:$0xff]  ;;  %s8854_s21 = sshll.u32 %s432_s20, 4  ;;  %s8844_s23 = scalar_lea.sflag [#allocation5], %s431_s1  ;;  %s8855_s21 = int_to_ptr.vmem [resolvable:$true] %s8854_s21 }
  0x22   : > { %v11976_v8 = vld [vmem:[%s12761_s17 + $0x30] sm:$0xff]  ;;  %v11977_v9 = vld [vmem:[%s12761_s17 + $0x38] sm:$0xff]  ;;  %v11978_v10 = vld [vmem:[%s12761_s17 + $0x40] sm:$0xff]  ;;  %s12582_s0 = sshra.s32 %s8857_s22, 4  ;;  %s12583_s0 = int_to_ptr.hbm [resolvable:$true] %s12582_s0 }
  0x23   : > { %957 = vmatpush.bf16.msra.mxu0 %v12019_v1  ;;  %v12783_v12 = vld [vmem:[%s16667_s2] ss:$0 sm:$0xff]  ;;  %v11979_v19 = vld [vmem:[%s12761_s17 + $0x48] sm:$0xff]  ;;  %v11980_v27 = vld [vmem:[%s12761_s17 + $0x50] sm:$0xff]  ;;  %p12589_p0 = scmp.lt.s32.totalorder %s12583_s0, %s16658_s13 }
  0x24   : > { %v11981_v35 = vld [vmem:[%s12761_s17 + $0x58] sm:$0xff]  ;;  %v11982_v43 = vld [vmem:[%s12761_s17 + $0x60] sm:$0xff]  ;;  %v11983_v46 = vld [vmem:[%s12761_s17 + $0x68] sm:$0xff] }
  0x25   : > { %v11984_v49 = vld [vmem:[%s12761_s17 + $0x70] sm:$0xff]  ;;  %v11985_v52 = vld [vmem:[%s12761_s17 + $0x78] sm:$0xff] }
  0x26   : > { %9120 = vmatmul.msk.bf16.vlgmr.msra.gmra.mxu0 %vm802_vm0, %v11970_v2  ;;  %v11986_v2 = vld [vmem:[%s12761_s17 + $0x80] sm:$0xff] }
  0x36   : > { %9121 = vmatmul.msk.bf16.gmra.mxu0 %vm802_vm0, %v11971_v3 }
  0x46   : > { %9122 = vmatmul.msk.bf16.gmra.mxu0 %vm802_vm0, %v11972_v4 }
  0x56   : > { %9123 = vmatmul.msk.bf16.gmra.mxu0 %vm802_vm0, %v11973_v5 }
  0x66   : > { %9124 = vmatmul.msk.bf16.gmra.mxu0 %vm802_vm0, %v11974_v6 }
  0x76   : > { %9125 = vmatmul.msk.bf16.gmra.mxu0 %vm802_vm0, %v11975_v7 }
  0x86   : > { %9126 = vmatmul.msk.bf16.gmra.mxu0 %vm802_vm0, %v11976_v8 }
  0x96   : > { %9127 = vmatmul.msk.bf16.gmra.mxu0 %vm802_vm0, %v11977_v9 }
  0xa3   : > { %v959_v11 = vpop.f32.mrf.mxu0 }
  0xa4   : > { %v960_v13 = vadd.f32 %v12783_v12, %v959_v11 }
  0xa6   : > { %9128 = vmatmul.msk.bf16.gmra.mxu0 %vm802_vm0, %v11978_v10  ;;  %v1204_v16 = vmax.f32 %v960_v13, 0.0 }
  0xab   : > { %v961_v14 = vpop.f32.mrf.mxu0 }
  0xac   : > { %v962_v15 = vadd.f32 %v12783_v12, %v961_v14 }
  0xae   : > { %v1205_v17 = vmax.f32 %v962_v15, 0.0 }
  0xb0   : > { %v12788_v18 = vpack.c.bf16 %v1205_v17, %v1204_v16 }
  0xb3   : > { %v964_v20 = vpop.f32.mrf.mxu0 }
  0xb4   : > { %v965_v21 = vadd.f32 %v12783_v12, %v964_v20 }
  0xb6   : > { %9129 = vmatmul.msk.bf16.gmra.mxu0 %vm802_vm0, %v11979_v19  ;;  %v1206_v24 = vmax.f32 %v965_v21, 0.0  ;;  %v11987_v21 = vld [vmem:[%s12761_s17 + $0x88] sm:$0xff] }
  0xbb   : > { %v966_v22 = vpop.f32.mrf.mxu0 }
  0xbc   : > { %v967_v23 = vadd.f32 %v12783_v12, %v966_v22 }
  0xbe   : > { %v1207_v25 = vmax.f32 %v967_v23, 0.0 }
  0xc0   : > { %v12794_v26 = vpack.c.bf16 %v1207_v25, %v1206_v24 }
  0xc3   : > { %v969_v28 = vpop.f32.mrf.mxu0 }
  0xc4   : > { %v970_v29 = vadd.f32 %v12783_v12, %v969_v28 }
  0xc6   : > { %9130 = vmatmul.msk.bf16.gmra.mxu0 %vm802_vm0, %v11980_v27  ;;  %v1208_v32 = vmax.f32 %v970_v29, 0.0 }
  0xcb   : > { %v971_v30 = vpop.f32.mrf.mxu0 }
  0xcc   : > { %v972_v31 = vadd.f32 %v12783_v12, %v971_v30  ;;  %v11988_v30 = vld [vmem:[%s12761_s17 + $0x90] sm:$0xff] }
  0xce   : > { %v1209_v33 = vmax.f32 %v972_v31, 0.0 }
  0xd0   : > { %v12800_v34 = vpack.c.bf16 %v1209_v33, %v1208_v32 }
  0xd3   : > { %v974_v36 = vpop.f32.mrf.mxu0 }
  0xd4   : > { %v975_v37 = vadd.f32 %v12783_v12, %v974_v36 }
  0xd6   : > { %9131 = vmatmul.msk.bf16.gmra.mxu0 %vm802_vm0, %v11981_v35  ;;  %v1210_v40 = vmax.f32 %v975_v37, 0.0  ;;  %v11989_v37 = vld [vmem:[%s12761_s17 + $0x98] sm:$0xff] }
  0xdb   : > { %v976_v38 = vpop.f32.mrf.mxu0 }
  0xdc   : > { %v977_v39 = vadd.f32 %v12783_v12, %v976_v38 }
  0xde   : > { %v1211_v41 = vmax.f32 %v977_v39, 0.0 }
  0xe0   : > { %v1405_v42 = vpack.c.bf16 %v1211_v41, %v1210_v40 }
  0xe3   : > { %v979_v44 = vpop.f32.mrf.mxu0 }
  0xe4   : > { %v980_v7 = vadd.f32 %v12783_v12, %v979_v44  ;;  %v11990_v44 = vld [vmem:[%s12761_s17 + $0xa0] sm:$0xff] }
  0xe6   : > { %9132 = vmatmul.msk.bf16.gmra.mxu0 %vm802_vm0, %v11982_v43  ;;  %v1212_v11 = vmax.f32 %v980_v7, 0.0 }
  0xeb   : > { %v981_v45 = vpop.f32.mrf.mxu0 }
  0xec   : > { %v982_v4 = vadd.f32 %v12783_v12, %v981_v45 }
  0xee   : > { %v1213_v9 = vmax.f32 %v982_v4, 0.0 }
  0xf0   : > { %v1406_v16 = vpack.c.bf16 %v1213_v9, %v1212_v11 }
  0xf3   : > { %v984_v47 = vpop.f32.mrf.mxu0 }
  0xf4   : > { %v985_v0 = vadd.f32 %v12783_v12, %v984_v47  ;;  %v11991_v47 = vld [vmem:[%s12761_s17 + $0xa8] sm:$0xff] }
  0xf6   : > { %9133 = vmatmul.msk.bf16.gmra.mxu0 %vm802_vm0, %v11983_v46  ;;  %v1214_v8 = vmax.f32 %v985_v0, 0.0 }
  0xfb   : > { %v986_v48 = vpop.f32.mrf.mxu0 }
  0xfc   : > { %v987_v61 = vadd.f32 %v12783_v12, %v986_v48 }
  0xfe   : > { %v1215_v5 = vmax.f32 %v987_v61, 0.0 }
 0x100   : > { %v1407_v10 = vpack.c.bf16 %v1215_v5, %v1214_v8 }
 0x103   : > { %v989_v50 = vpop.f32.mrf.mxu0 }
 0x104   : > { %v990_v58 = vadd.f32 %v12783_v12, %v989_v50  ;;  %v11992_v50 = vld [vmem:[%s12761_s17 + $0xb0] sm:$0xff] }
 0x106   : > { %9134 = vmatmul.msk.bf16.gmra.mxu0 %vm802_vm0, %v11984_v49  ;;  %v1216_v1 = vmax.f32 %v990_v58, 0.0 }
 0x10b   : > { %v991_v51 = vpop.f32.mrf.mxu0 }
 0x10c   : > { %v992_v56 = vadd.f32 %v12783_v12, %v991_v51 }
 0x10e   : > { %v1217_v62 = vmax.f32 %v992_v56, 0.0 }
 0x110   : > { %v1408_v6 = vpack.c.bf16 %v1217_v62, %v1216_v1 }
 0x113   : > { %v994_v53 = vpop.f32.mrf.mxu0 }
 0x114   : > { %v995_v54 = vadd.f32 %v12783_v12, %v994_v53  ;;  %v11993_v53 = vld [vmem:[%s12761_s17 + $0xb8] sm:$0xff] }
 0x116   : > { %9135 = vmatmul.msk.bf16.gmra.mxu0 %vm802_vm0, %v11985_v52  ;;  %v1218_v59 = vmax.f32 %v995_v54, 0.0 }
 0x11b   : > { %v996_v55 = vpop.f32.mrf.mxu0 }
 0x11c   : > { %v997_v57 = vadd.f32 %v12783_v12, %v996_v55 }
 0x11e   : > { %v1219_v60 = vmax.f32 %v997_v57, 0.0 }
 0x120   : > { %v1409_v63 = vpack.c.bf16 %v1219_v60, %v1218_v59 }
 0x122   : > { %1935 = vmatpush.bf16.msra.mxu1 %v1409_v63 }
 0x123   : > { %v999_v3 = vpop.f32.mrf.mxu0 }
 0x124   : > { %v1000_v13 = vadd.f32 %v12783_v12, %v999_v3  ;;  %v11994_v3 = vld [vmem:[%s12761_s17 + $0xc0] sm:$0xff] }
 0x126   : > { %9136 = vmatmul.msk.bf16.gmra.mxu0 %vm802_vm0, %v11986_v2  ;;  %1936 = vmatpush.bf16.msra.mxu1 %v1408_v6  ;;  %v1220_v17 = vmax.f32 %v1000_v13, 0.0 }
 0x12a   : > { %1937 = vmatpush.bf16.msra.mxu1 %v1407_v10 }
 0x12b   : > { %v1001_v14 = vpop.f32.mrf.mxu0 }
 0x12c   : > { %v1002_v15 = vadd.f32 %v12783_v12, %v1001_v14 }
 0x12e   : > { %v1221_v19 = vmax.f32 %v1002_v15, 0.0  ;;  %1938 = vmatpush.bf16.msra.mxu1 %v1406_v16 }
 0x130   : > { %v12826_v20 = vpack.c.bf16 %v1221_v19, %v1220_v17 }
 0x132   : > { %1939 = vmatpush.bf16.msra.mxu1 %v1405_v42 }
 0x133   : > { %v1004_v22 = vpop.f32.mrf.mxu0 }
 0x134   : > { %v1005_v23 = vadd.f32 %v12783_v12, %v1004_v22 }
 0x136   : > { %9137 = vmatmul.msk.bf16.gmra.mxu0 %vm802_vm0, %v11987_v21  ;;  %1940 = vmatpush.bf16.msra.mxu1 %v12800_v34  ;;  %v1222_v27 = vmax.f32 %v1005_v23, 0.0  ;;  %v11995_v23 = vld [vmem:[%s12761_s17 + $0xc8] sm:$0xff] }
 0x13a   : > { %1941 = vmatpush.bf16.msra.mxu1 %v12794_v26 }
 0x13b   : > { %v1006_v24 = vpop.f32.mrf.mxu0 }
 0x13c   : > { %v1007_v25 = vadd.f32 %v12783_v12, %v1006_v24 }
 0x13e   : > { %v1223_v28 = vmax.f32 %v1007_v25, 0.0  ;;  %1942 = vmatpush.bf16.msra.mxu1 %v12788_v18 }
 0x140   : > { %v12835_v29 = vpack.c.bf16 %v1223_v28, %v1222_v27 }
 0x143   : > { %v1009_v31 = vpop.f32.mrf.mxu0 }
 0x144   : > { %v1010_v32 = vadd.f32 %v12783_v12, %v1009_v31 }
 0x146   : > { %9138 = vmatmul.msk.bf16.gmra.mxu0 %vm802_vm0, %v11988_v30  ;;  %v1224_v34 = vmax.f32 %v1010_v32, 0.0 }
 0x14b   : > { %v1011_v33 = vpop.f32.mrf.mxu0 }
 0x14c   : > { %v1012_v26 = vadd.f32 %v12783_v12, %v1011_v33  ;;  %v11996_v33 = vld [vmem:[%s12761_s17 + $0xd0] sm:$0xff] }
 0x14e   : > { %v1225_v35 = vmax.f32 %v1012_v26, 0.0 }
 0x150   : > { %v12841_v36 = vpack.c.bf16 %v1225_v35, %v1224_v34 }
 0x153   : > { %v1014_v38 = vpop.f32.mrf.mxu0 }
 0x154   : > { %v1015_v18 = vadd.f32 %v12783_v12, %v1014_v38  ;;  %v9171_v38 = vld [vmem:[%s16648_s3] sm:$0xf] }
 0x156   : > { %9139 = vmatmul.msk.bf16.gmra.mxu0 %vm802_vm0, %v11989_v37  ;;  %v1226_v41 = vmax.f32 %v1015_v18, 0.0 }
 0x15b   : > { %v1016_v39 = vpop.f32.mrf.mxu0 }
 0x15c   : > { %v1017_v40 = vadd.f32 %v12783_v12, %v1016_v39 }
 0x15e   : > { %v1227_v42 = vmax.f32 %v1017_v40, 0.0  ;;  %v11997_v40 = vld [vmem:[%s12761_s17 + $0xd8] sm:$0xff] }
 0x160   : > { %v1413_v43 = vpack.c.bf16 %v1227_v42, %v1226_v41 }
 0x163   : > { %v1019_v45 = vpop.f32.mrf.mxu0 }
 0x164   : > { %v1020_v8 = vadd.f32 %v12783_v12, %v1019_v45 }
 0x166   : > { %9140 = vmatmul.msk.bf16.gmra.mxu0 %vm802_vm0, %v11990_v44  ;;  %v1228_v13 = vmax.f32 %v1020_v8, 0.0 }
 0x16b   : > { %v1021_v46 = vpop.f32.mrf.mxu0 }
 0x16c   : > { %v1022_v5 = vadd.f32 %v12783_v12, %v1021_v46 }
 0x16e   : > { %v1229_v10 = vmax.f32 %v1022_v5, 0.0  ;;  %v12001_v5 = vld [vmem:[%s12761_s17 + $0xf8] sm:$0xff] }
 0x170   : > { %v1414_v17 = vpack.c.bf16 %v1229_v10, %v1228_v13 }
 0x173   : > { %v1024_v48 = vpop.f32.mrf.mxu0 }
 0x174   : > { %v1025_v1 = vadd.f32 %v12783_v12, %v1024_v48  ;;  %v12031_v48 = vld [vmem:[%s16648_s3 + $0x50] sm:$0xf0] }
 0x176   : > { %9141 = vmatmul.msk.bf16.gmra.mxu0 %vm802_vm0, %v11991_v47  ;;  %v1230_v9 = vmax.f32 %v1025_v1, 0.0  ;;  %v9199_v47 = vld [vmem:[%s16648_s3 + $0x38] sm:$0xf] }
 0x17b   : > { %v1026_v49 = vpop.f32.mrf.mxu0 }
 0x17c   : > { %v1027_v62 = vadd.f32 %v12783_v12, %v1026_v49  ;;  %v9200_v49 = vor.u32 %v12031_v48, %v9199_v47 }
 0x17e   : > { %v1231_v6 = vmax.f32 %v1027_v62, 0.0 }
 0x180   : > { %v1415_v11 = vpack.c.bf16 %v1231_v6, %v1230_v9 }
 0x183   : > { %v1029_v51 = vpop.f32.mrf.mxu0 }
 0x184   : > { %v1030_v59 = vadd.f32 %v12783_v12, %v1029_v51  ;;  %v11998_v51 = vld [vmem:[%s12761_s17 + $0xe0] sm:$0xff] }
 0x186   : > { %9142 = vmatmul.msk.bf16.gmra.mxu0 %vm802_vm0, %v11992_v50  ;;  %v1232_v2 = vmax.f32 %v1030_v59, 0.0 }
 0x18b   : > { %v1031_v52 = vpop.f32.mrf.mxu0 }
 0x18c   : > { %v1032_v57 = vadd.f32 %v12783_v12, %v1031_v52 }
 0x18e   : > { %v1233_v63 = vmax.f32 %v1032_v57, 0.0  ;;  %v11999_v57 = vld [vmem:[%s12761_s17 + $0xe8] sm:$0xff] }
 0x190   : > { %v1416_v7 = vpack.c.bf16 %v1233_v63, %v1232_v2  ;;  %v12000_v63 = vld [vmem:[%s12761_s17 + $0xf0] sm:$0xff]  ;;  %v9283_v2 = vld [vmem:[%s16648_s3 + $0xe0] sm:$0xf] }
 0x193   : > { %v1034_v54 = vpop.f32.mrf.mxu0 }
 0x194   : > { %v1035_v55 = vadd.f32 %v12783_v12, %v1034_v54  ;;  %v9227_v54 = vld [vmem:[%s16648_s3 + $0x70] sm:$0xf] }
 0x196   : > { %9143 = vmatmul.msk.bf16.gmra.mxu0 %vm802_vm0, %v11993_v53  ;;  %v1234_v60 = vmax.f32 %v1035_v55, 0.0  ;;  %v12038_v55 = vld [vmem:[%s16648_s3 + $0x88] sm:$0xf0] }
 0x19b   : > { %v1036_v56 = vpop.f32.mrf.mxu0 }
 0x19c   : > { %v1037_v58 = vadd.f32 %v12783_v12, %v1036_v56  ;;  %v9228_v56 = vor.u32 %v12038_v55, %v9227_v54 }
 0x19e   : > { %v1235_v61 = vmax.f32 %v1037_v58, 0.0 }
 0x1a0   : > { %v1417_v0 = vpack.c.bf16 %v1235_v61, %v1234_v60  ;;  %v9255_v60 = vld [vmem:[%s16648_s3 + $0xa8] sm:$0xf]  ;;  %v12045_v61 = vld [vmem:[%s16648_s3 + $0xc0] sm:$0xf0] }
 0x1a1   : > { %v9256_v62 = vor.u32 %v12045_v61, %v9255_v60  ;;  %v12073_v61 = vld [vmem:[%s16648_s3 + $0x1a0] sm:$0xf0] }
 0x1a2   : > { %2008 = vmatpush.bf16.msra.mxu2 %v1417_v0 }
 0x1a3   : > { %v1039_v4 = vpop.f32.mrf.mxu0 }
 0x1a4   : > { %v1040_v14 = vadd.f32 %v12783_v12, %v1039_v4 }
 0x1a6   : > { %9144 = vmatmul.msk.bf16.gmra.mxu0 %vm802_vm0, %v11994_v3  ;;  %2009 = vmatpush.bf16.msra.mxu2 %v1416_v7  ;;  %v1236_v19 = vmax.f32 %v1040_v14, 0.0  ;;  %v12052_v3 = vld [vmem:[%s16648_s3 + $0xf8] sm:$0xf0] }
 0x1a7   : > { %v9284_v4 = vor.u32 %v12052_v3, %v9283_v2  ;;  %v12035_v2 = vld [vmem:[%s16648_s3 + $0x74] sm:$0xf] }
 0x1aa   : > { %2010 = vmatpush.bf16.msra.mxu2 %v1415_v11 }
 0x1ab   : > { %v1041_v15 = vpop.f32.mrf.mxu0 }
 0x1ac   : > { %v1042_v16 = vadd.f32 %v12783_v12, %v1041_v15  ;;  %v9311_v15 = vld [vmem:[%s16648_s3 + $0x118] sm:$0xf] }
 0x1ae   : > { %v1237_v21 = vmax.f32 %v1042_v16, 0.0  ;;  %2011 = vmatpush.bf16.msra.mxu2 %v1414_v17  ;;  %v12059_v16 = vld [vmem:[%s16648_s3 + $0x130] sm:$0xf0] }
 0x1af   : > { %v9312_v17 = vor.u32 %v12059_v16, %v9311_v15  ;;  %v12080_v15 = vld [vmem:[%s16648_s3 + $0x1d8] sm:$0xf0] }
 0x1b0   : > { %v12867_v22 = vpack.c.bf16 %v1237_v21, %v1236_v19 }
 0x1b2   : > { %2012 = vmatpush.bf16.msra.mxu2 %v1413_v43 }
 0x1b3   : > { %v1044_v24 = vpop.f32.mrf.mxu0 }
 0x1b4   : > { %v1045_v25 = vadd.f32 %v12783_v12, %v1044_v24 }
 0x1b6   : > { %9145 = vmatmul.msk.bf16.gmra.mxu0 %vm802_vm0, %v11995_v23  ;;  %2013 = vmatpush.bf16.msra.mxu2 %v12841_v36  ;;  %v1238_v30 = vmax.f32 %v1045_v25, 0.0 }
 0x1ba   : > { %2014 = vmatpush.bf16.msra.mxu2 %v12835_v29 }
 0x1bb   : > { %v1046_v27 = vpop.f32.mrf.mxu0 }
 0x1bc   : > { %v1047_v28 = vadd.f32 %v12783_v12, %v1046_v27  ;;  %v12002_v27 = vld [vmem:[%s12761_s17 + $0x100] sm:$0xff] }
 0x1be   : > { %v1239_v31 = vmax.f32 %v1047_v28, 0.0  ;;  %2015 = vmatpush.bf16.msra.mxu2 %v12826_v20  ;;  %v12024_v20 = vld [vmem:[%s16648_s3 + $0x18] sm:$0xf0] }
 0x1bf   : > { %v9172_v18 = vor.u32 %v12024_v20, %v9171_v38 }
 0x1c0   : > { %v12876_v32 = vpack.c.bf16 %v1239_v31, %v1238_v30 }
 0x1c1   : > { %1943 = vmatmul.bf16.vlgmr.msra.gmra.mxu1 %v9172_v18 }
 0x1c3   : > { %v1049_v26 = vpop.f32.mrf.mxu0 }
 0x1c4   : > { %v1050_v34 = vadd.f32 %v12783_v12, %v1049_v26  ;;  %v12021_v26 = vld [vmem:[%s16648_s3 + $0x4] sm:$0xf] }
 0x1c6   : > { %9146 = vmatmul.msk.bf16.gmra.mxu0 %vm802_vm0, %v11996_v33  ;;  %v1240_v29 = vmax.f32 %v1050_v34, 0.0  ;;  %v9173_v34 = vld [vmem:[%s16648_s3 + $0x1c] sm:$0xf0] }
 0x1cb   : > { %v1051_v35 = vpop.f32.mrf.mxu0 }
 0x1cc   : > { %v1052_v36 = vadd.f32 %v12783_v12, %v1051_v35  ;;  %v9176_v35 = vor.u32 %v12021_v26, %v9173_v34 }
 0x1ce   : > { %v1241_v37 = vmax.f32 %v1052_v36, 0.0  ;;  %2016 = vmatmul.bf16.vlgmr.msra.gmra.mxu2 %v9176_v35 }
 0x1d0   : > { %v12888_v39 = vpack.c.bf16 %v1241_v37, %v1240_v29 }
 0x1d1   : > { %1948 = vmatmul.bf16.gmra.mxu1 %v9200_v49  ;;  %v12003_v49 = vld [vmem:[%s12761_s17 + $0x108] sm:$0xff] }
 0x1d3   : > { %v1054_v41 = vpop.f32.mrf.mxu0 }
 0x1d4   : > { %v1055_v42 = vadd.f32 %v12783_v12, %v1054_v41 }
 0x1d6   : > { %9147 = vmatmul.msk.bf16.gmra.mxu0 %vm802_vm0, %v11997_v40  ;;  %v1242_v45 = vmax.f32 %v1055_v42, 0.0 }
 0x1db   : > { %v1056_v43 = vpop.f32.mrf.mxu0 }
 0x1dc   : > { %v1057_v44 = vadd.f32 %v12783_v12, %v1056_v43 }
 0x1de   : > { %v1243_v46 = vmax.f32 %v1057_v44, 0.0 }
 0x1e0   : > { %v12900_v50 = vpack.c.bf16 %v1243_v46, %v1242_v45  ;;  %v9339_v45 = vld [vmem:[%s16648_s3 + $0x150] sm:$0xf]  ;;  %v12066_v46 = vld [vmem:[%s16648_s3 + $0x168] sm:$0xf0] }
 0x1e1   : > { %1953 = vmatmul.bf16.gmra.mxu1 %v9228_v56  ;;  %v9340_v47 = vor.u32 %v12066_v46, %v9339_v45  ;;  %v12025_v56 = vld [vmem:[%s16648_s3 + $0x20] sm:$0xf0]  ;;  %v9263_v46 = vld [vmem:[%s16648_s3 + $0xb0] sm:$0xf] }
 0x1e3   : > { %v1059_v52 = vpop.f32.mrf.mxu0 }
 0x1e4   : > { %v1060_v36 = vadd.f32 %v12783_v12, %v1059_v52  ;;  %v12028_v52 = vld [vmem:[%s16648_s3 + $0x3c] sm:$0xf] }
 0x1e6   : > { %9148 = vmatmul.msk.bf16.gmra.mxu0 %vm802_vm0, %v11998_v51  ;;  %v1244_v20 = vmax.f32 %v1060_v36, 0.0 }
 0x1eb   : > { %v1061_v53 = vpop.f32.mrf.mxu0 }
 0x1ec   : > { %v1062_v30 = vadd.f32 %v12783_v12, %v1061_v53  ;;  %v9201_v53 = vld [vmem:[%s16648_s3 + $0x54] sm:$0xf0] }
 0x1ed   : > { %v9204_v54 = vor.u32 %v12028_v52, %v9201_v53  ;;  %v9451_v53 = vld [vmem:[%s16648_s3 + $0x230] sm:$0xf] }
 0x1ee   : > { %v1245_v37 = vmax.f32 %v1062_v30, 0.0  ;;  %v9235_v30 = vld [vmem:[%s16648_s3 + $0x78] sm:$0xf] }
 0x1ef   : > { %2021 = vmatmul.bf16.gmra.mxu2 %v9204_v54  ;;  %v12094_v54 = vld [vmem:[%s16648_s3 + $0x248] sm:$0xf0] }
 0x1f0   : > { %v1422_v42 = vpack.c.bf16 %v1245_v37, %v1244_v20  ;;  %v9423_v37 = vld [vmem:[%s16648_s3 + $0x1f8] sm:$0xf] }
 0x1f1   : > { %1958 = vmatmul.bf16.gmra.mxu1 %v9256_v62 }
 0x1f3   : > { %v1064_v58 = vpop.f32.mrf.mxu0 }
 0x1f4   : > { %v1065_v24 = vadd.f32 %v12783_v12, %v1064_v58 }
 0x1f6   : > { %9149 = vmatmul.msk.bf16.gmra.mxu0 %vm802_vm0, %v11999_v57  ;;  %v1246_v29 = vmax.f32 %v1065_v24, 0.0  ;;  %v9257_v24 = vld [vmem:[%s16648_s3 + $0xc4] sm:$0xf0] }
 0x1fb   : > { %v1066_v59 = vpop.f32.mrf.mxu0 }
 0x1fc   : > { %v1067_v19 = vadd.f32 %v12783_v12, %v1066_v59 }
 0x1fe   : > { %v1247_v31 = vmax.f32 %v1067_v19, 0.0  ;;  %v12005_v19 = vld [vmem:[%s12761_s17 + $0x118] sm:$0xff] }
 0x200   : > { %v1423_v38 = vpack.c.bf16 %v1247_v31, %v1246_v29  ;;  %v12039_v31 = vld [vmem:[%s16648_s3 + $0x90] sm:$0xf0] }
 0x201   : > { %1963 = vmatmul.bf16.gmra.mxu1 %v9284_v4  ;;  %v9236_v34 = vor.u32 %v12039_v31, %v9235_v30 }
 0x203   : > { %v1069_v0 = vpop.f32.mrf.mxu0 }
 0x204   : > { %v1070_v11 = vadd.f32 %v12783_v12, %v1069_v0  ;;  %v12004_v0 = vld [vmem:[%s12761_s17 + $0x110] sm:$0xff] }
 0x206   : > { %9150 = vmatmul.msk.bf16.gmra.mxu0 %vm802_vm0, %v12000_v63  ;;  %v1248_v25 = vmax.f32 %v1070_v11, 0.0 }
 0x20b   : > { %v1071_v1 = vpop.f32.mrf.mxu0 }
 0x20c   : > { %v1072_v9 = vadd.f32 %v12783_v12, %v1071_v1 }
 0x20e   : > { %v1249_v21 = vmax.f32 %v1072_v9, 0.0 }
 0x210   : > { %v1424_v33 = vpack.c.bf16 %v1249_v21, %v1248_v25 }
 0x211   : > { %1968 = vmatmul.bf16.gmra.mxu1 %v9312_v17 }
 0x213   : > { %v1074_v6 = vpop.f32.mrf.mxu0 }
 0x214   : > { %v1075_v7 = vadd.f32 %v12783_v12, %v1074_v6  ;;  %v12032_v6 = vld [vmem:[%s16648_s3 + $0x58] sm:$0xf0] }
 0x216   : > { %9151 = vmatmul.msk.bf16.gmra.mxu0 %vm802_vm0, %v12001_v5  ;;  %v1250_v13 = vmax.f32 %v1075_v7, 0.0  ;;  %v9207_v5 = vld [vmem:[%s16648_s3 + $0x40] sm:$0xf] }
 0x217   : > { %v9208_v9 = vor.u32 %v12032_v6, %v9207_v5  ;;  %v12063_v5 = vld [vmem:[%s16648_s3 + $0x154] sm:$0xf]  ;;  %v9341_v6 = vld [vmem:[%s16648_s3 + $0x16c] sm:$0xf0] }
 0x21b   : > { %v1076_v8 = vpop.f32.mrf.mxu0 }
 0x21c   : > { %v1077_v10 = vadd.f32 %v12783_v12, %v1076_v8 }
 0x21e   : > { %v1251_v14 = vmax.f32 %v1077_v10, 0.0 }
 0x220   : > { %v1425_v23 = vpack.c.bf16 %v1251_v14, %v1250_v13  ;;  %v9395_v14 = vld [vmem:[%s16648_s3 + $0x1c0] sm:$0xf] }
 0x221   : > { %1973 = vmatmul.bf16.gmra.mxu1 %v9340_v47  ;;  %v9396_v16 = vor.u32 %v12080_v15, %v9395_v14  ;;  %v12046_v47 = vld [vmem:[%s16648_s3 + $0xc8] sm:$0xf0]  ;;  %v13113_v14 = vld [vmem:[%s16648_s3 + $0x2a0] sm:$0xff] }
 0x222   : > { %2081 = vmatpush.bf16.msra.mxu3 %v1425_v23  ;;  %v12042_v23 = vld [vmem:[%s16648_s3 + $0xac] sm:$0xf]  ;;  %v1719_v15 = vunpack.c.l.b16 %v13113_v14 }
 0x223   : > { %v1079_v28 = vpop.f32.mrf.mxu0  ;;  %v9260_v25 = vor.u32 %v12042_v23, %v9257_v24  ;;  %v12009_v23 = vld [vmem:[%s12761_s17 + $0x138] sm:$0xff] }
 0x224   : > { %v1080_v18 = vadd.f32 %v12783_v12, %v1079_v28 }
 0x226   : > { %9152 = vmatmul.msk.bf16.gmra.mxu0 %vm802_vm0, %v12002_v27  ;;  %2082 = vmatpush.bf16.msra.mxu3 %v1424_v33  ;;  %v1252_v43 = vmax.f32 %v1080_v18, 0.0 }
 0x22a   : > { %2083 = vmatpush.bf16.msra.mxu3 %v1423_v38  ;;  %v12087_v38 = vld [vmem:[%s16648_s3 + $0x210] sm:$0xf0] }
 0x22b   : > { %v1081_v40 = vpop.f32.mrf.mxu0  ;;  %v9424_v20 = vor.u32 %v12087_v38, %v9423_v37 }
 0x22c   : > { %v1082_v41 = vadd.f32 %v12783_v12, %v1081_v40  ;;  %v12006_v40 = vld [vmem:[%s12761_s17 + $0x120] sm:$0xff] }
 0x22e   : > { %v1253_v44 = vmax.f32 %v1082_v41, 0.0  ;;  %2084 = vmatpush.bf16.msra.mxu3 %v1422_v42  ;;  %v12049_v42 = vld [vmem:[%s16648_s3 + $0xe4] sm:$0xf] }
 0x230   : > { %v12958_v48 = vpack.c.bf16 %v1253_v44, %v1252_v43  ;;  %v9285_v43 = vld [vmem:[%s16648_s3 + $0xfc] sm:$0xf0] }
 0x231   : > { %v9288_v44 = vor.u32 %v12049_v42, %v9285_v43 }
 0x232   : > { %2085 = vmatpush.bf16.msra.mxu3 %v12900_v50  ;;  %v9179_v50 = vld [vmem:[%s16648_s3 + $0x8] sm:$0xf] }
 0x233   : > { %v1084_v51 = vpop.f32.mrf.mxu0  ;;  %v9180_v59 = vor.u32 %v12025_v56, %v9179_v50  ;;  %v12007_v50 = vld [vmem:[%s12761_s17 + $0x128] sm:$0xff] }
 0x234   : > { %v1085_v55 = vadd.f32 %v12783_v12, %v1084_v51  ;;  %v9264_v51 = vor.u32 %v12046_v47, %v9263_v46 }
 0x236   : > { %9153 = vmatmul.msk.bf16.gmra.mxu0 %vm802_vm0, %v12003_v49  ;;  %2086 = vmatpush.bf16.msra.mxu3 %v12888_v39  ;;  %v1254_v60 = vmax.f32 %v1085_v55, 0.0  ;;  %v9452_v55 = vor.u32 %v12094_v54, %v9451_v53  ;;  %v12010_v54 = vld [vmem:[%s12761_s17 + $0x140] sm:$0xff] }
 0x23a   : > { %2087 = vmatpush.bf16.msra.mxu3 %v12876_v32  ;;  %v9367_v32 = vld [vmem:[%s16648_s3 + $0x188] sm:$0xf] }
 0x23b   : > { %v1086_v57 = vpop.f32.mrf.mxu0  ;;  %v9368_v62 = vor.u32 %v12073_v61, %v9367_v32  ;;  %v12053_v32 = vld [vmem:[%s16648_s3 + $0x100] sm:$0xf0] }
 0x23c   : > { %v1087_v58 = vadd.f32 %v12783_v12, %v1086_v57  ;;  %v12056_v57 = vld [vmem:[%s16648_s3 + $0x11c] sm:$0xf] }
 0x23d   : > { %1978 = vmatmul.bf16.gmra.mxu1 %v9368_v62 }
 0x23e   : > { %v1255_v39 = vmax.f32 %v1087_v58, 0.0  ;;  %2088 = vmatpush.bf16.msra.mxu3 %v12867_v22  ;;  %v9229_v22 = vld [vmem:[%s16648_s3 + $0x8c] sm:$0xf0]  ;;  %v13004_v13 = vpop.f32.mrf.mxu1  ;;  %v9313_v58 = vld [vmem:[%s16648_s3 + $0x134] sm:$0xf0] }
 0x23f   : > { %v9232_v3 = vor.u32 %v12035_v2, %v9229_v22  ;;  %v12101_v2 = vld [vmem:[%s16648_s3 + $0x280] sm:$0xf0] }
 0x240   : > { %v12986_v63 = vpack.c.bf16 %v1255_v39, %v1254_v60  ;;  %v9291_v39 = vld [vmem:[%s16648_s3 + $0xe8] sm:$0xf] }
 0x241   : > { %2089 = vmatmul.bf16.vlgmr.msra.gmra.mxu3 %v9180_v59  ;;  %2026 = vmatmul.bf16.gmra.mxu2 %v9232_v3  ;;  %v9316_v59 = vor.u32 %v12056_v57, %v9313_v58  ;;  %v9292_v62 = vor.u32 %v12053_v32, %v9291_v39  ;;  %v12008_v3 = vld [vmem:[%s12761_s17 + $0x130] sm:$0xff]  ;;  %v9397_v39 = vld [vmem:[%s16648_s3 + $0x1dc] sm:$0xf0] }
 0x243   : > { %v1089_v1 = vpop.f32.mrf.mxu0 }
 0x244   : > { %v1090_v4 = vadd.f32 %v12783_v12, %v1089_v1  ;;  %v9479_v1 = vld [vmem:[%s16648_s3 + $0x268] sm:$0xf] }
 0x245   : > { %v9480_v22 = vor.u32 %v12101_v2, %v9479_v1 }
 0x246   : > { %9154 = vmatmul.msk.bf16.gmra.mxu0 %vm802_vm0, %v12004_v0  ;;  %v1256_v10 = vmax.f32 %v1090_v4, 0.0  ;;  %v13022_v27 = vpop.f32.mrf.mxu1 }
 0x24b   : > { %v1091_v7 = vpop.f32.mrf.mxu0 }
 0x24c   : > { %v1092_v8 = vadd.f32 %v12783_v12, %v1091_v7  ;;  %v9344_v7 = vor.u32 %v12063_v5, %v9341_v6 }
 0x24d   : > { %1983 = vmatmul.bf16.gmra.mxu1 %v9396_v16 }
 0x24e   : > { %v1257_v11 = vmax.f32 %v1092_v8, 0.0  ;;  %v13032_v29 = vpop.f32.mrf.mxu1 }
 0x250   : > { %v13012_v17 = vpack.c.bf16 %v1257_v11, %v1256_v10  ;;  %v12060_v10 = vld [vmem:[%s16648_s3 + $0x138] sm:$0xf0] }
 0x251   : > { %2094 = vmatmul.bf16.gmra.mxu3 %v9208_v9  ;;  %2031 = vmatmul.bf16.gmra.mxu2 %v9260_v25  ;;  %v9319_v9 = vld [vmem:[%s16648_s3 + $0x120] sm:$0xf]  ;;  %v12070_v25 = vld [vmem:[%s16648_s3 + $0x18c] sm:$0xf] }
 0x252   : > { %v9320_v16 = vor.u32 %v12060_v10, %v9319_v9 }
 0x253   : > { %v1094_v21 = vpop.f32.mrf.mxu0 }
 0x254   : > { %v1095_v28 = vadd.f32 %v12783_v12, %v1094_v21  ;;  %v1810_v21 = vpack.c.b16 %v1719_v15, %v1719_v15 }
 0x256   : > { %9155 = vmatmul.msk.bf16.gmra.mxu0 %vm802_vm0, %v12005_v19  ;;  %v1258_v35 = vmax.f32 %v1095_v28, 0.0  ;;  %v13052_v45 = vpop.f32.mrf.mxu1  ;;  %v9369_v28 = vld [vmem:[%s16648_s3 + $0x1a4] sm:$0xf0] }
 0x257   : > { %v9372_v30 = vor.u32 %v12070_v25, %v9369_v28  ;;  %v12084_v25 = vld [vmem:[%s16648_s3 + $0x1fc] sm:$0xf]  ;;  %v9425_v28 = vld [vmem:[%s16648_s3 + $0x214] sm:$0xf0] }
 0x25b   : > { %v1096_v33 = vpop.f32.mrf.mxu0 }
 0x25c   : > { %v1097_v26 = vadd.f32 %v12783_v12, %v1096_v33 }
 0x25d   : > { %1988 = vmatmul.bf16.gmra.mxu1 %v9424_v20 }
 0x25e   : > { %v1259_v36 = vmax.f32 %v1097_v26, 0.0  ;;  %v13062_v52 = vpop.f32.mrf.mxu1  ;;  %v9347_v26 = vld [vmem:[%s16648_s3 + $0x158] sm:$0xf] }
 0x260   : > { %v13040_v18 = vpack.c.bf16 %v1259_v36, %v1258_v35 }
 0x261   : > { %2099 = vmatmul.bf16.gmra.mxu3 %v9236_v34  ;;  %2036 = vmatmul.bf16.gmra.mxu2 %v9288_v44  ;;  %v12067_v34 = vld [vmem:[%s16648_s3 + $0x170] sm:$0xf0] }
 0x262   : > { %v9348_v38 = vor.u32 %v12067_v34, %v9347_v26  ;;  %v9181_v34 = vld [vmem:[%s16648_s3 + $0x24] sm:$0xf0] }
 0x263   : > { %v13043_v41 = vpop.f32.mrf.mxu0 }
 0x266   : > { %9156 = vmatmul.msk.bf16.gmra.mxu0 %vm802_vm0, %v12006_v40  ;;  %v13078_v60 = vpop.f32.mrf.mxu1 }
 0x26b   : > { %v13060_v49 = vpop.f32.mrf.mxu0 }
 0x26d   : > { %1993 = vmatmul.bf16.gmra.mxu1 %v9452_v55 }
 0x26e   : > { %v13086_v0 = vpop.f32.mrf.mxu1 }
 0x271   : > { %2104 = vmatmul.bf16.gmra.mxu3 %v9264_v51  ;;  %2041 = vmatmul.bf16.gmra.mxu2 %v9316_v59  ;;  %v12077_v59 = vld [vmem:[%s16648_s3 + $0x1c4] sm:$0xf] }
 0x272   : > { %v9400_v32 = vor.u32 %v12077_v59, %v9397_v39  ;;  %v12029_v59 = vld [vmem:[%s16648_s3 + $0x44] sm:$0xf] }
 0x273   : > { %v1104_v56 = vpop.f32.mrf.mxu0 }
 0x274   : > { %v1105_v51 = vadd.f32 %v12783_v12, %v1104_v56  ;;  %v1100_v56 = vadd.f32 %v12783_v12, %v13043_v41  ;;  %v12074_v41 = vld [vmem:[%s16648_s3 + $0x1a8] sm:$0xf0] }
 0x276   : > { %9157 = vmatmul.msk.bf16.gmra.mxu0 %vm802_vm0, %v12007_v50  ;;  %v13102_v8 = vpop.f32.mrf.mxu1  ;;  %v1102_v50 = vadd.f32 %v12783_v12, %v13060_v49  ;;  %v1260_v2 = vmax.f32 %v1100_v56, 0.0  ;;  %v9209_v56 = vld [vmem:[%s16648_s3 + $0x5c] sm:$0xf0] }
 0x278   : > { %v1261_v49 = vmax.f32 %v1102_v50, 0.0  ;;  %v12091_v50 = vld [vmem:[%s16648_s3 + $0x234] sm:$0xf] }
 0x27b   : > { %v1106_v61 = vpop.f32.mrf.mxu0 }
 0x27c   : > { %v1107_v44 = vadd.f32 %v12783_v12, %v1106_v61  ;;  %v1262_v61 = vmax.f32 %v1105_v51, 0.0  ;;  %v12012_v51 = vld [vmem:[%s12761_s17 + $0x150] sm:$0xff] }
 0x27d   : > { %1998 = vmatmul.bf16.gmra.mxu1 %v9480_v22 }
 0x27e   : > { %v13116_v19 = vpop.f32.mrf.mxu1  ;;  %v1263_v57 = vmax.f32 %v1107_v44, 0.0 }
 0x280   : > { %v1431_v1 = vpack.c.bf16 %v1263_v57, %v1262_v61  ;;  %v9431_v61 = vld [vmem:[%s16648_s3 + $0x200] sm:$0xf] }
 0x281   : > { %2109 = vmatmul.bf16.gmra.mxu3 %v9292_v62  ;;  %2046 = vmatmul.bf16.gmra.mxu2 %v9344_v7  ;;  %v1430_v7 = vpack.c.bf16 %v1261_v49, %v1260_v2  ;;  %v12088_v49 = vld [vmem:[%s16648_s3 + $0x218] sm:$0xf0] }
 0x283   : > { %v1109_v4 = vpop.f32.mrf.mxu0 }
 0x284   : > { %v1110_v20 = vadd.f32 %v12783_v12, %v1109_v4  ;;  %v2017_v4 = vpop.f32.mrf.mxu2 }
 0x286   : > { %9158 = vmatmul.msk.bf16.gmra.mxu0 %vm802_vm0, %v12008_v3  ;;  %v13126_v31 = vpop.f32.mrf.mxu1  ;;  %v1264_v53 = vmax.f32 %v1110_v20, 0.0  ;;  %v9375_v3 = vld [vmem:[%s16648_s3 + $0x190] sm:$0xf] }
 0x287   : > { %v9376_v9 = vor.u32 %v12074_v41, %v9375_v3  ;;  %v9212_v3 = vor.u32 %v12029_v59, %v9209_v56 }
 0x28b   : > { %v1111_v11 = vpop.f32.mrf.mxu0 }
 0x28c   : > { %v1112_v36 = vadd.f32 %v12783_v12, %v1111_v11 }
 0x28d   : > { %2003 = vmatmul.bf16.gmra.mxu1 %v1810_v21  ;;  %v12011_v21 = vld [vmem:[%s12761_s17 + $0x148] sm:$0xff] }
 0x28e   : > { %v13138_v43 = vpop.f32.mrf.mxu1  ;;  %v1265_v46 = vmax.f32 %v1112_v36, 0.0 }
 0x290   : > { %v1432_v58 = vpack.c.bf16 %v1265_v46, %v1264_v53 }
 0x291   : > { %2114 = vmatmul.bf16.gmra.mxu3 %v9320_v16  ;;  %2051 = vmatmul.bf16.gmra.mxu2 %v9372_v30  ;;  %v9428_v30 = vor.u32 %v12084_v25, %v9425_v28  ;;  %v9481_v25 = vld [vmem:[%s16648_s3 + $0x284] sm:$0xf0] }
 0x293   : > { %v1114_v24 = vpop.f32.mrf.mxu0 }
 0x294   : > { %v1115_v33 = vadd.f32 %v12783_v12, %v1114_v24 }
 0x296   : > { %9159 = vmatmul.msk.bf16.gmra.mxu0 %vm802_vm0, %v12009_v23  ;;  %v1266_v40 = vmax.f32 %v1115_v33, 0.0  ;;  %v13154_v62 = vpop.f32.mrf.mxu1  ;;  %v2019_v23 = vpop.f32.mrf.mxu2 }
 0x297   : > { %v2020_v39 = vadd.f32 %v2019_v23, %v13022_v27 }
 0x29b   : > { %v1116_v35 = vpop.f32.mrf.mxu0 }
 0x29c   : > { %v1117_v37 = vadd.f32 %v12783_v12, %v1116_v35  ;;  %v12081_v35 = vld [vmem:[%s16648_s3 + $0x1e0] sm:$0xf0] }
 0x29e   : > { %v1267_v42 = vmax.f32 %v1117_v37, 0.0  ;;  %v13164_v15 = vpop.f32.mrf.mxu1  ;;  %v2022_v36 = vpop.f32.mrf.mxu2 }
 0x2a0   : > { %v1433_v47 = vpack.c.bf16 %v1267_v42, %v1266_v40 }
 0x2a1   : > { %2119 = vmatmul.bf16.gmra.mxu3 %v9348_v38  ;;  %2056 = vmatmul.bf16.gmra.mxu2 %v9400_v32 }
 0x2a2   : > { %2154 = vmatpush.bf16.msrb.mxu1 %v1433_v47  ;;  %v2018_v47 = vadd.f32 %v2017_v4, %v13004_v13  ;;  %v9432_v4 = vor.u32 %v12088_v49, %v9431_v61  ;;  %v12043_v61 = vld [vmem:[%s16648_s3 + $0xb4] sm:$0xf]  ;;  %v9487_v49 = vld [vmem:[%s16648_s3 + $0x270] sm:$0xf] }
 0x2a3   : > { %v1119_v55 = vpop.f32.mrf.mxu0 }
 0x2a4   : > { %v1120_v22 = vadd.f32 %v12783_v12, %v1119_v55 }
 0x2a6   : > { %9160 = vmatmul.msk.bf16.gmra.mxu0 %vm802_vm0, %v12010_v54  ;;  %2155 = vmatpush.bf16.msrb.mxu1 %v1432_v58  ;;  %v1268_v10 = vmax.f32 %v1120_v22, 0.0  ;;  %v13178_v33 = vpop.f32.mrf.mxu1  ;;  %v13202_v53 = vpop.f32.mrf.mxu2 }
 0x2a7   : > { %16668 = vst [vmem:[#allocation8_spill] sm:$0xff] %v13178_v33 }
 0x2aa   : > { %2156 = vmatpush.bf16.msrb.mxu1 %v1431_v1 }
 0x2ab   : > { %v1121_v5 = vpop.f32.mrf.mxu0 }
 0x2ac   : > { %v1122_v6 = vadd.f32 %v12783_v12, %v1121_v5 }
 0x2ae   : > { %v1269_v11 = vmax.f32 %v1122_v6, 0.0  ;;  %2157 = vmatpush.bf16.msrb.mxu1 %v1430_v7 }
 0x2b0   : > { %v13166_v16 = vpack.c.bf16 %v1269_v11, %v1268_v10  ;;  %v2023_v10 = vadd.f32 %v2022_v36, %v13032_v29  ;;  %v12013_v11 = vld [vmem:[%s12761_s17 + $0x158] sm:$0xff]  ;;  %v12095_v36 = vld [vmem:[%s16648_s3 + $0x250] sm:$0xf0] }
 0x2b1   : > { %2124 = vmatmul.bf16.gmra.mxu3 %v9376_v9  ;;  %2061 = vmatmul.bf16.gmra.mxu2 %v9428_v30 }
 0x2b2   : > { %2158 = vmatpush.bf16.msrb.mxu1 %v13040_v18  ;;  %v12022_v18 = vld [vmem:[%s16648_s3 + $0xc] sm:$0xf] }
 0x2b3   : > { %v1124_v24 = vpop.f32.mrf.mxu0  ;;  %v9184_v20 = vor.u32 %v12022_v18, %v9181_v34  ;;  %v12036_v18 = vld [vmem:[%s16648_s3 + $0x7c] sm:$0xf] }
 0x2b4   : > { %v1125_v26 = vadd.f32 %v12783_v12, %v1124_v24  ;;  %v12098_v24 = vld [vmem:[%s16648_s3 + $0x26c] sm:$0xf] }
 0x2b5   : > { %v9484_v30 = vor.u32 %v12098_v24, %v9481_v25 }
 0x2b6   : > { %9161 = vmatmul.msk.bf16.gmra.mxu0 %vm802_vm0, %v12011_v21  ;;  %2159 = vmatpush.bf16.msrb.mxu1 %v13012_v17  ;;  %v9403_v17 = vld [vmem:[%s16648_s3 + $0x1c8] sm:$0xf] }
 0x2b7   : > { %v9404_v40 = vor.u32 %v12081_v35, %v9403_v17  ;;  %v9237_v17 = vld [vmem:[%s16648_s3 + $0x94] sm:$0xf0] }
 0x2b8   : > { %v9459_v35 = vld [vmem:[%s16648_s3 + $0x238] sm:$0xf] }
 0x2ba   : > { %2160 = vmatpush.bf16.msrb.mxu1 %v12986_v63  ;;  %v1270_v63 = vmax.f32 %v1125_v26, 0.0  ;;  %v13196_v44 = vpop.f32.mrf.mxu1  ;;  %v13257_v26 = vld [vmem:[%s16667_s2] ss:$0 sm:$0xff]  ;;  %s12584_s2 = scalar_lea.hbm %s12583_s0, 1 }
 0x2bb   : > { %v1126_v37 = vpop.f32.mrf.mxu0  ;;  %p12585_p11 = scmp.ne.s32.totalorder %s12583_s0, %s12584_s2  ;;  %p12590_p1 = scmp.lt.s32.totalorder %s12588_s24, %s12584_s2 }
 0x2bc   : > { %v1127_v38 = vadd.f32 %v12783_v12, %v1126_v37 }
 0x2bd   : > { %p12586_p12 = pnand %p12585_p11, %p12740_p5  ;;  %p12591_p2 = por %p12590_p1, %p12589_p0 }
 0x2be   : > { %v1271_v42 = vmax.f32 %v1127_v38, 0.0  ;;  %2161 = vmatpush.bf16.msrb.mxu1 %v12958_v48  ;;  %v9453_v48 = vld [vmem:[%s16648_s3 + $0x24c] sm:$0xf0] }
 0x2bf   : > { %v9456_v58 = vor.u32 %v12091_v50, %v9453_v48  ;;  %v12014_v48 = vld [vmem:[%s12761_s17 + $0x160] sm:$0xff]  ;;  %p12587_p13 = pneg %p12586_p12 }
 0x2c0   : > { %v13198_v46 = vpack.c.bf16 %v1271_v42, %v1270_v63  ;;  %v9240_v63 = vor.u32 %v12036_v18, %v9237_v17  ;;  %v9460_v42 = vor.u32 %v12095_v36, %v9459_v35  ;;  %v13318_v18 = vld [vmem:[%s16648_s3 + $0x2a8] sm:$0xff] }
 0x2c1   : > { %2162 = vmatmul.bf16.vlgmr.msrb.gmra.mxu1 %v9184_v20  ;;  %2129 = vmatmul.bf16.gmra.mxu3 %v9404_v40  ;;  %v9293_v17 = vld [vmem:[%s16648_s3 + $0x104] sm:$0xf0]  ;;  %p12592_p3 = pnand %p12591_p2, %p12587_p13 }
 0x2c2   : > { %v13213_v13 = vpop.f32.mrf.mxu1  ;;  %2066 = vmatmul.bf16.gmra.mxu2 %v9456_v58 }
 0x2c3   : > { %v1129_v54 = vpop.f32.mrf.mxu0  ;;  %16669 = vst [vmem:[#allocation9_spill] sm:$0xff] %v13213_v13 }
 0x2c4   : > { %v2090_v55 = vpop.f32.mrf.mxu3  ;;  %v1130_v32 = vadd.f32 %v12783_v12, %v1129_v54  ;;  %v2027_v1 = vpop.f32.mrf.mxu2 }
 0x2c5   : > { %v13210_v57 = vadd.f32 %v2090_v55, %v2018_v47  ;;  %v2028_v50 = vadd.f32 %v2027_v1, %v13062_v52  ;;  %v9265_v52 = vld [vmem:[%s16648_s3 + $0xcc] sm:$0xf0]  ;;  %v12102_v1 = vld [vmem:[%s16648_s3 + $0x288] sm:$0xf0] }
 0x2c6   : > { %9162 = vmatmul.msk.bf16.gmra.mxu0 %vm802_vm0, %v12012_v51  ;;  %v1272_v5 = vmax.f32 %v1130_v32, 0.0 }
 0x2ca   : > { %v13232_v7 = vpop.f32.mrf.mxu1 }
 0x2cb   : > { %v1131_v2 = vpop.f32.mrf.mxu0 }
 0x2cc   : > { %v1132_v22 = vadd.f32 %v12783_v12, %v1131_v2  ;;  %v2092_v27 = vpop.f32.mrf.mxu3  ;;  %v13238_v21 = vpop.f32.mrf.mxu2 }
 0x2cd   : > { %v13230_v41 = vadd.f32 %v2092_v27, %v2020_v39  ;;  %v1720_v27 = vunpack.c.h.b16 %v13113_v14 }
 0x2ce   : > { %v1273_v6 = vmax.f32 %v1132_v22, 0.0 }
 0x2d0   : > { %v13234_v9 = vpack.c.bf16 %v1273_v6, %v1272_v5  ;;  %v9488_v5 = vor.u32 %v12102_v1, %v9487_v49  ;;  %v1811_v6 = vpack.c.b16 %v1720_v27, %v1720_v27 }
 0x2d1   : > { %2167 = vmatmul.bf16.gmra.mxu1 %v9212_v3  ;;  %2134 = vmatmul.bf16.gmra.mxu3 %v9432_v4  ;;  %v9268_v4 = vor.u32 %v12043_v61, %v9265_v52  ;;  %v12057_v52 = vld [vmem:[%s16648_s3 + $0x124] sm:$0xf] }
 0x2d2   : > { %v13249_v29 = vpop.f32.mrf.mxu1  ;;  %2071 = vmatmul.bf16.gmra.mxu2 %v9484_v30 }
 0x2d3   : > { %v1134_v23 = vpop.f32.mrf.mxu0  ;;  %16670 = vst [vmem:[#allocation10_spill] sm:$0xff] %v13249_v29 }
 0x2d4   : > { %v2095_v12 = vpop.f32.mrf.mxu3  ;;  %v1135_v34 = vadd.f32 %v13257_v26, %v1134_v23  ;;  %v2032_v37 = vpop.f32.mrf.mxu2  ;;  %v12015_v23 = vld [vmem:[%s12761_s17 + $0x168] sm:$0xff] }
 0x2d5   : > { %v13246_v28 = vadd.f32 %v2095_v12, %v2023_v10 }
 0x2d6   : > { %9163 = vmatmul.msk.bf16.gmra.mxu0 %vm802_vm0, %v12013_v11  ;;  %v1274_v47 = vmax.f32 %v1135_v34, 0.0  ;;  %v2033_v11 = vadd.f32 %v2032_v37, %v13086_v0  ;;  %v1721_v0 = vunpack.c.l.b16 %v13318_v18  ;;  %v12050_v34 = vld [vmem:[%s16648_s3 + $0xec] sm:$0xf] }
 0x2da   : > { %v13272_v54 = vpop.f32.mrf.mxu1 }
 0x2db   : > { %v1136_v38 = vpop.f32.mrf.mxu0 }
 0x2dc   : > { %v1137_v20 = vadd.f32 %v13257_v26, %v1136_v38  ;;  %v13270_v40 = vpop.f32.mrf.mxu3  ;;  %v13278_v58 = vpop.f32.mrf.mxu2  ;;  %v9296_v38 = vor.u32 %v12050_v34, %v9293_v17 }
 0x2de   : > { %v1275_v51 = vmax.f32 %v1137_v20, 0.0  ;;  %v1812_v20 = vpack.c.b16 %v1721_v0, %v1721_v0 }
 0x2e0   : > { %v13274_v55 = vpack.c.bf16 %v1275_v51, %v1274_v47  ;;  %v12016_v47 = vld [vmem:[%s12761_s17 + $0x170] sm:$0xff] }
 0x2e1   : > { %2172 = vmatmul.bf16.gmra.mxu1 %v9240_v63  ;;  %2139 = vmatmul.bf16.gmra.mxu3 %v9460_v42 }
 0x2e2   : > { %v13285_v56 = vpop.f32.mrf.mxu1  ;;  %2076 = vmatmul.bf16.gmra.mxu2 %v1811_v6  ;;  %v12017_v6 = vld [vmem:[%s12761_s17 + $0x178] sm:$0xff] }
 0x2e3   : > { %v13280_v59 = vpop.f32.mrf.mxu0  ;;  %16671 = vst [vmem:[#allocation11_spill] sm:$0xff] %v13285_v56 }
 0x2e4   : > { %v2100_v39 = vpop.f32.mrf.mxu3  ;;  %v2037_v2 = vpop.f32.mrf.mxu2 }
 0x2e5   : > { %v13282_v32 = vadd.f32 %v2100_v39, %v2028_v50  ;;  %v2038_v42 = vadd.f32 %v2037_v2, %v13116_v19  ;;  %v9321_v19 = vld [vmem:[%s16648_s3 + $0x13c] sm:$0xf0] }
 0x2e6   : > { %9164 = vmatmul.msk.bf16.gmra.mxu0 %vm802_vm0, %v12014_v48  ;;  %v9324_v27 = vor.u32 %v12057_v52, %v9321_v19 }
 0x2ea   : > { %v13304_v10 = vpop.f32.mrf.mxu1 }
 0x2eb   : > { %v13299_v22 = vpop.f32.mrf.mxu0 }
 0x2ec   : > { %v13302_v3 = vpop.f32.mrf.mxu3  ;;  %v13308_v12 = vpop.f32.mrf.mxu2 }
 0x2f1   : > { %2177 = vmatmul.bf16.gmra.mxu1 %v9268_v4  ;;  %2144 = vmatmul.bf16.gmra.mxu3 %v9488_v5 }
 0x2f2   : > { %v13313_v14 = vpop.f32.mrf.mxu1 }
 0x2f3   : > { %v1144_v24 = vpop.f32.mrf.mxu0  ;;  %16672 = vst [vmem:[#allocation12_spill] sm:$0xff] %v13313_v14 }
 0x2f4   : > { %v2105_v25 = vpop.f32.mrf.mxu3  ;;  %v2042_v35 = vpop.f32.mrf.mxu2 }
 0x2f5   : > { %v13310_v30 = vadd.f32 %v2105_v25, %v2033_v11  ;;  %v2043_v5 = vadd.f32 %v2042_v35, %v13138_v43  ;;  %v9349_v43 = vld [vmem:[%s16648_s3 + $0x174] sm:$0xf0] }
 0x2f6   : > { %9165 = vmatmul.msk.bf16.gmra.mxu0 %vm802_vm0, %v12015_v23 }
 0x2fa   : > { %v13329_v63 = vpop.f32.mrf.mxu1 }
 0x2fb   : > { %v1146_v36 = vpop.f32.mrf.mxu0 }
 0x2fc   : > { %v13327_v37 = vpop.f32.mrf.mxu3  ;;  %v13333_v51 = vpop.f32.mrf.mxu2 }
 0x301   : > { %2182 = vmatmul.bf16.gmra.mxu1 %v9296_v38  ;;  %2149 = vmatmul.bf16.gmra.mxu3 %v1812_v20  ;;  %v12064_v38 = vld [vmem:[%s16648_s3 + $0x15c] sm:$0xf] }
 0x302   : > { %v13338_v61 = vpop.f32.mrf.mxu1  ;;  %v9352_v52 = vor.u32 %v12064_v38, %v9349_v43 }
 0x303   : > { %v1149_v50 = vpop.f32.mrf.mxu0  ;;  %16673 = vst [vmem:[#allocation13_spill] sm:$0xff] %v13338_v61  ;;  %v1145_v61 = vadd.f32 %v13257_v26, %v1144_v24 }
 0x304   : > { %v2110_v48 = vpop.f32.mrf.mxu3  ;;  %v2047_v49 = vpop.f32.mrf.mxu2  ;;  %v1150_v19 = vadd.f32 %v13257_v26, %v1149_v50  ;;  %v1142_v50 = vadd.f32 %v13257_v26, %v13299_v22  ;;  %v12071_v22 = vld [vmem:[%s16648_s3 + $0x194] sm:$0xf] }
 0x305   : > { %v13335_v39 = vadd.f32 %v2110_v48, %v2038_v42 }
 0x306   : > { %9166 = vmatmul.msk.bf16.gmra.mxu0 %vm802_vm0, %v12016_v47  ;;  %v1280_v14 = vmax.f32 %v1150_v19, 0.0  ;;  %v1277_v24 = vmax.f32 %v1142_v50, 0.0  ;;  %v12078_v50 = vld [vmem:[%s16648_s3 + $0x1cc] sm:$0xf] }
 0x30a   : > { %v13348_v4 = vpop.f32.mrf.mxu1 }
 0x30b   : > { %v1151_v1 = vpop.f32.mrf.mxu0 }
 0x30c   : > { %v13346_v2 = vpop.f32.mrf.mxu3  ;;  %v13352_v11 = vpop.f32.mrf.mxu2  ;;  %v1152_v42 = vadd.f32 %v13257_v26, %v1151_v1  ;;  %v12018_v1 = vld [vmem:[%s12761_s17 + $0x180] sm:$0xff] }
 0x30d   : > { %16674 = vst [vmem:[#allocation14_spill] sm:$0xff] %v13352_v11 }
 0x311   : > { %2187 = vmatmul.bf16.gmra.mxu1 %v9324_v27 }
 0x312   : > { %v2006_v34 = vpop.f32.mrf.mxu1 }
 0x313   : > { %v1154_v23 = vpop.f32.mrf.mxu0  ;;  %v2048_v34 = vadd.f32 %v2047_v49, %v13164_v15  ;;  %v1140_v15 = vadd.f32 %v13257_v26, %v13280_v59  ;;  %v1278_v49 = vmax.f32 %v1145_v61, 0.0 }
 0x314   : > { %v2115_v25 = vpop.f32.mrf.mxu3  ;;  %v1155_v17 = vadd.f32 %v13257_v26, %v1154_v23  ;;  %v2052_v35 = vpop.f32.mrf.mxu2  ;;  %v1281_v23 = vmax.f32 %v1152_v42, 0.0 }
 0x315   : > { %v13354_v0 = vadd.f32 %v2115_v25, %v2043_v5 }
 0x316   : > { %9167 = vmatmul.msk.bf16.gmra.mxu0 %vm802_vm0, %v12017_v6  ;;  %v1282_v27 = vmax.f32 %v1155_v17, 0.0  ;;  %v1147_v6 = vadd.f32 %v13257_v26, %v1146_v36  ;;  %v1440_v38 = vpack.c.bf16 %v1281_v23, %v1280_v14  ;;  %v9377_v14 = vld [vmem:[%s16648_s3 + $0x1ac] sm:$0xf0] }
 0x318   : > { %v1279_v17 = vmax.f32 %v1147_v6, 0.0 }
 0x31a   : > { %v1439_v42 = vpack.c.bf16 %v1279_v17, %v1278_v49 }
 0x31b   : > { %v1156_v20 = vpop.f32.mrf.mxu0 }
 0x31c   : > { %v1157_v47 = vadd.f32 %v13257_v26, %v1156_v20  ;;  %v13366_v48 = vpop.f32.mrf.mxu3  ;;  %v13373_v20 = vpop.f32.mrf.mxu2 }
 0x31d   : > { %16675 = vst [vmem:[#allocation15_spill] sm:$0xff] %v13366_v48 }
 0x31e   : > { %v1283_v5 = vmax.f32 %v1157_v47, 0.0  ;;  %16676 = vst [vmem:[#allocation16_spill] sm:$0xff] %v13373_v20  ;;  %v1276_v47 = vmax.f32 %v1140_v15, 0.0  ;;  %v1722_v20 = vunpack.c.h.b16 %v13318_v18 }
 0x320   : > { %v1441_v25 = vpack.c.bf16 %v1283_v5, %v1282_v27  ;;  %v1438_v59 = vpack.c.bf16 %v1277_v24, %v1276_v47  ;;  %v9380_v27 = vor.u32 %v12071_v22, %v9377_v14  ;;  %v2053_v5 = vadd.f32 %v2052_v35, %v13196_v44  ;;  %v9405_v44 = vld [vmem:[%s16648_s3 + $0x1e4] sm:$0xf0] }
 0x321   : > { %2192 = vmatmul.bf16.gmra.mxu1 %v9352_v52 }
 0x322   : > { %2227 = vmatpush.bf16.msrb.mxu2 %v1441_v25 }
 0x323   : > { %v13375_v56 = vpop.f32.mrf.mxu0 }
 0x324   : > { %v2120_v36 = vpop.f32.mrf.mxu3  ;;  %v2057_v52 = vpop.f32.mrf.mxu2 }
 0x325   : > { %v13379_v43 = vadd.f32 %v2120_v36, %v2048_v34  ;;  %v9408_v36 = vor.u32 %v12078_v50, %v9405_v44  ;;  %v2058_v24 = vadd.f32 %v2057_v52, %v13232_v7  ;;  %v9215_v7 = vld [vmem:[%s16648_s3 + $0x48] sm:$0xf]  ;;  %v12033_v52 = vld [vmem:[%s16648_s3 + $0x60] sm:$0xf0] }
 0x326   : > { %9168 = vmatmul.msk.bf16.gmra.mxu0 %vm802_vm0, %v12018_v1  ;;  %2228 = vmatpush.bf16.msrb.mxu2 %v1440_v38  ;;  %v12168_v1 = vld [vmem:[%s16649_s4 + $0x1f8] sm:$0xff]  ;;  %v9216_v50 = vor.u32 %v12033_v52, %v9215_v7 }
 0x327   : > { %3674 = vmatpush.bf16.msrb.mxu0 %v12168_v1 }
 0x32a   : > { %2229 = vmatpush.bf16.msrb.mxu2 %v1439_v42 }
 0x32b   : > { %v13390_v19 = vpop.f32.mrf.mxu0 }
 0x32c   : > { %v13392_v61 = vpop.f32.mrf.mxu3  ;;  %v13396_v6 = vpop.f32.mrf.mxu2 }
 0x32d   : > { %16677 = vst [vmem:[#allocation17_spill] sm:$0xff] %v13392_v61 }
 0x32e   : > { %2230 = vmatpush.bf16.msrb.mxu2 %v1438_v59  ;;  %16678 = vst [vmem:[#allocation18_spill] sm:$0xff] %v13396_v6 }
 0x331   : > { %2197 = vmatmul.bf16.gmra.mxu1 %v9380_v27 }
 0x332   : > { %2231 = vmatpush.bf16.msrb.mxu2 %v13274_v55  ;;  %v9187_v55 = vld [vmem:[%s16648_s3 + $0x10] sm:$0xf] }
 0x333   : > { %v13398_v23 = vpop.f32.mrf.mxu0 }
 0x334   : > { %v2125_v25 = vpop.f32.mrf.mxu3  ;;  %v2062_v35 = vpop.f32.mrf.mxu2 }
 0x335   : > { %v13400_v34 = vadd.f32 %v2125_v25, %v2053_v5 }
 0x336   : > { %2232 = vmatpush.bf16.msrb.mxu2 %v13234_v9  ;;  %v12026_v9 = vld [vmem:[%s16648_s3 + $0x28] sm:$0xf0] }
 0x337   : > { %v9188_v15 = vor.u32 %v12026_v9, %v9187_v55  ;;  %v2063_v9 = vadd.f32 %v2062_v35, %v13272_v54  ;;  %v9243_v54 = vld [vmem:[%s16648_s3 + $0x80] sm:$0xf]  ;;  %v12040_v35 = vld [vmem:[%s16648_s3 + $0x98] sm:$0xf0] }
 0x338   : > { %v9244_v52 = vor.u32 %v12040_v35, %v9243_v54 }
 0x33a   : > { %2233 = vmatpush.bf16.msrb.mxu2 %v13198_v46 }
 0x33b   : > { %v13419_v17 = vpop.f32.mrf.mxu0 }
 0x33c   : > { %v13421_v38 = vpop.f32.mrf.mxu3  ;;  %v13428_v42 = vpop.f32.mrf.mxu2 }
 0x33d   : > { %16679 = vst [vmem:[#allocation19_spill] sm:$0xff] %v13421_v38 }
 0x33e   : > { %v2163_v46 = vpop.f32.mrf.mxu1  ;;  %2234 = vmatpush.bf16.msrb.mxu2 %v13166_v16  ;;  %16680 = vst [vmem:[#allocation20_spill] sm:$0xff] %v13428_v42  ;;  %v12085_v16 = vld [vmem:[%s16648_s3 + $0x204] sm:$0xf] }
 0x33f   : > { %v13425_v49 = vadd.f32 %v2163_v46, %v13210_v57  ;;  %v9433_v57 = vld [vmem:[%s16648_s3 + $0x21c] sm:$0xf0] }
 0x340   : > { %v9436_v1 = vor.u32 %v12085_v16, %v9433_v57 }
 0x341   : > { %2202 = vmatmul.bf16.gmra.mxu1 %v9408_v36  ;;  %2235 = vmatmul.bf16.vlgmr.msrb.gmra.mxu2 %v9188_v15 }
 0x343   : > { %v13430_v47 = vpop.f32.mrf.mxu0 }
 0x344   : > { %v2130_v22 = vpop.f32.mrf.mxu3 }
 0x345   : > { %v13432_v14 = vadd.f32 %v2130_v22, %v2058_v24  ;;  %v2067_v25 = vpop.f32.mrf.mxu2 }
 0x346   : > { %v2165_v59 = vpop.f32.mrf.mxu1 }
 0x347   : > { %v13435_v27 = vadd.f32 %v2165_v59, %v13230_v41  ;;  %v12092_v59 = vld [vmem:[%s16648_s3 + $0x23c] sm:$0xf] }
 0x34b   : > { %v13449_v5 = vpop.f32.mrf.mxu0 }
 0x34c   : > { %v13451_v41 = vpop.f32.mrf.mxu3 }
 0x34d   : > { %16681 = vst [vmem:[#allocation21_spill] sm:$0xff] %v13451_v41  ;;  %v13463_v22 = vpop.f32.mrf.mxu2 }
 0x34e   : > { %v2168_v44 = vpop.f32.mrf.mxu1  ;;  %16682 = vst [vmem:[#allocation22_spill] sm:$0xff] %v13463_v22 }
 0x34f   : > { %v13454_v55 = vadd.f32 %v2168_v44, %v13246_v28  ;;  %v9461_v28 = vld [vmem:[%s16648_s3 + $0x254] sm:$0xf0] }
 0x350   : > { %v9464_v7 = vor.u32 %v12092_v59, %v9461_v28  ;;  %v12099_v59 = vld [vmem:[%s16648_s3 + $0x274] sm:$0xf]  ;;  %v9271_v28 = vld [vmem:[%s16648_s3 + $0xb8] sm:$0xf] }
 0x351   : > { %2207 = vmatmul.bf16.gmra.mxu1 %v9436_v1  ;;  %2240 = vmatmul.bf16.gmra.mxu2 %v9216_v50 }
 0x353   : > { %v13457_v36 = vpop.f32.mrf.mxu0 }
 0x354   : > { %v2135_v15 = vpop.f32.mrf.mxu3 }
 0x355   : > { %v13459_v46 = vadd.f32 %v2135_v15, %v2063_v9  ;;  %v2072_v44 = vpop.f32.mrf.mxu2  ;;  %v2068_v9 = vadd.f32 %v2067_v25, %v13304_v10  ;;  %v12047_v10 = vld [vmem:[%s16648_s3 + $0xd0] sm:$0xf0] }
 0x356   : > { %v13461_v24 = vpop.f32.mrf.mxu1 }
 0x35b   : > { %v13477_v16 = vpop.f32.mrf.mxu0 }
 0x35c   : > { %v13479_v57 = vpop.f32.mrf.mxu3 }
 0x35d   : > { %16683 = vst [vmem:[#allocation23_spill] sm:$0xff] %v13479_v57  ;;  %v13503_v25 = vpop.f32.mrf.mxu2 }
 0x35e   : > { %v2173_v1 = vpop.f32.mrf.mxu1  ;;  %16684 = vst [vmem:[#allocation24_spill] sm:$0xff] %v13503_v25 }
 0x35f   : > { %v13482_v50 = vadd.f32 %v2173_v1, %v13282_v32  ;;  %v9489_v32 = vld [vmem:[%s16648_s3 + $0x28c] sm:$0xf0] }
 0x360   : > { %v9492_v35 = vor.u32 %v12099_v59, %v9489_v32  ;;  %v9299_v59 = vld [vmem:[%s16648_s3 + $0xf0] sm:$0xf] }
 0x361   : > { %2212 = vmatmul.bf16.gmra.mxu1 %v9464_v7  ;;  %2245 = vmatmul.bf16.gmra.mxu2 %v9244_v52  ;;  %v9272_v7 = vor.u32 %v12047_v10, %v9271_v28 }
 0x363   : > { %v13485_v15 = vpop.f32.mrf.mxu0 }
 0x364   : > { %v2140_v22 = vpop.f32.mrf.mxu3 }
 0x365   : > { %v13487_v42 = vadd.f32 %v2140_v22, %v2068_v9  ;;  %v2073_v9 = vadd.f32 %v2072_v44, %v13329_v63  ;;  %v2077_v57 = vpop.f32.mrf.mxu2  ;;  %v1813_v44 = vpack.c.b16 %v1722_v20, %v1722_v20  ;;  %v12061_v20 = vld [vmem:[%s16648_s3 + $0x140] sm:$0xf0] }
 0x366   : > { %v13489_v41 = vpop.f32.mrf.mxu1  ;;  %v2078_v18 = vadd.f32 %v2077_v57, %v13348_v4 }
 0x36b   : > { %v13505_v22 = vpop.f32.mrf.mxu0 }
 0x36c   : > { %v13507_v54 = vpop.f32.mrf.mxu3 }
 0x36d   : > { %16685 = vst [vmem:[#allocation25_spill] sm:$0xff] %v13507_v54  ;;  %v2079_v32 = vpop.f32.mrf.mxu2 }
 0x36e   : > { %v2178_v52 = vpop.f32.mrf.mxu1  ;;  %v9327_v32 = vld [vmem:[%s16648_s3 + $0x128] sm:$0xf] }
 0x36f   : > { %v13510_v1 = vadd.f32 %v2178_v52, %v13310_v30  ;;  %v12054_v30 = vld [vmem:[%s16648_s3 + $0x108] sm:$0xf0] }
 0x370   : > { %v9300_v10 = vor.u32 %v12054_v30, %v9299_v59  ;;  %v9328_v30 = vor.u32 %v12061_v20, %v9327_v32  ;;  %v12167_v32 = vld [vmem:[%s16649_s4 + $0x1f0] sm:$0xff] }
 0x371   : > { %2217 = vmatmul.bf16.gmra.mxu1 %v9492_v35  ;;  %2250 = vmatmul.bf16.gmra.mxu2 %v9272_v7 }
 0x372   : > { %3675 = vmatpush.bf16.msrb.mxu0 %v12167_v32  ;;  %v1175_v32 = vadd.f32 %v13257_v26, %v13457_v36 }
 0x373   : > { %v1184_v6 = vpop.f32.mrf.mxu0 }
 0x374   : > { %v2145_v29 = vpop.f32.mrf.mxu3  ;;  %v1185_v48 = vadd.f32 %v13257_v26, %v1184_v6 }
 0x375   : > { %v13513_v38 = vadd.f32 %v2145_v29, %v2073_v9 }
 0x376   : > { %v13515_v25 = vpop.f32.mrf.mxu1 }
 0x37b   : > { %v1186_v28 = vpop.f32.mrf.mxu0 }
 0x37c   : > { %v13524_v63 = vpop.f32.mrf.mxu3  ;;  %v1187_v11 = vadd.f32 %v13257_v26, %v1186_v28  ;;  %v1177_v28 = vadd.f32 %v13257_v26, %v13477_v16 }
 0x37d   : > { %16686 = vst [vmem:[#allocation26_spill] sm:$0xff] %v13524_v63 }
 0x37e   : > { %v2183_v29 = vpop.f32.mrf.mxu1 }
 0x37f   : > { %v13527_v35 = vadd.f32 %v2183_v29, %v13335_v39 }
 0x381   : > { %2222 = vmatmul.bf16.gmra.mxu1 %v1813_v44  ;;  %2255 = vmatmul.bf16.gmra.mxu2 %v9300_v10 }
 0x383   : > { %v1189_v7 = vpop.f32.mrf.mxu0 }
 0x384   : > { %v2150_v52 = vpop.f32.mrf.mxu3 }
 0x385   : > { %v13530_v9 = vadd.f32 %v2150_v52, %v2078_v18  ;;  %v9355_v18 = vld [vmem:[%s16648_s3 + $0x160] sm:$0xf]  ;;  %v12068_v52 = vld [vmem:[%s16648_s3 + $0x178] sm:$0xf0] }
 0x386   : > { %v13532_v54 = vpop.f32.mrf.mxu1 }
 0x38b   : > { %v1191_v39 = vpop.f32.mrf.mxu0 }
 0x38c   : > { %v2152_v59 = vpop.f32.mrf.mxu3  ;;  %v1192_v20 = vadd.f32 %v13257_v26, %v1191_v39 }
 0x38e   : > { %v2188_v44 = vpop.f32.mrf.mxu1  ;;  %v1297_v33 = vmax.f32 %v1192_v20, 0.0 }
 0x38f   : > { %v13541_v4 = vadd.f32 %v2188_v44, %v13354_v0  ;;  %v1190_v44 = vadd.f32 %v13257_v26, %v1189_v7  ;;  %v1295_v7 = vmax.f32 %v1187_v11, 0.0  ;;  %v12075_v11 = vld [vmem:[%s16648_s3 + $0x1b0] sm:$0xf0] }
 0x391   : > { %2260 = vmatmul.bf16.gmra.mxu2 %v9328_v30  ;;  %v9356_v30 = vor.u32 %v12068_v52, %v9355_v18  ;;  %v1296_v39 = vmax.f32 %v1190_v44, 0.0  ;;  %v1182_v18 = vadd.f32 %v13257_v26, %v13505_v22  ;;  %v1180_v52 = vadd.f32 %v13257_v26, %v13485_v15 }
 0x392   : > { %v1291_v15 = vmax.f32 %v1177_v28, 0.0  ;;  %v1170_v44 = vadd.f32 %v13257_v26, %v13430_v47 }
 0x393   : > { %v1194_v57 = vpop.f32.mrf.mxu0  ;;  %v1292_v22 = vmax.f32 %v1180_v52, 0.0 }
 0x394   : > { %v1195_v29 = vadd.f32 %v13257_v26, %v1194_v57 }
 0x396   : > { %v13543_v10 = vpop.f32.mrf.mxu1  ;;  %v1298_v57 = vmax.f32 %v1195_v29, 0.0  ;;  %v1448_v29 = vpack.c.bf16 %v1297_v33, %v1296_v39  ;;  %v9383_v33 = vld [vmem:[%s16648_s3 + $0x198] sm:$0xf] }
 0x397   : > { %16687 = vst [vmem:[#allocation27_spill] sm:$0xff] %v13543_v10  ;;  %v9384_v36 = vor.u32 %v12075_v11, %v9383_v33 }
 0x39b   : > { %v1196_v0 = vpop.f32.mrf.mxu0 }
 0x39c   : > { %v1197_v59 = vadd.f32 %v13257_v26, %v1196_v0 }
 0x39e   : > { %v1299_v63 = vmax.f32 %v1197_v59, 0.0  ;;  %v2193_v13 = vpop.f32.mrf.mxu1 }
 0x39f   : > { %v13559_v61 = vadd.f32 %v2193_v13, %v13379_v43  ;;  %v1294_v13 = vmax.f32 %v1185_v48, 0.0  ;;  %v1172_v48 = vadd.f32 %v13257_v26, %v13449_v5  ;;  %v12027_v5 = vld [vmem:[%s16648_s3 + $0x30] sm:$0xf0] }
 0x3a0   : > { %v1449_v10 = vpack.c.bf16 %v1299_v63, %v1298_v57  ;;  %v1293_v63 = vmax.f32 %v1182_v18, 0.0  ;;  %v1290_v57 = vmax.f32 %v1175_v32, 0.0  ;;  %v9195_v18 = vld [vmem:[%s16648_s3 + $0x18] sm:$0xf] }
 0x3a1   : > { %2265 = vmatmul.bf16.gmra.mxu2 %v9356_v30  ;;  %v1289_v52 = vmax.f32 %v1172_v48, 0.0  ;;  %v9196_v28 = vor.u32 %v12027_v5, %v9195_v18 }
 0x3a2   : > { %2300 = vmatpush.bf16.msrb.mxu3 %v1449_v10  ;;  %v1447_v10 = vpack.c.bf16 %v1295_v7, %v1294_v13  ;;  %v1446_v30 = vpack.c.bf16 %v1293_v63, %v1292_v22  ;;  %v1445_v13 = vpack.c.bf16 %v1291_v15, %v1290_v57  ;;  %v1165_v63 = vadd.f32 %v13257_v26, %v13398_v23 }
 0x3a3   : > { %v1199_v0 = vpop.f32.mrf.mxu0 }
 0x3a4   : > { %v1200_v6 = vadd.f32 %v13257_v26, %v1199_v0  ;;  %v1286_v22 = vmax.f32 %v1165_v63, 0.0 }
 0x3a6   : > { %v13567_v43 = vpop.f32.mrf.mxu1  ;;  %2301 = vmatpush.bf16.msrb.mxu3 %v1448_v29  ;;  %v1300_v20 = vmax.f32 %v1200_v6, 0.0  ;;  %v1167_v29 = vadd.f32 %v13257_v26, %v13419_v17  ;;  %v1288_v6 = vmax.f32 %v1170_v44, 0.0  ;;  %v1160_v17 = vadd.f32 %v13257_v26, %v13375_v56  ;;  %v9189_v56 = vld [vmem:[%s16648_s3 + $0x2c] sm:$0xf0]  ;;  %v12034_v44 = vld [vmem:[%s16648_s3 + $0x68] sm:$0xf0] }
 0x3a8   : > { %v1444_v32 = vpack.c.bf16 %v1289_v52, %v1288_v6  ;;  %v1284_v48 = vmax.f32 %v1160_v17, 0.0  ;;  %v12030_v52 = vld [vmem:[%s16648_s3 + $0x4c] sm:$0xf] }
 0x3aa   : > { %2302 = vmatpush.bf16.msrb.mxu3 %v1447_v10  ;;  %v1162_v10 = vadd.f32 %v13257_v26, %v13390_v19  ;;  %v12082_v19 = vld [vmem:[%s16648_s3 + $0x1e8] sm:$0xf0] }
 0x3ab   : > { %v1201_v16 = vpop.f32.mrf.mxu0 }
 0x3ac   : > { %v1202_v59 = vadd.f32 %v13257_v26, %v1201_v16  ;;  %v1285_v11 = vmax.f32 %v1162_v10, 0.0  ;;  %v9411_v16 = vld [vmem:[%s16648_s3 + $0x1d0] sm:$0xf]  ;;  %v12023_v26 = vld [vmem:[%s16648_s3 + $0x14] sm:$0xf] }
 0x3ad   : > { %v9251_v10 = vld [vmem:[%s16648_s3 + $0x88] sm:$0xf] }
 0x3ae   : > { %v1301_v39 = vmax.f32 %v1202_v59, 0.0  ;;  %v2198_v0 = vpop.f32.mrf.mxu1  ;;  %2303 = vmatpush.bf16.msrb.mxu3 %v1446_v30  ;;  %v1442_v15 = vpack.c.bf16 %v1285_v11, %v1284_v48  ;;  %v9192_v59 = vor.u32 %v12023_v26, %v9189_v56  ;;  %v12037_v48 = vld [vmem:[%s16648_s3 + $0x84] sm:$0xf] }
 0x3af   : > { %v13592_v7 = vadd.f32 %v2198_v0, %v13400_v34  ;;  %v1287_v34 = vmax.f32 %v1167_v29, 0.0  ;;  %v9439_v29 = vld [vmem:[%s16648_s3 + $0x208] sm:$0xf] }
 0x3b0   : > { %v1450_v47 = vpack.c.bf16 %v1301_v39, %v1300_v20  ;;  %v9412_v20 = vor.u32 %v12082_v19, %v9411_v16 }
 0x3b1   : > { %2270 = vmatmul.bf16.gmra.mxu2 %v9384_v36  ;;  %v1443_v23 = vpack.c.bf16 %v1287_v34, %v1286_v22  ;;  %v9223_v36 = vld [vmem:[%s16648_s3 + $0x50] sm:$0xf]  ;;  %v12041_v34 = vld [vmem:[%s16648_s3 + $0xa0] sm:$0xf0] }
 0x3b2   : > { %2304 = vmatpush.bf16.msrb.mxu3 %v1445_v13  ;;  %2380 = vmatpush.bf16.msra.mxu1 %v1450_v47  ;;  %v9224_v39 = vor.u32 %v12034_v44, %v9223_v36  ;;  %v9252_v17 = vor.u32 %v12041_v34, %v9251_v10 }
 0x3b5   : > { %9505 = vmatmul.msk.bf16.vlgmr.msra.gmra.mxu1 %vm1895_vm1, %v9196_v28 }
 0x3b6   : > { %v13603_v33 = vpop.f32.mrf.mxu1  ;;  %2305 = vmatpush.bf16.msrb.mxu3 %v1444_v32 }
 0x3ba   : > { %2306 = vmatpush.bf16.msrb.mxu3 %v1443_v23  ;;  %v9467_v23 = vld [vmem:[%s16648_s3 + $0x240] sm:$0xf] }
 0x3be   : > { %v2203_v30 = vpop.f32.mrf.mxu1  ;;  %2307 = vmatpush.bf16.msrb.mxu3 %v1442_v15  ;;  %v9279_v15 = vld [vmem:[%s16648_s3 + $0xc0] sm:$0xf] }
 0x3bf   : > { %v13624_v57 = vadd.f32 %v2203_v30, %v13432_v14  ;;  %v12089_v14 = vld [vmem:[%s16648_s3 + $0x220] sm:$0xf0] }
 0x3c0   : > { %v9440_v28 = vor.u32 %v12089_v14, %v9439_v29  ;;  %v12044_v29 = vld [vmem:[%s16648_s3 + $0xbc] sm:$0xf] }
 0x3c1   : > { %2275 = vmatmul.bf16.gmra.mxu2 %v9412_v20  ;;  %2308 = vmatmul.bf16.vlgmr.msrb.gmra.mxu3 %v9192_v59  ;;  %v12048_v20 = vld [vmem:[%s16648_s3 + $0xd8] sm:$0xf0] }
 0x3c2   : > { %v9280_v30 = vor.u32 %v12048_v20, %v9279_v15  ;;  %v9335_v15 = vld [vmem:[%s16648_s3 + $0x130] sm:$0xf]  ;;  %v12062_v20 = vld [vmem:[%s16648_s3 + $0x148] sm:$0xf0] }
 0x3c4   : > { %v2236_v0 = vpop.f32.mrf.mxu2 }
 0x3c5   : > { %v13627_v18 = vadd.f32 %v2236_v0, %v13425_v49  ;;  %9506 = vmatmul.msk.bf16.gmra.mxu1 %vm1895_vm1, %v9224_v39  ;;  %v9217_v49 = vld [vmem:[%s16648_s3 + $0x64] sm:$0xf0]  ;;  %v9495_v0 = vld [vmem:[%s16648_s3 + $0x278] sm:$0xf] }
 0x3c6   : > { %v13630_v5 = vpop.f32.mrf.mxu1  ;;  %v9220_v63 = vor.u32 %v12030_v52, %v9217_v49 }
 0x3cc   : > { %v2238_v47 = vpop.f32.mrf.mxu2 }
 0x3cd   : > { %v13645_v13 = vadd.f32 %v2238_v47, %v13435_v27 }
 0x3ce   : > { %v2208_v6 = vpop.f32.mrf.mxu1 }
 0x3cf   : > { %v13654_v32 = vadd.f32 %v2208_v6, %v13459_v46  ;;  %v12096_v46 = vld [vmem:[%s16648_s3 + $0x258] sm:$0xf0] }
 0x3d0   : > { %v9468_v19 = vor.u32 %v12096_v46, %v9467_v23  ;;  %v13723_v23 = vld [vmem:[%s16648_s3 + $0x2b0] sm:$0xff] }
 0x3d1   : > { %2280 = vmatmul.bf16.gmra.mxu2 %v9440_v28  ;;  %2313 = vmatmul.bf16.gmra.mxu3 %v9220_v63  ;;  %v9307_v28 = vld [vmem:[%s16648_s3 + $0xf8] sm:$0xf]  ;;  %v12055_v63 = vld [vmem:[%s16648_s3 + $0x110] sm:$0xf0]  ;;  %v1723_v46 = vunpack.c.l.b16 %v13723_v23 }
 0x3d2   : > { %v9308_v10 = vor.u32 %v12055_v63, %v9307_v28 }
 0x3d4   : > { %v2241_v22 = vpop.f32.mrf.mxu2 }
 0x3d5   : > { %v13657_v27 = vadd.f32 %v2241_v22, %v13454_v55  ;;  %9507 = vmatmul.msk.bf16.gmra.mxu1 %vm1895_vm1, %v9252_v17  ;;  %v9245_v55 = vld [vmem:[%s16648_s3 + $0x9c] sm:$0xf0] }
 0x3d6   : > { %v13660_v11 = vpop.f32.mrf.mxu1  ;;  %v9248_v26 = vor.u32 %v12037_v48, %v9245_v55  ;;  %v1814_v55 = vpack.c.b16 %v1723_v46, %v1723_v46  ;;  %v9357_v46 = vld [vmem:[%s16648_s3 + $0x17c] sm:$0xf0] }
 0x3dc   : > { %v13674_v16 = vpop.f32.mrf.mxu2 }
 0x3de   : > { %v2213_v56 = vpop.f32.mrf.mxu1 }
 0x3df   : > { %v13683_v59 = vadd.f32 %v2213_v56, %v13487_v42  ;;  %v12103_v42 = vld [vmem:[%s16648_s3 + $0x290] sm:$0xf0] }
 0x3e0   : > { %v9496_v52 = vor.u32 %v12103_v42, %v9495_v0 }
 0x3e1   : > { %2285 = vmatmul.bf16.gmra.mxu2 %v9468_v19  ;;  %2318 = vmatmul.bf16.gmra.mxu3 %v9248_v26  ;;  %v12166_v26 = vld [vmem:[%s16649_s4 + $0x1e8] sm:$0xff] }
 0x3e2   : > { %3676 = vmatpush.bf16.msrb.mxu0 %v12166_v26  ;;  %v12120_v26 = vld [vmem:[%s16649_s4 + $0x78] sm:$0xff] }
 0x3e3   : > { %2606 = vmatpush.bf16.msra.mxu2 %v12120_v26  ;;  %v12079_v26 = vld [vmem:[%s16648_s3 + $0x1d4] sm:$0xf] }
 0x3e4   : > { %v2246_v36 = vpop.f32.mrf.mxu2 }
 0x3e5   : > { %v13686_v44 = vadd.f32 %v2246_v36, %v13482_v50  ;;  %9508 = vmatmul.msk.bf16.gmra.mxu1 %vm1895_vm1, %v9280_v30  ;;  %v9273_v50 = vld [vmem:[%s16648_s3 + $0xd4] sm:$0xf0]  ;;  %v9336_v36 = vor.u32 %v12062_v20, %v9335_v15  ;;  %v12119_v20 = vld [vmem:[%s16649_s4 + $0x70] sm:$0xff] }
 0x3e6   : > { %v13689_v39 = vpop.f32.mrf.mxu1  ;;  %v9276_v49 = vor.u32 %v12044_v29, %v9273_v50  ;;  %v12058_v50 = vld [vmem:[%s16648_s3 + $0x12c] sm:$0xf] }
 0x3e7   : > { %2607 = vmatpush.bf16.msra.mxu2 %v12119_v20  ;;  %v12114_v20 = vld [vmem:[%s16649_s4 + $0x48] sm:$0xff] }
 0x3ec   : > { %v13703_v14 = vpop.f32.mrf.mxu2 }
 0x3ee   : > { %v2218_v47 = vpop.f32.mrf.mxu1 }
 0x3ef   : > { %v13712_v6 = vadd.f32 %v2218_v47, %v13513_v38  ;;  %v12051_v38 = vld [vmem:[%s16648_s3 + $0xf4] sm:$0xf]  ;;  %v9363_v47 = vld [vmem:[%s16648_s3 + $0x168] sm:$0xf] }
 0x3f1   : > { %2290 = vmatmul.bf16.gmra.mxu2 %v9496_v52  ;;  %2323 = vmatmul.bf16.gmra.mxu3 %v9276_v49 }
 0x3f4   : > { %v2251_v34 = vpop.f32.mrf.mxu2 }
 0x3f5   : > { %v13715_v17 = vadd.f32 %v2251_v34, %v13510_v1  ;;  %9509 = vmatmul.msk.bf16.gmra.mxu1 %vm1895_vm1, %v9308_v10  ;;  %v9301_v1 = vld [vmem:[%s16648_s3 + $0x10c] sm:$0xf0]  ;;  %v12065_v34 = vld [vmem:[%s16648_s3 + $0x164] sm:$0xf] }
 0x3f6   : > { %v13718_v22 = vpop.f32.mrf.mxu1  ;;  %v9304_v19 = vor.u32 %v12051_v38, %v9301_v1  ;;  %v9360_v1 = vor.u32 %v12065_v34, %v9357_v46  ;;  %v12116_v34 = vld [vmem:[%s16649_s4 + $0x58] sm:$0xff] }
 0x3f7   : > { %v12164_v46 = vld [vmem:[%s16649_s4 + $0x1d8] sm:$0xff] }
 0x3fc   : > { %v13732_v48 = vpop.f32.mrf.mxu2 }
 0x3fe   : > { %v2223_v56 = vpop.f32.mrf.mxu1 }
 0x3ff   : > { %v13744_v30 = vadd.f32 %v2223_v56, %v13530_v9  ;;  %v9329_v9 = vld [vmem:[%s16648_s3 + $0x144] sm:$0xf0] }
 0x400   : > { %v9332_v49 = vor.u32 %v12058_v50, %v9329_v9  ;;  %v9419_v9 = vld [vmem:[%s16648_s3 + $0x1d8] sm:$0xf] }
 0x401   : > { %2295 = vmatmul.bf16.gmra.mxu2 %v1814_v55  ;;  %2328 = vmatmul.bf16.gmra.mxu3 %v9304_v19  ;;  %v9391_v55 = vld [vmem:[%s16648_s3 + $0x1a0] sm:$0xf] }
 0x404   : > { %v2256_v0 = vpop.f32.mrf.mxu2 }
 0x405   : > { %v13747_v42 = vadd.f32 %v2256_v0, %v13527_v35  ;;  %9510 = vmatmul.msk.bf16.gmra.mxu1 %vm1895_vm1, %v9336_v36  ;;  %v12069_v35 = vld [vmem:[%s16648_s3 + $0x180] sm:$0xf0]  ;;  %v12072_v36 = vld [vmem:[%s16648_s3 + $0x19c] sm:$0xf]  ;;  %v9385_v0 = vld [vmem:[%s16648_s3 + $0x1b4] sm:$0xf0] }
 0x406   : > { %v2225_v29 = vpop.f32.mrf.mxu1  ;;  %v9364_v28 = vor.u32 %v12069_v35, %v9363_v47  ;;  %v9388_v50 = vor.u32 %v12072_v36, %v9385_v0  ;;  %v12117_v47 = vld [vmem:[%s16649_s4 + $0x60] sm:$0xff]  ;;  %v12162_v36 = vld [vmem:[%s16649_s4 + $0x1c8] sm:$0xff] }
 0x407   : > { %v12165_v35 = vld [vmem:[%s16649_s4 + $0x1e0] sm:$0xff] }
 0x408   : > { %3677 = vmatpush.bf16.msrb.mxu0 %v12165_v35 }
 0x40c   : > { %v13756_v52 = vpop.f32.mrf.mxu2  ;;  %3678 = vmatpush.bf16.msrb.mxu0 %v12164_v46 }
 0x411   : > { %2333 = vmatmul.bf16.gmra.mxu3 %v9332_v49  ;;  %v12083_v49 = vld [vmem:[%s16648_s3 + $0x1f0] sm:$0xf0] }
 0x414   : > { %v2261_v63 = vpop.f32.mrf.mxu2 }
 0x415   : > { %v13765_v10 = vadd.f32 %v2261_v63, %v13541_v4  ;;  %9511 = vmatmul.msk.bf16.gmra.mxu1 %vm1895_vm1, %v9364_v28  ;;  %v12076_v4 = vld [vmem:[%s16648_s3 + $0x1b8] sm:$0xf0]  ;;  %v9420_v28 = vor.u32 %v12083_v49, %v9419_v9  ;;  %v12090_v9 = vld [vmem:[%s16648_s3 + $0x228] sm:$0xf0]  ;;  %v12113_v49 = vld [vmem:[%s16649_s4 + $0x40] sm:$0xff] }
 0x416   : > { %v9392_v19 = vor.u32 %v12076_v4, %v9391_v55  ;;  %v12115_v4 = vld [vmem:[%s16649_s4 + $0x50] sm:$0xff] }
 0x41c   : > { %v13774_v38 = vpop.f32.mrf.mxu2 }
 0x421   : > { %2338 = vmatmul.bf16.gmra.mxu3 %v9360_v1 }
 0x424   : > { %v2266_v56 = vpop.f32.mrf.mxu2 }
 0x425   : > { %v13786_v15 = vadd.f32 %v2266_v56, %v13559_v61  ;;  %9512 = vmatmul.msk.bf16.gmra.mxu1 %vm1895_vm1, %v9392_v19  ;;  %v12118_v61 = vld [vmem:[%s16649_s4 + $0x68] sm:$0xff]  ;;  %v12163_v19 = vld [vmem:[%s16649_s4 + $0x1d0] sm:$0xff] }
 0x426   : > { %2608 = vmatpush.bf16.msra.mxu2 %v12118_v61  ;;  %3679 = vmatpush.bf16.msrb.mxu0 %v12163_v19 }
 0x42a   : > { %2609 = vmatpush.bf16.msra.mxu2 %v12117_v47  ;;  %3680 = vmatpush.bf16.msrb.mxu0 %v12162_v36  ;;  %v12161_v47 = vld [vmem:[%s16649_s4 + $0x1c0] sm:$0xff]  ;;  %v12086_v36 = vld [vmem:[%s16648_s3 + $0x20c] sm:$0xf] }
 0x42c   : > { %v13801_v29 = vpop.f32.mrf.mxu2 }
 0x42e   : > { %2610 = vmatpush.bf16.msra.mxu2 %v12116_v34  ;;  %3681 = vmatpush.bf16.msrb.mxu0 %v12161_v47  ;;  %v12097_v47 = vld [vmem:[%s16648_s3 + $0x260] sm:$0xf0] }
 0x431   : > { %2343 = vmatmul.bf16.gmra.mxu3 %v9388_v50  ;;  %v9447_v50 = vld [vmem:[%s16648_s3 + $0x210] sm:$0xf] }
 0x432   : > { %v2382_v63 = vpop.f32.mrf.mxu1  ;;  %2611 = vmatpush.bf16.msra.mxu2 %v12115_v4  ;;  %v9448_v35 = vor.u32 %v12090_v9, %v9447_v50 }
 0x434   : > { %v2271_v1 = vpop.f32.mrf.mxu2 }
 0x435   : > { %v13822_v55 = vadd.f32 %v2271_v1, %v13592_v7  ;;  %9513 = vmatmul.msk.bf16.gmra.mxu1 %vm1895_vm1, %v9420_v28  ;;  %v9413_v7 = vld [vmem:[%s16648_s3 + $0x1ec] sm:$0xf0]  ;;  %v12144_v1 = vld [vmem:[%s16649_s4 + $0x138] sm:$0xff] }
 0x436   : > { %2612 = vmatpush.bf16.msra.mxu2 %v12114_v20  ;;  %v9416_v61 = vor.u32 %v12079_v26, %v9413_v7  ;;  %3182 = vmatpush.bf16.msrb.mxu1 %v12144_v1  ;;  %v12143_v7 = vld [vmem:[%s16649_s4 + $0x130] sm:$0xff] }
 0x43a   : > { %v2384_v56 = vpop.f32.mrf.mxu1  ;;  %2613 = vmatpush.bf16.msra.mxu2 %v12113_v49  ;;  %3183 = vmatpush.bf16.msrb.mxu1 %v12143_v7  ;;  %v9475_v49 = vld [vmem:[%s16648_s3 + $0x248] sm:$0xf] }
 0x43c   : > { %v13843_v0 = vpop.f32.mrf.mxu2 }
 0x441   : > { %2348 = vmatmul.bf16.gmra.mxu3 %v9416_v61  ;;  %v12142_v61 = vld [vmem:[%s16649_s4 + $0x128] sm:$0xff] }
 0x442   : > { %v2387_v28 = vpop.f32.mrf.mxu1  ;;  %3184 = vmatpush.bf16.msrb.mxu1 %v12142_v61 }
 0x444   : > { %v2276_v34 = vpop.f32.mrf.mxu2  ;;  %v2309_v46 = vpop.f32.mrf.mxu3 }
 0x445   : > { %v13861_v4 = vadd.f32 %v2276_v34, %v13624_v57  ;;  %v2310_v19 = vadd.f32 %v2309_v46, %v13627_v18  ;;  %9514 = vmatmul.msk.bf16.gmra.mxu1 %vm1895_vm1, %v9448_v35  ;;  %v9441_v57 = vld [vmem:[%s16648_s3 + $0x224] sm:$0xf0]  ;;  %v12112_v34 = vld [vmem:[%s16649_s4 + $0x38] sm:$0xff]  ;;  %v9476_v46 = vor.u32 %v12097_v47, %v9475_v49  ;;  %v12139_v49 = vld [vmem:[%s16649_s4 + $0x110] sm:$0xff] }
 0x446   : > { %v9444_v9 = vor.u32 %v12086_v36, %v9441_v57  ;;  %2708 = vmatpush.bf16.msra.mxu3 %v12112_v34  ;;  %v12111_v57 = vld [vmem:[%s16649_s4 + $0x30] sm:$0xff] }
 0x447   : > { %v13865_v26 = vadd.f32 %v2382_v63, %v2310_v19 }
 0x449   : > { %2446 = vst [vmem:[#allocation2] sm:$0xff] %v13865_v26 }
 0x44a   : > { %v2389_v20 = vpop.f32.mrf.mxu1  ;;  %2709 = vmatpush.bf16.msra.mxu3 %v12111_v57 }
 0x44c   : > { %v13877_v18 = vpop.f32.mrf.mxu2  ;;  %v2311_v63 = vpop.f32.mrf.mxu3 }
 0x44d   : > { %v2312_v50 = vadd.f32 %v2311_v63, %v13645_v13  ;;  %v12141_v13 = vld [vmem:[%s16649_s4 + $0x120] sm:$0xff]  ;;  %v12140_v63 = vld [vmem:[%s16649_s4 + $0x118] sm:$0xff] }
 0x44e   : > { %3185 = vmatpush.bf16.msrb.mxu1 %v12141_v13 }
 0x44f   : > { %v13889_v35 = vadd.f32 %v2384_v56, %v2312_v50  ;;  %v2025_v56 = vadd.f32 %v13202_v53, %v13052_v45 }
 0x451   : > { %2447 = vst [vmem:[#allocation2 + $0x8] sm:$0xff] %v13889_v35  ;;  %2353 = vmatmul.bf16.gmra.mxu3 %v9444_v9  ;;  %v2489_v1 = vpack.c.bf16 %v13889_v35, %v13865_v26  ;;  %v2098_v45 = vadd.f32 %v13270_v40, %v2025_v56  ;;  %v12110_v9 = vld [vmem:[%s16649_s4 + $0x28] sm:$0xff]  ;;  %v9469_v40 = vld [vmem:[%s16648_s3 + $0x25c] sm:$0xf0] }
 0x452   : > { %v2392_v19 = vpop.f32.mrf.mxu1  ;;  %3186 = vmatpush.bf16.msrb.mxu1 %v12140_v63  ;;  %2710 = vmatpush.bf16.msra.mxu3 %v12110_v9  ;;  %v12137_v9 = vld [vmem:[%s16649_s4 + $0x100] sm:$0xff] }
 0x453   : > { %v16688_v26 = vld [vmem:[#allocation15_spill] sm:$0xff] }
 0x454   : > { %v2281_v7 = vpop.f32.mrf.mxu2  ;;  %v2314_v36 = vpop.f32.mrf.mxu3 }
 0x455   : > { %v13909_v61 = vadd.f32 %v2281_v7, %v13654_v32  ;;  %v2315_v50 = vadd.f32 %v2314_v36, %v13657_v27  ;;  %9515 = vmatmul.msk.bf16.gmra.mxu1 %vm1895_vm1, %v9476_v46  ;;  %v2171_v32 = vadd.f32 %v13461_v24, %v2098_v45  ;;  %v12093_v27 = vld [vmem:[%s16648_s3 + $0x244] sm:$0xf]  ;;  %v12138_v46 = vld [vmem:[%s16649_s4 + $0x108] sm:$0xff]  ;;  %v9503_v36 = vld [vmem:[%s16648_s3 + $0x280] sm:$0xf] }
 0x456   : > { %3187 = vmatpush.bf16.msrb.mxu1 %v12139_v49  ;;  %v12109_v24 = vld [vmem:[%s16649_s4 + $0x20] sm:$0xff]  ;;  %v9472_v7 = vor.u32 %v12093_v27, %v9469_v40  ;;  %v12108_v45 = vld [vmem:[%s16649_s4 + $0x18] sm:$0xff] }
 0x457   : > { %v2388_v53 = vadd.f32 %v2387_v28, %v2315_v50  ;;  %v2244_v28 = vadd.f32 %v13674_v16, %v2171_v32  ;;  %v12104_v16 = vld [vmem:[%s16648_s3 + $0x298] sm:$0xf0]  ;;  %2711 = vmatpush.bf16.msra.mxu3 %v12109_v24 }
 0x458   : > { %v2514_v63 = vld [vmem:[#allocation2 + $0x1] sm:$0xff]  ;;  %v9504_v32 = vor.u32 %v12104_v16, %v9503_v36  ;;  %v9497_v36 = vld [vmem:[%s16648_s3 + $0x294] sm:$0xf0] }
 0x459   : > { %2448 = vst [vmem:[#allocation2 + $0x10] sm:$0xff] %v2388_v53 }
 0x45a   : > { %v2394_v47 = vpop.f32.mrf.mxu1  ;;  %3188 = vmatpush.bf16.msrb.mxu1 %v12138_v46 }
 0x45b   : > { %2712 = vmatpush.bf16.msra.mxu3 %v12108_v45  ;;  %v12105_v45 = vld [vmem:[%s16649_s4] sm:$0xff] }
 0x45c   : > { %v13928_v34 = vpop.f32.mrf.mxu2  ;;  %v2316_v13 = vpop.f32.mrf.mxu3 }
 0x45d   : > { %v2317_v56 = vadd.f32 %v2316_v13, %v2244_v28 }
 0x45e   : > { %3189 = vmatpush.bf16.msrb.mxu1 %v12137_v9 }
 0x45f   : > { %v2390_v57 = vadd.f32 %v2389_v20, %v2317_v56  ;;  %v2030_v20 = vadd.f32 %v13238_v21, %v13078_v60  ;;  %v12106_v21 = vld [vmem:[%s16649_s4 + $0x8] sm:$0xff] }
 0x460   : > { %v2515_v50 = vld [vmem:[#allocation2 + $0x9] sm:$0xff] }
 0x461   : > { %2449 = vst [vmem:[#allocation2 + $0x18] sm:$0xff] %v2390_v57  ;;  %2358 = vmatmul.bf16.gmra.mxu3 %v9472_v7  ;;  %v2532_v49 = vpack.c.bf16 %v2515_v50, %v2514_v63  ;;  %v13948_v27 = vpack.c.bf16 %v2390_v57, %v2388_v53  ;;  %v12107_v53 = vld [vmem:[%s16649_s4 + $0x10] sm:$0xff]  ;;  %v2103_v56 = vadd.f32 %v13302_v3, %v2030_v20  ;;  %v1401_v3 = vld [vmem:[%s16648_s3 + $0x2b8] sm:$0xf] }
 0x462   : > { %v2397_v40 = vpop.f32.mrf.mxu1  ;;  %2713 = vmatpush.bf16.msra.mxu3 %v12107_v53  ;;  %v1725_v50 = vunpack.c.l.b16 %v1401_v3 }
 0x463   : > { %2614 = vmatmul.bf16.vlgmr.msra.gmra.mxu2 %v2532_v49  ;;  %3682 = vmatmul.bf16.vlgmr.msrb.gmra.mxu0 %v13948_v27  ;;  %v2176_v60 = vadd.f32 %v13489_v41, %v2103_v56 }
 0x464   : > { %v2286_v28 = vpop.f32.mrf.mxu2  ;;  %v2319_v13 = vpop.f32.mrf.mxu3 }
 0x465   : > { %v13954_v24 = vadd.f32 %v2286_v28, %v13683_v59  ;;  %v2320_v46 = vadd.f32 %v2319_v13, %v13686_v44  ;;  %9516 = vmatmul.msk.bf16.gmra.mxu1 %vm1895_vm1, %v9504_v32  ;;  %v12100_v44 = vld [vmem:[%s16648_s3 + $0x27c] sm:$0xf]  ;;  %v2249_v41 = vadd.f32 %v13703_v14, %v2176_v60  ;;  %v1816_v14 = vpack.c.b16 %v1725_v50, %v1725_v50  ;;  %v3091_v50 = vld [vmem:[#allocation2 + $0xc] sm:$0xff] }
 0x466   : > { %2714 = vmatpush.bf16.msra.mxu3 %v12106_v21  ;;  %v9500_v63 = vor.u32 %v12100_v44, %v9497_v36 }
 0x467   : > { %v2393_v7 = vadd.f32 %v2392_v19, %v2320_v46  ;;  %v2035_v46 = vadd.f32 %v13278_v58, %v13102_v8  ;;  %v1724_v8 = vunpack.c.h.b16 %v13723_v23  ;;  %v3090_v23 = vld [vmem:[#allocation2 + $0x4] sm:$0xff] }
 0x468   : > { %v2516_v49 = vld [vmem:[#allocation2 + $0x11] sm:$0xff] }
 0x469   : > { %2450 = vst [vmem:[#allocation2 + $0x20] sm:$0xff] %v2393_v7 }
 0x46a   : > { %v2399_v59 = vpop.f32.mrf.mxu1  ;;  %2715 = vmatpush.bf16.msra.mxu3 %v12105_v45  ;;  %v3108_v45 = vpack.c.bf16 %v3091_v50, %v3090_v23 }
 0x46c   : > { %v13976_v19 = vpop.f32.mrf.mxu2  ;;  %v2321_v16 = vpop.f32.mrf.mxu3 }
 0x46d   : > { %v2322_v57 = vadd.f32 %v2321_v16, %v2249_v41  ;;  %v1815_v16 = vpack.c.b16 %v1724_v8, %v1724_v8 }
 0x46f   : > { %v2395_v9 = vadd.f32 %v2394_v47, %v2322_v57 }
 0x470   : > { %v2517_v32 = vld [vmem:[#allocation2 + $0x19] sm:$0xff] }
 0x471   : > { %2451 = vst [vmem:[#allocation2 + $0x28] sm:$0xff] %v2395_v9  ;;  %2363 = vmatmul.bf16.gmra.mxu3 %v9500_v63  ;;  %v13981_v20 = vpack.c.bf16 %v2517_v32, %v2516_v49  ;;  %v13983_v28 = vpack.c.bf16 %v2395_v9, %v2393_v7  ;;  %v2108_v7 = vadd.f32 %v13327_v37, %v2035_v46 }
 0x472   : > { %v2402_v13 = vpop.f32.mrf.mxu1 }
 0x473   : > { %2619 = vmatmul.bf16.gmra.mxu2 %v13981_v20  ;;  %3687 = vmatmul.bf16.gmra.mxu0 %v13983_v28  ;;  %v2181_v44 = vadd.f32 %v13515_v25, %v2108_v7 }
 0x474   : > { %v2291_v53 = vpop.f32.mrf.mxu2  ;;  %v2324_v47 = vpop.f32.mrf.mxu3 }
 0x475   : > { %v13990_v56 = vadd.f32 %v2291_v53, %v13712_v6  ;;  %v2325_v60 = vadd.f32 %v2324_v47, %v13715_v17  ;;  %9517 = vmatmul.msk.bf16.gmra.mxu1 %vm1895_vm1, %v1816_v14  ;;  %v2254_v36 = vadd.f32 %v13732_v48, %v2181_v44  ;;  %v2040_v48 = vadd.f32 %v13308_v12, %v13126_v31 }
 0x477   : > { %v2398_v21 = vadd.f32 %v2397_v40, %v2325_v60  ;;  %v2113_v14 = vadd.f32 %v13346_v2, %v2040_v48 }
 0x478   : > { %v2518_v17 = vld [vmem:[#allocation2 + $0x21] sm:$0xff] }
 0x479   : > { %2452 = vst [vmem:[#allocation2 + $0x30] sm:$0xff] %v2398_v21  ;;  %v2186_v53 = vadd.f32 %v13532_v54, %v2113_v14 }
 0x47a   : > { %v2404_v58 = vpop.f32.mrf.mxu1 }
 0x47c   : > { %v13998_v3 = vpop.f32.mrf.mxu2  ;;  %v2326_v41 = vpop.f32.mrf.mxu3 }
 0x47d   : > { %v2327_v6 = vadd.f32 %v2326_v41, %v2254_v36 }
 0x47f   : > { %v2400_v57 = vadd.f32 %v2399_v59, %v2327_v6  ;;  %v3092_v6 = vld [vmem:[#allocation2 + $0x14] sm:$0xff] }
 0x480   : > { %v2519_v63 = vld [vmem:[#allocation2 + $0x29] sm:$0xff] }
 0x481   : > { %2453 = vst [vmem:[#allocation2 + $0x38] sm:$0xff] %v2400_v57  ;;  %2368 = vmatmul.bf16.gmra.mxu3 %v1815_v16  ;;  %v14000_v37 = vpack.c.bf16 %v2519_v63, %v2518_v17  ;;  %v14002_v25 = vpack.c.bf16 %v2400_v57, %v2398_v21  ;;  %v14014_v31 = vld [vmem:[#allocation2 + $0x2a] sm:$0xff]  ;;  %v16689_v17 = vld [vmem:[#allocation27_spill] sm:$0xff] }
 0x482   : > { %v2407_v40 = vpop.f32.mrf.mxu1  ;;  %v3095_v14 = vld [vmem:[#allocation2 + $0x2c] sm:$0xff] }
 0x483   : > { %2624 = vmatmul.bf16.gmra.mxu2 %v14000_v37  ;;  %3692 = vmatmul.bf16.gmra.mxu0 %v14002_v25 }
 0x484   : > { %v2296_v59 = vpop.f32.mrf.mxu2  ;;  %v2329_v9 = vpop.f32.mrf.mxu3 }
 0x485   : > { %v14009_v49 = vadd.f32 %v2296_v59, %v13744_v30  ;;  %v2330_v32 = vadd.f32 %v2329_v9, %v13747_v42  ;;  %3190 = vmatmul.bf16.vlgmr.msrb.gmra.mxu1 %v3108_v45  ;;  %v2259_v30 = vadd.f32 %v13756_v52, %v2186_v53  ;;  %v2045_v52 = vadd.f32 %v13333_v51, %v13154_v62  ;;  %v12231_v51 = vld [vmem:[%s16649_s4 + $0x3f0] sm:$0xff] }
 0x487   : > { %v2403_v46 = vadd.f32 %v2402_v13, %v2330_v32  ;;  %v3093_v13 = vld [vmem:[#allocation2 + $0x1c] sm:$0xff]  ;;  %v2118_v35 = vadd.f32 %v16688_v26, %v2045_v52 }
 0x488   : > { %v14016_v12 = vld [vmem:[#allocation2 + $0x32] sm:$0xff] }
 0x489   : > { %2454 = vst [vmem:[#allocation2 + $0x40] sm:$0xff] %v2403_v46  ;;  %v2520_v8 = vld [vmem:[#allocation2 + $0x31] sm:$0xff]  ;;  %v2191_v63 = vadd.f32 %v16689_v17, %v2118_v35 }
 0x48a   : > { %v2409_v47 = vpop.f32.mrf.mxu1 }
 0x48b   : > { %v2264_v48 = vadd.f32 %v13774_v38, %v2191_v63 }
 0x48c   : > { %v2331_v7 = vpop.f32.mrf.mxu3  ;;  %v2298_v21 = vpop.f32.mrf.mxu2 }
 0x48d   : > { %v2332_v42 = vadd.f32 %v2331_v7, %v2259_v30  ;;  %v3094_v30 = vld [vmem:[#allocation2 + $0x24] sm:$0xff]  ;;  %v16691_v21 = vld [vmem:[#allocation14_spill] sm:$0xff] }
 0x48e   : > { %v16690_v7 = vld [vmem:[#allocation8_spill] sm:$0xff]  ;;  %v3110_v38 = vpack.c.bf16 %v3095_v14, %v3094_v30  ;;  %v16695_v14 = vld [vmem:[#allocation19_spill] sm:$0xff] }
 0x48f   : > { %v2405_v44 = vadd.f32 %v2404_v58, %v2332_v42  ;;  %v3109_v58 = vpack.c.bf16 %v3093_v13, %v3092_v6  ;;  %v2050_v42 = vadd.f32 %v16691_v21, %v16690_v7  ;;  %v12127_v21 = vld [vmem:[%s16649_s4 + $0xb0] sm:$0xff] }
 0x490   : > { %v2521_v2 = vld [vmem:[#allocation2 + $0x39] sm:$0xff] }
 0x491   : > { %2455 = vst [vmem:[#allocation2 + $0x48] sm:$0xff] %v2405_v44  ;;  %2716 = vmatmul.bf16.vlgmr.msra.gmra.mxu3 %v2489_v1  ;;  %v14024_v54 = vpack.c.bf16 %v2521_v2, %v2520_v8  ;;  %v14026_v36 = vpack.c.bf16 %v2405_v44, %v2403_v46  ;;  %v14035_v50 = vld [vmem:[#allocation2 + $0x3a] sm:$0xff]  ;;  %v16692_v8 = vld [vmem:[#allocation17_spill] sm:$0xff] }
 0x492   : > { %v2412_v41 = vpop.f32.mrf.mxu1  ;;  %v3097_v63 = vld [vmem:[#allocation2 + $0x3c] sm:$0xff] }
 0x493   : > { %2629 = vmatmul.bf16.gmra.mxu2 %v14024_v54  ;;  %3697 = vmatmul.bf16.gmra.mxu0 %v14026_v36 }
 0x494   : > { %v2334_v16 = vpop.f32.mrf.mxu3 }
 0x495   : > { %v2335_v57 = vadd.f32 %v2334_v16, %v13765_v10  ;;  %3195 = vmatmul.bf16.gmra.mxu1 %v3109_v58 }
 0x497   : > { %v2408_v1 = vadd.f32 %v2407_v40, %v2335_v57 }
 0x498   : > { %v14037_v23 = vld [vmem:[#allocation2 + $0x42] sm:$0xff] }
 0x499   : > { %2456 = vst [vmem:[#allocation2 + $0x50] sm:$0xff] %v2408_v1  ;;  %v2522_v9 = vld [vmem:[#allocation2 + $0x41] sm:$0xff] }
 0x49a   : > { %v2414_v62 = vpop.f32.mrf.mxu1 }
 0x49c   : > { %v2336_v45 = vpop.f32.mrf.mxu3 }
 0x49d   : > { %v2337_v59 = vadd.f32 %v2336_v45, %v2264_v48  ;;  %v3096_v45 = vld [vmem:[#allocation2 + $0x34] sm:$0xff] }
 0x49f   : > { %v2410_v10 = vadd.f32 %v2409_v47, %v2337_v59  ;;  %v16693_v59 = vld [vmem:[#allocation9_spill] sm:$0xff] }
 0x4a0   : > { %v2523_v32 = vld [vmem:[#allocation2 + $0x49] sm:$0xff] }
 0x4a1   : > { %2457 = vst [vmem:[#allocation2 + $0x58] sm:$0xff] %v2410_v10  ;;  %2721 = vmatmul.bf16.gmra.mxu3 %v13948_v27  ;;  %v14043_v40 = vpack.c.bf16 %v2523_v32, %v2522_v9  ;;  %v14045_v46 = vpack.c.bf16 %v2410_v10, %v2408_v1  ;;  %v2123_v27 = vadd.f32 %v16692_v8, %v2050_v42  ;;  %v14054_v6 = vld [vmem:[#allocation2 + $0x4a] sm:$0xff] }
 0x4a2   : > { %v2417_v53 = vpop.f32.mrf.mxu1  ;;  %v16694_v10 = vld [vmem:[#allocation16_spill] sm:$0xff] }
 0x4a3   : > { %2634 = vmatmul.bf16.gmra.mxu2 %v14043_v40  ;;  %3702 = vmatmul.bf16.gmra.mxu0 %v14045_v46  ;;  %v2196_v13 = vadd.f32 %v13567_v43, %v2123_v27  ;;  %v2055_v9 = vadd.f32 %v16694_v10, %v16693_v59  ;;  %v16697_v59 = vld [vmem:[#allocation18_spill] sm:$0xff] }
 0x4a4   : > { %v2339_v47 = vpop.f32.mrf.mxu3 }
 0x4a5   : > { %v2340_v44 = vadd.f32 %v2339_v47, %v13786_v15  ;;  %3200 = vmatmul.bf16.gmra.mxu1 %v3110_v38  ;;  %v2269_v57 = vadd.f32 %v13801_v29, %v2196_v13  ;;  %v3111_v29 = vpack.c.bf16 %v3097_v63, %v3096_v45  ;;  %v2128_v30 = vadd.f32 %v16695_v14, %v2055_v9  ;;  %v3098_v63 = vld [vmem:[#allocation2 + $0x44] sm:$0xff]  ;;  %v16696_v45 = vld [vmem:[#allocation10_spill] sm:$0xff] }
 0x4a6   : > { %v2060_v10 = vadd.f32 %v16697_v59, %v16696_v45 }
 0x4a7   : > { %v2413_v2 = vadd.f32 %v2412_v41, %v2340_v44  ;;  %v2201_v42 = vadd.f32 %v13603_v33, %v2128_v30  ;;  %v12200_v33 = vld [vmem:[%s16649_s4 + $0x2f8] sm:$0xff] }
 0x4a8   : > { %v14056_v52 = vld [vmem:[#allocation2 + $0x52] sm:$0xff]  ;;  %4330 = vmatpush.bf16.msra.mxu0 %v12200_v33 }
 0x4a9   : > { %2458 = vst [vmem:[#allocation2 + $0x60] sm:$0xff] %v2413_v2  ;;  %v2524_v1 = vld [vmem:[#allocation2 + $0x51] sm:$0xff]  ;;  %v2274_v8 = vadd.f32 %v13843_v0, %v2201_v42 }
 0x4aa   : > { %v2419_v58 = vpop.f32.mrf.mxu1  ;;  %v12199_v0 = vld [vmem:[%s16649_s4 + $0x2f0] sm:$0xff] }
 0x4ab   : > { %v3100_v59 = vld [vmem:[#allocation2 + $0x54] sm:$0xff] }
 0x4ac   : > { %v2341_v26 = vpop.f32.mrf.mxu3  ;;  %4331 = vmatpush.bf16.msra.mxu0 %v12199_v0  ;;  %v12121_v0 = vld [vmem:[%s16649_s4 + $0x80] sm:$0xff] }
 0x4ad   : > { %v2342_v35 = vadd.f32 %v2341_v26, %v2269_v57  ;;  %v12125_v57 = vld [vmem:[%s16649_s4 + $0xa0] sm:$0xff] }
 0x4af   : > { %v2415_v15 = vadd.f32 %v2414_v62, %v2342_v35  ;;  %v12128_v62 = vld [vmem:[%s16649_s4 + $0xb8] sm:$0xff] }
 0x4b0   : > { %v2525_v17 = vld [vmem:[#allocation2 + $0x59] sm:$0xff]  ;;  %2854 = vmatpush.bf16.msrb.mxu2 %v12128_v62 }
 0x4b1   : > { %2459 = vst [vmem:[#allocation2 + $0x68] sm:$0xff] %v2415_v15  ;;  %2726 = vmatmul.bf16.gmra.mxu3 %v13983_v28  ;;  %v14062_v43 = vpack.c.bf16 %v2525_v17, %v2524_v1  ;;  %v14064_v41 = vpack.c.bf16 %v2415_v15, %v2413_v2  ;;  %v14079_v38 = vld [vmem:[#allocation2 + $0x5a] sm:$0xff]  ;;  %v3099_v15 = vld [vmem:[#allocation2 + $0x4c] sm:$0xff] }
 0x4b2   : > { %v2422_v48 = vpop.f32.mrf.mxu1  ;;  %v3112_v9 = vpack.c.bf16 %v3099_v15, %v3098_v63  ;;  %v3101_v15 = vld [vmem:[#allocation2 + $0x5c] sm:$0xff] }
 0x4b3   : > { %2639 = vmatmul.bf16.gmra.mxu2 %v14062_v43  ;;  %3707 = vmatmul.bf16.gmra.mxu0 %v14064_v41 }
 0x4b4   : > { %v2344_v32 = vpop.f32.mrf.mxu3  ;;  %2855 = vmatpush.bf16.msrb.mxu2 %v12127_v21  ;;  %v12197_v21 = vld [vmem:[%s16649_s4 + $0x2e0] sm:$0xff] }
 0x4b5   : > { %v2345_v28 = vadd.f32 %v2344_v32, %v13822_v55  ;;  %3205 = vmatmul.bf16.gmra.mxu1 %v3111_v29  ;;  %v12198_v29 = vld [vmem:[%s16649_s4 + $0x2e8] sm:$0xff] }
 0x4b6   : > { %4332 = vmatpush.bf16.msra.mxu0 %v12198_v29  ;;  %v3113_v29 = vpack.c.bf16 %v3101_v15, %v3100_v59  ;;  %v12136_v59 = vld [vmem:[%s16649_s4 + $0xf8] sm:$0xff] }
 0x4b7   : > { %v2418_v7 = vadd.f32 %v2417_v53, %v2345_v28  ;;  %v12126_v53 = vld [vmem:[%s16649_s4 + $0xa8] sm:$0xff]  ;;  %v16698_v28 = vld [vmem:[#allocation21_spill] sm:$0xff]  ;;  %3018 = vmatpush.bf16.msrb.mxu3 %v12136_v59 }
 0x4b8   : > { %v14081_v47 = vld [vmem:[#allocation2 + $0x62] sm:$0xff]  ;;  %2856 = vmatpush.bf16.msrb.mxu2 %v12126_v53  ;;  %v2133_v14 = vadd.f32 %v16698_v28, %v2060_v10  ;;  %v12176_v28 = vld [vmem:[%s16649_s4 + $0x238] sm:$0xff] }
 0x4b9   : > { %2460 = vst [vmem:[#allocation2 + $0x70] sm:$0xff] %v2418_v7  ;;  %v2526_v26 = vld [vmem:[#allocation2 + $0x61] sm:$0xff]  ;;  %3838 = vmatpush.bf16.msra.mxu1 %v12176_v28  ;;  %v12135_v28 = vld [vmem:[%s16649_s4 + $0xf0] sm:$0xff] }
 0x4ba   : > { %v2424_v44 = vpop.f32.mrf.mxu1  ;;  %v2206_v42 = vadd.f32 %v13630_v5, %v2133_v14  ;;  %4333 = vmatpush.bf16.msra.mxu0 %v12197_v21  ;;  %v12196_v5 = vld [vmem:[%s16649_s4 + $0x2d8] sm:$0xff]  ;;  %v16699_v10 = vld [vmem:[#allocation11_spill] sm:$0xff] }
 0x4bb   : > { %v16701_v14 = vld [vmem:[#allocation23_spill] sm:$0xff]  ;;  %3019 = vmatpush.bf16.msrb.mxu3 %v12135_v28  ;;  %v16706_v28 = vld [vmem:[#allocation13_spill] sm:$0xff] }
 0x4bc   : > { %v2346_v27 = vpop.f32.mrf.mxu3  ;;  %2857 = vmatpush.bf16.msrb.mxu2 %v12125_v57  ;;  %v2279_v33 = vadd.f32 %v13877_v18, %v2206_v42  ;;  %v12195_v18 = vld [vmem:[%s16649_s4 + $0x2d0] sm:$0xff]  ;;  %v12193_v42 = vld [vmem:[%s16649_s4 + $0x2c0] sm:$0xff] }
 0x4bd   : > { %v2347_v2 = vadd.f32 %v2346_v27, %v2274_v8  ;;  %v12122_v27 = vld [vmem:[%s16649_s4 + $0x88] sm:$0xff] }
 0x4be   : > { %4334 = vmatpush.bf16.msra.mxu0 %v12196_v5 }
 0x4bf   : > { %v2420_v13 = vadd.f32 %v2419_v58, %v2347_v2 }
 0x4c0   : > { %v2527_v35 = vld [vmem:[#allocation2 + $0x69] sm:$0xff] }
 0x4c1   : > { %2461 = vst [vmem:[#allocation2 + $0x78] sm:$0xff] %v2420_v13  ;;  %2731 = vmatmul.bf16.gmra.mxu3 %v14002_v25  ;;  %v14099_v1 = vpack.c.bf16 %v2527_v35, %v2526_v26  ;;  %v14101_v17 = vpack.c.bf16 %v2420_v13, %v2418_v7  ;;  %v12124_v25 = vld [vmem:[%s16649_s4 + $0x98] sm:$0xff]  ;;  %v12123_v7 = vld [vmem:[%s16649_s4 + $0x90] sm:$0xff] }
 0x4c2   : > { %v2427_v58 = vpop.f32.mrf.mxu1  ;;  %2858 = vmatpush.bf16.msrb.mxu2 %v12124_v25  ;;  %4335 = vmatpush.bf16.msra.mxu0 %v12195_v18  ;;  %v3103_v15 = vld [vmem:[#allocation2 + $0x6c] sm:$0xff] }
 0x4c3   : > { %2644 = vmatmul.bf16.gmra.mxu2 %v14099_v1  ;;  %3712 = vmatmul.bf16.gmra.mxu0 %v14101_v17 }
 0x4c4   : > { %v2349_v62 = vpop.f32.mrf.mxu3 }
 0x4c5   : > { %v2350_v32 = vadd.f32 %v2349_v62, %v13861_v4  ;;  %3210 = vmatmul.bf16.gmra.mxu1 %v3112_v9  ;;  %v14125_v4 = vld [vmem:[#allocation2 + $0x6a] sm:$0xff] }
 0x4c6   : > { %2859 = vmatpush.bf16.msrb.mxu2 %v12123_v7  ;;  %v16700_v9 = vld [vmem:[#allocation20_spill] sm:$0xff]  ;;  %v2786_v60 = vpack.c.bf16 %v14125_v4, %v14081_v47 }
 0x4c7   : > { %v14115_v30 = vadd.f32 %v2422_v48, %v2350_v32  ;;  %v2065_v25 = vadd.f32 %v16700_v9, %v16699_v10  ;;  %v12194_v62 = vld [vmem:[%s16649_s4 + $0x2c8] sm:$0xff]  ;;  %v12173_v10 = vld [vmem:[%s16649_s4 + $0x220] sm:$0xff] }
 0x4c8   : > { %v14127_v8 = vld [vmem:[#allocation2 + $0x72] sm:$0xff]  ;;  %4336 = vmatpush.bf16.msra.mxu0 %v12194_v62 }
 0x4c9   : > { %2462 = vst [vmem:[#allocation2 + $0x80] sm:$0xff] %v14115_v30  ;;  %v2528_v26 = vld [vmem:[#allocation2 + $0x71] sm:$0xff]  ;;  %v2138_v7 = vadd.f32 %v16701_v14, %v2065_v25  ;;  %v3102_v25 = vld [vmem:[#allocation2 + $0x64] sm:$0xff] }
 0x4ca   : > { %v2429_v53 = vpop.f32.mrf.mxu1  ;;  %2860 = vmatpush.bf16.msrb.mxu2 %v12122_v27  ;;  %v12172_v14 = vld [vmem:[%s16649_s4 + $0x218] sm:$0xff] }
 0x4cc   : > { %v2351_v2 = vpop.f32.mrf.mxu3  ;;  %4337 = vmatpush.bf16.msra.mxu0 %v12193_v42  ;;  %v16704_v42 = vld [vmem:[#allocation25_spill] sm:$0xff] }
 0x4cd   : > { %v2352_v13 = vadd.f32 %v2351_v2, %v2279_v33  ;;  %v2211_v33 = vadd.f32 %v13660_v11, %v2138_v7  ;;  %v12174_v11 = vld [vmem:[%s16649_s4 + $0x228] sm:$0xff] }
 0x4ce   : > { %2861 = vmatpush.bf16.msrb.mxu2 %v12121_v0 }
 0x4cf   : > { %v2425_v57 = vadd.f32 %v2424_v44, %v2352_v13 }
 0x4d0   : > { %v2529_v35 = vld [vmem:[#allocation2 + $0x79] sm:$0xff] }
 0x4d1   : > { %2463 = vst [vmem:[#allocation2 + $0x88] sm:$0xff] %v2425_v57  ;;  %2736 = vmatmul.bf16.gmra.mxu3 %v14026_v36  ;;  %v14145_v63 = vpack.c.bf16 %v2529_v35, %v2528_v26  ;;  %v3607_v45 = vpack.c.bf16 %v2425_v57, %v14115_v30  ;;  %v14166_v5 = vld [vmem:[#allocation2 + $0x7a] sm:$0xff] }
 0x4d2   : > { %v2432_v44 = vpop.f32.mrf.mxu1 }
 0x4d3   : > { %2649 = vmatmul.bf16.gmra.mxu2 %v14145_v63  ;;  %3717 = vmatmul.bf16.gmra.mxu0 %v3607_v45 }
 0x4d4   : > { %v2354_v36 = vpop.f32.mrf.mxu3 }
 0x4d5   : > { %v2355_v32 = vadd.f32 %v2354_v36, %v13909_v61  ;;  %3215 = vmatmul.bf16.gmra.mxu1 %v3113_v29  ;;  %v12175_v61 = vld [vmem:[%s16649_s4 + $0x230] sm:$0xff]  ;;  %v16703_v29 = vld [vmem:[#allocation22_spill] sm:$0xff]  ;;  %v3114_v36 = vpack.c.bf16 %v3103_v15, %v3102_v25 }
 0x4d6   : > { %3839 = vmatpush.bf16.msra.mxu1 %v12175_v61 }
 0x4d7   : > { %v2428_v21 = vadd.f32 %v2427_v58, %v2355_v32  ;;  %v2284_v58 = vadd.f32 %v13928_v34, %v2211_v33 }
 0x4d8   : > { %v14168_v2 = vld [vmem:[#allocation2 + $0x82] sm:$0xff] }
 0x4d9   : > { %2464 = vst [vmem:[#allocation2 + $0x90] sm:$0xff] %v2428_v21  ;;  %v14176_v18 = vld [vmem:[#allocation2 + $0x81] sm:$0xff]  ;;  %v2531_v26 = vld [vmem:[#allocation2 + $0x89] sm:$0xf] }
 0x4da   : > { %v2434_v27 = vpop.f32.mrf.mxu1  ;;  %3840 = vmatpush.bf16.msra.mxu1 %v12174_v11  ;;  %v2540_v34 = vpack.c.bf16 %v2531_v26, %v14176_v18  ;;  %v12134_v11 = vld [vmem:[%s16649_s4 + $0xe8] sm:$0xff]  ;;  %v12171_v26 = vld [vmem:[%s16649_s4 + $0x210] sm:$0xff] }
 0x4db   : > { %3020 = vmatpush.bf16.msrb.mxu3 %v12134_v11  ;;  %v16708_v11 = vld [vmem:[#allocation26_spill] sm:$0xff] }
 0x4dc   : > { %v2356_v57 = vpop.f32.mrf.mxu3 }
 0x4dd   : > { %v2357_v0 = vadd.f32 %v2356_v57, %v2284_v58 }
 0x4de   : > { %3841 = vmatpush.bf16.msra.mxu1 %v12173_v10  ;;  %v2763_v10 = vld [vmem:[#allocation2 + $0xa] sm:$0xff] }
 0x4df   : > { %v2430_v35 = vadd.f32 %v2429_v53, %v2357_v0  ;;  %v16702_v53 = vld [vmem:[#allocation12_spill] sm:$0xff] }
 0x4e0   : > { %v14178_v45 = vpop.f32.mrf.mxu0  ;;  %v2070_v62 = vadd.f32 %v16703_v29, %v16702_v53  ;;  %v2762_v53 = vld [vmem:[#allocation2 + $0x2] sm:$0xff] }
 0x4e1   : > { %2465 = vst [vmem:[#allocation2 + $0x98] sm:$0xff] %v2430_v35  ;;  %2741 = vmatmul.bf16.gmra.mxu3 %v14045_v46 }
 0x4e2   : > { %v2437_v9 = vpop.f32.mrf.mxu1  ;;  %v2143_v33 = vadd.f32 %v16704_v42, %v2070_v62  ;;  %3842 = vmatpush.bf16.msra.mxu1 %v12172_v14  ;;  %v2780_v62 = vpack.c.bf16 %v2763_v10, %v2762_v53  ;;  %v16707_v14 = vld [vmem:[#allocation24_spill] sm:$0xff] }
 0x4e3   : > { %2654 = vmatmul.bf16.gmra.mxu2 %v2540_v34  ;;  %v2075_v42 = vadd.f32 %v16707_v14, %v16706_v28  ;;  %v3107_v28 = vld [vmem:[#allocation2 + $0x8c] sm:$0xf] }
 0x4e4   : > { %v2359_v32 = vpop.f32.mrf.mxu3 }
 0x4e5   : > { %v2360_v46 = vadd.f32 %v2359_v32, %v13954_v24  ;;  %3220 = vmatmul.bf16.gmra.mxu1 %v3114_v36  ;;  %v2216_v24 = vadd.f32 %v13689_v39, %v2143_v33  ;;  %v12133_v39 = vld [vmem:[%s16649_s4 + $0xe0] sm:$0xff]  ;;  %v12132_v36 = vld [vmem:[%s16649_s4 + $0xd8] sm:$0xff] }
 0x4e6   : > { %v14197_v7 = vpop.f32.mrf.mxu2  ;;  %3843 = vmatpush.bf16.msra.mxu1 %v12171_v26  ;;  %3021 = vmatpush.bf16.msrb.mxu3 %v12133_v39  ;;  %v12169_v32 = vld [vmem:[%s16649_s4 + $0x200] sm:$0xff]  ;;  %v2148_v26 = vadd.f32 %v16708_v11, %v2075_v42  ;;  %v4240_v11 = vld [vmem:[#allocation2 + $0x2d] sm:$0xff] }
 0x4e7   : > { %v2433_v61 = vadd.f32 %v2432_v44, %v2360_v46  ;;  %v2289_v44 = vadd.f32 %v13976_v19, %v2216_v24  ;;  %v3105_v19 = vld [vmem:[#allocation2 + $0x7c] sm:$0xff] }
 0x4e8   : > { %v3599_v58 = vld [vmem:[#allocation2 + $0x98] sm:$0xf]  ;;  %v14200_v57 = vpop.f32.mrf.mxu0 }
 0x4e9   : > { %2466 = vst [vmem:[#allocation2 + $0xa0] sm:$0xff] %v2433_v61  ;;  %v3608_v0 = vpack.c.bf16 %v3599_v58, %v2428_v21  ;;  %v12170_v21 = vld [vmem:[%s16649_s4 + $0x208] sm:$0xff]  ;;  %v12131_v58 = vld [vmem:[%s16649_s4 + $0xd0] sm:$0xff] }
 0x4ea   : > { %v2439_v35 = vpop.f32.mrf.mxu1  ;;  %3844 = vmatpush.bf16.msra.mxu1 %v12170_v21  ;;  %3022 = vmatpush.bf16.msrb.mxu3 %v12132_v36  ;;  %v2765_v36 = vld [vmem:[#allocation2 + $0x1a] sm:$0xff] }
 0x4eb   : > { %3722 = vmatmul.bf16.gmra.mxu0 %v3608_v0  ;;  %v4239_v0 = vld [vmem:[#allocation2 + $0x25] sm:$0xff] }
 0x4ec   : > { %v2361_v15 = vpop.f32.mrf.mxu3 }
 0x4ed   : > { %v2362_v34 = vadd.f32 %v2361_v15, %v2289_v44  ;;  %v12130_v15 = vld [vmem:[%s16649_s4 + $0xc8] sm:$0xff] }
 0x4ee   : > { %v14216_v59 = vpop.f32.mrf.mxu2  ;;  %3845 = vmatpush.bf16.msra.mxu1 %v12169_v32  ;;  %3023 = vmatpush.bf16.msrb.mxu3 %v12131_v58 }
 0x4ef   : > { %v2435_v25 = vadd.f32 %v2434_v27, %v2362_v34  ;;  %v3104_v27 = vld [vmem:[#allocation2 + $0x74] sm:$0xff]  ;;  %v4238_v34 = vld [vmem:[#allocation2 + $0x1d] sm:$0xff] }
 0x4f0   : > { %v14218_v29 = vpop.f32.mrf.mxu0  ;;  %v3115_v33 = vpack.c.bf16 %v3105_v19, %v3104_v27  ;;  %v4256_v21 = vpack.c.bf16 %v4239_v0, %v4238_v34  ;;  %v2764_v27 = vld [vmem:[#allocation2 + $0x12] sm:$0xff]  ;;  %v2488_v34 = vld [vmem:[#allocation2 + $0x88] sm:$0xf] }
 0x4f1   : > { %16705 = vst [vmem:[#allocation15_spill] sm:$0xff] %v14218_v29  ;;  %2746 = vmatmul.bf16.gmra.mxu3 %v14064_v41 }
 0x4f2   : > { %2467 = vst [vmem:[#allocation2 + $0xa8] sm:$0xff] %v2435_v25  ;;  %v2442_v46 = vpop.f32.mrf.mxu1  ;;  %3024 = vmatpush.bf16.msrb.mxu3 %v12130_v15 }
 0x4f3   : > { %2862 = vmatmul.bf16.vlgmr.msrb.gmra.mxu2 %v2780_v62 }
 0x4f4   : > { %v2364_v61 = vpop.f32.mrf.mxu3 }
 0x4f5   : > { %v2365_v41 = vadd.f32 %v2364_v61, %v13990_v56  ;;  %3225 = vmatmul.bf16.gmra.mxu1 %v3115_v33  ;;  %v2221_v56 = vadd.f32 %v13718_v22, %v2148_v26  ;;  %v3106_v22 = vld [vmem:[#allocation2 + $0x84] sm:$0xff] }
 0x4f6   : > { %v14233_v24 = vpop.f32.mrf.mxu2  ;;  %v3116_v33 = vpack.c.bf16 %v3107_v28, %v3106_v22 }
 0x4f7   : > { %v2438_v44 = vadd.f32 %v2437_v9, %v2365_v41  ;;  %v2294_v25 = vadd.f32 %v13998_v3, %v2221_v56  ;;  %v12129_v9 = vld [vmem:[%s16649_s4 + $0xc0] sm:$0xff]  ;;  %v2781_v3 = vpack.c.bf16 %v2765_v36, %v2764_v27 }
 0x4f8   : > { %v14239_v39 = vpop.f32.mrf.mxu0  ;;  %3025 = vmatpush.bf16.msrb.mxu3 %v12129_v9  ;;  %v4243_v36 = vld [vmem:[#allocation2 + $0x45] sm:$0xff] }
 0x4f9   : > { %16709 = vst [vmem:[#allocation27_spill] sm:$0xff] %v14239_v39 }
 0x4fa   : > { %2468 = vst [vmem:[#allocation2 + $0xb0] sm:$0xff] %v2438_v44  ;;  %v2444_v10 = vpop.f32.mrf.mxu1 }
 0x4fb   : > { %4338 = vmatmul.bf16.vlgmr.msra.gmra.mxu0 %v4256_v21  ;;  %v2497_v21 = vpack.c.bf16 %v2488_v34, %v14115_v30  ;;  %v2766_v10 = vld [vmem:[#allocation2 + $0x22] sm:$0xff]  ;;  %v4244_v34 = vld [vmem:[#allocation2 + $0x4d] sm:$0xff] }
 0x4fc   : > { %v2366_v53 = vpop.f32.mrf.mxu3 }
 0x4fd   : > { %v2367_v19 = vadd.f32 %v2366_v53, %v2294_v25 }
 0x4fe   : > { %v14246_v62 = vpop.f32.mrf.mxu2 }
 0x4ff   : > { %v2440_v32 = vadd.f32 %v2439_v35, %v2367_v19  ;;  %v4241_v35 = vld [vmem:[#allocation2 + $0x35] sm:$0xff] }
 0x500   : > { %v14248_v14 = vpop.f32.mrf.mxu0  ;;  %v4257_v44 = vpack.c.bf16 %v4241_v35, %v4240_v11 }
 0x501   : > { %16710 = vst [vmem:[#allocation8_spill] sm:$0xff] %v14248_v14  ;;  %2751 = vmatmul.bf16.gmra.mxu3 %v14101_v17  ;;  %v12156_v14 = vld [vmem:[%s16649_s4 + $0x198] sm:$0xff] }
 0x502   : > { %2469 = vst [vmem:[#allocation2 + $0xb8] sm:$0xff] %v2440_v32  ;;  %v14251_v42 = vpop.f32.mrf.mxu1  ;;  %v4242_v32 = vld [vmem:[#allocation2 + $0x3d] sm:$0xff] }
 0x503   : > { %2867 = vmatmul.bf16.gmra.mxu2 %v2781_v3  ;;  %v4258_v30 = vpack.c.bf16 %v4243_v36, %v4242_v32  ;;  %v2927_v3 = vld [vmem:[#allocation2 + $0xb] sm:$0xff]  ;;  %v2929_v36 = vld [vmem:[#allocation2 + $0x1b] sm:$0xff] }
 0x504   : > { %v2369_v61 = vpop.f32.mrf.mxu3 }
 0x505   : > { %v2370_v41 = vadd.f32 %v2369_v61, %v14009_v49  ;;  %3230 = vmatmul.bf16.gmra.mxu1 %v3116_v33  ;;  %v2782_v49 = vpack.c.bf16 %v14014_v31, %v2766_v10 }
 0x506   : > { %v2625_v58 = vpop.f32.mrf.mxu2 }
 0x507   : > { %v2443_v0 = vadd.f32 %v2442_v46, %v2370_v41 }
 0x508   : > { %v14254_v26 = vpop.f32.mrf.mxu0 }
 0x509   : > { %16711 = vst [vmem:[#allocation14_spill] sm:$0xff] %v14254_v26 }
 0x50a   : > { %2470 = vst [vmem:[#allocation2 + $0xc0] sm:$0xff] %v2443_v0  ;;  %v14256_v15 = vpop.f32.mrf.mxu1 }
 0x50b   : > { %4343 = vmatmul.bf16.gmra.mxu0 %v4257_v44 }
 0x50c   : > { %v2371_v17 = vpop.f32.mrf.mxu3 }
 0x50d   : > { %v4245_v17 = vld [vmem:[#allocation2 + $0x55] sm:$0xff] }
 0x50e   : > { %v2627_v56 = vpop.f32.mrf.mxu2  ;;  %v4259_v10 = vpack.c.bf16 %v4245_v17, %v4244_v34  ;;  %v4246_v17 = vld [vmem:[#allocation2 + $0x5d] sm:$0xff] }
 0x510   : > { %v14259_v25 = vpop.f32.mrf.mxu0 }
 0x511   : > { %16712 = vst [vmem:[#allocation17_spill] sm:$0xff] %v14259_v25  ;;  %2756 = vmatmul.bf16.gmra.mxu3 %v2497_v21 }
 0x512   : > { %v14262_v46 = vpop.f32.mrf.mxu1 }
 0x513   : > { %2872 = vmatmul.bf16.gmra.mxu2 %v2782_v49 }
 0x514   : > { %v2717_v53 = vpop.f32.mrf.mxu3 }
 0x515   : > { %v14265_v19 = vadd.f32 %v2717_v53, %v14197_v7  ;;  %3846 = vmatmul.bf16.vlgmr.msra.gmra.mxu1 %v13981_v20  ;;  %v2926_v7 = vld [vmem:[#allocation2 + $0x3] sm:$0xff]  ;;  %v2783_v20 = vpack.c.bf16 %v14035_v50, %v14016_v12 }
 0x516   : > { %v2630_v9 = vpop.f32.mrf.mxu2  ;;  %v2944_v41 = vpack.c.bf16 %v2927_v3, %v2926_v7  ;;  %v2784_v3 = vpack.c.bf16 %v14054_v6, %v14037_v23 }
 0x518   : > { %v14268_v27 = vpop.f32.mrf.mxu0 }
 0x519   : > { %16713 = vst [vmem:[#allocation9_spill] sm:$0xff] %v14268_v27 }
 0x51a   : > { %v14270_v22 = vpop.f32.mrf.mxu1 }
 0x51b   : > { %4348 = vmatmul.bf16.gmra.mxu0 %v4258_v30 }
 0x51c   : > { %v2719_v28 = vpop.f32.mrf.mxu3 }
 0x51d   : > { %v14273_v33 = vadd.f32 %v2719_v28, %v14216_v59 }
 0x51e   : > { %v14275_v61 = vpop.f32.mrf.mxu2 }
 0x520   : > { %v14277_v35 = vpop.f32.mrf.mxu0 }
 0x521   : > { %16714 = vst [vmem:[#allocation16_spill] sm:$0xff] %v14277_v35  ;;  %3026 = vmatmul.bf16.vlgmr.msrb.gmra.mxu3 %v2944_v41  ;;  %v2779_v35 = vld [vmem:[#allocation2 + $0x8a] sm:$0xf] }
 0x522   : > { %v14281_v0 = vpop.f32.mrf.mxu1 }
 0x523   : > { %2877 = vmatmul.bf16.gmra.mxu2 %v2783_v20 }
 0x524   : > { %v2722_v11 = vpop.f32.mrf.mxu3 }
 0x525   : > { %v14284_v44 = vadd.f32 %v2722_v11, %v14233_v24  ;;  %3851 = vmatmul.bf16.gmra.mxu1 %v14000_v37  ;;  %v2928_v24 = vld [vmem:[#allocation2 + $0x13] sm:$0xff]  ;;  %v4247_v11 = vld [vmem:[#allocation2 + $0x65] sm:$0xff] }
 0x526   : > { %v14287_v59 = vpop.f32.mrf.mxu2  ;;  %v2945_v28 = vpack.c.bf16 %v2929_v36, %v2928_v24  ;;  %v2931_v24 = vld [vmem:[#allocation2 + $0x2b] sm:$0xff] }
 0x528   : > { %v14289_v21 = vpop.f32.mrf.mxu0 }
 0x529   : > { %16715 = vst [vmem:[#allocation19_spill] sm:$0xff] %v14289_v21  ;;  %v2936_v21 = vld [vmem:[#allocation2 + $0x53] sm:$0xff] }
 0x52a   : > { %v14291_v49 = vpop.f32.mrf.mxu1 }
 0x52b   : > { %4353 = vmatmul.bf16.gmra.mxu0 %v4259_v10  ;;  %v4260_v10 = vpack.c.bf16 %v4247_v11, %v4246_v17  ;;  %v12152_v17 = vld [vmem:[%s16649_s4 + $0x178] sm:$0xff] }
 0x52c   : > { %v2724_v53 = vpop.f32.mrf.mxu3  ;;  %3346 = vmatpush.bf16.msra.mxu2 %v12152_v17 }
 0x52d   : > { %v14294_v32 = vadd.f32 %v2724_v53, %v14246_v62 }
 0x52e   : > { %v14296_v30 = vpop.f32.mrf.mxu2 }
 0x530   : > { %v14298_v37 = vpop.f32.mrf.mxu0 }
 0x531   : > { %16716 = vst [vmem:[#allocation10_spill] sm:$0xff] %v14298_v37  ;;  %3031 = vmatmul.bf16.gmra.mxu3 %v2945_v28  ;;  %v2937_v37 = vld [vmem:[#allocation2 + $0x5b] sm:$0xff] }
 0x532   : > { %v14302_v7 = vpop.f32.mrf.mxu1 }
 0x533   : > { %2882 = vmatmul.bf16.gmra.mxu2 %v2784_v3 }
 0x534   : > { %v2727_v41 = vpop.f32.mrf.mxu3 }
 0x535   : > { %v14304_v20 = vadd.f32 %v2727_v41, %v2625_v58  ;;  %3856 = vmatmul.bf16.gmra.mxu1 %v14024_v54  ;;  %v2930_v58 = vld [vmem:[#allocation2 + $0x23] sm:$0xff]  ;;  %v2785_v54 = vpack.c.bf16 %v14079_v38, %v14056_v52 }
 0x536   : > { %v14307_v62 = vpop.f32.mrf.mxu2  ;;  %v2946_v41 = vpack.c.bf16 %v2931_v24, %v2930_v58  ;;  %v12151_v24 = vld [vmem:[%s16649_s4 + $0x170] sm:$0xff] }
 0x537   : > { %v4248_v58 = vld [vmem:[#allocation2 + $0x6d] sm:$0xff]  ;;  %3347 = vmatpush.bf16.msra.mxu2 %v12151_v24  ;;  %v12149_v24 = vld [vmem:[%s16649_s4 + $0x160] sm:$0xff] }
 0x538   : > { %v14309_v34 = vpop.f32.mrf.mxu0 }
 0x539   : > { %16717 = vst [vmem:[#allocation18_spill] sm:$0xff] %v14309_v34 }
 0x53a   : > { %v14311_v53 = vpop.f32.mrf.mxu1 }
 0x53b   : > { %4358 = vmatmul.bf16.gmra.mxu0 %v4260_v10 }
 0x53c   : > { %v2729_v36 = vpop.f32.mrf.mxu3 }
 0x53d   : > { %v14313_v28 = vadd.f32 %v2729_v36, %v2627_v56  ;;  %v4249_v36 = vld [vmem:[#allocation2 + $0x75] sm:$0xff] }
 0x53e   : > { %v14315_v3 = vpop.f32.mrf.mxu2 }
 0x540   : > { %v14321_v48 = vpop.f32.mrf.mxu0 }
 0x541   : > { %3036 = vmatmul.bf16.gmra.mxu3 %v2946_v41  ;;  %16718 = vst [vmem:[#allocation21_spill] sm:$0xff] %v14321_v48  ;;  %v4261_v41 = vpack.c.bf16 %v4249_v36, %v4248_v58  ;;  %v2932_v58 = vld [vmem:[#allocation2 + $0x33] sm:$0xff] }
 0x542   : > { %v14319_v13 = vpop.f32.mrf.mxu1 }
 0x543   : > { %2887 = vmatmul.bf16.gmra.mxu2 %v2785_v54 }
 0x544   : > { %v2732_v11 = vpop.f32.mrf.mxu3 }
 0x545   : > { %v14326_v56 = vadd.f32 %v2732_v11, %v2630_v9  ;;  %3861 = vmatmul.bf16.gmra.mxu1 %v14043_v40  ;;  %v2933_v9 = vld [vmem:[#allocation2 + $0x3b] sm:$0xff]  ;;  %v12150_v40 = vld [vmem:[%s16649_s4 + $0x168] sm:$0xff] }
 0x546   : > { %v14329_v10 = vpop.f32.mrf.mxu2  ;;  %v12232_v11 = vld [vmem:[%s16649_s4 + $0x3f8] sm:$0xff]  ;;  %3348 = vmatpush.bf16.msra.mxu2 %v12150_v40 }
 0x547   : > { %4986 = vmatpush.bf16.msrb.mxu0 %v12232_v11  ;;  %v12148_v40 = vld [vmem:[%s16649_s4 + $0x158] sm:$0xff] }
 0x548   : > { %v14336_v16 = vpop.f32.mrf.mxu0 }
 0x549   : > { %16719 = vst [vmem:[#allocation11_spill] sm:$0xff] %v14336_v16  ;;  %v12229_v16 = vld [vmem:[%s16649_s4 + $0x3e0] sm:$0xff] }
 0x54a   : > { %v14334_v54 = vpop.f32.mrf.mxu1  ;;  %3349 = vmatpush.bf16.msra.mxu2 %v12149_v24  ;;  %v4250_v24 = vld [vmem:[#allocation2 + $0x7d] sm:$0xff] }
 0x54b   : > { %4363 = vmatmul.bf16.gmra.mxu0 %v4261_v41  ;;  %v2947_v41 = vpack.c.bf16 %v2933_v9, %v2932_v58  ;;  %v12230_v9 = vld [vmem:[%s16649_s4 + $0x3e8] sm:$0xff] }
 0x54c   : > { %v2734_v55 = vpop.f32.mrf.mxu3  ;;  %4987 = vmatpush.bf16.msrb.mxu0 %v12231_v51  ;;  %v4251_v51 = vld [vmem:[#allocation2 + $0x85] sm:$0xff] }
 0x54d   : > { %v14345_v17 = vadd.f32 %v2734_v55, %v14275_v61 }
 0x54e   : > { %v14347_v36 = vpop.f32.mrf.mxu2  ;;  %3350 = vmatpush.bf16.msra.mxu2 %v12148_v40  ;;  %v12146_v40 = vld [vmem:[%s16649_s4 + $0x148] sm:$0xff] }
 0x550   : > { %4988 = vmatpush.bf16.msrb.mxu0 %v12230_v9  ;;  %v12228_v9 = vld [vmem:[%s16649_s4 + $0x3d8] sm:$0xff] }
 0x551   : > { %3041 = vmatmul.bf16.gmra.mxu3 %v2947_v41  ;;  %v14371_v41 = vpop.f32.mrf.mxu0 }
 0x552   : > { %v14357_v55 = vpop.f32.mrf.mxu1  ;;  %16720 = vst [vmem:[#allocation20_spill] sm:$0xff] %v14371_v41  ;;  %v2935_v41 = vld [vmem:[#allocation2 + $0x4b] sm:$0xff] }
 0x553   : > { %2892 = vmatmul.bf16.gmra.mxu2 %v2786_v60  ;;  %v12147_v60 = vld [vmem:[%s16649_s4 + $0x150] sm:$0xff] }
 0x554   : > { %v2737_v61 = vpop.f32.mrf.mxu3  ;;  %3351 = vmatpush.bf16.msra.mxu2 %v12147_v60  ;;  %4989 = vmatpush.bf16.msrb.mxu0 %v12229_v16  ;;  %v12145_v60 = vld [vmem:[%s16649_s4 + $0x140] sm:$0xff] }
 0x555   : > { %v14366_v11 = vadd.f32 %v2737_v61, %v14287_v59  ;;  %3866 = vmatmul.bf16.gmra.mxu1 %v14062_v43  ;;  %v4262_v59 = vpack.c.bf16 %v4251_v51, %v4250_v24  ;;  %v2934_v51 = vld [vmem:[#allocation2 + $0x43] sm:$0xff] }
 0x556   : > { %v14369_v58 = vpop.f32.mrf.mxu2  ;;  %v2948_v16 = vpack.c.bf16 %v2935_v41, %v2934_v51 }
 0x558   : > { %3352 = vmatpush.bf16.msra.mxu2 %v12146_v40  ;;  %4990 = vmatpush.bf16.msrb.mxu0 %v12228_v9  ;;  %v12226_v40 = vld [vmem:[%s16649_s4 + $0x3c8] sm:$0xff] }
 0x559   : > { %v14395_v24 = vpop.f32.mrf.mxu0 }
 0x55a   : > { %v14379_v61 = vpop.f32.mrf.mxu1  ;;  %16721 = vst [vmem:[#allocation23_spill] sm:$0xff] %v14395_v24  ;;  %v12225_v24 = vld [vmem:[%s16649_s4 + $0x3c0] sm:$0xff] }
 0x55b   : > { %4368 = vmatmul.bf16.gmra.mxu0 %v4262_v59  ;;  %v12227_v59 = vld [vmem:[%s16649_s4 + $0x3d0] sm:$0xff] }
 0x55c   : > { %v2739_v43 = vpop.f32.mrf.mxu3  ;;  %3353 = vmatpush.bf16.msra.mxu2 %v12145_v60  ;;  %4991 = vmatpush.bf16.msrb.mxu0 %v12227_v59  ;;  %v12208_v60 = vld [vmem:[%s16649_s4 + $0x338] sm:$0xff] }
 0x55d   : > { %v14388_v48 = vadd.f32 %v2739_v43, %v14296_v30  ;;  %v2787_v30 = vpack.c.bf16 %v14166_v5, %v14127_v8  ;;  %4494 = vmatpush.bf16.msrb.mxu1 %v12208_v60 }
 0x55e   : > { %v14390_v34 = vpop.f32.mrf.mxu2 }
 0x560   : > { %4992 = vmatpush.bf16.msrb.mxu0 %v12226_v40 }
 0x561   : > { %3046 = vmatmul.bf16.gmra.mxu3 %v2948_v16  ;;  %v4253_v16 = vld [vmem:[#allocation2 + $0x95] sm:$0xff] }
 0x562   : > { %v14402_v43 = vpop.f32.mrf.mxu1 }
 0x563   : > { %2897 = vmatmul.bf16.gmra.mxu2 %v2787_v30  ;;  %v4252_v30 = vld [vmem:[#allocation2 + $0x8d] sm:$0xff] }
 0x564   : > { %v2742_v41 = vpop.f32.mrf.mxu3  ;;  %4993 = vmatpush.bf16.msrb.mxu0 %v12225_v24  ;;  %v2949_v24 = vpack.c.bf16 %v2937_v37, %v2936_v21  ;;  %v4255_v37 = vld [vmem:[#allocation2 + $0xa5] sm:$0xf] }
 0x565   : > { %v14408_v9 = vadd.f32 %v2742_v41, %v14307_v62  ;;  %3871 = vmatmul.bf16.gmra.mxu1 %v14099_v1  ;;  %v4263_v62 = vpack.c.bf16 %v4253_v16, %v4252_v30  ;;  %v12207_v1 = vld [vmem:[%s16649_s4 + $0x330] sm:$0xff]  ;;  %v12206_v16 = vld [vmem:[%s16649_s4 + $0x328] sm:$0xff] }
 0x566   : > { %v14411_v51 = vpop.f32.mrf.mxu2  ;;  %4495 = vmatpush.bf16.msrb.mxu1 %v12207_v1 }
 0x568   : > { %v14416_v59 = vpop.f32.mrf.mxu0 }
 0x569   : > { %16722 = vst [vmem:[#allocation12_spill] sm:$0xff] %v14416_v59 }
 0x56a   : > { %v14421_v41 = vpop.f32.mrf.mxu1  ;;  %4496 = vmatpush.bf16.msrb.mxu1 %v12206_v16  ;;  %v12159_v16 = vld [vmem:[%s16649_s4 + $0x1b0] sm:$0xff] }
 0x56b   : > { %4373 = vmatmul.bf16.gmra.mxu0 %v4263_v62  ;;  %v2788_v62 = vpack.c.bf16 %v2779_v35, %v14168_v2 }
 0x56c   : > { %v2744_v40 = vpop.f32.mrf.mxu3 }
 0x56d   : > { %v14427_v59 = vadd.f32 %v2744_v40, %v14315_v3  ;;  %v12160_v3 = vld [vmem:[%s16649_s4 + $0x1b8] sm:$0xff]  ;;  %v12205_v40 = vld [vmem:[%s16649_s4 + $0x320] sm:$0xff] }
 0x56e   : > { %v14429_v60 = vpop.f32.mrf.mxu2  ;;  %3510 = vmatpush.bf16.msra.mxu3 %v12160_v3  ;;  %4497 = vmatpush.bf16.msrb.mxu1 %v12205_v40  ;;  %v4254_v40 = vld [vmem:[#allocation2 + $0x9d] sm:$0xff] }
 0x570   : > { %v14434_v30 = vpop.f32.mrf.mxu0 }
 0x571   : > { %16723 = vst [vmem:[#allocation22_spill] sm:$0xff] %v14434_v30  ;;  %3051 = vmatmul.bf16.gmra.mxu3 %v2949_v24  ;;  %v12204_v24 = vld [vmem:[%s16649_s4 + $0x318] sm:$0xff]  ;;  %v12203_v30 = vld [vmem:[%s16649_s4 + $0x310] sm:$0xff] }
 0x572   : > { %v14440_v1 = vpop.f32.mrf.mxu1  ;;  %3511 = vmatpush.bf16.msra.mxu3 %v12159_v16  ;;  %4498 = vmatpush.bf16.msrb.mxu1 %v12204_v24  ;;  %v3255_v16 = vld [vmem:[#allocation2 + $0x16] sm:$0xff] }
 0x573   : > { %2902 = vmatmul.bf16.gmra.mxu2 %v2788_v62 }
 0x574   : > { %v2747_v27 = vpop.f32.mrf.mxu3 }
 0x575   : > { %v14446_v21 = vadd.f32 %v2747_v27, %v14329_v10  ;;  %3876 = vmatmul.bf16.gmra.mxu1 %v14145_v63  ;;  %v12158_v63 = vld [vmem:[%s16649_s4 + $0x1a8] sm:$0xff]  ;;  %v4264_v27 = vpack.c.bf16 %v4255_v37, %v4254_v40  ;;  %v12157_v37 = vld [vmem:[%s16649_s4 + $0x1a0] sm:$0xff] }
 0x576   : > { %v2863_v35 = vpop.f32.mrf.mxu2  ;;  %3512 = vmatpush.bf16.msra.mxu3 %v12158_v63  ;;  %4499 = vmatpush.bf16.msrb.mxu1 %v12203_v30  ;;  %v12202_v40 = vld [vmem:[%s16649_s4 + $0x308] sm:$0xff] }
 0x577   : > { %v14456_v62 = vadd.f32 %v2863_v35, %v14265_v19  ;;  %v2939_v19 = vld [vmem:[#allocation2 + $0x6b] sm:$0xff] }
 0x578   : > { %v14458_v3 = vpop.f32.mrf.mxu0  ;;  %v3254_v30 = vld [vmem:[#allocation2 + $0xe] sm:$0xff] }
 0x579   : > { %16724 = vst [vmem:[#allocation25_spill] sm:$0xff] %v14458_v3  ;;  %v2938_v3 = vld [vmem:[#allocation2 + $0x63] sm:$0xff] }
 0x57a   : > { %v14463_v10 = vpop.f32.mrf.mxu1  ;;  %v2950_v26 = vpack.c.bf16 %v2939_v19, %v2938_v3  ;;  %3513 = vmatpush.bf16.msra.mxu3 %v12157_v37  ;;  %4500 = vmatpush.bf16.msrb.mxu1 %v12202_v40  ;;  %v12155_v37 = vld [vmem:[%s16649_s4 + $0x190] sm:$0xff] }
 0x57b   : > { %4378 = vmatmul.bf16.gmra.mxu0 %v4264_v27 }
 0x57c   : > { %v2749_v25 = vpop.f32.mrf.mxu3 }
 0x57d   : > { %v14469_v35 = vadd.f32 %v2749_v25, %v14347_v36  ;;  %v3761_v25 = vld [vmem:[#allocation2 + $0x89] sm:$0xff]  ;;  %v3272_v36 = vpack.c.bf16 %v3255_v16, %v3254_v30 }
 0x57e   : > { %v2865_v24 = vpop.f32.mrf.mxu2  ;;  %v3771_v3 = vpack.c.bf16 %v3761_v25, %v14176_v18  ;;  %3514 = vmatpush.bf16.msra.mxu3 %v12156_v14  ;;  %v12154_v18 = vld [vmem:[%s16649_s4 + $0x188] sm:$0xff] }
 0x57f   : > { %v14478_v27 = vadd.f32 %v2865_v24, %v14273_v33  ;;  %v12201_v33 = vld [vmem:[%s16649_s4 + $0x300] sm:$0xff] }
 0x580   : > { %v14480_v63 = vpop.f32.mrf.mxu0  ;;  %4501 = vmatpush.bf16.msrb.mxu1 %v12201_v33  ;;  %v2940_v33 = vld [vmem:[#allocation2 + $0x73] sm:$0xff] }
 0x581   : > { %16725 = vst [vmem:[#allocation13_spill] sm:$0xff] %v14480_v63  ;;  %3056 = vmatmul.bf16.gmra.mxu3 %v2950_v26 }
 0x582   : > { %v14485_v39 = vpop.f32.mrf.mxu1  ;;  %3515 = vmatpush.bf16.msra.mxu3 %v12155_v37  ;;  %v12153_v37 = vld [vmem:[%s16649_s4 + $0x180] sm:$0xff] }
 0x583   : > { %3354 = vmatmul.bf16.vlgmr.msra.gmra.mxu2 %v3272_v36 }
 0x584   : > { %v2752_v19 = vpop.f32.mrf.mxu3 }
 0x585   : > { %v14492_v24 = vadd.f32 %v2752_v19, %v14369_v58  ;;  %3881 = vmatmul.bf16.gmra.mxu1 %v3771_v3  ;;  %v16727_v58 = vpack.c.bf16 %v14016_v12, %v14014_v31  ;;  %v3257_v3 = vld [vmem:[#allocation2 + $0x26] sm:$0xff]  ;;  %v3256_v31 = vld [vmem:[#allocation2 + $0x1e] sm:$0xff]  ;;  %v3762_v12 = vld [vmem:[#allocation2 + $0x91] sm:$0xff] }
 0x586   : > { %v2868_v26 = vpop.f32.mrf.mxu2  ;;  %3516 = vmatpush.bf16.msra.mxu3 %v12154_v18 }
 0x587   : > { %v14495_v16 = vadd.f32 %v2868_v26, %v14284_v44  ;;  %v2941_v44 = vld [vmem:[#allocation2 + $0x7b] sm:$0xff] }
 0x588   : > { %v14500_v40 = vpop.f32.mrf.mxu0  ;;  %v2951_v26 = vpack.c.bf16 %v2941_v44, %v2940_v33 }
 0x589   : > { %16726 = vst [vmem:[#allocation24_spill] sm:$0xff] %v14500_v40 }
 0x58a   : > { %v14505_v14 = vpop.f32.mrf.mxu1  ;;  %3517 = vmatpush.bf16.msra.mxu3 %v12153_v37  ;;  %v2942_v37 = vld [vmem:[#allocation2 + $0x83] sm:$0xff] }
 0x58b   : > { %4994 = vmatmul.bf16.vlgmr.msrb.gmra.mxu0 %v16727_v58  ;;  %v3763_v58 = vld [vmem:[#allocation2 + $0x99] sm:$0xf] }
 0x58c   : > { %v2754_v30 = vpop.f32.mrf.mxu3  ;;  %v3772_v18 = vpack.c.bf16 %v3763_v58, %v3762_v12 }
 0x58d   : > { %v14511_v25 = vadd.f32 %v2754_v30, %v14390_v34  ;;  %v3273_v34 = vpack.c.bf16 %v3257_v3, %v3256_v31  ;;  %v16730_v3 = vpack.c.bf16 %v14037_v23, %v14035_v50  ;;  %v2943_v31 = vld [vmem:[#allocation2 + $0x8b] sm:$0xf] }
 0x58e   : > { %v2870_v36 = vpop.f32.mrf.mxu2 }
 0x58f   : > { %v14514_v19 = vadd.f32 %v2870_v36, %v14294_v32 }
 0x590   : > { %v14519_v40 = vpop.f32.mrf.mxu0 }
 0x591   : > { %16728 = vst [vmem:[#allocation26_spill] sm:$0xff] %v14519_v40  ;;  %3061 = vmatmul.bf16.gmra.mxu3 %v2951_v26 }
 0x592   : > { %v14521_v30 = vpop.f32.mrf.mxu1 }
 0x593   : > { %3359 = vmatmul.bf16.gmra.mxu2 %v3273_v34 }
 0x594   : > { %v2757_v63 = vpop.f32.mrf.mxu3 }
 0x595   : > { %v14524_v32 = vadd.f32 %v2757_v63, %v14411_v51  ;;  %3886 = vmatmul.bf16.gmra.mxu1 %v3772_v18  ;;  %v3259_v63 = vld [vmem:[#allocation2 + $0x36] sm:$0xff] }
 0x596   : > { %v2873_v44 = vpop.f32.mrf.mxu2 }
 0x597   : > { %v14527_v36 = vadd.f32 %v2873_v44, %v14304_v20  ;;  %v2952_v20 = vpack.c.bf16 %v2943_v31, %v2942_v37  ;;  %v3258_v44 = vld [vmem:[#allocation2 + $0x2e] sm:$0xff]  ;;  %v16733_v37 = vpack.c.bf16 %v14056_v52, %v14054_v6 }
 0x598   : > { %v14529_v33 = vpop.f32.mrf.mxu0 }
 0x599   : > { %16729 = vst [vmem:[#allocation28_spill] sm:$0xff] %v14529_v33  ;;  %v14542_v33 = vpack.c.bf16 %v3259_v63, %v3258_v44 }
 0x59a   : > { %v14531_v40 = vpop.f32.mrf.mxu1 }
 0x59b   : > { %4999 = vmatmul.bf16.gmra.mxu0 %v16730_v3 }
 0x59c   : > { %v2759_v26 = vpop.f32.mrf.mxu3 }
 0x59d   : > { %v14537_v12 = vadd.f32 %v2759_v26, %v14429_v60 }
 0x59e   : > { %v2875_v51 = vpop.f32.mrf.mxu2 }
 0x59f   : > { %v2913_v58 = vadd.f32 %v2875_v51, %v14313_v28  ;;  %v3419_v51 = vld [vmem:[#allocation2 + $0x17] sm:$0xff] }
 0x5a0   : > { %v14540_v18 = vpop.f32.mrf.mxu0 }
 0x5a1   : > { %16731 = vst [vmem:[#allocation29_spill] sm:$0xff] %v14540_v18  ;;  %3066 = vmatmul.bf16.gmra.mxu3 %v2952_v20  ;;  %v3418_v20 = vld [vmem:[#allocation2 + $0xf] sm:$0xff] }
 0x5a2   : > { %v14544_v29 = vpop.f32.mrf.mxu1 }
 0x5a3   : > { %3364 = vmatmul.bf16.gmra.mxu2 %v14542_v33 }
 0x5a4   : > { %v3027_v50 = vpop.f32.mrf.mxu3 }
 0x5a5   : > { %v14548_v23 = vadd.f32 %v3027_v50, %v14456_v62  ;;  %4502 = vmatmul.bf16.vlgmr.msrb.gmra.mxu1 %v3273_v34  ;;  %v3261_v34 = vld [vmem:[#allocation2 + $0x46] sm:$0xff] }
 0x5a6   : > { %v2878_v60 = vpop.f32.mrf.mxu2 }
 0x5a7   : > { %v14551_v3 = vadd.f32 %v2878_v60, %v14326_v56  ;;  %v3436_v56 = vpack.c.bf16 %v3419_v51, %v3418_v20  ;;  %v3260_v60 = vld [vmem:[#allocation2 + $0x3e] sm:$0xff] }
 0x5a8   : > { %v14553_v28 = vpop.f32.mrf.mxu0 }
 0x5a9   : > { %16732 = vst [vmem:[#allocation30_spill] sm:$0xff] %v14553_v28  ;;  %v14568_v28 = vpack.c.bf16 %v3261_v34, %v3260_v60  ;;  %v3421_v34 = vld [vmem:[#allocation2 + $0x27] sm:$0xff]  ;;  %v3420_v60 = vld [vmem:[#allocation2 + $0x1f] sm:$0xff] }
 0x5aa   : > { %v14555_v26 = vpop.f32.mrf.mxu1 }
 0x5ab   : > { %5004 = vmatmul.bf16.gmra.mxu0 %v16733_v37 }
 0x5ac   : > { %v3029_v31 = vpop.f32.mrf.mxu3 }
 0x5ad   : > { %v14561_v63 = vadd.f32 %v3029_v31, %v14478_v27 }
 0x5ae   : > { %v2880_v62 = vpop.f32.mrf.mxu2 }
 0x5af   : > { %v14564_v44 = vadd.f32 %v2880_v62, %v14345_v17  ;;  %v16737_v62 = vpack.c.bf16 %v14081_v47, %v14079_v38 }
 0x5b0   : > { %v14566_v50 = vpop.f32.mrf.mxu0 }
 0x5b1   : > { %16734 = vst [vmem:[#allocation31_spill] sm:$0xff] %v14566_v50  ;;  %3518 = vmatmul.bf16.vlgmr.msra.gmra.mxu3 %v3436_v56 }
 0x5b2   : > { %v14570_v6 = vpop.f32.mrf.mxu1 }
 0x5b3   : > { %3369 = vmatmul.bf16.gmra.mxu2 %v14568_v28 }
 0x5b4   : > { %v3032_v52 = vpop.f32.mrf.mxu3 }
 0x5b5   : > { %v14574_v27 = vadd.f32 %v3032_v52, %v14495_v16  ;;  %4507 = vmatmul.bf16.gmra.mxu1 %v14542_v33  ;;  %v3263_v52 = vld [vmem:[#allocation2 + $0x56] sm:$0xff] }
 0x5b6   : > { %v2883_v37 = vpop.f32.mrf.mxu2 }
 0x5b7   : > { %v14578_v17 = vadd.f32 %v2883_v37, %v14366_v11  ;;  %v3437_v11 = vpack.c.bf16 %v3421_v34, %v3420_v60  ;;  %v3423_v60 = vld [vmem:[#allocation2 + $0x37] sm:$0xff] }
 0x5b8   : > { %v14580_v31 = vpop.f32.mrf.mxu0 }
 0x5b9   : > { %16735 = vst [vmem:[#allocation32_spill] sm:$0xff] %v14580_v31  ;;  %v3262_v31 = vld [vmem:[#allocation2 + $0x4e] sm:$0xff] }
 0x5ba   : > { %v14582_v51 = vpop.f32.mrf.mxu1  ;;  %v14595_v18 = vpack.c.bf16 %v3263_v52, %v3262_v31  ;;  %v16742_v31 = vpack.c.bf16 %v14127_v8, %v14125_v4 }
 0x5bb   : > { %16736 = vst [vmem:[#allocation33_spill] sm:$0xff] %v14582_v51  ;;  %5009 = vmatmul.bf16.gmra.mxu0 %v16737_v62 }
 0x5bc   : > { %v3034_v20 = vpop.f32.mrf.mxu3 }
 0x5bd   : > { %v14588_v56 = vadd.f32 %v3034_v20, %v14514_v19 }
 0x5be   : > { %v2885_v16 = vpop.f32.mrf.mxu2 }
 0x5bf   : > { %v14591_v50 = vadd.f32 %v2885_v16, %v14388_v48 }
 0x5c0   : > { %v14593_v37 = vpop.f32.mrf.mxu0 }
 0x5c1   : > { %16738 = vst [vmem:[#allocation34_spill] sm:$0xff] %v14593_v37  ;;  %3523 = vmatmul.bf16.gmra.mxu3 %v3437_v11  ;;  %v3422_v11 = vld [vmem:[#allocation2 + $0x2f] sm:$0xff] }
 0x5c2   : > { %v14597_v38 = vpop.f32.mrf.mxu1 }
 0x5c3   : > { %16739 = vst [vmem:[#allocation35_spill] sm:$0xff] %v14597_v38  ;;  %3374 = vmatmul.bf16.gmra.mxu2 %v14595_v18 }
 0x5c4   : > { %v3037_v47 = vpop.f32.mrf.mxu3 }
 0x5c5   : > { %v14601_v19 = vadd.f32 %v3037_v47, %v14527_v36  ;;  %4512 = vmatmul.bf16.gmra.mxu1 %v14568_v28  ;;  %v3265_v47 = vld [vmem:[#allocation2 + $0x66] sm:$0xff] }
 0x5c6   : > { %v2888_v62 = vpop.f32.mrf.mxu2 }
 0x5c7   : > { %v14605_v48 = vadd.f32 %v2888_v62, %v14408_v9  ;;  %v3438_v9 = vpack.c.bf16 %v3423_v60, %v3422_v11  ;;  %v3425_v11 = vld [vmem:[#allocation2 + $0x47] sm:$0xff] }
 0x5c8   : > { %v14607_v20 = vpop.f32.mrf.mxu0 }
 0x5c9   : > { %16740 = vst [vmem:[#allocation36_spill] sm:$0xff] %v14607_v20  ;;  %v3264_v20 = vld [vmem:[#allocation2 + $0x5e] sm:$0xff] }
 0x5ca   : > { %v14609_v34 = vpop.f32.mrf.mxu1 }
 0x5cb   : > { %16741 = vst [vmem:[#allocation37_spill] sm:$0xff] %v14609_v34  ;;  %5014 = vmatmul.bf16.gmra.mxu0 %v16742_v31  ;;  %v14621_v34 = vpack.c.bf16 %v3265_v47, %v3264_v20  ;;  %v12183_v20 = vld [vmem:[%s16649_s4 + $0x270] sm:$0xff] }
 0x5cc   : > { %v3039_v16 = vpop.f32.mrf.mxu3 }
 0x5cd   : > { %v14614_v52 = vadd.f32 %v3039_v16, %v2913_v58 }
 0x5ce   : > { %v2890_v36 = vpop.f32.mrf.mxu2 }
 0x5cf   : > { %v14617_v37 = vadd.f32 %v2890_v36, %v14427_v59  ;;  %v12184_v59 = vld [vmem:[%s16649_s4 + $0x278] sm:$0xff] }
 0x5d0   : > { %v14619_v62 = vpop.f32.mrf.mxu0  ;;  %4002 = vmatpush.bf16.msrb.mxu2 %v12184_v59  ;;  %v3424_v59 = vld [vmem:[#allocation2 + $0x3f] sm:$0xff] }
 0x5d1   : > { %16743 = vst [vmem:[#allocation38_spill] sm:$0xff] %v14619_v62  ;;  %3528 = vmatmul.bf16.gmra.mxu3 %v3438_v9  ;;  %v12264_v9 = vld [vmem:[%s16649_s4 + $0x4f8] sm:$0xff] }
 0x5d2   : > { %v14623_v38 = vpop.f32.mrf.mxu1  ;;  %5642 = vmatpush.bf16.msra.mxu0 %v12264_v9  ;;  %v12262_v9 = vld [vmem:[%s16649_s4 + $0x4e8] sm:$0xff] }
 0x5d3   : > { %16744 = vst [vmem:[#allocation39_spill] sm:$0xff] %v14623_v38  ;;  %3379 = vmatmul.bf16.gmra.mxu2 %v14621_v34 }
 0x5d4   : > { %v3042_v4 = vpop.f32.mrf.mxu3  ;;  %4003 = vmatpush.bf16.msrb.mxu2 %v12183_v20 }
 0x5d5   : > { %v14627_v8 = vadd.f32 %v3042_v4, %v14551_v3  ;;  %4517 = vmatmul.bf16.gmra.mxu1 %v14595_v18  ;;  %v16747_v3 = vpack.c.bf16 %v14168_v2, %v14166_v5  ;;  %v3439_v2 = vpack.c.bf16 %v3425_v11, %v3424_v59  ;;  %v14681_v59 = vld [vmem:[#allocation2 + $0x92] sm:$0xff] }
 0x5d6   : > { %v2893_v58 = vpop.f32.mrf.mxu2 }
 0x5d7   : > { %v14634_v31 = vadd.f32 %v2893_v58, %v14446_v21  ;;  %v12182_v21 = vld [vmem:[%s16649_s4 + $0x268] sm:$0xff]  ;;  %v3267_v58 = vld [vmem:[#allocation2 + $0x76] sm:$0xff] }
 0x5d8   : > { %v14639_v16 = vpop.f32.mrf.mxu0  ;;  %4004 = vmatpush.bf16.msrb.mxu2 %v12182_v21  ;;  %v12180_v21 = vld [vmem:[%s16649_s4 + $0x258] sm:$0xff] }
 0x5d9   : > { %16745 = vst [vmem:[#allocation40_spill] sm:$0xff] %v14639_v16 }
 0x5da   : > { %v14641_v60 = vpop.f32.mrf.mxu1 }
 0x5db   : > { %16746 = vst [vmem:[#allocation41_spill] sm:$0xff] %v14641_v60  ;;  %5019 = vmatmul.bf16.gmra.mxu0 %v16747_v3  ;;  %v12181_v3 = vld [vmem:[%s16649_s4 + $0x260] sm:$0xff] }
 0x5dc   : > { %v3044_v36 = vpop.f32.mrf.mxu3  ;;  %4005 = vmatpush.bf16.msrb.mxu2 %v12181_v3  ;;  %v12261_v3 = vld [vmem:[%s16649_s4 + $0x4e0] sm:$0xff] }
 0x5dd   : > { %v14647_v47 = vadd.f32 %v3044_v36, %v14564_v44  ;;  %v3266_v44 = vld [vmem:[#allocation2 + $0x6e] sm:$0xff]  ;;  %v3269_v60 = vld [vmem:[#allocation2 + $0x86] sm:$0xff] }
 0x5de   : > { %v2895_v4 = vpop.f32.mrf.mxu2  ;;  %v12263_v36 = vld [vmem:[%s16649_s4 + $0x4f0] sm:$0xff]  ;;  %v14666_v16 = vpack.c.bf16 %v3267_v58, %v3266_v44 }
 0x5df   : > { %v14656_v5 = vadd.f32 %v2895_v4, %v14469_v35  ;;  %5643 = vmatpush.bf16.msra.mxu0 %v12263_v36  ;;  %v12179_v44 = vld [vmem:[%s16649_s4 + $0x250] sm:$0xff] }
 0x5e0   : > { %v14658_v20 = vpop.f32.mrf.mxu0  ;;  %4006 = vmatpush.bf16.msrb.mxu2 %v12180_v21 }
 0x5e1   : > { %16748 = vst [vmem:[#allocation42_spill] sm:$0xff] %v14658_v20  ;;  %3533 = vmatmul.bf16.gmra.mxu3 %v3439_v2 }
 0x5e2   : > { %v14668_v62 = vpop.f32.mrf.mxu1 }
 0x5e3   : > { %16749 = vst [vmem:[#allocation43_spill] sm:$0xff] %v14668_v62  ;;  %3384 = vmatmul.bf16.gmra.mxu2 %v14666_v16  ;;  %5644 = vmatpush.bf16.msra.mxu0 %v12262_v9  ;;  %v3427_v9 = vld [vmem:[#allocation2 + $0x57] sm:$0xff]  ;;  %v3426_v62 = vld [vmem:[#allocation2 + $0x4f] sm:$0xff] }
 0x5e4   : > { %v3047_v35 = vpop.f32.mrf.mxu3  ;;  %4007 = vmatpush.bf16.msrb.mxu2 %v12179_v44 }
 0x5e5   : > { %v14672_v11 = vadd.f32 %v3047_v35, %v14578_v17  ;;  %4522 = vmatmul.bf16.gmra.mxu1 %v14621_v34  ;;  %v14688_v17 = vld [vmem:[#allocation2 + $0x8a] sm:$0xff] }
 0x5e6   : > { %v2898_v4 = vpop.f32.mrf.mxu2  ;;  %v4918_v36 = vpack.c.bf16 %v14681_v59, %v14688_v17 }
 0x5e7   : > { %v14684_v58 = vadd.f32 %v2898_v4, %v14492_v24  ;;  %5645 = vmatpush.bf16.msra.mxu0 %v12261_v3  ;;  %v12178_v4 = vld [vmem:[%s16649_s4 + $0x248] sm:$0xff]  ;;  %v3268_v3 = vld [vmem:[#allocation2 + $0x7e] sm:$0xff] }
 0x5e8   : > { %v14686_v2 = vpop.f32.mrf.mxu0  ;;  %4008 = vmatpush.bf16.msrb.mxu2 %v12178_v4  ;;  %v14720_v38 = vpack.c.bf16 %v3269_v60, %v3268_v3  ;;  %v4908_v3 = vld [vmem:[#allocation2 + $0x9a] sm:$0xff] }
 0x5e9   : > { %16750 = vst [vmem:[#allocation44_spill] sm:$0xff] %v14686_v2  ;;  %v12260_v2 = vld [vmem:[%s16649_s4 + $0x4d8] sm:$0xff] }
 0x5ea   : > { %v14698_v35 = vpop.f32.mrf.mxu1 }
 0x5eb   : > { %16751 = vst [vmem:[#allocation45_spill] sm:$0xff] %v14698_v35  ;;  %5024 = vmatmul.bf16.gmra.mxu0 %v4918_v36  ;;  %v3440_v35 = vpack.c.bf16 %v3427_v9, %v3426_v62  ;;  %v12240_v9 = vld [vmem:[%s16649_s4 + $0x438] sm:$0xff] }
 0x5ec   : > { %v3049_v24 = vpop.f32.mrf.mxu3  ;;  %5646 = vmatpush.bf16.msra.mxu0 %v12260_v2  ;;  %5150 = vmatpush.bf16.msra.mxu1 %v12240_v9 }
 0x5ed   : > { %v14701_v21 = vadd.f32 %v3049_v24, %v14591_v50  ;;  %v12177_v50 = vld [vmem:[%s16649_s4 + $0x240] sm:$0xff]  ;;  %v12259_v24 = vld [vmem:[%s16649_s4 + $0x4d0] sm:$0xff] }
 0x5ee   : > { %v2900_v20 = vpop.f32.mrf.mxu2  ;;  %4009 = vmatpush.bf16.msrb.mxu2 %v12177_v50 }
 0x5ef   : > { %v14710_v36 = vadd.f32 %v2900_v20, %v14511_v25  ;;  %v12258_v20 = vld [vmem:[%s16649_s4 + $0x4c8] sm:$0xff] }
 0x5f0   : > { %v14712_v44 = vpop.f32.mrf.mxu0  ;;  %5647 = vmatpush.bf16.msra.mxu0 %v12259_v24 }
 0x5f1   : > { %16752 = vst [vmem:[#allocation46_spill] sm:$0xff] %v14712_v44  ;;  %3538 = vmatmul.bf16.gmra.mxu3 %v3440_v35  ;;  %v4909_v35 = vld [vmem:[#allocation2 + $0xa2] sm:$0xff] }
 0x5f2   : > { %v14722_v51 = vpop.f32.mrf.mxu1  ;;  %v4919_v50 = vpack.c.bf16 %v4909_v35, %v4908_v3  ;;  %v3428_v44 = vld [vmem:[#allocation2 + $0x5f] sm:$0xff]  ;;  %v12238_v3 = vld [vmem:[%s16649_s4 + $0x428] sm:$0xff] }
 0x5f3   : > { %16753 = vst [vmem:[#allocation47_spill] sm:$0xff] %v14722_v51  ;;  %3389 = vmatmul.bf16.gmra.mxu2 %v14720_v38  ;;  %v3271_v51 = vld [vmem:[#allocation2 + $0x96] sm:$0xf] }
 0x5f4   : > { %v3052_v25 = vpop.f32.mrf.mxu3  ;;  %5648 = vmatpush.bf16.msra.mxu0 %v12258_v20 }
 0x5f5   : > { %v14726_v62 = vadd.f32 %v3052_v25, %v14605_v48  ;;  %4527 = vmatmul.bf16.gmra.mxu1 %v14666_v16  ;;  %v12257_v48 = vld [vmem:[%s16649_s4 + $0x4c0] sm:$0xff] }
 0x5f6   : > { %v2903_v2 = vpop.f32.mrf.mxu2 }
 0x5f7   : > { %v14733_v60 = vadd.f32 %v2903_v2, %v14524_v32  ;;  %v12239_v32 = vld [vmem:[%s16649_s4 + $0x430] sm:$0xff]  ;;  %v3429_v2 = vld [vmem:[#allocation2 + $0x67] sm:$0xff] }
 0x5f8   : > { %v14738_v4 = vpop.f32.mrf.mxu0  ;;  %5649 = vmatpush.bf16.msra.mxu0 %v12257_v48  ;;  %5151 = vmatpush.bf16.msra.mxu1 %v12239_v32  ;;  %v3441_v9 = vpack.c.bf16 %v3429_v2, %v3428_v44 }
 0x5f9   : > { %16754 = vst [vmem:[#allocation48_spill] sm:$0xff] %v14738_v4 }
 0x5fa   : > { %v14743_v24 = vpop.f32.mrf.mxu1 }
 0x5fb   : > { %16755 = vst [vmem:[#allocation49_spill] sm:$0xff] %v14743_v24  ;;  %5029 = vmatmul.bf16.gmra.mxu0 %v4919_v50  ;;  %v3270_v50 = vld [vmem:[#allocation2 + $0x8e] sm:$0xff] }
 0x5fc   : > { %v3054_v25 = vpop.f32.mrf.mxu3  ;;  %v3280_v48 = vpack.c.bf16 %v3271_v51, %v3270_v50  ;;  %5152 = vmatpush.bf16.msra.mxu1 %v12238_v3  ;;  %v3236_v51 = vadd.f32 %v14251_v42, %v14548_v23  ;;  %v12190_v42 = vld [vmem:[%s16649_s4 + $0x2a8] sm:$0xff] }
 0x5fd   : > { %v14749_v4 = vadd.f32 %v3054_v25, %v14617_v37  ;;  %v12192_v37 = vld [vmem:[%s16649_s4 + $0x2b8] sm:$0xff] }
 0x5fe   : > { %v2905_v20 = vpop.f32.mrf.mxu2  ;;  %4166 = vmatpush.bf16.msrb.mxu3 %v12192_v37 }
 0x5ff   : > { %v14752_v35 = vadd.f32 %v2905_v20, %v14537_v12  ;;  %v12237_v12 = vld [vmem:[%s16649_s4 + $0x420] sm:$0xff]  ;;  %v4910_v20 = vld [vmem:[#allocation2 + $0xaa] sm:$0xff] }
 0x600   : > { %v14757_v24 = vpop.f32.mrf.mxu0  ;;  %5153 = vmatpush.bf16.msra.mxu1 %v12237_v12  ;;  %v12235_v12 = vld [vmem:[%s16649_s4 + $0x410] sm:$0xff] }
 0x601   : > { %16756 = vst [vmem:[#allocation50_spill] sm:$0xff] %v14757_v24  ;;  %3543 = vmatmul.bf16.gmra.mxu3 %v3441_v9  ;;  %v4911_v9 = vld [vmem:[#allocation2 + $0xb2] sm:$0xf] }
 0x602   : > { %v14762_v32 = vpop.f32.mrf.mxu1 }
 0x603   : > { %16757 = vst [vmem:[#allocation51_spill] sm:$0xff] %v14762_v32  ;;  %3394 = vmatmul.bf16.gmra.mxu2 %v3280_v48  ;;  %v12191_v48 = vld [vmem:[%s16649_s4 + $0x2b0] sm:$0xff] }
 0x604   : > { %v3057_v44 = vpop.f32.mrf.mxu3  ;;  %4167 = vmatpush.bf16.msrb.mxu3 %v12191_v48  ;;  %v3430_v48 = vld [vmem:[#allocation2 + $0x6f] sm:$0xff] }
 0x605   : > { %v14768_v25 = vadd.f32 %v3057_v44, %v14634_v31  ;;  %4532 = vmatmul.bf16.gmra.mxu1 %v14720_v38  ;;  %v12236_v31 = vld [vmem:[%s16649_s4 + $0x418] sm:$0xff]  ;;  %v4920_v44 = vpack.c.bf16 %v4911_v9, %v4910_v20  ;;  %v3237_v20 = vadd.f32 %v14256_v15, %v14561_v63 }
 0x606   : > { %v3355_v2 = vpop.f32.mrf.mxu2  ;;  %5154 = vmatpush.bf16.msra.mxu1 %v12236_v31  ;;  %v4417_v32 = vld [vmem:[#allocation2 + $0x96] sm:$0xff] }
 0x607   : > { %v14773_v3 = vadd.f32 %v3355_v2, %v3236_v51  ;;  %v3431_v2 = vld [vmem:[#allocation2 + $0x77] sm:$0xff] }
 0x608   : > { %v14781_v37 = vpop.f32.mrf.mxu0  ;;  %4168 = vmatpush.bf16.msrb.mxu3 %v12190_v42  ;;  %v3442_v31 = vpack.c.bf16 %v3431_v2, %v3430_v48  ;;  %v12188_v42 = vld [vmem:[%s16649_s4 + $0x298] sm:$0xff]  ;;  %v3238_v48 = vadd.f32 %v14262_v46, %v14574_v27  ;;  %v3433_v46 = vld [vmem:[#allocation2 + $0x87] sm:$0xff] }
 0x609   : > { %16758 = vst [vmem:[#allocation52_spill] sm:$0xff] %v14781_v37  ;;  %v3911_v37 = vld [vmem:[#allocation2 + $0x1a] sm:$0xff] }
 0x60a   : > { %v14786_v23 = vpop.f32.mrf.mxu1  ;;  %5155 = vmatpush.bf16.msra.mxu1 %v12235_v12  ;;  %v12233_v12 = vld [vmem:[%s16649_s4 + $0x400] sm:$0xff] }
 0x60b   : > { %16759 = vst [vmem:[#allocation53_spill] sm:$0xff] %v14786_v23  ;;  %5034 = vmatmul.bf16.gmra.mxu0 %v4920_v44  ;;  %v12189_v44 = vld [vmem:[%s16649_s4 + $0x2a0] sm:$0xff] }
 0x60c   : > { %v3059_v51 = vpop.f32.mrf.mxu3  ;;  %4169 = vmatpush.bf16.msrb.mxu3 %v12189_v44 }
 0x60d   : > { %v14792_v24 = vadd.f32 %v3059_v51, %v14656_v5  ;;  %v12234_v5 = vld [vmem:[%s16649_s4 + $0x408] sm:$0xff]  ;;  %v3910_v51 = vld [vmem:[#allocation2 + $0x12] sm:$0xff] }
 0x60e   : > { %v3357_v9 = vpop.f32.mrf.mxu2  ;;  %v3928_v15 = vpack.c.bf16 %v3911_v37, %v3910_v51  ;;  %5156 = vmatpush.bf16.msra.mxu1 %v12234_v5  ;;  %v12187_v5 = vld [vmem:[%s16649_s4 + $0x290] sm:$0xff] }
 0x60f   : > { %v14796_v23 = vadd.f32 %v3357_v9, %v3237_v20  ;;  %v14814_v20 = vpack.c.bf16 %v4417_v32, %v3270_v50 }
 0x610   : > { %v14812_v2 = vpop.f32.mrf.mxu0  ;;  %4170 = vmatpush.bf16.msrb.mxu3 %v12188_v42 }
 0x611   : > { %3548 = vmatmul.bf16.gmra.mxu3 %v3442_v31  ;;  %16760 = vst [vmem:[#allocation54_spill] sm:$0xff] %v14812_v2  ;;  %v4419_v2 = vld [vmem:[#allocation2 + $0xa6] sm:$0xf] }
 0x612   : > { %v14804_v63 = vpop.f32.mrf.mxu1  ;;  %5157 = vmatpush.bf16.msra.mxu1 %v12233_v12  ;;  %v3432_v12 = vld [vmem:[#allocation2 + $0x7f] sm:$0xff] }
 0x613   : > { %4010 = vmatmul.bf16.vlgmr.msrb.gmra.mxu2 %v3928_v15  ;;  %v3239_v15 = vadd.f32 %v14270_v22, %v14588_v56 }
 0x614   : > { %v3062_v9 = vpop.f32.mrf.mxu3  ;;  %4171 = vmatpush.bf16.msrb.mxu3 %v12187_v5  ;;  %v3912_v5 = vld [vmem:[#allocation2 + $0x22] sm:$0xff] }
 0x615   : > { %v14817_v37 = vadd.f32 %v3062_v9, %v14684_v58  ;;  %4537 = vmatmul.bf16.gmra.mxu1 %v14814_v20  ;;  %v12186_v58 = vld [vmem:[%s16649_s4 + $0x288] sm:$0xff] }
 0x616   : > { %v3360_v31 = vpop.f32.mrf.mxu2  ;;  %v3913_v9 = vld [vmem:[#allocation2 + $0x2a] sm:$0xff] }
 0x617   : > { %v14822_v44 = vadd.f32 %v3360_v31, %v3238_v48  ;;  %v3443_v31 = vpack.c.bf16 %v3433_v46, %v3432_v12  ;;  %v3240_v46 = vadd.f32 %v14281_v0, %v14601_v19  ;;  %v3915_v0 = vld [vmem:[#allocation2 + $0x3a] sm:$0xff] }
 0x618   : > { %v14833_v27 = vpop.f32.mrf.mxu0  ;;  %4172 = vmatpush.bf16.msrb.mxu3 %v12186_v58 }
 0x619   : > { %16761 = vst [vmem:[#allocation55_spill] sm:$0xff] %v14833_v27  ;;  %v3929_v27 = vpack.c.bf16 %v3913_v9, %v3912_v5  ;;  %v3434_v5 = vld [vmem:[#allocation2 + $0x8f] sm:$0xff] }
 0x61a   : > { %v14827_v50 = vpop.f32.mrf.mxu1 }
 0x61b   : > { %5650 = vmatmul.bf16.vlgmr.msra.gmra.mxu0 %v14542_v33  ;;  %v12185_v33 = vld [vmem:[%s16649_s4 + $0x280] sm:$0xff] }
 0x61c   : > { %v3064_v32 = vpop.f32.mrf.mxu3  ;;  %4173 = vmatpush.bf16.msrb.mxu3 %v12185_v33 }
 0x61d   : > { %v14836_v51 = vadd.f32 %v3064_v32, %v14710_v36  ;;  %v14847_v32 = vld [vmem:[#allocation2 + $0x9e] sm:$0xff] }
 0x61e   : > { %v3362_v42 = vpop.f32.mrf.mxu2  ;;  %v4428_v22 = vpack.c.bf16 %v4419_v2, %v14847_v32 }
 0x61f   : > { %v14840_v48 = vadd.f32 %v3362_v42, %v3239_v15 }
 0x620   : > { %v14855_v42 = vpop.f32.mrf.mxu0 }
 0x621   : > { %3553 = vmatmul.bf16.gmra.mxu3 %v3443_v31  ;;  %16762 = vst [vmem:[#allocation56_spill] sm:$0xff] %v14855_v42  ;;  %v3435_v31 = vld [vmem:[#allocation2 + $0x97] sm:$0xf] }
 0x622   : > { %v14845_v36 = vpop.f32.mrf.mxu1 }
 0x623   : > { %4015 = vmatmul.bf16.gmra.mxu2 %v3929_v27 }
 0x624   : > { %v3067_v56 = vpop.f32.mrf.mxu3 }
 0x625   : > { %v14851_v58 = vadd.f32 %v3067_v56, %v14733_v60  ;;  %4542 = vmatmul.bf16.gmra.mxu1 %v4428_v22  ;;  %v3241_v60 = vadd.f32 %v14291_v49, %v14614_v52  ;;  %v3444_v22 = vpack.c.bf16 %v3435_v31, %v3434_v5  ;;  %v3914_v56 = vld [vmem:[#allocation2 + $0x32] sm:$0xff]  ;;  %v3242_v52 = vadd.f32 %v14302_v7, %v14627_v8  ;;  %v3917_v7 = vld [vmem:[#allocation2 + $0x4a] sm:$0xff] }
 0x626   : > { %v3365_v15 = vpop.f32.mrf.mxu2 }
 0x627   : > { %v14857_v12 = vadd.f32 %v3365_v15, %v3240_v46  ;;  %v5059_v46 = vld [vmem:[#allocation2 + $0x33] sm:$0xff] }
 0x628   : > { %v14869_v15 = vpop.f32.mrf.mxu0 }
 0x629   : > { %16764 = vst [vmem:[#allocation58_spill] sm:$0xff] %v14869_v15 }
 0x62a   : > { %v14859_v9 = vpop.f32.mrf.mxu1 }
 0x62b   : > { %16763 = vst [vmem:[#allocation57_spill] sm:$0xff] %v14859_v9  ;;  %5655 = vmatmul.bf16.gmra.mxu0 %v14568_v28  ;;  %v3930_v28 = vpack.c.bf16 %v3915_v0, %v3914_v56  ;;  %v5058_v9 = vld [vmem:[#allocation2 + $0x2b] sm:$0xff] }
 0x62c   : > { %v3069_v27 = vpop.f32.mrf.mxu3 }
 0x62d   : > { %v14863_v2 = vadd.f32 %v3069_v27, %v14752_v35  ;;  %v5076_v35 = vpack.c.bf16 %v5059_v46, %v5058_v9  ;;  %v4074_v46 = vld [vmem:[#allocation2 + $0x1c] sm:$0xff] }
 0x62e   : > { %v3367_v33 = vpop.f32.mrf.mxu2 }
 0x62f   : > { %v14867_v19 = vadd.f32 %v3367_v33, %v3241_v60 }
 0x630   : > { %v14882_v5 = vpop.f32.mrf.mxu0 }
 0x631   : > { %3558 = vmatmul.bf16.gmra.mxu3 %v3444_v22  ;;  %16765 = vst [vmem:[#allocation59_spill] sm:$0xff] %v14882_v5  ;;  %v4075_v22 = vld [vmem:[#allocation2 + $0x24] sm:$0xff] }
 0x632   : > { %v14871_v42 = vpop.f32.mrf.mxu1 }
 0x633   : > { %4020 = vmatmul.bf16.gmra.mxu2 %v3930_v28  ;;  %v4092_v28 = vpack.c.bf16 %v4075_v22, %v4074_v46 }
 0x634   : > { %v3519_v27 = vpop.f32.mrf.mxu3 }
 0x635   : > { %v14874_v49 = vadd.f32 %v3519_v27, %v14773_v3  ;;  %5158 = vmatmul.bf16.vlgmr.msra.gmra.mxu1 %v5076_v35  ;;  %v3243_v3 = vadd.f32 %v14311_v53, %v14647_v47  ;;  %v3916_v35 = vld [vmem:[#allocation2 + $0x42] sm:$0xff]  ;;  %v3244_v47 = vadd.f32 %v14319_v13, %v14672_v11 }
 0x636   : > { %v3370_v31 = vpop.f32.mrf.mxu2  ;;  %v5061_v27 = vld [vmem:[#allocation2 + $0x43] sm:$0xff] }
 0x637   : > { %v14878_v60 = vadd.f32 %v3370_v31, %v3242_v52  ;;  %v3931_v52 = vpack.c.bf16 %v3917_v7, %v3916_v35  ;;  %v4077_v7 = vld [vmem:[#allocation2 + $0x34] sm:$0xff] }
 0x63a   : > { %v14880_v33 = vpop.f32.mrf.mxu1 }
 0x63b   : > { %5660 = vmatmul.bf16.gmra.mxu0 %v14595_v18  ;;  %v5060_v18 = vld [vmem:[#allocation2 + $0x3b] sm:$0xff] }
 0x63c   : > { %v3521_v0 = vpop.f32.mrf.mxu3  ;;  %v14894_v5 = vpack.c.bf16 %v5061_v27, %v5060_v18  ;;  %v4076_v27 = vld [vmem:[#allocation2 + $0x2c] sm:$0xff] }
 0x63d   : > { %v14886_v9 = vadd.f32 %v3521_v0, %v14796_v23  ;;  %v14896_v0 = vpop.f32.mrf.mxu0  ;;  %v4093_v11 = vpack.c.bf16 %v4077_v7, %v4076_v27 }
 0x63e   : > { %v3372_v56 = vpop.f32.mrf.mxu2  ;;  %16766 = vst [vmem:[#allocation60_spill] sm:$0xff] %v14896_v0  ;;  %v5062_v0 = vld [vmem:[#allocation2 + $0x4b] sm:$0xff] }
 0x63f   : > { %v14890_v8 = vadd.f32 %v3372_v56, %v3243_v3 }
 0x641   : > { %4174 = vmatmul.bf16.vlgmr.msrb.gmra.mxu3 %v4092_v28 }
 0x642   : > { %v14892_v31 = vpop.f32.mrf.mxu1 }
 0x643   : > { %4025 = vmatmul.bf16.gmra.mxu2 %v3931_v52  ;;  %v3919_v52 = vld [vmem:[#allocation2 + $0x5a] sm:$0xff] }
 0x644   : > { %v3524_v23 = vpop.f32.mrf.mxu3 }
 0x645   : > { %v14899_v53 = vadd.f32 %v3524_v23, %v14822_v44  ;;  %5163 = vmatmul.bf16.gmra.mxu1 %v14894_v5  ;;  %v3245_v44 = vadd.f32 %v14334_v54, %v14701_v21  ;;  %v14914_v18 = vpop.f32.mrf.mxu0  ;;  %v3918_v23 = vld [vmem:[#allocation2 + $0x52] sm:$0xff]  ;;  %v3246_v21 = vadd.f32 %v14357_v55, %v14726_v62  ;;  %v3921_v55 = vld [vmem:[#allocation2 + $0x6a] sm:$0xff] }
 0x646   : > { %v3375_v22 = vpop.f32.mrf.mxu2  ;;  %16767 = vst [vmem:[#allocation61_spill] sm:$0xff] %v14914_v18 }
 0x647   : > { %v14904_v3 = vadd.f32 %v3375_v22, %v3244_v47  ;;  %v5063_v47 = vld [vmem:[#allocation2 + $0x53] sm:$0xff] }
 0x64a   : > { %v14906_v56 = vpop.f32.mrf.mxu1 }
 0x64b   : > { %5665 = vmatmul.bf16.gmra.mxu0 %v14621_v34  ;;  %v3932_v34 = vpack.c.bf16 %v3919_v52, %v3918_v23  ;;  %v4079_v52 = vld [vmem:[#allocation2 + $0x44] sm:$0xff] }
 0x64c   : > { %v3526_v46 = vpop.f32.mrf.mxu3 }
 0x64d   : > { %v14910_v28 = vadd.f32 %v3526_v46, %v14840_v48  ;;  %v14920_v48 = vpack.c.bf16 %v5063_v47, %v5062_v0  ;;  %v4078_v47 = vld [vmem:[#allocation2 + $0x3c] sm:$0xff] }
 0x64e   : > { %v3377_v35 = vpop.f32.mrf.mxu2 }
 0x64f   : > { %v14916_v13 = vadd.f32 %v3377_v35, %v3245_v44  ;;  %v14930_v35 = vpop.f32.mrf.mxu0 }
 0x650   : > { %16768 = vst [vmem:[#allocation62_spill] sm:$0xff] %v14930_v35 }
 0x651   : > { %4179 = vmatmul.bf16.gmra.mxu3 %v4093_v11 }
 0x652   : > { %v14918_v22 = vpop.f32.mrf.mxu1 }
 0x653   : > { %4030 = vmatmul.bf16.gmra.mxu2 %v3932_v34  ;;  %v4094_v34 = vpack.c.bf16 %v4079_v52, %v4078_v47  ;;  %v12215_v47 = vld [vmem:[%s16649_s4 + $0x370] sm:$0xff] }
 0x654   : > { %v3529_v46 = vpop.f32.mrf.mxu3 }
 0x655   : > { %v14923_v54 = vadd.f32 %v3529_v46, %v14857_v12  ;;  %5168 = vmatmul.bf16.gmra.mxu1 %v14920_v48  ;;  %v3247_v12 = vadd.f32 %v14379_v61, %v14749_v4  ;;  %v3920_v46 = vld [vmem:[#allocation2 + $0x62] sm:$0xff]  ;;  %v3248_v4 = vadd.f32 %v14402_v43, %v14768_v25 }
 0x656   : > { %v3380_v7 = vpop.f32.mrf.mxu2 }
 0x657   : > { %v14928_v44 = vadd.f32 %v3380_v7, %v3246_v21  ;;  %v5065_v21 = vld [vmem:[#allocation2 + $0x63] sm:$0xff]  ;;  %v3933_v7 = vpack.c.bf16 %v3921_v55, %v3920_v46  ;;  %v14944_v18 = vpop.f32.mrf.mxu0  ;;  %v3249_v46 = vadd.f32 %v14421_v41, %v14792_v24  ;;  %v12295_v24 = vld [vmem:[%s16649_s4 + $0x5f0] sm:$0xff] }
 0x658   : > { %16769 = vst [vmem:[#allocation63_spill] sm:$0xff] %v14944_v18  ;;  %v12213_v41 = vld [vmem:[%s16649_s4 + $0x360] sm:$0xff] }
 0x65a   : > { %v14932_v27 = vpop.f32.mrf.mxu1 }
 0x65b   : > { %5670 = vmatmul.bf16.gmra.mxu0 %v14666_v16  ;;  %v5064_v16 = vld [vmem:[#allocation2 + $0x5b] sm:$0xff] }
 0x65c   : > { %v3531_v0 = vpop.f32.mrf.mxu3 }
 0x65d   : > { %v14936_v11 = vadd.f32 %v3531_v0, %v14867_v19  ;;  %v14946_v19 = vpack.c.bf16 %v5065_v21, %v5064_v16  ;;  %v4080_v21 = vld [vmem:[#allocation2 + $0x4c] sm:$0xff]  ;;  %v3923_v16 = vld [vmem:[#allocation2 + $0x7a] sm:$0xff] }
 0x65e   : > { %v3382_v23 = vpop.f32.mrf.mxu2 }
 0x65f   : > { %v14940_v62 = vadd.f32 %v3382_v23, %v3247_v12  ;;  %v12216_v12 = vld [vmem:[%s16649_s4 + $0x378] sm:$0xff]  ;;  %v14965_v43 = vpop.f32.mrf.mxu0 }
 0x660   : > { %4658 = vmatpush.bf16.msra.mxu2 %v12216_v12  ;;  %16770 = vst [vmem:[#allocation64_spill] sm:$0xff] %v14965_v43  ;;  %v3922_v12 = vld [vmem:[#allocation2 + $0x72] sm:$0xff] }
 0x661   : > { %4184 = vmatmul.bf16.gmra.mxu3 %v4094_v34  ;;  %v4081_v34 = vld [vmem:[#allocation2 + $0x54] sm:$0xff]  ;;  %v5066_v43 = vld [vmem:[#allocation2 + $0x6b] sm:$0xff] }
 0x662   : > { %v14942_v35 = vpop.f32.mrf.mxu1 }
 0x663   : > { %4035 = vmatmul.bf16.gmra.mxu2 %v3933_v7 }
 0x664   : > { %v3534_v0 = vpop.f32.mrf.mxu3  ;;  %4659 = vmatpush.bf16.msra.mxu2 %v12215_v47  ;;  %v3934_v47 = vpack.c.bf16 %v3923_v16, %v3922_v12  ;;  %v12212_v16 = vld [vmem:[%s16649_s4 + $0x358] sm:$0xff] }
 0x665   : > { %v14949_v61 = vadd.f32 %v3534_v0, %v14878_v60  ;;  %5173 = vmatmul.bf16.gmra.mxu1 %v14946_v19  ;;  %v12214_v0 = vld [vmem:[%s16649_s4 + $0x368] sm:$0xff] }
 0x666   : > { %v3385_v52 = vpop.f32.mrf.mxu2 }
 0x667   : > { %v14957_v23 = vadd.f32 %v3385_v52, %v3248_v4  ;;  %v4095_v52 = vpack.c.bf16 %v4081_v34, %v4080_v21 }
 0x668   : > { %4660 = vmatpush.bf16.msra.mxu2 %v12214_v0 }
 0x66a   : > { %v14962_v55 = vpop.f32.mrf.mxu1 }
 0x66b   : > { %5675 = vmatmul.bf16.gmra.mxu0 %v14720_v38  ;;  %v12296_v38 = vld [vmem:[%s16649_s4 + $0x5f8] sm:$0xff] }
 0x66c   : > { %v3536_v60 = vpop.f32.mrf.mxu3  ;;  %6298 = vmatpush.bf16.msrb.mxu0 %v12296_v38  ;;  %4661 = vmatpush.bf16.msra.mxu2 %v12213_v41  ;;  %v15002_v38 = vpop.f32.mrf.mxu0 }
 0x66d   : > { %v14968_v25 = vadd.f32 %v3536_v60, %v14890_v8  ;;  %v5067_v8 = vld [vmem:[#allocation2 + $0x73] sm:$0xff]  ;;  %16771 = vst [vmem:[#allocation65_spill] sm:$0xff] %v15002_v38 }
 0x66e   : > { %v3387_v7 = vpop.f32.mrf.mxu2 }
 0x66f   : > { %v14978_v4 = vadd.f32 %v3387_v7, %v3249_v46  ;;  %v14988_v46 = vpack.c.bf16 %v5067_v8, %v5066_v43  ;;  %v3250_v7 = vadd.f32 %v14440_v1, %v14817_v37  ;;  %v12294_v43 = vld [vmem:[%s16649_s4 + $0x5e8] sm:$0xff]  ;;  %v12293_v1 = vld [vmem:[%s16649_s4 + $0x5e0] sm:$0xff] }
 0x670   : > { %6299 = vmatpush.bf16.msrb.mxu0 %v12295_v24  ;;  %4662 = vmatpush.bf16.msra.mxu2 %v12212_v16  ;;  %v4083_v8 = vld [vmem:[#allocation2 + $0x64] sm:$0xff]  ;;  %v3251_v24 = vadd.f32 %v14463_v10, %v14836_v51  ;;  %v12291_v51 = vld [vmem:[%s16649_s4 + $0x5d0] sm:$0xff] }
 0x671   : > { %4189 = vmatmul.bf16.gmra.mxu3 %v4095_v52  ;;  %v12209_v10 = vld [vmem:[%s16649_s4 + $0x340] sm:$0xff] }
 0x672   : > { %v14986_v60 = vpop.f32.mrf.mxu1 }
 0x673   : > { %4040 = vmatmul.bf16.gmra.mxu2 %v3934_v47 }
 0x674   : > { %v3539_v34 = vpop.f32.mrf.mxu3  ;;  %6300 = vmatpush.bf16.msrb.mxu0 %v12294_v43  ;;  %v3924_v43 = vld [vmem:[#allocation2 + $0x82] sm:$0xff] }
 0x675   : > { %v14991_v21 = vadd.f32 %v3539_v34, %v14904_v3  ;;  %5178 = vmatmul.bf16.gmra.mxu1 %v14988_v46  ;;  %v12211_v3 = vld [vmem:[%s16649_s4 + $0x350] sm:$0xff]  ;;  %v4082_v34 = vld [vmem:[#allocation2 + $0x5c] sm:$0xff] }
 0x676   : > { %v3390_v0 = vpop.f32.mrf.mxu2  ;;  %4663 = vmatpush.bf16.msra.mxu2 %v12211_v3  ;;  %v4096_v16 = vpack.c.bf16 %v4083_v8, %v4082_v34  ;;  %v5069_v3 = vld [vmem:[#allocation2 + $0x83] sm:$0xff]  ;;  %v5068_v8 = vld [vmem:[#allocation2 + $0x7b] sm:$0xff] }
 0x677   : > { %v15004_v52 = vadd.f32 %v3390_v0, %v3250_v7  ;;  %v12210_v7 = vld [vmem:[%s16649_s4 + $0x348] sm:$0xff] }
 0x678   : > { %6301 = vmatpush.bf16.msrb.mxu0 %v12293_v1  ;;  %v3935_v1 = vpack.c.bf16 %v14688_v17, %v3924_v43  ;;  %v12290_v43 = vld [vmem:[%s16649_s4 + $0x5c8] sm:$0xff] }
 0x67a   : > { %v15012_v37 = vpop.f32.mrf.mxu1  ;;  %4664 = vmatpush.bf16.msra.mxu2 %v12210_v7  ;;  %v3252_v7 = vadd.f32 %v14485_v39, %v14851_v58  ;;  %v12289_v39 = vld [vmem:[%s16649_s4 + $0x5c0] sm:$0xff] }
 0x67b   : > { %5680 = vmatmul.bf16.gmra.mxu0 %v14814_v20  ;;  %v12292_v20 = vld [vmem:[%s16649_s4 + $0x5d8] sm:$0xff] }
 0x67c   : > { %v3541_v12 = vpop.f32.mrf.mxu3  ;;  %6302 = vmatpush.bf16.msrb.mxu0 %v12292_v20 }
 0x67d   : > { %v15016_v41 = vadd.f32 %v3541_v12, %v14916_v13  ;;  %v15034_v13 = vpop.f32.mrf.mxu0 }
 0x67e   : > { %v3392_v47 = vpop.f32.mrf.mxu2  ;;  %16772 = vst [vmem:[#allocation66_spill] sm:$0xff] %v15034_v13  ;;  %4665 = vmatpush.bf16.msra.mxu2 %v12209_v10  ;;  %v12271_v10 = vld [vmem:[%s16649_s4 + $0x530] sm:$0xff] }
 0x67f   : > { %v15026_v0 = vadd.f32 %v3392_v47, %v3251_v24  ;;  %v15039_v24 = vpack.c.bf16 %v5069_v3, %v5068_v8  ;;  %v12272_v3 = vld [vmem:[%s16649_s4 + $0x538] sm:$0xff] }
 0x680   : > { %6303 = vmatpush.bf16.msrb.mxu0 %v12291_v51  ;;  %5806 = vmatpush.bf16.msrb.mxu1 %v12272_v3  ;;  %v4085_v8 = vld [vmem:[#allocation2 + $0x74] sm:$0xff] }
 0x681   : > { %4194 = vmatmul.bf16.gmra.mxu3 %v4096_v16  ;;  %v5565_v16 = vld [vmem:[#allocation2 + $0xa6] sm:$0xff] }
 0x682   : > { %v15037_v12 = vpop.f32.mrf.mxu1 }
 0x683   : > { %4045 = vmatmul.bf16.gmra.mxu2 %v3935_v1 }
 0x684   : > { %v3544_v47 = vpop.f32.mrf.mxu3  ;;  %6304 = vmatpush.bf16.msrb.mxu0 %v12290_v43  ;;  %5807 = vmatpush.bf16.msrb.mxu1 %v12271_v10  ;;  %v12269_v10 = vld [vmem:[%s16649_s4 + $0x520] sm:$0xff] }
 0x685   : > { %v15042_v34 = vadd.f32 %v3544_v47, %v14928_v44  ;;  %5183 = vmatmul.bf16.gmra.mxu1 %v15039_v24  ;;  %v5575_v44 = vpack.c.bf16 %v5565_v16, %v14847_v32  ;;  %v15064_v51 = vpop.f32.mrf.mxu0  ;;  %v3253_v32 = vadd.f32 %v14505_v14, %v14863_v2  ;;  %v3927_v16 = vld [vmem:[#allocation2 + $0x9a] sm:$0xf] }
 0x686   : > { %v3395_v20 = vpop.f32.mrf.mxu2  ;;  %16773 = vst [vmem:[#allocation67_spill] sm:$0xff] %v15064_v51  ;;  %v5071_v51 = vld [vmem:[#allocation2 + $0x93] sm:$0xff] }
 0x687   : > { %v15047_v17 = vadd.f32 %v3395_v20, %v3252_v7  ;;  %v4084_v20 = vld [vmem:[#allocation2 + $0x6c] sm:$0xff]  ;;  %v12224_v14 = vld [vmem:[%s16649_s4 + $0x3b8] sm:$0xff] }
 0x688   : > { %6305 = vmatpush.bf16.msrb.mxu0 %v12289_v39  ;;  %v4097_v3 = vpack.c.bf16 %v4085_v8, %v4084_v20  ;;  %v5070_v39 = vld [vmem:[#allocation2 + $0x8b] sm:$0xff]  ;;  %4822 = vmatpush.bf16.msra.mxu3 %v12224_v14  ;;  %v5567_v20 = vld [vmem:[#allocation2 + $0xb6] sm:$0xf] }
 0x689   : > { %v15087_v8 = vpack.c.bf16 %v5071_v51, %v5070_v39  ;;  %v12223_v51 = vld [vmem:[%s16649_s4 + $0x3b0] sm:$0xff] }
 0x68a   : > { %v15059_v58 = vpop.f32.mrf.mxu1  ;;  %v12267_v14 = vld [vmem:[%s16649_s4 + $0x510] sm:$0xff] }
 0x68b   : > { %5685 = vmatmul.bf16.gmra.mxu0 %v5575_v44  ;;  %v12270_v44 = vld [vmem:[%s16649_s4 + $0x528] sm:$0xff] }
 0x68c   : > { %v3546_v1 = vpop.f32.mrf.mxu3  ;;  %5808 = vmatpush.bf16.msrb.mxu1 %v12270_v44  ;;  %v5566_v44 = vld [vmem:[#allocation2 + $0xae] sm:$0xff]  ;;  %4823 = vmatpush.bf16.msra.mxu3 %v12223_v51 }
 0x68d   : > { %v15067_v47 = vadd.f32 %v3546_v1, %v14940_v62  ;;  %v3728_v62 = vadd.f32 %v14178_v45, %v14874_v49  ;;  %v3936_v1 = vpack.c.bf16 %v3927_v16, %v14681_v59  ;;  %v15089_v49 = vpop.f32.mrf.mxu0 }
 0x68e   : > { %v3397_v7 = vpop.f32.mrf.mxu2  ;;  %16774 = vst [vmem:[#allocation68_spill] sm:$0xff] %v15089_v49 }
 0x68f   : > { %v15071_v43 = vadd.f32 %v3397_v7, %v3253_v32  ;;  %v3892_v32 = vadd.f32 %v14521_v30, %v3728_v62  ;;  %v12222_v30 = vld [vmem:[%s16649_s4 + $0x3a8] sm:$0xff] }
 0x690   : > { %5809 = vmatpush.bf16.msrb.mxu1 %v12269_v10  ;;  %v4087_v10 = vld [vmem:[#allocation2 + $0x84] sm:$0xff]  ;;  %4824 = vmatpush.bf16.msra.mxu3 %v12222_v30 }
 0x691   : > { %4199 = vmatmul.bf16.gmra.mxu3 %v4097_v3  ;;  %v12268_v3 = vld [vmem:[%s16649_s4 + $0x518] sm:$0xff] }
 0x692   : > { %v15082_v2 = vpop.f32.mrf.mxu1 }
 0x693   : > { %4050 = vmatmul.bf16.gmra.mxu2 %v3936_v1  ;;  %v5576_v1 = vpack.c.bf16 %v5567_v20, %v5566_v44  ;;  %v12221_v44 = vld [vmem:[%s16649_s4 + $0x3a0] sm:$0xff] }
 0x694   : > { %v3549_v45 = vpop.f32.mrf.mxu3  ;;  %5810 = vmatpush.bf16.msrb.mxu1 %v12268_v3  ;;  %4825 = vmatpush.bf16.msra.mxu3 %v12221_v44 }
 0x695   : > { %v15092_v59 = vadd.f32 %v3549_v45, %v14957_v23  ;;  %5188 = vmatmul.bf16.gmra.mxu1 %v15087_v8  ;;  %v3729_v23 = vadd.f32 %v14200_v57, %v14886_v9  ;;  %v15118_v20 = vpop.f32.mrf.mxu0 }
 0x696   : > { %v4011_v7 = vpop.f32.mrf.mxu2  ;;  %16775 = vst [vmem:[#allocation69_spill] sm:$0xff] %v15118_v20 }
 0x697   : > { %v15096_v16 = vadd.f32 %v4011_v7, %v3892_v32  ;;  %v3893_v57 = vadd.f32 %v14531_v40, %v3729_v23  ;;  %v4086_v32 = vld [vmem:[#allocation2 + $0x7c] sm:$0xff]  ;;  %v4567_v7 = vld [vmem:[#allocation2 + $0x27] sm:$0xff] }
 0x698   : > { %5811 = vmatpush.bf16.msrb.mxu1 %v12267_v14  ;;  %v4098_v3 = vpack.c.bf16 %v4087_v10, %v4086_v32  ;;  %v5073_v40 = vld [vmem:[#allocation2 + $0xa3] sm:$0xff]  ;;  %v12220_v10 = vld [vmem:[%s16649_s4 + $0x398] sm:$0xff] }
 0x699   : > { %v16776_v23 = vld [vmem:[#allocation15_spill] sm:$0xff]  ;;  %4826 = vmatpush.bf16.msra.mxu3 %v12220_v10 }
 0x69a   : > { %v15109_v62 = vpop.f32.mrf.mxu1  ;;  %v3730_v30 = vadd.f32 %v16776_v23, %v14899_v53 }
 0x69b   : > { %5690 = vmatmul.bf16.gmra.mxu0 %v5576_v1  ;;  %v4566_v1 = vld [vmem:[#allocation2 + $0x1f] sm:$0xff] }
 0x69c   : > { %v3551_v39 = vpop.f32.mrf.mxu3  ;;  %v4584_v14 = vpack.c.bf16 %v4567_v7, %v4566_v1  ;;  %v3894_v7 = vadd.f32 %v14544_v29, %v3730_v30  ;;  %v16777_v1 = vld [vmem:[#allocation27_spill] sm:$0xff]  ;;  %v4089_v30 = vld [vmem:[#allocation2 + $0x94] sm:$0xff] }
 0x69d   : > { %v15115_v45 = vadd.f32 %v3551_v39, %v14978_v4  ;;  %v12266_v4 = vld [vmem:[%s16649_s4 + $0x508] sm:$0xff]  ;;  %v15152_v23 = vpop.f32.mrf.mxu0 }
 0x69e   : > { %v4013_v9 = vpop.f32.mrf.mxu2  ;;  %5812 = vmatpush.bf16.msrb.mxu1 %v12266_v4  ;;  %v12219_v4 = vld [vmem:[%s16649_s4 + $0x390] sm:$0xff]  ;;  %16778 = vst [vmem:[#allocation15_spill] sm:$0xff] %v15152_v23  ;;  %v12218_v29 = vld [vmem:[%s16649_s4 + $0x388] sm:$0xff] }
 0x69f   : > { %v15120_v51 = vadd.f32 %v4013_v9, %v3893_v57  ;;  %v5072_v57 = vld [vmem:[#allocation2 + $0x9b] sm:$0xff]  ;;  %4827 = vmatpush.bf16.msra.mxu3 %v12219_v4  ;;  %v5075_v23 = vld [vmem:[#allocation2 + $0xb3] sm:$0xf] }
 0x6a0   : > { %v12265_v9 = vld [vmem:[%s16649_s4 + $0x500] sm:$0xff]  ;;  %v15138_v32 = vpack.c.bf16 %v5073_v40, %v5072_v57  ;;  %v3731_v40 = vadd.f32 %v16777_v1, %v14910_v28  ;;  %v4088_v28 = vld [vmem:[#allocation2 + $0x8c] sm:$0xff] }
 0x6a1   : > { %4204 = vmatmul.bf16.gmra.mxu3 %v4098_v3  ;;  %v12217_v4 = vld [vmem:[%s16649_s4 + $0x380] sm:$0xff]  ;;  %v4568_v1 = vld [vmem:[#allocation2 + $0x2f] sm:$0xff] }
 0x6a2   : > { %v15130_v39 = vpop.f32.mrf.mxu1  ;;  %5813 = vmatpush.bf16.msrb.mxu1 %v12265_v9  ;;  %v3895_v57 = vadd.f32 %v14555_v26, %v3731_v40  ;;  %v4569_v9 = vld [vmem:[#allocation2 + $0x37] sm:$0xff] }
 0x6a3   : > { %4666 = vmatmul.bf16.vlgmr.msra.gmra.mxu2 %v4584_v14  ;;  %4828 = vmatpush.bf16.msra.mxu3 %v12218_v29  ;;  %v4585_v26 = vpack.c.bf16 %v4569_v9, %v4568_v1  ;;  %v4091_v1 = vld [vmem:[#allocation2 + $0xa4] sm:$0xf] }
 0x6a4   : > { %v3554_v20 = vpop.f32.mrf.mxu3 }
 0x6a5   : > { %v15141_v53 = vadd.f32 %v3554_v20, %v15004_v52  ;;  %5193 = vmatmul.bf16.gmra.mxu1 %v15138_v32  ;;  %v15173_v40 = vpop.f32.mrf.mxu0 }
 0x6a6   : > { %v4016_v3 = vpop.f32.mrf.mxu2  ;;  %16780 = vst [vmem:[#allocation27_spill] sm:$0xff] %v15173_v40 }
 0x6a7   : > { %v15145_v44 = vadd.f32 %v4016_v3, %v3894_v7  ;;  %v4099_v3 = vpack.c.bf16 %v4089_v30, %v4088_v28  ;;  %4829 = vmatpush.bf16.msra.mxu3 %v12217_v4  ;;  %v4090_v4 = vld [vmem:[#allocation2 + $0x9c] sm:$0xff] }
 0x6aa   : > { %v15154_v52 = vpop.f32.mrf.mxu1 }
 0x6ab   : > { %6306 = vmatmul.bf16.vlgmr.msrb.gmra.mxu0 %v14894_v5  ;;  %v15169_v5 = vld [vmem:[#allocation2 + $0xab] sm:$0xff] }
 0x6ac   : > { %v3556_v20 = vpop.f32.mrf.mxu3  ;;  %v5084_v30 = vpack.c.bf16 %v5075_v23, %v15169_v5 }
 0x6ad   : > { %v15161_v14 = vadd.f32 %v3556_v20, %v15026_v0  ;;  %v16779_v0 = vld [vmem:[#allocation8_spill] sm:$0xff] }
 0x6ae   : > { %v4018_v10 = vpop.f32.mrf.mxu2  ;;  %v3732_v20 = vadd.f32 %v16779_v0, %v14923_v54  ;;  %v16781_v54 = vld [vmem:[#allocation14_spill] sm:$0xff]  ;;  %v15187_v0 = vpop.f32.mrf.mxu0 }
 0x6af   : > { %v15164_v7 = vadd.f32 %v4018_v10, %v3895_v57  ;;  %v3733_v9 = vadd.f32 %v16781_v54, %v14936_v11  ;;  %16782 = vst [vmem:[#allocation8_spill] sm:$0xff] %v15187_v0  ;;  %v4570_v11 = vld [vmem:[#allocation2 + $0x3f] sm:$0xff] }
 0x6b0   : > { %v3896_v28 = vadd.f32 %v14570_v6, %v3732_v20  ;;  %v5714_v0 = vld [vmem:[#allocation2 + $0x38] sm:$0xff] }
 0x6b1   : > { %4209 = vmatmul.bf16.gmra.mxu3 %v4099_v3 }
 0x6b2   : > { %v15175_v29 = vpop.f32.mrf.mxu1 }
 0x6b3   : > { %4671 = vmatmul.bf16.gmra.mxu2 %v4585_v26  ;;  %v16783_v26 = vld [vmem:[#allocation33_spill] sm:$0xff] }
 0x6b4   : > { %v3559_v57 = vpop.f32.mrf.mxu3  ;;  %v3897_v6 = vadd.f32 %v16783_v26, %v3733_v9  ;;  %v16785_v26 = vld [vmem:[#allocation35_spill] sm:$0xff] }
 0x6b5   : > { %v15179_v10 = vadd.f32 %v3559_v57, %v15047_v17  ;;  %5198 = vmatmul.bf16.gmra.mxu1 %v5084_v30  ;;  %v4100_v57 = vpack.c.bf16 %v4091_v1, %v4090_v4 }
 0x6b6   : > { %v4021_v49 = vpop.f32.mrf.mxu2  ;;  %v15206_v1 = vpop.f32.mrf.mxu0 }
 0x6b7   : > { %v15182_v13 = vadd.f32 %v4021_v49, %v3896_v28  ;;  %v4571_v49 = vld [vmem:[#allocation2 + $0x47] sm:$0xff]  ;;  %16786 = vst [vmem:[#allocation14_spill] sm:$0xff] %v15206_v1 }
 0x6b8   : > { %v15197_v28 = vld [vmem:[#allocation2 + $0x40] sm:$0xff]  ;;  %v4586_v40 = vpack.c.bf16 %v4571_v49, %v4570_v11  ;;  %v16788_v11 = vld [vmem:[#allocation37_spill] sm:$0xff] }
 0x6ba   : > { %v15189_v23 = vpop.f32.mrf.mxu1 }
 0x6bb   : > { %6311 = vmatmul.bf16.gmra.mxu0 %v14920_v48  ;;  %v16784_v48 = vld [vmem:[#allocation17_spill] sm:$0xff] }
 0x6bc   : > { %v3561_v3 = vpop.f32.mrf.mxu3  ;;  %v3734_v54 = vadd.f32 %v16784_v48, %v14949_v61  ;;  %v16787_v61 = vld [vmem:[#allocation9_spill] sm:$0xff] }
 0x6bd   : > { %v15192_v17 = vadd.f32 %v3561_v3, %v15071_v43  ;;  %v5732_v43 = vpack.c.bf16 %v15197_v28, %v5714_v0  ;;  %v3735_v49 = vadd.f32 %v16787_v61, %v14968_v25  ;;  %v16789_v25 = vld [vmem:[#allocation16_spill] sm:$0xff] }
 0x6be   : > { %v4023_v20 = vpop.f32.mrf.mxu2  ;;  %v3736_v61 = vadd.f32 %v16789_v25, %v14991_v21  ;;  %v16793_v21 = vld [vmem:[#allocation19_spill] sm:$0xff] }
 0x6bf   : > { %v15195_v30 = vadd.f32 %v4023_v20, %v3897_v6  ;;  %v3898_v6 = vadd.f32 %v16785_v26, %v3734_v54  ;;  %v3899_v48 = vadd.f32 %v16788_v11, %v3735_v49  ;;  %v3737_v25 = vadd.f32 %v16793_v21, %v15016_v41  ;;  %v15249_v41 = vld [vmem:[#allocation2 + $0x60] sm:$0xff] }
 0x6c0   : > { %v16797_v21 = vld [vmem:[#allocation10_spill] sm:$0xff] }
 0x6c1   : > { %4214 = vmatmul.bf16.gmra.mxu3 %v4100_v57  ;;  %v4731_v57 = vld [vmem:[#allocation2 + $0x28] sm:$0xff] }
 0x6c2   : > { %v15208_v20 = vpop.f32.mrf.mxu1 }
 0x6c3   : > { %4676 = vmatmul.bf16.gmra.mxu2 %v4586_v40 }
 0x6c4   : > { %v4175_v3 = vpop.f32.mrf.mxu3 }
 0x6c5   : > { %v15203_v9 = vadd.f32 %v4175_v3, %v15096_v16  ;;  %5814 = vmatmul.bf16.vlgmr.msrb.gmra.mxu1 %v5732_v43  ;;  %v4730_v43 = vld [vmem:[#allocation2 + $0x20] sm:$0xff]  ;;  %v4573_v3 = vld [vmem:[#allocation2 + $0x57] sm:$0xff] }
 0x6c6   : > { %v4026_v4 = vpop.f32.mrf.mxu2  ;;  %v4748_v1 = vpack.c.bf16 %v4731_v57, %v4730_v43  ;;  %v16792_v57 = vld [vmem:[#allocation39_spill] sm:$0xff] }
 0x6c7   : > { %v15210_v38 = vadd.f32 %v4026_v4, %v3898_v6  ;;  %v4572_v6 = vld [vmem:[#allocation2 + $0x4f] sm:$0xff] }
 0x6c8   : > { %v15221_v4 = vld [vmem:[#allocation2 + $0x50] sm:$0xff] }
 0x6ca   : > { %v15227_v18 = vpop.f32.mrf.mxu1 }
 0x6cb   : > { %6316 = vmatmul.bf16.gmra.mxu0 %v14946_v19  ;;  %v15225_v19 = vpop.f32.mrf.mxu0  ;;  %16791 = vst [vmem:[#allocation17_spill] sm:$0xff] %v15227_v18 }
 0x6cc   : > { %v4177_v40 = vpop.f32.mrf.mxu3  ;;  %16790 = vst [vmem:[#allocation33_spill] sm:$0xff] %v15225_v19 }
 0x6cd   : > { %v15216_v16 = vadd.f32 %v4177_v40, %v15120_v51  ;;  %v4587_v51 = vpack.c.bf16 %v4573_v3, %v4572_v6  ;;  %v5716_v40 = vld [vmem:[#allocation2 + $0x48] sm:$0xff] }
 0x6ce   : > { %v4028_v54 = vpop.f32.mrf.mxu2  ;;  %v5733_v49 = vpack.c.bf16 %v15221_v4, %v5716_v40 }
 0x6cf   : > { %v15219_v26 = vadd.f32 %v4028_v54, %v3899_v48  ;;  %v3900_v54 = vadd.f32 %v16792_v57, %v3736_v61  ;;  %v4732_v61 = vld [vmem:[#allocation2 + $0x30] sm:$0xff] }
 0x6d1   : > { %4830 = vmatmul.bf16.vlgmr.msra.gmra.mxu3 %v4748_v1 }
 0x6d2   : > { %v15240_v1 = vpop.f32.mrf.mxu1 }
 0x6d3   : > { %4681 = vmatmul.bf16.gmra.mxu2 %v4587_v51  ;;  %v15238_v19 = vpop.f32.mrf.mxu0  ;;  %16795 = vst [vmem:[#allocation9_spill] sm:$0xff] %v15240_v1  ;;  %v5718_v1 = vld [vmem:[#allocation2 + $0x58] sm:$0xff] }
 0x6d4   : > { %v4180_v11 = vpop.f32.mrf.mxu3  ;;  %16794 = vst [vmem:[#allocation35_spill] sm:$0xff] %v15238_v19  ;;  %v3738_v19 = vadd.f32 %v16797_v21, %v15042_v34  ;;  %v16800_v34 = vld [vmem:[#allocation18_spill] sm:$0xff]  ;;  %v16801_v21 = vld [vmem:[#allocation45_spill] sm:$0xff] }
 0x6d5   : > { %v15231_v48 = vadd.f32 %v4180_v11, %v15145_v44  ;;  %5819 = vmatmul.bf16.gmra.mxu1 %v5733_v49  ;;  %v16796_v44 = vld [vmem:[#allocation41_spill] sm:$0xff]  ;;  %v4575_v11 = vld [vmem:[#allocation2 + $0x67] sm:$0xff] }
 0x6d6   : > { %v4031_v43 = vpop.f32.mrf.mxu2  ;;  %v3901_v51 = vadd.f32 %v16796_v44, %v3737_v25 }
 0x6d7   : > { %v15234_v15 = vadd.f32 %v4031_v43, %v3900_v54  ;;  %v4749_v54 = vpack.c.bf16 %v5714_v0, %v4732_v61  ;;  %v4574_v43 = vld [vmem:[#allocation2 + $0x5f] sm:$0xff] }
 0x6d8   : > { %v16799_v0 = vld [vmem:[#allocation43_spill] sm:$0xff] }
 0x6da   : > { %v15256_v44 = vpop.f32.mrf.mxu1 }
 0x6db   : > { %6321 = vmatmul.bf16.gmra.mxu0 %v14988_v46  ;;  %v4588_v46 = vpack.c.bf16 %v4575_v11, %v4574_v43  ;;  %v15254_v25 = vpop.f32.mrf.mxu0  ;;  %v3739_v11 = vadd.f32 %v16800_v34, %v15067_v47  ;;  %v15278_v47 = vld [vmem:[#allocation2 + $0x70] sm:$0xff]  ;;  %v15282_v34 = vld [vmem:[#allocation2 + $0x68] sm:$0xff] }
 0x6dc   : > { %v4182_v3 = vpop.f32.mrf.mxu3  ;;  %16798 = vst [vmem:[#allocation37_spill] sm:$0xff] %v15254_v25 }
 0x6dd   : > { %v15244_v6 = vadd.f32 %v4182_v3, %v15164_v7  ;;  %v5734_v7 = vpack.c.bf16 %v15249_v41, %v5718_v1 }
 0x6de   : > { %v4033_v49 = vpop.f32.mrf.mxu2 }
 0x6df   : > { %v15247_v57 = vadd.f32 %v4033_v49, %v3901_v51  ;;  %v3902_v49 = vadd.f32 %v16799_v0, %v3738_v19  ;;  %v4750_v0 = vpack.c.bf16 %v5716_v40, %v15197_v28  ;;  %v16804_v28 = vld [vmem:[#allocation47_spill] sm:$0xff] }
 0x6e1   : > { %4835 = vmatmul.bf16.gmra.mxu3 %v4749_v54 }
 0x6e3   : > { %4686 = vmatmul.bf16.gmra.mxu2 %v4588_v46  ;;  %v3903_v46 = vadd.f32 %v16801_v21, %v3739_v11  ;;  %v5735_v11 = vpack.c.bf16 %v15278_v47, %v15282_v34 }
 0x6e4   : > { %v4185_v3 = vpop.f32.mrf.mxu3 }
 0x6e5   : > { %v15259_v51 = vadd.f32 %v4185_v3, %v15182_v13  ;;  %5824 = vmatmul.bf16.gmra.mxu1 %v5734_v7  ;;  %v4577_v13 = vld [vmem:[#allocation2 + $0x77] sm:$0xff]  ;;  %v15271_v3 = vpop.f32.mrf.mxu0  ;;  %v15273_v7 = vpop.f32.mrf.mxu1 }
 0x6e6   : > { %v4036_v61 = vpop.f32.mrf.mxu2  ;;  %16802 = vst [vmem:[#allocation16_spill] sm:$0xff] %v15271_v3  ;;  %v15315_v3 = vld [vmem:[#allocation2 + $0x80] sm:$0xff] }
 0x6e7   : > { %v15262_v18 = vadd.f32 %v4036_v61, %v3902_v49  ;;  %v4576_v49 = vld [vmem:[#allocation2 + $0x6f] sm:$0xff] }
 0x6eb   : > { %6326 = vmatmul.bf16.gmra.mxu0 %v15039_v24  ;;  %v16803_v24 = vld [vmem:[#allocation21_spill] sm:$0xff] }
 0x6ec   : > { %v4187_v54 = vpop.f32.mrf.mxu3  ;;  %v3740_v61 = vadd.f32 %v16803_v24, %v15092_v59  ;;  %v12248_v59 = vld [vmem:[%s16649_s4 + $0x478] sm:$0xff] }
 0x6ed   : > { %v15268_v43 = vadd.f32 %v4187_v54, %v15195_v30  ;;  %v4589_v30 = vpack.c.bf16 %v4577_v13, %v4576_v49  ;;  %v16805_v13 = vld [vmem:[#allocation11_spill] sm:$0xff]  ;;  %v15297_v49 = vpop.f32.mrf.mxu0  ;;  %v15299_v24 = vpop.f32.mrf.mxu1  ;;  %5314 = vmatpush.bf16.msrb.mxu2 %v12248_v59 }
 0x6ee   : > { %v4038_v25 = vpop.f32.mrf.mxu2  ;;  %v3904_v40 = vadd.f32 %v16804_v28, %v3740_v61  ;;  %v12246_v59 = vld [vmem:[%s16649_s4 + $0x468] sm:$0xff] }
 0x6ef   : > { %v15275_v19 = vadd.f32 %v4038_v25, %v3903_v46 }
 0x6f1   : > { %4840 = vmatmul.bf16.gmra.mxu3 %v4750_v0  ;;  %v3741_v0 = vadd.f32 %v16805_v13, %v15115_v45  ;;  %v4579_v45 = vld [vmem:[#allocation2 + $0x87] sm:$0xff]  ;;  %v4578_v13 = vld [vmem:[#allocation2 + $0x7f] sm:$0xff] }
 0x6f3   : > { %4691 = vmatmul.bf16.gmra.mxu2 %v4589_v30 }
 0x6f4   : > { %v4190_v54 = vpop.f32.mrf.mxu3 }
 0x6f5   : > { %v15287_v25 = vadd.f32 %v4190_v54, %v15210_v38  ;;  %5829 = vmatmul.bf16.gmra.mxu1 %v5735_v11  ;;  %v12247_v38 = vld [vmem:[%s16649_s4 + $0x470] sm:$0xff] }
 0x6f6   : > { %v4041_v21 = vpop.f32.mrf.mxu2  ;;  %v16806_v11 = vld [vmem:[#allocation49_spill] sm:$0xff]  ;;  %5315 = vmatpush.bf16.msrb.mxu2 %v12247_v38 }
 0x6f7   : > { %v15290_v46 = vadd.f32 %v4041_v21, %v3904_v40  ;;  %v3905_v54 = vadd.f32 %v16806_v11, %v3741_v0  ;;  %v4751_v21 = vpack.c.bf16 %v5718_v1, %v15221_v4  ;;  %v12245_v0 = vld [vmem:[%s16649_s4 + $0x460] sm:$0xff]  ;;  %v15322_v38 = vld [vmem:[#allocation2 + $0x78] sm:$0xff]  ;;  %v15324_v4 = vpop.f32.mrf.mxu0  ;;  %v15326_v1 = vpop.f32.mrf.mxu1 }
 0x6f8   : > { %16808 = vst [vmem:[#allocation39_spill] sm:$0xff] %v15324_v4  ;;  %v5736_v11 = vpack.c.bf16 %v15315_v3, %v15322_v38  ;;  %v4580_v4 = vld [vmem:[#allocation2 + $0x8f] sm:$0xff] }
 0x6fa   : > { %5316 = vmatpush.bf16.msrb.mxu2 %v12246_v59 }
 0x6fb   : > { %6331 = vmatmul.bf16.gmra.mxu0 %v15087_v8  ;;  %v16807_v8 = vld [vmem:[#allocation20_spill] sm:$0xff] }
 0x6fc   : > { %v4192_v61 = vpop.f32.mrf.mxu3 }
 0x6fd   : > { %v15306_v30 = vadd.f32 %v4192_v61, %v15219_v26  ;;  %v3742_v26 = vadd.f32 %v16807_v8, %v15141_v53  ;;  %v4590_v61 = vpack.c.bf16 %v4579_v45, %v4578_v13  ;;  %v12244_v13 = vld [vmem:[%s16649_s4 + $0x458] sm:$0xff]  ;;  %v16810_v8 = vld [vmem:[#allocation23_spill] sm:$0xff] }
 0x6fe   : > { %v4043_v28 = vpop.f32.mrf.mxu2  ;;  %5317 = vmatpush.bf16.msrb.mxu2 %v12245_v0 }
 0x6ff   : > { %v15309_v40 = vadd.f32 %v4043_v28, %v3905_v54  ;;  %v16809_v28 = vld [vmem:[#allocation51_spill] sm:$0xff]  ;;  %v15347_v0 = vpop.f32.mrf.mxu1 }
 0x700   : > { %v3906_v45 = vadd.f32 %v16809_v28, %v3742_v26  ;;  %v15345_v26 = vpop.f32.mrf.mxu0  ;;  %v16812_v28 = vld [vmem:[#allocation53_spill] sm:$0xff] }
 0x701   : > { %4845 = vmatmul.bf16.gmra.mxu3 %v4751_v21  ;;  %16811 = vst [vmem:[#allocation19_spill] sm:$0xff] %v15345_v26  ;;  %v15360_v26 = vld [vmem:[#allocation2 + $0x90] sm:$0xff] }
 0x702   : > { %5318 = vmatpush.bf16.msrb.mxu2 %v12244_v13 }
 0x703   : > { %4696 = vmatmul.bf16.gmra.mxu2 %v4590_v61  ;;  %v3743_v61 = vadd.f32 %v16810_v8, %v15161_v14  ;;  %v4581_v14 = vld [vmem:[#allocation2 + $0x97] sm:$0xff]  ;;  %v4752_v8 = vpack.c.bf16 %v15282_v34, %v15249_v41 }
 0x704   : > { %v4195_v54 = vpop.f32.mrf.mxu3 }
 0x705   : > { %v15331_v53 = vadd.f32 %v4195_v54, %v15234_v15  ;;  %5834 = vmatmul.bf16.gmra.mxu1 %v5736_v11  ;;  %v12243_v15 = vld [vmem:[%s16649_s4 + $0x450] sm:$0xff] }
 0x706   : > { %v4046_v21 = vpop.f32.mrf.mxu2  ;;  %5319 = vmatpush.bf16.msrb.mxu2 %v12243_v15  ;;  %v12241_v15 = vld [vmem:[%s16649_s4 + $0x440] sm:$0xff] }
 0x707   : > { %v15334_v59 = vadd.f32 %v4046_v21, %v3906_v45  ;;  %v3907_v45 = vadd.f32 %v16812_v28, %v3743_v61  ;;  %v4591_v61 = vpack.c.bf16 %v4581_v14, %v4580_v4  ;;  %v15367_v28 = vld [vmem:[#allocation2 + $0x88] sm:$0xff] }
 0x708   : > { %v5737_v41 = vpack.c.bf16 %v15360_v26, %v15367_v28  ;;  %v15375_v14 = vpop.f32.mrf.mxu0 }
 0x709   : > { %16814 = vst [vmem:[#allocation41_spill] sm:$0xff] %v15375_v14 }
 0x70b   : > { %6336 = vmatmul.bf16.gmra.mxu0 %v15138_v32  ;;  %v12242_v32 = vld [vmem:[%s16649_s4 + $0x448] sm:$0xff] }
 0x70c   : > { %v4197_v11 = vpop.f32.mrf.mxu3  ;;  %5320 = vmatpush.bf16.msrb.mxu2 %v12242_v32 }
 0x70d   : > { %v15350_v54 = vadd.f32 %v4197_v11, %v15247_v57  ;;  %v16813_v57 = vld [vmem:[#allocation12_spill] sm:$0xff] }
 0x70e   : > { %v4048_v21 = vpop.f32.mrf.mxu2  ;;  %v3744_v11 = vadd.f32 %v16813_v57, %v15179_v10  ;;  %v12304_v57 = vld [vmem:[%s16649_s4 + $0x638] sm:$0xff] }
 0x70f   : > { %v15353_v13 = vadd.f32 %v4048_v21, %v3907_v45  ;;  %v6221_v21 = vld [vmem:[#allocation2 + $0xb3] sm:$0xff]  ;;  %6462 = vmatpush.bf16.msra.mxu1 %v12304_v57  ;;  %v15401_v57 = vld [vmem:[#allocation2 + $0xa0] sm:$0xff] }
 0x710   : > { %v3908_v10 = vadd.f32 %v14804_v63, %v3744_v11  ;;  %5321 = vmatpush.bf16.msrb.mxu2 %v12241_v15  ;;  %v12303_v63 = vld [vmem:[%s16649_s4 + $0x630] sm:$0xff] }
 0x711   : > { %4850 = vmatmul.bf16.gmra.mxu3 %v4752_v8  ;;  %v15377_v8 = vpop.f32.mrf.mxu1 }
 0x713   : > { %4701 = vmatmul.bf16.gmra.mxu2 %v4591_v61  ;;  %v16815_v61 = vld [vmem:[#allocation22_spill] sm:$0xff]  ;;  %6463 = vmatpush.bf16.msra.mxu1 %v12303_v63 }
 0x714   : > { %v4200_v34 = vpop.f32.mrf.mxu3  ;;  %v12301_v63 = vld [vmem:[%s16649_s4 + $0x620] sm:$0xff] }
 0x715   : > { %v15372_v45 = vadd.f32 %v4200_v34, %v15262_v18  ;;  %5839 = vmatmul.bf16.gmra.mxu1 %v5737_v41  ;;  %v3745_v18 = vadd.f32 %v16815_v61, %v15192_v17  ;;  %v6231_v41 = vpack.c.bf16 %v6221_v21, %v15169_v5  ;;  %v4753_v5 = vpack.c.bf16 %v15322_v38, %v15278_v47  ;;  %v12302_v17 = vld [vmem:[%s16649_s4 + $0x628] sm:$0xff]  ;;  %v4582_v21 = vld [vmem:[#allocation2 + $0x9f] sm:$0xff] }
 0x716   : > { %v4051_v4 = vpop.f32.mrf.mxu2  ;;  %v12256_v47 = vld [vmem:[%s16649_s4 + $0x4b8] sm:$0xff] }
 0x717   : > { %v15379_v32 = vadd.f32 %v4051_v4, %v3908_v10  ;;  %v3909_v34 = vadd.f32 %v14827_v50, %v3745_v18  ;;  %v4583_v4 = vld [vmem:[#allocation2 + $0xa7] sm:$0xf]  ;;  %6464 = vmatpush.bf16.msra.mxu1 %v12302_v17  ;;  %v15412_v38 = vld [vmem:[#allocation2 + $0x98] sm:$0xff]  ;;  %5478 = vmatpush.bf16.msrb.mxu3 %v12256_v47  ;;  %v6223_v17 = vld [vmem:[#allocation2 + $0xc3] sm:$0xf] }
 0x718   : > { %v4592_v18 = vpack.c.bf16 %v4583_v4, %v4582_v21 }
 0x719   : > { %v15407_v50 = vpop.f32.mrf.mxu1 }
 0x71b   : > { %6341 = vmatmul.bf16.gmra.mxu0 %v6231_v41  ;;  %v15405_v41 = vpop.f32.mrf.mxu0  ;;  %6465 = vmatpush.bf16.msra.mxu1 %v12301_v63 }
 0x71c   : > { %v4202_v11 = vpop.f32.mrf.mxu3  ;;  %16817 = vst [vmem:[#allocation10_spill] sm:$0xff] %v15405_v41 }
 0x71d   : > { %v15391_v15 = vadd.f32 %v4202_v11, %v15275_v19  ;;  %v16816_v19 = vld [vmem:[#allocation25_spill] sm:$0xff] }
 0x71e   : > { %v4053_v10 = vpop.f32.mrf.mxu2  ;;  %v4384_v61 = vadd.f32 %v16816_v19, %v15203_v9  ;;  %v5738_v9 = vpack.c.bf16 %v15401_v57, %v15412_v38  ;;  %v12255_v19 = vld [vmem:[%s16649_s4 + $0x4b0] sm:$0xff] }
 0x71f   : > { %v15394_v14 = vadd.f32 %v4053_v10, %v3909_v34  ;;  %5479 = vmatpush.bf16.msrb.mxu3 %v12255_v19  ;;  %v5223_v19 = vld [vmem:[#allocation2 + $0x34] sm:$0xff] }
 0x720   : > { %v4548_v10 = vadd.f32 %v14845_v36, %v4384_v61  ;;  %v12254_v36 = vld [vmem:[%s16649_s4 + $0x4a8] sm:$0xff]  ;;  %v12299_v61 = vld [vmem:[%s16649_s4 + $0x610] sm:$0xff] }
 0x721   : > { %4855 = vmatmul.bf16.gmra.mxu3 %v4753_v5  ;;  %v6222_v5 = vld [vmem:[#allocation2 + $0xbb] sm:$0xff] }
 0x723   : > { %4706 = vmatmul.bf16.gmra.mxu2 %v4592_v18  ;;  %v12300_v18 = vld [vmem:[%s16649_s4 + $0x618] sm:$0xff]  ;;  %v15439_v63 = vpop.f32.mrf.mxu0  ;;  %5480 = vmatpush.bf16.msrb.mxu3 %v12254_v36 }
 0x724   : > { %v4205_v11 = vpop.f32.mrf.mxu3  ;;  %6466 = vmatpush.bf16.msra.mxu1 %v12300_v18  ;;  %16819 = vst [vmem:[#allocation43_spill] sm:$0xff] %v15439_v63  ;;  %v12253_v63 = vld [vmem:[%s16649_s4 + $0x4a0] sm:$0xff] }
 0x725   : > { %v15420_v34 = vadd.f32 %v4205_v11, %v15290_v46  ;;  %5844 = vmatmul.bf16.gmra.mxu1 %v5738_v9  ;;  %v16818_v46 = vld [vmem:[#allocation13_spill] sm:$0xff]  ;;  %v6232_v9 = vpack.c.bf16 %v6223_v17, %v6222_v5  ;;  %v15441_v11 = vpop.f32.mrf.mxu1 }
 0x726   : > { %v4667_v4 = vpop.f32.mrf.mxu2  ;;  %v4385_v47 = vadd.f32 %v16818_v46, %v15216_v16  ;;  %v16820_v16 = vld [vmem:[#allocation57_spill] sm:$0xff]  ;;  %v4754_v46 = vpack.c.bf16 %v15367_v28, %v15315_v3  ;;  %v12297_v28 = vld [vmem:[%s16649_s4 + $0x600] sm:$0xff] }
 0x727   : > { %v15423_v21 = vadd.f32 %v4667_v4, %v4548_v10  ;;  %5481 = vmatpush.bf16.msrb.mxu3 %v12253_v63  ;;  %v12252_v3 = vld [vmem:[%s16649_s4 + $0x498] sm:$0xff] }
 0x728   : > { %v4549_v5 = vadd.f32 %v16820_v16, %v4385_v47  ;;  %6467 = vmatpush.bf16.msra.mxu1 %v12299_v61  ;;  %v16821_v47 = vld [vmem:[#allocation24_spill] sm:$0xff] }
 0x729   : > { %v4386_v36 = vadd.f32 %v16821_v47, %v15231_v48  ;;  %v5728_v16 = vld [vmem:[#allocation2 + $0xa8] sm:$0xff] }
 0x72b   : > { %6346 = vmatmul.bf16.gmra.mxu0 %v6232_v9  ;;  %v5222_v9 = vld [vmem:[#allocation2 + $0x2c] sm:$0xff]  ;;  %v4550_v63 = vadd.f32 %v14871_v42, %v4386_v36  ;;  %5482 = vmatpush.bf16.msrb.mxu3 %v12252_v3 }
 0x72c   : > { %v4207_v10 = vpop.f32.mrf.mxu3  ;;  %v5240_v61 = vpack.c.bf16 %v5223_v19, %v5222_v9  ;;  %v16822_v9 = vld [vmem:[#allocation26_spill] sm:$0xff] }
 0x72d   : > { %v15444_v4 = vadd.f32 %v4207_v10, %v15309_v40  ;;  %v12298_v40 = vld [vmem:[%s16649_s4 + $0x608] sm:$0xff]  ;;  %v5729_v10 = vld [vmem:[#allocation2 + $0xb0] sm:$0xff]  ;;  %v15465_v41 = vpop.f32.mrf.mxu1 }
 0x72e   : > { %v4669_v17 = vpop.f32.mrf.mxu2  ;;  %6468 = vmatpush.bf16.msra.mxu1 %v12298_v40  ;;  %v12251_v40 = vld [vmem:[%s16649_s4 + $0x490] sm:$0xff] }
 0x72f   : > { %v15447_v18 = vadd.f32 %v4669_v17, %v4549_v5  ;;  %v5739_v5 = vpack.c.bf16 %v5729_v10, %v5728_v16  ;;  %v4387_v10 = vadd.f32 %v16822_v9, %v15244_v6  ;;  %5483 = vmatpush.bf16.msrb.mxu3 %v12251_v40  ;;  %v5225_v16 = vld [vmem:[#allocation2 + $0x44] sm:$0xff]  ;;  %v4755_v6 = vpack.c.bf16 %v15412_v38, %v15360_v26  ;;  %v5730_v40 = vld [vmem:[#allocation2 + $0xb8] sm:$0xff] }
 0x731   : > { %4860 = vmatmul.bf16.gmra.mxu3 %v4754_v46  ;;  %v4551_v36 = vadd.f32 %v14880_v33, %v4387_v10 }
 0x732   : > { %6469 = vmatpush.bf16.msra.mxu1 %v12297_v28 }
 0x733   : > { %5322 = vmatmul.bf16.vlgmr.msrb.gmra.mxu2 %v5240_v61 }
 0x734   : > { %v4210_v17 = vpop.f32.mrf.mxu3 }
 0x735   : > { %v15468_v48 = vadd.f32 %v4210_v17, %v15334_v59  ;;  %5849 = vmatmul.bf16.gmra.mxu1 %v5739_v5  ;;  %v12250_v59 = vld [vmem:[%s16649_s4 + $0x488] sm:$0xff]  ;;  %v15485_v3 = vpop.f32.mrf.mxu1  ;;  %v12249_v5 = vld [vmem:[%s16649_s4 + $0x480] sm:$0xff] }
 0x736   : > { %v4672_v19 = vpop.f32.mrf.mxu2  ;;  %5484 = vmatpush.bf16.msrb.mxu3 %v12250_v59  ;;  %v5224_v17 = vld [vmem:[#allocation2 + $0x3c] sm:$0xff] }
 0x737   : > { %v15471_v46 = vadd.f32 %v4672_v19, %v4550_v63  ;;  %v5731_v63 = vld [vmem:[#allocation2 + $0xc0] sm:$0xf]  ;;  %v5241_v33 = vpack.c.bf16 %v5225_v16, %v5224_v17 }
 0x738   : > { %v5740_v9 = vpack.c.bf16 %v5731_v63, %v5730_v40  ;;  %v5227_v63 = vld [vmem:[#allocation2 + $0x54] sm:$0xff] }
 0x739   : > { %v16825_v40 = vld [vmem:[#allocation30_spill] sm:$0xff] }
 0x73a   : > { %5485 = vmatpush.bf16.msrb.mxu3 %v12249_v5 }
 0x73c   : > { %v4212_v47 = vpop.f32.mrf.mxu3 }
 0x73d   : > { %v15482_v42 = vadd.f32 %v4212_v47, %v15353_v13  ;;  %v16823_v13 = vld [vmem:[#allocation28_spill] sm:$0xff] }
 0x73e   : > { %v4674_v61 = vpop.f32.mrf.mxu2  ;;  %v4388_v19 = vadd.f32 %v16823_v13, %v15259_v51  ;;  %v15504_v51 = vpop.f32.mrf.mxu1 }
 0x73f   : > { %v15487_v28 = vadd.f32 %v4674_v61, %v4551_v36  ;;  %v16824_v36 = vld [vmem:[#allocation29_spill] sm:$0xff] }
 0x740   : > { %v4552_v26 = vadd.f32 %v14892_v31, %v4388_v19  ;;  %v4389_v61 = vadd.f32 %v16824_v36, %v15268_v43  ;;  %v5226_v19 = vld [vmem:[#allocation2 + $0x4c] sm:$0xff] }
 0x741   : > { %4865 = vmatmul.bf16.gmra.mxu3 %v4755_v6  ;;  %v4747_v6 = vld [vmem:[#allocation2 + $0xa8] sm:$0xf]  ;;  %v5242_v43 = vpack.c.bf16 %v5227_v63, %v5226_v19  ;;  %v5386_v63 = vld [vmem:[#allocation2 + $0x2d] sm:$0xff]  ;;  %v5228_v19 = vld [vmem:[#allocation2 + $0x5c] sm:$0xff] }
 0x742   : > { %v4553_v17 = vadd.f32 %v14906_v56, %v4389_v61  ;;  %v4756_v31 = vpack.c.bf16 %v4747_v6, %v15401_v57  ;;  %v16826_v57 = vld [vmem:[#allocation31_spill] sm:$0xff] }
 0x743   : > { %5327 = vmatmul.bf16.gmra.mxu2 %v5241_v33  ;;  %v4391_v61 = vadd.f32 %v16826_v57, %v15306_v30 }
 0x744   : > { %v4215_v10 = vpop.f32.mrf.mxu3 }
 0x745   : > { %v15497_v59 = vadd.f32 %v4215_v10, %v15379_v32  ;;  %5854 = vmatmul.bf16.gmra.mxu1 %v5740_v9  ;;  %v4390_v9 = vadd.f32 %v16825_v40, %v15287_v25  ;;  %v5387_v25 = vld [vmem:[#allocation2 + $0x35] sm:$0xff]  ;;  %v16828_v40 = vld [vmem:[#allocation32_spill] sm:$0xff] }
 0x746   : > { %v4677_v38 = vpop.f32.mrf.mxu2  ;;  %v15515_v10 = vpop.f32.mrf.mxu1 }
 0x747   : > { %v15500_v47 = vadd.f32 %v4677_v38, %v4552_v26  ;;  %v4554_v56 = vadd.f32 %v14918_v22, %v4390_v9  ;;  %v5404_v22 = vpack.c.bf16 %v5387_v25, %v5386_v63  ;;  %v4392_v9 = vadd.f32 %v16828_v40, %v15331_v53  ;;  %v5389_v53 = vld [vmem:[#allocation2 + $0x45] sm:$0xff]  ;;  %v5388_v63 = vld [vmem:[#allocation2 + $0x3d] sm:$0xff] }
 0x74c   : > { %v4217_v16 = vpop.f32.mrf.mxu3 }
 0x74d   : > { %v15507_v5 = vadd.f32 %v4217_v16, %v15394_v14 }
 0x74e   : > { %v4679_v32 = vpop.f32.mrf.mxu2  ;;  %v15525_v6 = vpop.f32.mrf.mxu1 }
 0x74f   : > { %v15510_v13 = vadd.f32 %v4679_v32, %v4553_v17  ;;  %16827 = vst [vmem:[#allocation18_spill] sm:$0xff] %v15525_v6  ;;  %v4555_v32 = vadd.f32 %v14932_v27, %v4391_v61  ;;  %v4556_v27 = vadd.f32 %v14942_v35, %v4392_v9  ;;  %v16829_v61 = vld [vmem:[#allocation34_spill] sm:$0xff]  ;;  %v5405_v35 = vpack.c.bf16 %v5389_v53, %v5388_v63  ;;  %v5390_v63 = vld [vmem:[#allocation2 + $0x4d] sm:$0xff]  ;;  %v6059_v6 = vld [vmem:[#allocation2 + $0xc2] sm:$0xf] }
 0x750   : > { %v5391_v53 = vld [vmem:[#allocation2 + $0x55] sm:$0xff] }
 0x751   : > { %4870 = vmatmul.bf16.gmra.mxu3 %v4756_v31 }
 0x753   : > { %5332 = vmatmul.bf16.gmra.mxu2 %v5242_v43 }
 0x754   : > { %v4831_v26 = vpop.f32.mrf.mxu3 }
 0x755   : > { %v15518_v14 = vadd.f32 %v4831_v26, %v15423_v21  ;;  %6470 = vmatmul.bf16.vlgmr.msra.gmra.mxu1 %v5241_v33  ;;  %v5229_v33 = vld [vmem:[#allocation2 + $0x64] sm:$0xff] }
 0x756   : > { %v4682_v38 = vpop.f32.mrf.mxu2  ;;  %v5243_v30 = vpack.c.bf16 %v5229_v33, %v5228_v19  ;;  %v16830_v19 = vld [vmem:[#allocation36_spill] sm:$0xff] }
 0x757   : > { %v15521_v36 = vadd.f32 %v4682_v38, %v4554_v56  ;;  %v15539_v38 = vpop.f32.mrf.mxu1  ;;  %v4394_v40 = vadd.f32 %v16830_v19, %v15372_v45 }
 0x75c   : > { %v4833_v16 = vpop.f32.mrf.mxu3 }
 0x75d   : > { %v15528_v17 = vadd.f32 %v4833_v16, %v15447_v18  ;;  %v4393_v16 = vadd.f32 %v16829_v61, %v15350_v54  ;;  %v16831_v61 = vld [vmem:[#allocation38_spill] sm:$0xff] }
 0x75e   : > { %v4684_v21 = vpop.f32.mrf.mxu2 }
 0x75f   : > { %v15531_v31 = vadd.f32 %v4684_v21, %v4555_v32  ;;  %v4557_v21 = vadd.f32 %v14962_v55, %v4393_v16  ;;  %v15553_v9 = vpop.f32.mrf.mxu1  ;;  %v4558_v55 = vadd.f32 %v14986_v60, %v4394_v40  ;;  %v4395_v16 = vadd.f32 %v16831_v61, %v15391_v15  ;;  %v12280_v61 = vld [vmem:[%s16649_s4 + $0x578] sm:$0xff] }
 0x760   : > { %v5406_v60 = vpack.c.bf16 %v5391_v53, %v5390_v63  ;;  %5970 = vmatpush.bf16.msra.mxu2 %v12280_v61  ;;  %v5393_v53 = vld [vmem:[#allocation2 + $0x65] sm:$0xff]  ;;  %v5235_v63 = vld [vmem:[#allocation2 + $0x94] sm:$0xff] }
 0x761   : > { %5486 = vmatmul.bf16.vlgmr.msrb.gmra.mxu3 %v5404_v22  ;;  %v5230_v22 = vld [vmem:[#allocation2 + $0x6c] sm:$0xff] }
 0x763   : > { %5337 = vmatmul.bf16.gmra.mxu2 %v5243_v30 }
 0x764   : > { %v4836_v26 = vpop.f32.mrf.mxu3 }
 0x765   : > { %v15536_v56 = vadd.f32 %v4836_v26, %v15471_v46  ;;  %6475 = vmatmul.bf16.gmra.mxu1 %v5242_v43  ;;  %v5231_v43 = vld [vmem:[#allocation2 + $0x74] sm:$0xff] }
 0x766   : > { %v4687_v18 = vpop.f32.mrf.mxu2  ;;  %v5244_v54 = vpack.c.bf16 %v5231_v43, %v5230_v22  ;;  %v16832_v22 = vld [vmem:[#allocation40_spill] sm:$0xff] }
 0x767   : > { %v15541_v57 = vadd.f32 %v4687_v18, %v4556_v27  ;;  %v4396_v19 = vadd.f32 %v16832_v22, %v15420_v34  ;;  %v16833_v34 = vld [vmem:[#allocation42_spill] sm:$0xff]  ;;  %v5234_v22 = vld [vmem:[#allocation2 + $0x8c] sm:$0xff] }
 0x76c   : > { %v4838_v25 = vpop.f32.mrf.mxu3 }
 0x76d   : > { %v15546_v32 = vadd.f32 %v4838_v25, %v15487_v28  ;;  %v15563_v25 = vpop.f32.mrf.mxu1 }
 0x76e   : > { %v4689_v46 = vpop.f32.mrf.mxu2 }
 0x76f   : > { %v15549_v33 = vadd.f32 %v4689_v46, %v4557_v21  ;;  %v4559_v46 = vadd.f32 %v15012_v37, %v4395_v16  ;;  %v4560_v37 = vadd.f32 %v15037_v12, %v4396_v19  ;;  %v4397_v16 = vadd.f32 %v16833_v34, %v15444_v4  ;;  %v16834_v19 = vld [vmem:[#allocation44_spill] sm:$0xff] }
 0x771   : > { %5491 = vmatmul.bf16.gmra.mxu3 %v5405_v35  ;;  %v5232_v35 = vld [vmem:[#allocation2 + $0x7c] sm:$0xff]  ;;  %v4561_v12 = vadd.f32 %v15059_v58, %v4397_v16 }
 0x772   : > { %v12277_v58 = vld [vmem:[%s16649_s4 + $0x560] sm:$0xff] }
 0x773   : > { %5342 = vmatmul.bf16.gmra.mxu2 %v5244_v54 }
 0x774   : > { %v4841_v26 = vpop.f32.mrf.mxu3 }
 0x775   : > { %v15556_v28 = vadd.f32 %v4841_v26, %v15500_v47  ;;  %6480 = vmatmul.bf16.gmra.mxu1 %v5243_v30  ;;  %v5233_v30 = vld [vmem:[#allocation2 + $0x84] sm:$0xff]  ;;  %v15573_v26 = vpop.f32.mrf.mxu1 }
 0x776   : > { %v4692_v27 = vpop.f32.mrf.mxu2  ;;  %v5245_v15 = vpack.c.bf16 %v5233_v30, %v5232_v35  ;;  %v12278_v35 = vld [vmem:[%s16649_s4 + $0x568] sm:$0xff] }
 0x777   : > { %v15559_v18 = vadd.f32 %v4692_v27, %v4558_v55 }
 0x77c   : > { %v4843_v45 = vpop.f32.mrf.mxu3 }
 0x77d   : > { %v15566_v21 = vadd.f32 %v4843_v45, %v15510_v13  ;;  %v12279_v45 = vld [vmem:[%s16649_s4 + $0x570] sm:$0xff]  ;;  %v15593_v30 = vpop.f32.mrf.mxu1 }
 0x77e   : > { %v4694_v47 = vpop.f32.mrf.mxu2  ;;  %5971 = vmatpush.bf16.msra.mxu2 %v12279_v45  ;;  %v16835_v45 = vld [vmem:[#allocation46_spill] sm:$0xff] }
 0x77f   : > { %v15569_v43 = vadd.f32 %v4694_v47, %v4559_v46  ;;  %v5392_v47 = vld [vmem:[#allocation2 + $0x5d] sm:$0xff] }
 0x780   : > { %v5407_v4 = vpack.c.bf16 %v5393_v53, %v5392_v47 }
 0x781   : > { %5496 = vmatmul.bf16.gmra.mxu3 %v5406_v60 }
 0x782   : > { %5972 = vmatpush.bf16.msra.mxu2 %v12278_v35 }
 0x783   : > { %5347 = vmatmul.bf16.gmra.mxu2 %v5245_v15 }
 0x784   : > { %v4846_v40 = vpop.f32.mrf.mxu3 }
 0x785   : > { %v15576_v13 = vadd.f32 %v4846_v40, %v15521_v36  ;;  %6485 = vmatmul.bf16.gmra.mxu1 %v5244_v54  ;;  %v5246_v40 = vpack.c.bf16 %v5235_v63, %v5234_v22  ;;  %v15616_v53 = vpop.f32.mrf.mxu1  ;;  %v5394_v63 = vld [vmem:[#allocation2 + $0x6d] sm:$0xff] }
 0x786   : > { %v4697_v55 = vpop.f32.mrf.mxu2  ;;  %5973 = vmatpush.bf16.msra.mxu2 %v12277_v58  ;;  %v12274_v22 = vld [vmem:[%s16649_s4 + $0x548] sm:$0xff] }
 0x787   : > { %v15579_v27 = vadd.f32 %v4697_v55, %v4560_v37 }
 0x78c   : > { %v4848_v36 = vpop.f32.mrf.mxu3 }
 0x78d   : > { %v15590_v54 = vadd.f32 %v4848_v36, %v15531_v31  ;;  %v4398_v31 = vadd.f32 %v16834_v19, %v15468_v48  ;;  %v12276_v48 = vld [vmem:[%s16649_s4 + $0x558] sm:$0xff]  ;;  %v4399_v36 = vadd.f32 %v16835_v45, %v15482_v42 }
 0x78e   : > { %v4699_v46 = vpop.f32.mrf.mxu2  ;;  %5974 = vmatpush.bf16.msra.mxu2 %v12276_v48  ;;  %v5236_v19 = vld [vmem:[#allocation2 + $0x9c] sm:$0xff] }
 0x78f   : > { %v15595_v60 = vadd.f32 %v4699_v46, %v4561_v12  ;;  %v4562_v61 = vadd.f32 %v15082_v2, %v4398_v31  ;;  %v5395_v2 = vld [vmem:[#allocation2 + $0x75] sm:$0xff]  ;;  %v4563_v46 = vadd.f32 %v15109_v62, %v4399_v36  ;;  %v16836_v31 = vld [vmem:[#allocation48_spill] sm:$0xff]  ;;  %v12273_v62 = vld [vmem:[%s16649_s4 + $0x540] sm:$0xff] }
 0x790   : > { %v5408_v42 = vpack.c.bf16 %v5395_v2, %v5394_v63  ;;  %v4400_v58 = vadd.f32 %v16836_v31, %v15497_v59  ;;  %v16837_v36 = vld [vmem:[#allocation50_spill] sm:$0xff]  ;;  %v5397_v2 = vld [vmem:[#allocation2 + $0x85] sm:$0xff] }
 0x791   : > { %5501 = vmatmul.bf16.gmra.mxu3 %v5407_v4  ;;  %v5237_v4 = vld [vmem:[#allocation2 + $0xa4] sm:$0xff] }
 0x792   : > { %v4564_v48 = vadd.f32 %v15130_v39, %v4400_v58  ;;  %v5239_v39 = vld [vmem:[#allocation2 + $0xb4] sm:$0xf]  ;;  %v12288_v58 = vld [vmem:[%s16649_s4 + $0x5b8] sm:$0xff] }
 0x793   : > { %5352 = vmatmul.bf16.gmra.mxu2 %v5246_v40  ;;  %6134 = vmatpush.bf16.msra.mxu3 %v12288_v58 }
 0x794   : > { %v4851_v37 = vpop.f32.mrf.mxu3 }
 0x795   : > { %v15606_v55 = vadd.f32 %v4851_v37, %v15541_v57  ;;  %6490 = vmatmul.bf16.gmra.mxu1 %v5245_v15  ;;  %v12275_v57 = vld [vmem:[%s16649_s4 + $0x550] sm:$0xff]  ;;  %v15635_v37 = vpop.f32.mrf.mxu1 }
 0x796   : > { %v4702_v34 = vpop.f32.mrf.mxu2  ;;  %5975 = vmatpush.bf16.msra.mxu2 %v12275_v57  ;;  %v4401_v57 = vadd.f32 %v16837_v36, %v15507_v5  ;;  %v16839_v36 = vld [vmem:[#allocation54_spill] sm:$0xff] }
 0x797   : > { %v15609_v16 = vadd.f32 %v4702_v34, %v4562_v61 }
 0x79a   : > { %5976 = vmatpush.bf16.msra.mxu2 %v12274_v22 }
 0x79c   : > { %v4853_v15 = vpop.f32.mrf.mxu3 }
 0x79d   : > { %v15622_v12 = vadd.f32 %v4853_v15, %v15549_v33  ;;  %v5247_v33 = vpack.c.bf16 %v5237_v4, %v5236_v19  ;;  %v5238_v4 = vld [vmem:[#allocation2 + $0xac] sm:$0xff] }
 0x79e   : > { %v4704_v47 = vpop.f32.mrf.mxu2  ;;  %5977 = vmatpush.bf16.msra.mxu2 %v12273_v62  ;;  %v16838_v19 = vld [vmem:[#allocation52_spill] sm:$0xff]  ;;  %v5248_v5 = vpack.c.bf16 %v5239_v39, %v5238_v4 }
 0x79f   : > { %v15625_v35 = vadd.f32 %v4704_v47, %v4563_v46  ;;  %v15645_v46 = vpop.f32.mrf.mxu1  ;;  %v5040_v31 = vadd.f32 %v16838_v19, %v15518_v14  ;;  %v12287_v14 = vld [vmem:[%s16649_s4 + $0x5b0] sm:$0xff]  ;;  %v5878_v19 = vld [vmem:[#allocation2 + $0x39] sm:$0xff] }
 0x7a0   : > { %6135 = vmatpush.bf16.msra.mxu3 %v12287_v14 }
 0x7a1   : > { %5506 = vmatmul.bf16.gmra.mxu3 %v5408_v42  ;;  %v5204_v62 = vadd.f32 %v15175_v29, %v5040_v31  ;;  %v6385_v31 = vld [vmem:[#allocation2 + $0xb4] sm:$0xff] }
 0x7a3   : > { %5357 = vmatmul.bf16.gmra.mxu2 %v5247_v33 }
 0x7a4   : > { %v4856_v61 = vpop.f32.mrf.mxu3 }
 0x7a5   : > { %v15638_v34 = vadd.f32 %v4856_v61, %v15559_v18  ;;  %6495 = vmatmul.bf16.gmra.mxu1 %v5246_v40  ;;  %v4565_v18 = vadd.f32 %v15154_v52, %v4401_v57  ;;  %v5396_v40 = vld [vmem:[#allocation2 + $0x7d] sm:$0xff]  ;;  %v5041_v57 = vadd.f32 %v16839_v36, %v15528_v17 }
 0x7a6   : > { %v4707_v45 = vpop.f32.mrf.mxu2  ;;  %v5409_v22 = vpack.c.bf16 %v5397_v2, %v5396_v40  ;;  %v5879_v40 = vld [vmem:[#allocation2 + $0x41] sm:$0xff] }
 0x7a7   : > { %v15641_v59 = vadd.f32 %v4707_v45, %v4564_v48  ;;  %v15662_v48 = vpop.f32.mrf.mxu1  ;;  %v5205_v2 = vadd.f32 %v15189_v23, %v5041_v57  ;;  %v12285_v17 = vld [vmem:[%s16649_s4 + $0x5a0] sm:$0xff]  ;;  %v5896_v23 = vpack.c.bf16 %v5879_v40, %v5878_v19  ;;  %v5881_v19 = vld [vmem:[#allocation2 + $0x51] sm:$0xff] }
 0x7ac   : > { %v4858_v15 = vpop.f32.mrf.mxu3 }
 0x7ad   : > { %v15648_v47 = vadd.f32 %v4858_v15, %v15569_v43  ;;  %v5399_v15 = vld [vmem:[#allocation2 + $0x95] sm:$0xff] }
 0x7ae   : > { %v4709_v63 = vpop.f32.mrf.mxu2 }
 0x7af   : > { %v15651_v42 = vadd.f32 %v4709_v63, %v4565_v18  ;;  %v5398_v63 = vld [vmem:[#allocation2 + $0x8d] sm:$0xff] }
 0x7b1   : > { %5511 = vmatmul.bf16.gmra.mxu3 %v5409_v22  ;;  %v5410_v22 = vpack.c.bf16 %v5399_v15, %v5398_v63  ;;  %v16842_v63 = vld [vmem:[#allocation17_spill] sm:$0xff] }
 0x7b3   : > { %5362 = vmatmul.bf16.gmra.mxu2 %v5248_v5  ;;  %v16840_v5 = vld [vmem:[#allocation55_spill] sm:$0xff] }
 0x7b4   : > { %v4861_v43 = vpop.f32.mrf.mxu3  ;;  %v5042_v58 = vadd.f32 %v16840_v5, %v15536_v56  ;;  %v12281_v5 = vld [vmem:[%s16649_s4 + $0x580] sm:$0xff] }
 0x7b5   : > { %v15659_v52 = vadd.f32 %v4861_v43, %v15579_v27  ;;  %6500 = vmatmul.bf16.gmra.mxu1 %v5247_v33  ;;  %v12286_v27 = vld [vmem:[%s16649_s4 + $0x5a8] sm:$0xff]  ;;  %v12284_v43 = vld [vmem:[%s16649_s4 + $0x598] sm:$0xff] }
 0x7b6   : > { %v5323_v61 = vpop.f32.mrf.mxu2  ;;  %6136 = vmatpush.bf16.msra.mxu3 %v12286_v27  ;;  %v5206_v36 = vadd.f32 %v15208_v20, %v5042_v58  ;;  %v12283_v27 = vld [vmem:[%s16649_s4 + $0x590] sm:$0xff]  ;;  %v5401_v20 = vld [vmem:[#allocation2 + $0xa5] sm:$0xff] }
 0x7b7   : > { %v15664_v45 = vadd.f32 %v5323_v61, %v5204_v62  ;;  %v6395_v62 = vpack.c.bf16 %v6385_v31, %v5238_v4  ;;  %v5880_v58 = vld [vmem:[#allocation2 + $0x49] sm:$0xff] }
 0x7ba   : > { %6137 = vmatpush.bf16.msra.mxu3 %v12285_v17  ;;  %v5400_v17 = vld [vmem:[#allocation2 + $0x9d] sm:$0xff] }
 0x7bc   : > { %v4863_v33 = vpop.f32.mrf.mxu3 }
 0x7bd   : > { %v15675_v29 = vadd.f32 %v4863_v33, %v15595_v60  ;;  %v15685_v60 = vpop.f32.mrf.mxu1  ;;  %v16841_v33 = vld [vmem:[#allocation56_spill] sm:$0xff] }
 0x7be   : > { %v5325_v18 = vpop.f32.mrf.mxu2  ;;  %6138 = vmatpush.bf16.msra.mxu3 %v12284_v43  ;;  %v5043_v15 = vadd.f32 %v16841_v33, %v15546_v32  ;;  %v5411_v32 = vpack.c.bf16 %v5401_v20, %v5400_v17  ;;  %v6387_v43 = vld [vmem:[#allocation2 + $0xc4] sm:$0xf] }
 0x7bf   : > { %v15678_v39 = vadd.f32 %v5325_v18, %v5205_v2 }
 0x7c0   : > { %v5207_v40 = vadd.f32 %v16842_v63, %v5043_v15  ;;  %v16844_v15 = vld [vmem:[#allocation9_spill] sm:$0xff]  ;;  %v16845_v63 = vld [vmem:[#allocation59_spill] sm:$0xff] }
 0x7c1   : > { %5516 = vmatmul.bf16.gmra.mxu3 %v5410_v22 }
 0x7c2   : > { %6139 = vmatpush.bf16.msra.mxu3 %v12283_v27 }
 0x7c3   : > { %5978 = vmatmul.bf16.vlgmr.msra.gmra.mxu2 %v5896_v23  ;;  %v6386_v23 = vld [vmem:[#allocation2 + $0xbc] sm:$0xff] }
 0x7c4   : > { %v4866_v61 = vpop.f32.mrf.mxu3 }
 0x7c5   : > { %v15691_v14 = vadd.f32 %v4866_v61, %v15609_v16  ;;  %6505 = vmatmul.bf16.gmra.mxu1 %v6395_v62  ;;  %v12282_v16 = vld [vmem:[%s16649_s4 + $0x588] sm:$0xff]  ;;  %v15704_v4 = vpop.f32.mrf.mxu1  ;;  %v16843_v62 = vld [vmem:[#allocation58_spill] sm:$0xff] }
 0x7c6   : > { %v5328_v57 = vpop.f32.mrf.mxu2  ;;  %6140 = vmatpush.bf16.msra.mxu3 %v12282_v16  ;;  %v5044_v61 = vadd.f32 %v16843_v62, %v15556_v28  ;;  %v16847_v62 = vld [vmem:[#allocation60_spill] sm:$0xff] }
 0x7c7   : > { %v15694_v56 = vadd.f32 %v5328_v57, %v5206_v36  ;;  %v6396_v36 = vpack.c.bf16 %v6387_v43, %v6386_v23  ;;  %v5882_v43 = vld [vmem:[#allocation2 + $0x59] sm:$0xff] }
 0x7c8   : > { %v5208_v16 = vadd.f32 %v16844_v15, %v5044_v61  ;;  %v5046_v61 = vadd.f32 %v16847_v62, %v15576_v13  ;;  %v16848_v15 = vld [vmem:[#allocation61_spill] sm:$0xff] }
 0x7ca   : > { %6141 = vmatpush.bf16.msra.mxu3 %v12281_v5  ;;  %v5402_v5 = vld [vmem:[#allocation2 + $0xad] sm:$0xff] }
 0x7cc   : > { %v4868_v2 = vpop.f32.mrf.mxu3 }
 0x7cd   : > { %v15707_v18 = vadd.f32 %v4868_v2, %v15625_v35  ;;  %v5897_v35 = vpack.c.bf16 %v5881_v19, %v5880_v58  ;;  %v15715_v27 = vpop.f32.mrf.mxu1  ;;  %v5883_v58 = vld [vmem:[#allocation2 + $0x61] sm:$0xff] }
 0x7ce   : > { %v5330_v22 = vpop.f32.mrf.mxu2 }
 0x7cf   : > { %v5371_v31 = vadd.f32 %v5330_v22, %v5207_v40  ;;  %v5045_v40 = vadd.f32 %v16845_v63, %v15566_v21  ;;  %v5403_v22 = vld [vmem:[#allocation2 + $0xb5] sm:$0xf]  ;;  %v6043_v63 = vld [vmem:[#allocation2 + $0x42] sm:$0xff] }
 0x7d0   : > { %v5412_v23 = vpack.c.bf16 %v5403_v22, %v5402_v5  ;;  %v6042_v22 = vld [vmem:[#allocation2 + $0x3a] sm:$0xff]  ;;  %v5884_v5 = vld [vmem:[#allocation2 + $0x69] sm:$0xff] }
 0x7d1   : > { %5521 = vmatmul.bf16.gmra.mxu3 %v5411_v32  ;;  %v5209_v19 = vadd.f32 %v15256_v44, %v5045_v40 }
 0x7d3   : > { %5983 = vmatmul.bf16.gmra.mxu2 %v5897_v35  ;;  %v5898_v35 = vpack.c.bf16 %v5883_v58, %v5882_v43 }
 0x7d4   : > { %v4871_v57 = vpop.f32.mrf.mxu3 }
 0x7d5   : > { %v15718_v33 = vadd.f32 %v4871_v57, %v15641_v59  ;;  %6510 = vmatmul.bf16.gmra.mxu1 %v6396_v36 }
 0x7d6   : > { %v5333_v2 = vpop.f32.mrf.mxu2 }
 0x7d7   : > { %v5372_v20 = vadd.f32 %v5333_v2, %v5208_v16  ;;  %v5047_v16 = vadd.f32 %v16848_v15, %v15590_v54 }
 0x7d9   : > { %v5211_v13 = vadd.f32 %v15299_v24, %v5047_v16  ;;  %v6044_v16 = vld [vmem:[#allocation2 + $0x4a] sm:$0xff] }
 0x7dc   : > { %v4873_v28 = vpop.f32.mrf.mxu3 }
 0x7dd   : > { %v15724_v17 = vadd.f32 %v4873_v28, %v15651_v42  ;;  %v5210_v42 = vadd.f32 %v15273_v7, %v5046_v61  ;;  %v16849_v7 = vld [vmem:[#allocation62_spill] sm:$0xff]  ;;  %v16850_v61 = vld [vmem:[#allocation63_spill] sm:$0xff] }
 0x7de   : > { %v5335_v32 = vpop.f32.mrf.mxu2  ;;  %v5048_v58 = vadd.f32 %v16849_v7, %v15606_v55 }
 0x7df   : > { %16846 = vst [vmem:[#allocation45_spill] sm:$0xff] %v15724_v17  ;;  %v5373_v59 = vadd.f32 %v5335_v32, %v5209_v19  ;;  %v5885_v19 = vld [vmem:[#allocation2 + $0x71] sm:$0xff] }
 0x7e1   : > { %5526 = vmatmul.bf16.gmra.mxu3 %v5412_v23  ;;  %v5899_v23 = vpack.c.bf16 %v5885_v19, %v5884_v5 }
 0x7e3   : > { %5988 = vmatmul.bf16.gmra.mxu2 %v5898_v35  ;;  %v5049_v35 = vadd.f32 %v16850_v61, %v15622_v12  ;;  %v5889_v61 = vld [vmem:[#allocation2 + $0x91] sm:$0xff] }
 0x7e4   : > { %v5487_v21 = vpop.f32.mrf.mxu3 }
 0x7e5   : > { %v15730_v36 = vadd.f32 %v5487_v21, %v15664_v45  ;;  %v6060_v45 = vpack.c.bf16 %v6043_v63, %v6042_v22  ;;  %v5213_v55 = vadd.f32 %v15347_v0, %v5049_v35  ;;  %v16852_v0 = vld [vmem:[#allocation65_spill] sm:$0xff] }
 0x7e6   : > { %v5338_v57 = vpop.f32.mrf.mxu2  ;;  %v5051_v7 = vadd.f32 %v16852_v0, %v15648_v47 }
 0x7e7   : > { %v5374_v44 = vadd.f32 %v5338_v57, %v5210_v42  ;;  %v6045_v42 = vld [vmem:[#allocation2 + $0x52] sm:$0xff] }
 0x7ec   : > { %v5489_v2 = vpop.f32.mrf.mxu3 }
 0x7ed   : > { %v15736_v40 = vadd.f32 %v5489_v2, %v15678_v39  ;;  %v5212_v39 = vadd.f32 %v15326_v1, %v5048_v58  ;;  %v5887_v2 = vld [vmem:[#allocation2 + $0x81] sm:$0xff] }
 0x7ee   : > { %v5340_v28 = vpop.f32.mrf.mxu2 }
 0x7ef   : > { %v5375_v32 = vadd.f32 %v5340_v28, %v5211_v13  ;;  %v6061_v13 = vpack.c.bf16 %v6045_v42, %v6044_v16  ;;  %v16851_v28 = vld [vmem:[#allocation64_spill] sm:$0xff]  ;;  %v16853_v42 = vld [vmem:[#allocation66_spill] sm:$0xff] }
 0x7f0   : > { %v5050_v1 = vadd.f32 %v16851_v28, %v15638_v34  ;;  %v6049_v28 = vld [vmem:[#allocation2 + $0x72] sm:$0xff] }
 0x7f1   : > { %6142 = vmatmul.bf16.vlgmr.msra.gmra.mxu3 %v6060_v45 }
 0x7f3   : > { %5993 = vmatmul.bf16.gmra.mxu2 %v5899_v23  ;;  %v6047_v23 = vld [vmem:[#allocation2 + $0x62] sm:$0xff] }
 0x7f4   : > { %v5492_v54 = vpop.f32.mrf.mxu3 }
 0x7f5   : > { %v15742_v43 = vadd.f32 %v5492_v54, %v15694_v56  ;;  %v5886_v56 = vld [vmem:[#allocation2 + $0x79] sm:$0xff] }
 0x7f6   : > { %v5343_v62 = vpop.f32.mrf.mxu2  ;;  %v5900_v22 = vpack.c.bf16 %v5887_v2, %v5886_v56 }
 0x7f7   : > { %v5376_v24 = vadd.f32 %v5343_v62, %v5212_v39  ;;  %v5215_v39 = vadd.f32 %v15407_v50, %v5051_v7  ;;  %v6046_v62 = vld [vmem:[#allocation2 + $0x5a] sm:$0xff]  ;;  %v15765_v50 = vpop.f32.mrf.mxu0 }
 0x7fc   : > { %v5494_v21 = vpop.f32.mrf.mxu3 }
 0x7fd   : > { %v15747_v57 = vadd.f32 %v5494_v21, %v5371_v31  ;;  %v5214_v31 = vadd.f32 %v15377_v8, %v5050_v1  ;;  %v6062_v21 = vpack.c.bf16 %v6047_v23, %v6046_v62  ;;  %v5052_v8 = vadd.f32 %v16853_v42, %v15659_v52  ;;  %v6048_v52 = vld [vmem:[#allocation2 + $0x6a] sm:$0xff] }
 0x7fe   : > { %v5345_v15 = vpop.f32.mrf.mxu2 }
 0x7ff   : > { %v5377_v63 = vadd.f32 %v5345_v15, %v5213_v55  ;;  %v15775_v7 = vpop.f32.mrf.mxu0 }
 0x801   : > { %6147 = vmatmul.bf16.gmra.mxu3 %v6061_v13  ;;  %v15767_v13 = vpop.f32.mrf.mxu1 }
 0x803   : > { %5998 = vmatmul.bf16.gmra.mxu2 %v5900_v22 }
 0x804   : > { %v5497_v19 = vpop.f32.mrf.mxu3 }
 0x805   : > { %v15752_v12 = vadd.f32 %v5497_v19, %v5372_v20  ;;  %v5888_v20 = vld [vmem:[#allocation2 + $0x89] sm:$0xff]  ;;  %v5891_v19 = vld [vmem:[#allocation2 + $0xa1] sm:$0xff] }
 0x806   : > { %v5348_v45 = vpop.f32.mrf.mxu2  ;;  %v5901_v55 = vpack.c.bf16 %v5889_v61, %v5888_v20  ;;  %v6051_v20 = vld [vmem:[#allocation2 + $0x82] sm:$0xff] }
 0x807   : > { %v5378_v5 = vadd.f32 %v5348_v45, %v5214_v31  ;;  %v6063_v31 = vpack.c.bf16 %v6049_v28, %v6048_v52  ;;  %v5890_v45 = vld [vmem:[#allocation2 + $0x99] sm:$0xff]  ;;  %v15782_v61 = vpop.f32.mrf.mxu0 }
 0x80c   : > { %v5499_v58 = vpop.f32.mrf.mxu3 }
 0x80d   : > { %v15757_v54 = vadd.f32 %v5499_v58, %v5373_v59  ;;  %v5216_v59 = vadd.f32 %v15441_v11, %v5052_v8  ;;  %v5902_v11 = vpack.c.bf16 %v5891_v19, %v5890_v45  ;;  %v15777_v58 = vpop.f32.mrf.mxu1 }
 0x80e   : > { %v5350_v34 = vpop.f32.mrf.mxu2 }
 0x80f   : > { %v5379_v35 = vadd.f32 %v5350_v34, %v5215_v39  ;;  %v15795_v19 = vpop.f32.mrf.mxu0 }
 0x810   : > { %16856 = vst [vmem:[#allocation21_spill] sm:$0xff] %v15795_v19 }
 0x811   : > { %6152 = vmatmul.bf16.gmra.mxu3 %v6062_v21 }
 0x813   : > { %6003 = vmatmul.bf16.gmra.mxu2 %v5901_v55  ;;  %v6050_v55 = vld [vmem:[#allocation2 + $0x7a] sm:$0xff] }
 0x814   : > { %v5502_v15 = vpop.f32.mrf.mxu3 }
 0x815   : > { %v15762_v47 = vadd.f32 %v5502_v15, %v5374_v44  ;;  %v16854_v44 = vld [vmem:[#allocation68_spill] sm:$0xff] }
 0x816   : > { %v5353_v16 = vpop.f32.mrf.mxu2  ;;  %v5054_v0 = vadd.f32 %v16854_v44, %v15691_v14  ;;  %v15786_v14 = vpop.f32.mrf.mxu1  ;;  %v5893_v15 = vld [vmem:[#allocation2 + $0xb1] sm:$0xff] }
 0x817   : > { %v5380_v2 = vadd.f32 %v5353_v16, %v5216_v59  ;;  %v6064_v59 = vpack.c.bf16 %v6051_v20, %v6050_v55  ;;  %v5892_v16 = vld [vmem:[#allocation2 + $0xa9] sm:$0xff] }
 0x81c   : > { %v5504_v56 = vpop.f32.mrf.mxu3 }
 0x81d   : > { %v15769_v1 = vadd.f32 %v5504_v56, %v5375_v32  ;;  %v5218_v32 = vadd.f32 %v15485_v3, %v5054_v0  ;;  %v5903_v3 = vpack.c.bf16 %v5893_v15, %v5892_v16 }
 0x81e   : > { %v15771_v22 = vpop.f32.mrf.mxu2  ;;  %v15797_v44 = vpop.f32.mrf.mxu1 }
 0x81f   : > { %16857 = vst [vmem:[#allocation47_spill] sm:$0xff] %v15797_v44 }
 0x821   : > { %6157 = vmatmul.bf16.gmra.mxu3 %v6063_v31 }
 0x823   : > { %6008 = vmatmul.bf16.gmra.mxu2 %v5902_v11  ;;  %v6053_v11 = vld [vmem:[#allocation2 + $0x92] sm:$0xff] }
 0x824   : > { %v5507_v23 = vpop.f32.mrf.mxu3 }
 0x825   : > { %v15779_v39 = vadd.f32 %v5507_v23, %v5376_v24  ;;  %v16855_v24 = vld [vmem:[#allocation15_spill] sm:$0xff] }
 0x826   : > { %v5358_v34 = vpop.f32.mrf.mxu2  ;;  %v5056_v56 = vadd.f32 %v16855_v24, %v15718_v33  ;;  %v6052_v33 = vld [vmem:[#allocation2 + $0x8a] sm:$0xff] }
 0x827   : > { %v5382_v62 = vadd.f32 %v5358_v34, %v5218_v32  ;;  %v5894_v34 = vld [vmem:[#allocation2 + $0xb9] sm:$0xff]  ;;  %v6065_v20 = vpack.c.bf16 %v6053_v11, %v6052_v33 }
 0x828   : > { %v6054_v11 = vld [vmem:[#allocation2 + $0x9a] sm:$0xff] }
 0x82c   : > { %v5509_v21 = vpop.f32.mrf.mxu3 }
 0x82d   : > { %v15784_v42 = vadd.f32 %v5509_v21, %v5377_v63  ;;  %v5220_v63 = vadd.f32 %v15515_v10, %v5056_v56  ;;  %v5895_v21 = vld [vmem:[#allocation2 + $0xc1] sm:$0xf]  ;;  %v16860_v10 = vld [vmem:[#allocation8_spill] sm:$0xff] }
 0x82e   : > { %v15788_v8 = vpop.f32.mrf.mxu2  ;;  %v5696_v55 = vadd.f32 %v16860_v10, %v15730_v36  ;;  %v5904_v15 = vpack.c.bf16 %v5895_v21, %v5894_v34  ;;  %v16864_v34 = vld [vmem:[#allocation33_spill] sm:$0xff] }
 0x82f   : > { %v5698_v21 = vadd.f32 %v16864_v34, %v15742_v43  ;;  %v16865_v43 = vld [vmem:[#allocation37_spill] sm:$0xff] }
 0x831   : > { %6162 = vmatmul.bf16.gmra.mxu3 %v6064_v59  ;;  %v15807_v59 = vpop.f32.mrf.mxu1 }
 0x832   : > { %16861 = vst [vmem:[#allocation20_spill] sm:$0xff] %v15807_v59  ;;  %v6056_v59 = vld [vmem:[#allocation2 + $0xaa] sm:$0xff] }
 0x833   : > { %6013 = vmatmul.bf16.gmra.mxu2 %v5903_v3 }
 0x834   : > { %v5512_v28 = vpop.f32.mrf.mxu3 }
 0x835   : > { %v15792_v52 = vadd.f32 %v5512_v28, %v5378_v5  ;;  %v15803_v5 = vpop.f32.mrf.mxu0 }
 0x836   : > { %v5363_v31 = vpop.f32.mrf.mxu2  ;;  %16859 = vst [vmem:[#allocation49_spill] sm:$0xff] %v15803_v5  ;;  %v6058_v5 = vld [vmem:[#allocation2 + $0xba] sm:$0xff] }
 0x837   : > { %v5384_v45 = vadd.f32 %v5363_v31, %v5220_v63 }
 0x839   : > { %v15814_v63 = vpop.f32.mrf.mxu1 }
 0x83a   : > { %16863 = vst [vmem:[#allocation23_spill] sm:$0xff] %v15814_v63 }
 0x83c   : > { %v5514_v0 = vpop.f32.mrf.mxu3 }
 0x83d   : > { %v15799_v23 = vadd.f32 %v5514_v0, %v5379_v35  ;;  %v5860_v35 = vadd.f32 %v15539_v38, %v5696_v55  ;;  %v15812_v28 = vpop.f32.mrf.mxu0  ;;  %v6055_v0 = vld [vmem:[#allocation2 + $0xa2] sm:$0xff]  ;;  %v5862_v38 = vadd.f32 %v15563_v25, %v5698_v21 }
 0x83e   : > { %v15801_v32 = vpop.f32.mrf.mxu2  ;;  %16862 = vst [vmem:[#allocation51_spill] sm:$0xff] %v15812_v28  ;;  %v6066_v33 = vpack.c.bf16 %v6055_v0, %v6054_v11 }
 0x83f   : > { %16858 = vst [vmem:[#allocation11_spill] sm:$0xff] %v15801_v32 }
 0x841   : > { %6167 = vmatmul.bf16.gmra.mxu3 %v6065_v20  ;;  %v6471_v55 = vpop.f32.mrf.mxu1 }
 0x843   : > { %6018 = vmatmul.bf16.gmra.mxu2 %v5904_v15 }
 0x844   : > { %v5517_v16 = vpop.f32.mrf.mxu3 }
 0x845   : > { %v15809_v24 = vadd.f32 %v5517_v16, %v5380_v2  ;;  %v6307_v2 = vpop.f32.mrf.mxu0 }
 0x846   : > { %v5979_v56 = vpop.f32.mrf.mxu2 }
 0x847   : > { %v6024_v3 = vadd.f32 %v5979_v56, %v5860_v35  ;;  %v6057_v56 = vld [vmem:[#allocation2 + $0xb2] sm:$0xff] }
 0x848   : > { %v6067_v0 = vpack.c.bf16 %v6057_v56, %v6056_v59  ;;  %v6068_v59 = vpack.c.bf16 %v6059_v6, %v6058_v5  ;;  %v5702_v56 = vadd.f32 %v15297_v49, %v15762_v47  ;;  %v15841_v47 = vld [vmem:[%s16650_s5] ss:$0 sm:$0xff] }
 0x849   : > { %v6473_v11 = vpop.f32.mrf.mxu1 }
 0x84c   : > { %v15816_v31 = vpop.f32.mrf.mxu3 }
 0x84d   : > { %v6309_v63 = vpop.f32.mrf.mxu0 }
 0x84e   : > { %v5981_v36 = vpop.f32.mrf.mxu2 }
 0x851   : > { %6172 = vmatmul.bf16.gmra.mxu3 %v6066_v33  ;;  %v5700_v33 = vadd.f32 %v16865_v43, %v15752_v12  ;;  %v16868_v43 = vld [vmem:[#allocation14_spill] sm:$0xff] }
 0x853   : > { %v5864_v25 = vadd.f32 %v15593_v30, %v5700_v33  ;;  %v5697_v30 = vadd.f32 %v16868_v43, %v15736_v40 }
 0x854   : > { %v5522_v20 = vpop.f32.mrf.mxu3 }
 0x855   : > { %v15820_v10 = vadd.f32 %v5522_v20, %v5382_v62 }
 0x856   : > { %v5984_v15 = vpop.f32.mrf.mxu2 }
 0x857   : > { %v6026_v16 = vadd.f32 %v5984_v15, %v5862_v38  ;;  %v6312_v38 = vpop.f32.mrf.mxu0  ;;  %v6476_v15 = vpop.f32.mrf.mxu1 }
 0x85c   : > { %v15823_v35 = vpop.f32.mrf.mxu3 }
 0x85e   : > { %v5986_v28 = vpop.f32.mrf.mxu2 }
 0x85f   : > { %v6314_v12 = vpop.f32.mrf.mxu0 }
 0x861   : > { %6177 = vmatmul.bf16.gmra.mxu3 %v6067_v0  ;;  %v6478_v0 = vpop.f32.mrf.mxu1 }
 0x864   : > { %v5527_v34 = vpop.f32.mrf.mxu3 }
 0x865   : > { %v15827_v62 = vadd.f32 %v5527_v34, %v5384_v45  ;;  %v5866_v34 = vadd.f32 %v15635_v37, %v5702_v56  ;;  %v16869_v37 = vld [vmem:[#allocation19_spill] sm:$0xff] }
 0x866   : > { %v5989_v21 = vpop.f32.mrf.mxu2  ;;  %v5704_v56 = vadd.f32 %v16869_v37, %v15779_v39 }
 0x867   : > { %16866 = vst [vmem:[#allocation53_spill] sm:$0xff] %v15827_v62  ;;  %v6028_v20 = vadd.f32 %v5989_v21, %v5864_v25  ;;  %v6317_v6 = vpop.f32.mrf.mxu0 }
 0x86c   : > { %v15830_v32 = vpop.f32.mrf.mxu3 }
 0x86d   : > { %16867 = vst [vmem:[#allocation12_spill] sm:$0xff] %v15830_v32  ;;  %v5861_v32 = vadd.f32 %v15553_v9, %v5697_v30 }
 0x86e   : > { %v5991_v44 = vpop.f32.mrf.mxu2 }
 0x86f   : > { %v6025_v17 = vadd.f32 %v5981_v36, %v5861_v32  ;;  %v16870_v36 = vld [vmem:[#allocation35_spill] sm:$0xff] }
 0x871   : > { %6182 = vmatmul.bf16.gmra.mxu3 %v6068_v59  ;;  %v6481_v59 = vpop.f32.mrf.mxu1 }
 0x874   : > { %v6143_v45 = vpop.f32.mrf.mxu3 }
 0x875   : > { %v6188_v33 = vadd.f32 %v6143_v45, %v6024_v3 }
 0x876   : > { %v5994_v25 = vpop.f32.mrf.mxu2 }
 0x877   : > { %v6030_v21 = vadd.f32 %v5994_v25, %v5866_v34  ;;  %v6352_v62 = vadd.f32 %v6307_v2, %v6188_v33  ;;  %v5699_v2 = vadd.f32 %v16870_v36, %v15747_v57  ;;  %v6319_v33 = vpop.f32.mrf.mxu0  ;;  %v16871_v36 = vld [vmem:[#allocation16_spill] sm:$0xff] }
 0x879   : > { %v6516_v19 = vadd.f32 %v6471_v55, %v6352_v62  ;;  %v5868_v62 = vadd.f32 %v15662_v48, %v5704_v56  ;;  %v6483_v39 = vpop.f32.mrf.mxu1 }
 0x87b   : > { %v6538_v9 = vadd.f32 %v15841_v47, %v6516_v19 }
 0x87c   : > { %v6145_v5 = vpop.f32.mrf.mxu3 }
 0x87d   : > { %v6189_v49 = vadd.f32 %v6145_v5, %v6025_v17  ;;  %v6556_v43 = vmax.f32 %v6538_v9, 0.0 }
 0x87e   : > { %v5996_v40 = vpop.f32.mrf.mxu2 }
 0x87f   : > { %v6353_v3 = vadd.f32 %v6309_v63, %v6189_v49 }
 0x881   : > { %v6517_v45 = vadd.f32 %v6473_v11, %v6353_v3  ;;  %v5863_v11 = vadd.f32 %v15573_v26, %v5699_v2  ;;  %v6486_v56 = vpop.f32.mrf.mxu1 }
 0x883   : > { %v6539_v32 = vadd.f32 %v15841_v47, %v6517_v45  ;;  %v6027_v5 = vadd.f32 %v5986_v28, %v5863_v11  ;;  %v6322_v45 = vpop.f32.mrf.mxu0 }
 0x884   : > { %v6148_v17 = vpop.f32.mrf.mxu3 }
 0x885   : > { %v6190_v55 = vadd.f32 %v6148_v17, %v6026_v16  ;;  %v6557_v30 = vmax.f32 %v6539_v32, 0.0  ;;  %v5701_v17 = vadd.f32 %v16871_v36, %v15757_v54 }
 0x886   : > { %v5999_v34 = vpop.f32.mrf.mxu2 }
 0x887   : > { %v6032_v63 = vadd.f32 %v5999_v34, %v5868_v62  ;;  %v15850_v25 = vpack.c.bf16 %v6557_v30, %v6556_v43  ;;  %v6354_v19 = vadd.f32 %v6312_v38, %v6190_v55  ;;  %v5865_v28 = vadd.f32 %v15616_v53, %v5701_v17 }
 0x889   : > { %v6518_v3 = vadd.f32 %v6476_v15, %v6354_v19  ;;  %v6029_v2 = vadd.f32 %v5991_v44, %v5865_v28 }
 0x88b   : > { %v6540_v48 = vadd.f32 %v15841_v47, %v6518_v3  ;;  %v16872_v3 = vld [vmem:[#allocation39_spill] sm:$0xff] }
 0x88c   : > { %v6150_v49 = vpop.f32.mrf.mxu3 }
 0x88d   : > { %v6191_v37 = vadd.f32 %v6150_v49, %v6027_v5  ;;  %v6558_v43 = vmax.f32 %v6540_v48, 0.0 }
 0x88e   : > { %v6001_v48 = vpop.f32.mrf.mxu2 }
 0x88f   : > { %v6355_v57 = vadd.f32 %v6314_v12, %v6191_v37  ;;  %v6324_v12 = vpop.f32.mrf.mxu0  ;;  %v5703_v37 = vadd.f32 %v16872_v3, %v15769_v1 }
 0x891   : > { %v6519_v16 = vadd.f32 %v6478_v0, %v6355_v57  ;;  %v6488_v0 = vpop.f32.mrf.mxu1 }
 0x893   : > { %v6541_v9 = vadd.f32 %v15841_v47, %v6519_v16 }
 0x894   : > { %v6153_v32 = vpop.f32.mrf.mxu3 }
 0x895   : > { %v6192_v62 = vadd.f32 %v6153_v32, %v6028_v20  ;;  %v6559_v26 = vmax.f32 %v6541_v9, 0.0 }
 0x897   : > { %v15857_v38 = vpack.c.bf16 %v6559_v26, %v6558_v43  ;;  %v6356_v15 = vadd.f32 %v6317_v6, %v6192_v62  ;;  %v6327_v20 = vpop.f32.mrf.mxu0 }
 0x899   : > { %v6520_v30 = vadd.f32 %v6481_v59, %v6356_v15  ;;  %v6491_v16 = vpop.f32.mrf.mxu1  ;;  %v5867_v59 = vadd.f32 %v15645_v46, %v5703_v37 }
 0x89b   : > { %v6542_v5 = vadd.f32 %v15841_v47, %v6520_v30 }
 0x89c   : > { %v6155_v55 = vpop.f32.mrf.mxu3 }
 0x89d   : > { %v6193_v34 = vadd.f32 %v6155_v55, %v6029_v2  ;;  %v6560_v53 = vmax.f32 %v6542_v5, 0.0  ;;  %v16873_v2 = vld [vmem:[#allocation41_spill] sm:$0xff] }
 0x89e   : > { %v5705_v55 = vadd.f32 %v16873_v2, %v15784_v42 }
 0x89f   : > { %v6357_v11 = vadd.f32 %v6319_v33, %v6193_v34  ;;  %v6329_v17 = vpop.f32.mrf.mxu0 }
 0x8a1   : > { %v6521_v19 = vadd.f32 %v6483_v39, %v6357_v11  ;;  %v6031_v39 = vadd.f32 %v5996_v40, %v5867_v59  ;;  %v6493_v43 = vpop.f32.mrf.mxu1 }
 0x8a3   : > { %v6543_v54 = vadd.f32 %v15841_v47, %v6521_v19 }
 0x8a4   : > { %v6158_v49 = vpop.f32.mrf.mxu3 }
 0x8a5   : > { %v6194_v57 = vadd.f32 %v6158_v49, %v6030_v21  ;;  %v6561_v6 = vmax.f32 %v6543_v54, 0.0  ;;  %v6004_v21 = vpop.f32.mrf.mxu2  ;;  %v16874_v49 = vld [vmem:[#allocation10_spill] sm:$0xff] }
 0x8a6   : > { %v5706_v3 = vadd.f32 %v16874_v49, %v15792_v52 }
 0x8a7   : > { %v15864_v44 = vpack.c.bf16 %v6561_v6, %v6560_v53  ;;  %v6358_v33 = vadd.f32 %v6322_v45, %v6194_v57 }
 0x8a8   : > { %v5870_v42 = vadd.f32 %v15704_v4, %v5706_v3  ;;  %v16876_v4 = vld [vmem:[#allocation67_spill] sm:$0xff] }
 0x8a9   : > { %v6522_v32 = vadd.f32 %v6486_v56, %v6358_v33  ;;  %v6332_v56 = vpop.f32.mrf.mxu0 }
 0x8aa   : > { %v6034_v6 = vadd.f32 %v6004_v21, %v5870_v42 }
 0x8ab   : > { %v6544_v1 = vadd.f32 %v15841_v47, %v6522_v32 }
 0x8ac   : > { %v6160_v9 = vpop.f32.mrf.mxu3 }
 0x8ad   : > { %v6195_v36 = vadd.f32 %v6160_v9, %v6031_v39  ;;  %v6562_v46 = vmax.f32 %v6544_v1, 0.0  ;;  %v6006_v5 = vpop.f32.mrf.mxu2 }
 0x8af   : > { %v6359_v62 = vadd.f32 %v6324_v12, %v6195_v36  ;;  %v5869_v12 = vadd.f32 %v15685_v60, %v5705_v55 }
 0x8b1   : > { %v6523_v26 = vadd.f32 %v6488_v0, %v6359_v62  ;;  %v6496_v0 = vpop.f32.mrf.mxu1  ;;  %v6033_v19 = vadd.f32 %v6001_v48, %v5869_v12  ;;  %v6334_v53 = vpop.f32.mrf.mxu0  ;;  %v16875_v48 = vld [vmem:[#allocation43_spill] sm:$0xff] }
 0x8b2   : > { %v5707_v33 = vadd.f32 %v16875_v48, %v15799_v23  ;;  %v5708_v23 = vadd.f32 %v15765_v50, %v15809_v24 }
 0x8b3   : > { %v6545_v28 = vadd.f32 %v15841_v47, %v6523_v26 }
 0x8b4   : > { %v6163_v15 = vpop.f32.mrf.mxu3  ;;  %v5871_v62 = vadd.f32 %v15715_v27, %v5707_v33  ;;  %v5872_v27 = vadd.f32 %v15767_v13, %v5708_v23 }
 0x8b5   : > { %v6196_v30 = vadd.f32 %v6163_v15, %v6032_v63  ;;  %v6563_v45 = vmax.f32 %v6545_v28, 0.0  ;;  %v6009_v52 = vpop.f32.mrf.mxu2 }
 0x8b6   : > { %v6035_v26 = vadd.f32 %v6006_v5, %v5871_v62  ;;  %v6036_v12 = vadd.f32 %v6009_v52, %v5872_v27  ;;  %v16879_v62 = vld [vmem:[#allocation45_spill] sm:$0xff] }
 0x8b7   : > { %v6360_v40 = vadd.f32 %v6327_v20, %v6196_v30  ;;  %v15871_v34 = vpack.c.bf16 %v6563_v45, %v6562_v46 }
 0x8b9   : > { %v6524_v11 = vadd.f32 %v6491_v16, %v6360_v40  ;;  %v6498_v60 = vpop.f32.mrf.mxu1  ;;  %v6337_v1 = vpop.f32.mrf.mxu0 }
 0x8bb   : > { %v6546_v20 = vadd.f32 %v15841_v47, %v6524_v11 }
 0x8bc   : > { %v6165_v54 = vpop.f32.mrf.mxu3 }
 0x8bd   : > { %v6197_v37 = vadd.f32 %v6165_v54, %v6033_v19  ;;  %v6564_v9 = vmax.f32 %v6546_v20, 0.0  ;;  %v6011_v45 = vpop.f32.mrf.mxu2 }
 0x8bf   : > { %v6361_v57 = vadd.f32 %v6329_v17, %v6197_v37  ;;  %v5053_v17 = vadd.f32 %v16876_v4, %v15675_v29 }
 0x8c1   : > { %v6525_v63 = vadd.f32 %v6493_v43, %v6361_v57  ;;  %v5217_v28 = vadd.f32 %v15465_v41, %v5053_v17  ;;  %v6501_v55 = vpop.f32.mrf.mxu1  ;;  %v6339_v5 = vpop.f32.mrf.mxu0 }
 0x8c3   : > { %v6547_v59 = vadd.f32 %v15841_v47, %v6525_v63  ;;  %v5381_v30 = vadd.f32 %v15771_v22, %v5217_v28 }
 0x8c4   : > { %v6168_v16 = vpop.f32.mrf.mxu3 }
 0x8c5   : > { %v6198_v39 = vadd.f32 %v6168_v16, %v6034_v6  ;;  %v6565_v32 = vmax.f32 %v6547_v59, 0.0  ;;  %v5545_v29 = vadd.f32 %v15816_v31, %v5381_v30  ;;  %v16877_v31 = vld [vmem:[#allocation69_spill] sm:$0xff]  ;;  %v6014_v37 = vpop.f32.mrf.mxu2 }
 0x8c6   : > { %v5055_v49 = vadd.f32 %v16877_v31, %v15707_v18  ;;  %v16883_v30 = vld [vmem:[#allocation53_spill] sm:$0xff] }
 0x8c7   : > { %v15881_v36 = vpack.c.bf16 %v6565_v32, %v6564_v9  ;;  %v6362_v43 = vadd.f32 %v6332_v56, %v6198_v39  ;;  %v5709_v50 = vadd.f32 %v15775_v7, %v5545_v29  ;;  %v5710_v7 = vadd.f32 %v15782_v61, %v15820_v10  ;;  %v16878_v61 = vld [vmem:[#allocation21_spill] sm:$0xff] }
 0x8c8   : > { %v5219_v63 = vadd.f32 %v15504_v51, %v5055_v49 }
 0x8c9   : > { %v6526_v15 = vadd.f32 %v6496_v0, %v6362_v43  ;;  %v6503_v54 = vpop.f32.mrf.mxu1  ;;  %v5873_v13 = vadd.f32 %v15777_v58, %v5709_v50  ;;  %v5874_v18 = vadd.f32 %v15786_v14, %v5710_v7  ;;  %v16880_v43 = vld [vmem:[#allocation27_spill] sm:$0xff] }
 0x8ca   : > { %v5383_v6 = vadd.f32 %v15788_v8, %v5219_v63 }
 0x8cb   : > { %v6548_v56 = vadd.f32 %v15841_v47, %v6526_v15  ;;  %v6037_v57 = vadd.f32 %v6011_v45, %v5873_v13  ;;  %v6038_v39 = vadd.f32 %v6014_v37, %v5874_v18 }
 0x8cc   : > { %v6170_v21 = vpop.f32.mrf.mxu3  ;;  %v5547_v16 = vadd.f32 %v15823_v35, %v5383_v6  ;;  %v5057_v35 = vadd.f32 %v16880_v43, %v16879_v62  ;;  %v16889_v6 = vld [vmem:[#allocation23_spill] sm:$0xff]  ;;  %v12315_v43 = vld [vmem:[%s16652_s7 + $0x30] sm:$0xff] }
 0x8cd   : > { %v6199_v2 = vadd.f32 %v6170_v21, %v6035_v26  ;;  %v6566_v0 = vmax.f32 %v6548_v56, 0.0  ;;  %v6016_v9 = vpop.f32.mrf.mxu2  ;;  %v16881_v26 = vld [vmem:[#allocation47_spill] sm:$0xff] }
 0x8ce   : > { %v5711_v10 = vadd.f32 %v16878_v61, %v5547_v16  ;;  %v16885_v56 = vld [vmem:[#allocation11_spill] sm:$0xff] }
 0x8cf   : > { %v6363_v46 = vadd.f32 %v6334_v53, %v6199_v2  ;;  %v16882_v2 = vld [vmem:[#allocation18_spill] sm:$0xff] }
 0x8d0   : > { %v5875_v14 = vadd.f32 %v16881_v26, %v5711_v10  ;;  %v12314_v26 = vld [vmem:[%s16652_s7 + $0x28] sm:$0xff] }
 0x8d1   : > { %v6527_v40 = vadd.f32 %v6498_v60, %v6363_v46  ;;  %v6342_v60 = vpop.f32.mrf.mxu0  ;;  %v6506_v33 = vpop.f32.mrf.mxu1  ;;  %v16884_v46 = vld [vmem:[#allocation49_spill] sm:$0xff] }
 0x8d2   : > { %v6039_v28 = vadd.f32 %v6016_v9, %v5875_v14  ;;  %v5712_v45 = vadd.f32 %v16884_v46, %v16883_v30  ;;  %v12306_v14 = vld [vmem:[%s16651_s6 + $0x4] sm:$0xf0]  ;;  %v10714_v30 = vld [vmem:[%s16651_s6 + $0x18] sm:$0x10] }
 0x8d3   : > { %v6549_v41 = vadd.f32 %v15841_v47, %v6527_v40  ;;  %v12312_v46 = vld [vmem:[%s16652_s7 + $0x18] sm:$0xff] }
 0x8d4   : > { %v6173_v11 = vpop.f32.mrf.mxu3 }
 0x8d5   : > { %v6200_v24 = vadd.f32 %v6173_v11, %v6036_v12  ;;  %v6567_v19 = vmax.f32 %v6549_v41, 0.0  ;;  %v6019_v40 = vpop.f32.mrf.mxu2  ;;  %v16886_v11 = vld [vmem:[#allocation12_spill] sm:$0xff] }
 0x8d7   : > { %v15895_v22 = vpack.c.bf16 %v6567_v19, %v6566_v0  ;;  %v6364_v3 = vadd.f32 %v6337_v1, %v6200_v24  ;;  %v16887_v24 = vld [vmem:[#allocation20_spill] sm:$0xff] }
 0x8d8   : > { %v5876_v0 = vadd.f32 %v16887_v24, %v5712_v45  ;;  %v12337_v45 = vld [vmem:[%s16652_s7 + $0xe0] sm:$0xff]  ;;  %v12335_v24 = vld [vmem:[%s16652_s7 + $0xd0] sm:$0xff] }
 0x8d9   : > { %v6528_v20 = vadd.f32 %v6501_v55, %v6364_v3  ;;  %v6344_v21 = vpop.f32.mrf.mxu0  ;;  %v6508_v23 = vpop.f32.mrf.mxu1  ;;  %v5221_v55 = vadd.f32 %v16882_v2, %v5057_v35  ;;  %v16888_v3 = vld [vmem:[#allocation51_spill] sm:$0xff]  ;;  %v12331_v35 = vld [vmem:[%s16652_s7 + $0xb0] sm:$0xff] }
 0x8da   : > { %v12323_v2 = vld [vmem:[%s16652_s7 + $0x70] sm:$0xff] }
 0x8db   : > { %v6550_v48 = vadd.f32 %v15841_v47, %v6528_v20  ;;  %v5385_v12 = vadd.f32 %v16885_v56, %v5221_v55  ;;  %v12307_v55 = vld [vmem:[%s16651_s6 + $0x14] sm:$0xf]  ;;  %v12328_v56 = vld [vmem:[%s16652_s7 + $0x98] sm:$0xff] }
 0x8dc   : > { %v6175_v42 = vpop.f32.mrf.mxu3 }
 0x8dd   : > { %v6201_v53 = vadd.f32 %v6175_v42, %v6037_v57  ;;  %v6568_v4 = vmax.f32 %v6550_v48, 0.0  ;;  %v5549_v50 = vadd.f32 %v16886_v11, %v5385_v12  ;;  %v12336_v12 = vld [vmem:[%s16652_s7 + $0xd8] sm:$0xff]  ;;  %v12310_v11 = vld [vmem:[%s16652_s7 + $0x8] sm:$0xff] }
 0x8df   : > { %v6365_v59 = vadd.f32 %v6339_v5, %v6201_v53  ;;  %v5713_v37 = vadd.f32 %v16888_v3, %v5549_v50  ;;  %v6021_v53 = vpop.f32.mrf.mxu2  ;;  %v12327_v50 = vld [vmem:[%s16652_s7 + $0x90] sm:$0xff]  ;;  %v12318_v3 = vld [vmem:[%s16652_s7 + $0x48] sm:$0xff] }
 0x8e1   : > { %v6529_v58 = vadd.f32 %v6503_v54, %v6365_v59  ;;  %v6040_v54 = vadd.f32 %v6019_v40, %v5876_v0  ;;  %v6347_v49 = vpop.f32.mrf.mxu0  ;;  %v6511_v7 = vpop.f32.mrf.mxu1  ;;  %v5877_v59 = vadd.f32 %v16889_v6, %v5713_v37  ;;  %v12311_v40 = vld [vmem:[%s16652_s7 + $0x10] sm:$0xff]  ;;  %v12317_v37 = vld [vmem:[%s16652_s7 + $0x40] sm:$0xff] }
 0x8e2   : > { %v10712_v0 = vld [vmem:[%s16651_s6 + $0x10] sm:$0xf]  ;;  %v12325_v6 = vld [vmem:[%s16652_s7 + $0x80] sm:$0xff] }
 0x8e3   : > { %v6551_v51 = vadd.f32 %v15841_v47, %v6529_v58  ;;  %v6041_v16 = vadd.f32 %v6021_v53, %v5877_v59  ;;  %v12334_v53 = vld [vmem:[%s16652_s7 + $0xc8] sm:$0xff]  ;;  %v12333_v59 = vld [vmem:[%s16652_s7 + $0xc0] sm:$0xff] }
 0x8e4   : > { %v6178_v32 = vpop.f32.mrf.mxu3 }
 0x8e5   : > { %v6202_v52 = vadd.f32 %v6178_v32, %v6038_v39  ;;  %v6569_v8 = vmax.f32 %v6551_v51, 0.0 }
 0x8e7   : > { %v6580_v17 = vpack.c.bf16 %v6569_v8, %v6568_v4  ;;  %v6366_v1 = vadd.f32 %v6342_v60, %v6202_v52  ;;  %v12305_v4 = vld [vmem:[%s16651_s6 + $0x4] sm:$0xf]  ;;  %v10706_v8 = vld [vmem:[%s16651_s6 + $0x8] sm:$0xf0] }
 0x8e8   : > { %v10709_v62 = vor.u32 %v12305_v4, %v10706_v8  ;;  %v12352_v4 = vld [vmem:[%s16652_s7 + $0x158] sm:$0xff] }
 0x8e9   : > { %v6530_v29 = vadd.f32 %v6506_v33, %v6366_v1  ;;  %v6349_v33 = vpop.f32.mrf.mxu0  ;;  %v6513_v51 = vpop.f32.mrf.mxu1  ;;  %v12324_v1 = vld [vmem:[%s16652_s7 + $0x78] sm:$0xff] }
 0x8ea   : > { %v12360_v8 = vld [vmem:[%s16652_s7 + $0x198] sm:$0xff] }
 0x8eb   : > { %v6552_v19 = vadd.f32 %v15841_v47, %v6530_v29  ;;  %v10717_v29 = vor.u32 %v12307_v55, %v10714_v30  ;;  %v12388_v55 = vld [vmem:[%s16652_s7 + $0x278] sm:$0xff] }
 0x8ec   : > { %v6180_v15 = vpop.f32.mrf.mxu3 }
 0x8ed   : > { %v6203_v27 = vadd.f32 %v6180_v15, %v6039_v28  ;;  %v6570_v57 = vmax.f32 %v6552_v19, 0.0  ;;  %v12330_v28 = vld [vmem:[%s16652_s7 + $0xa8] sm:$0xff]  ;;  %v12308_v19 = vld [vmem:[%s16651_s6 + $0x14] sm:$0x10] }
 0x8ee   : > { %v12338_v15 = vld [vmem:[%s16652_s7 + $0xe8] sm:$0xff] }
 0x8ef   : > { %v6367_v41 = vadd.f32 %v6344_v21, %v6203_v27  ;;  %v12339_v21 = vld [vmem:[%s16652_s7 + $0xf0] sm:$0xff]  ;;  %v12322_v27 = vld [vmem:[%s16652_s7 + $0x68] sm:$0xff] }
 0x8f1   : > { %v6531_v5 = vadd.f32 %v6508_v23, %v6367_v41  ;;  %v12321_v41 = vld [vmem:[%s16652_s7 + $0x60] sm:$0xff] }
 0x8f3   : > { %v6553_v31 = vadd.f32 %v15841_v47, %v6531_v5  ;;  %v12320_v5 = vld [vmem:[%s16652_s7 + $0x58] sm:$0xff] }
 0x8f4   : > { %v6183_v13 = vpop.f32.mrf.mxu3 }
 0x8f5   : > { %v6571_v42 = vmax.f32 %v6553_v31, 0.0  ;;  %v6204_v63 = vadd.f32 %v6183_v13, %v6040_v54  ;;  %v12309_v54 = vld [vmem:[%s16652_s7] sm:$0xff]  ;;  %v10713_v31 = vor.u32 %v12308_v19, %v10712_v0  ;;  %v12319_v13 = vld [vmem:[%s16652_s7 + $0x50] sm:$0xff] }
 0x8f6   : > { %v12395_v0 = vld [vmem:[%s16652_s7 + $0x2b0] sm:$0xff] }
 0x8f7   : > { %v6581_v20 = vpack.c.bf16 %v6571_v42, %v6570_v57  ;;  %v6368_v60 = vadd.f32 %v6347_v49, %v6204_v63  ;;  %v12356_v49 = vld [vmem:[%s16652_s7 + $0x178] sm:$0xff]  ;;  %v12347_v42 = vld [vmem:[%s16652_s7 + $0x130] sm:$0xff]  ;;  %v12346_v63 = vld [vmem:[%s16652_s7 + $0x128] sm:$0xff] }
 0x8f8   : > { %v12348_v57 = vld [vmem:[%s16652_s7 + $0x138] sm:$0xff]  ;;  %v12403_v19 = vld [vmem:[%s16652_s7 + $0x2f0] sm:$0xff] }
 0x8f9   : > { %6616 = vmatpush.bf16.msrb.mxu2 %v6581_v20  ;;  %v6532_v58 = vadd.f32 %v6511_v7, %v6368_v60  ;;  %v12345_v7 = vld [vmem:[%s16652_s7 + $0x120] sm:$0xff]  ;;  %v12326_v20 = vld [vmem:[%s16652_s7 + $0x88] sm:$0xff]  ;;  %v12364_v60 = vld [vmem:[%s16652_s7 + $0x1b8] sm:$0xff] }
 0x8fb   : > { %v6554_v9 = vadd.f32 %v15841_v47, %v6532_v58  ;;  %v12363_v58 = vld [vmem:[%s16652_s7 + $0x1b0] sm:$0xff] }
 0x8fc   : > { %v6185_v18 = vpop.f32.mrf.mxu3 }
 0x8fd   : > { %v6205_v48 = vadd.f32 %v6185_v18, %v6041_v16  ;;  %6617 = vmatpush.bf16.msrb.mxu2 %v6580_v17  ;;  %v6572_v10 = vmax.f32 %v6554_v9, 0.0  ;;  %v12372_v16 = vld [vmem:[%s16652_s7 + $0x1f8] sm:$0xff]  ;;  %v12355_v18 = vld [vmem:[%s16652_s7 + $0x170] sm:$0xff]  ;;  %v12353_v9 = vld [vmem:[%s16652_s7 + $0x160] sm:$0xff] }
 0x8ff   : > { %v6369_v39 = vadd.f32 %v6349_v33, %v6205_v48  ;;  %v12371_v48 = vld [vmem:[%s16652_s7 + $0x1f0] sm:$0xff]  ;;  %v12354_v33 = vld [vmem:[%s16652_s7 + $0x168] sm:$0xff] }
 0x901   : > { %v6533_v32 = vadd.f32 %v6513_v51, %v6369_v39  ;;  %6618 = vmatpush.bf16.msrb.mxu2 %v15895_v22  ;;  %v12316_v22 = vld [vmem:[%s16652_s7 + $0x38] sm:$0xff]  ;;  %v12362_v39 = vld [vmem:[%s16652_s7 + $0x1a8] sm:$0xff] }
 0x902   : > { %v12370_v51 = vld [vmem:[%s16652_s7 + $0x1e8] sm:$0xff] }
 0x903   : > { %v6555_v61 = vadd.f32 %v15841_v47, %v6533_v32  ;;  %v12361_v32 = vld [vmem:[%s16652_s7 + $0x1a0] sm:$0xff] }
 0x905   : > { %v6573_v52 = vmax.f32 %v6555_v61, 0.0  ;;  %6619 = vmatpush.bf16.msrb.mxu2 %v15881_v36  ;;  %v12332_v36 = vld [vmem:[%s16652_s7 + $0xb8] sm:$0xff]  ;;  %v12369_v61 = vld [vmem:[%s16652_s7 + $0x1e0] sm:$0xff] }
 0x906   : > { %6884 = vmatpush.bf16.msra.mxu0 %v12332_v36  ;;  %v12367_v36 = vld [vmem:[%s16652_s7 + $0x1d0] sm:$0xff] }
 0x907   : > { %v6582_v17 = vpack.c.bf16 %v6573_v52, %v6572_v10  ;;  %v12344_v10 = vld [vmem:[%s16652_s7 + $0x118] sm:$0xff]  ;;  %v12343_v52 = vld [vmem:[%s16652_s7 + $0x110] sm:$0xff] }
 0x909   : > { %6620 = vmatpush.bf16.msrb.mxu2 %v15871_v34  ;;  %v6614_v47 = vsel %vm6612_vm2, %v6582_v17, 0  ;;  %v12340_v34 = vld [vmem:[%s16652_s7 + $0xf8] sm:$0xff] }
 0x90a   : > { %6642 = vmatpush.bf16.msrb.mxu3 %v6614_v47  ;;  %6965 = vmatpush.bf16.msrb.mxu1 %v12340_v34  ;;  %v12368_v17 = vld [vmem:[%s16652_s7 + $0x1d8] sm:$0xff]  ;;  %v12351_v47 = vld [vmem:[%s16652_s7 + $0x150] sm:$0xff]  ;;  %v12350_v34 = vld [vmem:[%s16652_s7 + $0x148] sm:$0xff] }
 0x90b   : > { %6885 = vmatpush.bf16.msra.mxu0 %v12331_v35  ;;  %v12358_v35 = vld [vmem:[%s16652_s7 + $0x188] sm:$0xff] }
 0x90d   : > { %6621 = vmatpush.bf16.msrb.mxu2 %v15864_v44  ;;  %10718 = vmatmul.msk.bf16.vlgmr.msrb.gmra.mxu3 %vm6605_vm3, %v10709_v62  ;;  %v10704_v44 = vld [vmem:[%s16651_s6] sm:$0xf]  ;;  %v12359_v62 = vld [vmem:[%s16652_s7 + $0x190] sm:$0xff] }
 0x90e   : > { %6804 = vmatpush.bf16.msra.mxu3 %v12316_v22  ;;  %v10705_v23 = vor.u32 %v12306_v14, %v10704_v44  ;;  %6966 = vmatpush.bf16.msrb.mxu1 %v12339_v21  ;;  %v12342_v22 = vld [vmem:[%s16652_s7 + $0x108] sm:$0xff]  ;;  %v12349_v44 = vld [vmem:[%s16652_s7 + $0x140] sm:$0xff] }
 0x90f   : > { %6886 = vmatpush.bf16.msra.mxu0 %v12330_v28  ;;  %v12357_v14 = vld [vmem:[%s16652_s7 + $0x180] sm:$0xff] }
 0x911   : > { %6622 = vmatpush.bf16.msrb.mxu2 %v15857_v38  ;;  %v12313_v38 = vld [vmem:[%s16652_s7 + $0x20] sm:$0xff] }
 0x912   : > { %6805 = vmatpush.bf16.msra.mxu3 %v12315_v43  ;;  %6967 = vmatpush.bf16.msrb.mxu1 %v12338_v15  ;;  %v12341_v43 = vld [vmem:[%s16652_s7 + $0x100] sm:$0xff] }
 0x915   : > { %6623 = vmatpush.bf16.msrb.mxu2 %v15850_v25  ;;  %v12329_v25 = vld [vmem:[%s16652_s7 + $0xa0] sm:$0xff] }
 0x916   : > { %6806 = vmatpush.bf16.msra.mxu3 %v12314_v26  ;;  %6887 = vmatpush.bf16.msra.mxu0 %v12329_v25  ;;  %v12366_v26 = vld [vmem:[%s16652_s7 + $0x1c8] sm:$0xff] }
 0x917   : > { %6968 = vmatpush.bf16.msrb.mxu1 %v12337_v45 }
 0x918   : > { %6624 = vmatmul.bf16.vlgmr.msrb.gmra.mxu2 %v10705_v23 }
 0x919   : > { %6743 = vmatpush.bf16.msra.mxu2 %v12324_v1  ;;  %v12365_v1 = vld [vmem:[%s16652_s7 + $0x1c0] sm:$0xff] }
 0x91a   : > { %6807 = vmatpush.bf16.msra.mxu3 %v12313_v38  ;;  %6888 = vmatpush.bf16.msra.mxu0 %v12328_v56 }
 0x91b   : > { %6969 = vmatpush.bf16.msrb.mxu1 %v12336_v12  ;;  %v12396_v12 = vld [vmem:[%s16652_s7 + $0x2b8] sm:$0xff] }
 0x91d   : > { %6744 = vmatpush.bf16.msra.mxu2 %v12323_v2  ;;  %10719 = vmatmul.msk.bf16.gmra.mxu3 %vm6605_vm3, %v10717_v29  ;;  %v12380_v2 = vld [vmem:[%s16652_s7 + $0x238] sm:$0xff] }
 0x91e   : > { %6808 = vmatpush.bf16.msra.mxu3 %v12312_v46  ;;  %6889 = vmatpush.bf16.msra.mxu0 %v12327_v50  ;;  %v12379_v50 = vld [vmem:[%s16652_s7 + $0x230] sm:$0xff] }
 0x91f   : > { %6970 = vmatpush.bf16.msrb.mxu1 %v12335_v24  ;;  %v12387_v24 = vld [vmem:[%s16652_s7 + $0x270] sm:$0xff] }
 0x921   : > { %6745 = vmatpush.bf16.msra.mxu2 %v12322_v27 }
 0x922   : > { %6809 = vmatpush.bf16.msra.mxu3 %v12311_v40  ;;  %6890 = vmatpush.bf16.msra.mxu0 %v12326_v20  ;;  %v12384_v20 = vld [vmem:[%s16652_s7 + $0x258] sm:$0xff] }
 0x923   : > { %6971 = vmatpush.bf16.msrb.mxu1 %v12334_v53 }
 0x925   : > { %6746 = vmatpush.bf16.msra.mxu2 %v12321_v41 }
 0x926   : > { %6810 = vmatpush.bf16.msra.mxu3 %v12310_v11  ;;  %6891 = vmatpush.bf16.msra.mxu0 %v12325_v6  ;;  %v12404_v11 = vld [vmem:[%s16652_s7 + $0x2f8] sm:$0xff] }
 0x927   : > { %6972 = vmatpush.bf16.msrb.mxu1 %v12333_v59 }
 0x928   : > { %6629 = vmatmul.bf16.gmra.mxu2 %v10713_v31  ;;  %v12394_v31 = vld [vmem:[%s16652_s7 + $0x2a8] sm:$0xff] }
 0x929   : > { %6747 = vmatpush.bf16.msra.mxu2 %v12320_v5  ;;  %v12378_v5 = vld [vmem:[%s16652_s7 + $0x228] sm:$0xff] }
 0x92a   : > { %6811 = vmatpush.bf16.msra.mxu3 %v12309_v54  ;;  %7208 = vmatpush.bf16.msrb.mxu0 %v12364_v60  ;;  %v12386_v54 = vld [vmem:[%s16652_s7 + $0x268] sm:$0xff] }
 0x92b   : > { %7289 = vmatpush.bf16.msra.mxu1 %v12372_v16  ;;  %v12392_v16 = vld [vmem:[%s16652_s7 + $0x298] sm:$0xff] }
 0x92d   : > { %6748 = vmatpush.bf16.msra.mxu2 %v12319_v13  ;;  %v12377_v13 = vld [vmem:[%s16652_s7 + $0x220] sm:$0xff] }
 0x92e   : > { %7127 = vmatpush.bf16.msrb.mxu3 %v12356_v49  ;;  %7209 = vmatpush.bf16.msrb.mxu0 %v12363_v58  ;;  %v12402_v49 = vld [vmem:[%s16652_s7 + $0x2e8] sm:$0xff] }
 0x92f   : > { %7290 = vmatpush.bf16.msra.mxu1 %v12371_v48 }
 0x931   : > { %6749 = vmatpush.bf16.msra.mxu2 %v12318_v3  ;;  %v12385_v3 = vld [vmem:[%s16652_s7 + $0x260] sm:$0xff] }
 0x932   : > { %7128 = vmatpush.bf16.msrb.mxu3 %v12355_v18  ;;  %7210 = vmatpush.bf16.msrb.mxu0 %v12362_v39  ;;  %v12400_v18 = vld [vmem:[%s16652_s7 + $0x2d8] sm:$0xff]  ;;  %v12383_v39 = vld [vmem:[%s16652_s7 + $0x250] sm:$0xff] }
 0x933   : > { %7291 = vmatpush.bf16.msra.mxu1 %v12370_v51  ;;  %v12391_v51 = vld [vmem:[%s16652_s7 + $0x290] sm:$0xff] }
 0x935   : > { %6750 = vmatpush.bf16.msra.mxu2 %v12317_v37  ;;  %v12393_v37 = vld [vmem:[%s16652_s7 + $0x2a0] sm:$0xff] }
 0x936   : > { %7129 = vmatpush.bf16.msrb.mxu3 %v12354_v33  ;;  %7211 = vmatpush.bf16.msrb.mxu0 %v12361_v32  ;;  %v12375_v33 = vld [vmem:[%s16652_s7 + $0x210] sm:$0xff]  ;;  %v12374_v32 = vld [vmem:[%s16652_s7 + $0x208] sm:$0xff] }
 0x937   : > { %7292 = vmatpush.bf16.msra.mxu1 %v12369_v61  ;;  %v12382_v61 = vld [vmem:[%s16652_s7 + $0x248] sm:$0xff] }
 0x939   : > { %7046 = vmatpush.bf16.msrb.mxu2 %v12348_v57 }
 0x93a   : > { %7130 = vmatpush.bf16.msrb.mxu3 %v12353_v9  ;;  %7212 = vmatpush.bf16.msrb.mxu0 %v12360_v8  ;;  %v12399_v9 = vld [vmem:[%s16652_s7 + $0x2d0] sm:$0xff]  ;;  %v12381_v8 = vld [vmem:[%s16652_s7 + $0x240] sm:$0xff] }
 0x93b   : > { %7293 = vmatpush.bf16.msra.mxu1 %v12368_v17  ;;  %v12412_v17 = vld [vmem:[%s16652_s7 + $0x338] sm:$0xff] }
 0x93d   : > { %7047 = vmatpush.bf16.msrb.mxu2 %v12347_v42  ;;  %v12401_v42 = vld [vmem:[%s16652_s7 + $0x2e0] sm:$0xff] }
 0x93e   : > { %7131 = vmatpush.bf16.msrb.mxu3 %v12352_v4  ;;  %7213 = vmatpush.bf16.msrb.mxu0 %v12359_v62  ;;  %v12373_v4 = vld [vmem:[%s16652_s7 + $0x200] sm:$0xff]  ;;  %v12428_v62 = vld [vmem:[%s16652_s7 + $0x3b8] sm:$0xff] }
 0x93f   : > { %7294 = vmatpush.bf16.msra.mxu1 %v12367_v36  ;;  %v12397_v36 = vld [vmem:[%s16652_s7 + $0x2c0] sm:$0xff] }
 0x941   : > { %7048 = vmatpush.bf16.msrb.mxu2 %v12346_v63 }
 0x942   : > { %7132 = vmatpush.bf16.msrb.mxu3 %v12351_v47  ;;  %7214 = vmatpush.bf16.msrb.mxu0 %v12358_v35  ;;  %v12389_v47 = vld [vmem:[%s16652_s7 + $0x280] sm:$0xff] }
 0x943   : > { %7295 = vmatpush.bf16.msra.mxu1 %v12366_v26  ;;  %v12411_v26 = vld [vmem:[%s16652_s7 + $0x330] sm:$0xff] }
 0x945   : > { %7049 = vmatpush.bf16.msrb.mxu2 %v12345_v7  ;;  %v12376_v7 = vld [vmem:[%s16652_s7 + $0x218] sm:$0xff] }
 0x946   : > { %7133 = vmatpush.bf16.msrb.mxu3 %v12350_v34  ;;  %7215 = vmatpush.bf16.msrb.mxu0 %v12357_v14 }
 0x947   : > { %7296 = vmatpush.bf16.msra.mxu1 %v12365_v1 }
 0x949   : > { %7050 = vmatpush.bf16.msrb.mxu2 %v12344_v10  ;;  %v12390_v10 = vld [vmem:[%s16652_s7 + $0x288] sm:$0xff] }
 0x94a   : > { %7134 = vmatpush.bf16.msrb.mxu3 %v12349_v44  ;;  %v12419_v44 = vld [vmem:[%s16652_s7 + $0x370] sm:$0xff] }
 0x94d   : > { %7051 = vmatpush.bf16.msrb.mxu2 %v12343_v52  ;;  %v12398_v52 = vld [vmem:[%s16652_s7 + $0x2c8] sm:$0xff] }
 0x951   : > { %7052 = vmatpush.bf16.msrb.mxu2 %v12342_v22  ;;  %v12420_v22 = vld [vmem:[%s16652_s7 + $0x378] sm:$0xff] }
 0x955   : > { %7053 = vmatpush.bf16.msrb.mxu2 %v12341_v43  ;;  %v12436_v43 = vld [vmem:[%s16652_s7 + $0x3f8] sm:$0xff] }
 0x990   : > { %v6644_v21 = vpop.f32.mrf.mxu3 }
 0x998   : > { %v6646_v15 = vpop.f32.mrf.mxu3 }
 0x99b   : > { %v6625_v38 = vpop.f32.mrf.mxu2 }
 0x99c   : > { %v6645_v28 = vadd.f32 %v6644_v21, %v6625_v38 }
 0x99e   : > { %6654 = vst [vmem:[#allocation3] sm:$0xff] %v6645_v28  ;;  %v12427_v28 = vld [vmem:[%s16652_s7 + $0x3b0] sm:$0xff] }
 0x9a3   : > { %v6627_v23 = vpop.f32.mrf.mxu2 }
 0x9a4   : > { %v6647_v30 = vadd.f32 %v6646_v15, %v6627_v23  ;;  %v12435_v23 = vld [vmem:[%s16652_s7 + $0x3f0] sm:$0xff] }
 0x9a5   : > { %v6676_v46 = vld [vmem:[#allocation3 + $0x1] sm:$0x1]  ;;  %v6658_v25 = vld [vmem:[#allocation3] sm:$0x1]  ;;  %v6817_v45 = vld [vmem:[#allocation3 + $0x2] sm:$0x1] }
 0x9a6   : > { %v6677_v29 = vpack.c.bf16 %v6676_v46, %v6676_v46  ;;  %v6659_v27 = vpack.c.bf16 %v6658_v25, %v6658_v25  ;;  %v6818_v40 = vpack.c.bf16 %v6817_v45, %v6817_v45  ;;  %v6898_v56 = vld [vmem:[#allocation3 + $0x3] sm:$0x1]  ;;  %6655 = vst [vmem:[#allocation3 + $0x8] sm:$0xff] %v6647_v30  ;;  %v6979_v57 = vld [vmem:[#allocation3 + $0x4] sm:$0x1]  ;;  %v12409_v45 = vld [vmem:[%s16652_s7 + $0x320] sm:$0xff] }
 0x9a7   : > { %v6899_v41 = vpack.c.bf16 %v6898_v56, %v6898_v56  ;;  %v7060_v63 = vld [vmem:[#allocation3 + $0x5] sm:$0x1]  ;;  %v7141_v53 = vld [vmem:[#allocation3 + $0x6] sm:$0x1]  ;;  %v7222_v6 = vld [vmem:[#allocation3 + $0x7] sm:$0x1]  ;;  %v6980_v59 = vpack.c.bf16 %v6979_v57, %v6979_v57 }
 0x9a8   : > { %6751 = vmatmul.bf16.vlgmr.msra.gmra.mxu2 %v6677_v29  ;;  %6812 = vmatmul.bf16.vlgmr.msra.gmra.mxu3 %v6659_v27  ;;  %v7061_v60 = vpack.c.bf16 %v7060_v63, %v7060_v63  ;;  %v7142_v58 = vpack.c.bf16 %v7141_v53, %v7141_v53  ;;  %v7223_v48 = vpack.c.bf16 %v7222_v6, %v7222_v6  ;;  %v12418_v30 = vld [vmem:[%s16652_s7 + $0x368] sm:$0xff]  ;;  %v12417_v29 = vld [vmem:[%s16652_s7 + $0x360] sm:$0xff]  ;;  %v12408_v56 = vld [vmem:[%s16652_s7 + $0x318] sm:$0xff] }
 0x9a9   : > { %7370 = vmatpush.bf16.msra.mxu2 %v12380_v2  ;;  %7451 = vmatpush.bf16.msra.mxu3 %v12388_v55  ;;  %v12410_v55 = vld [vmem:[%s16652_s7 + $0x328] sm:$0xff]  ;;  %v12425_v27 = vld [vmem:[%s16652_s7 + $0x3a0] sm:$0xff]  ;;  %v12444_v63 = vld [vmem:[%s16652_s7 + $0x438] sm:$0xff] }
 0x9aa   : > { %6892 = vmatmul.bf16.vlgmr.msra.gmra.mxu0 %v6818_v40  ;;  %6973 = vmatmul.bf16.vlgmr.msrb.gmra.mxu1 %v6899_v41  ;;  %v12426_v46 = vld [vmem:[%s16652_s7 + $0x3a8] sm:$0xff]  ;;  %v12433_v40 = vld [vmem:[%s16652_s7 + $0x3e0] sm:$0xff]  ;;  %v12424_v41 = vld [vmem:[%s16652_s7 + $0x398] sm:$0xff] }
 0x9ab   : > { %7532 = vmatpush.bf16.msra.mxu0 %v12396_v12  ;;  %7613 = vmatpush.bf16.msrb.mxu1 %v12404_v11  ;;  %v12434_v25 = vld [vmem:[%s16652_s7 + $0x3e8] sm:$0xff]  ;;  %v12416_v12 = vld [vmem:[%s16652_s7 + $0x358] sm:$0xff]  ;;  %v12405_v57 = vld [vmem:[%s16652_s7 + $0x300] sm:$0xff] }
 0x9ac   : > { %v12432_v11 = vld [vmem:[%s16652_s7 + $0x3d8] sm:$0xff]  ;;  %v12429_v53 = vld [vmem:[%s16652_s7 + $0x3c0] sm:$0xff] }
 0x9ad   : > { %7371 = vmatpush.bf16.msra.mxu2 %v12379_v50  ;;  %7452 = vmatpush.bf16.msra.mxu3 %v12387_v24  ;;  %v7303_v34 = vld [vmem:[#allocation3 + $0x8] sm:$0x1]  ;;  %v7384_v35 = vld [vmem:[#allocation3 + $0x9] sm:$0x1]  ;;  %v7465_v14 = vld [vmem:[#allocation3 + $0xa] sm:$0x1] }
 0x9ae   : > { %v7546_v1 = vld [vmem:[#allocation3 + $0xb] sm:$0x1]  ;;  %v7304_v21 = vpack.c.bf16 %v7303_v34, %v7303_v34  ;;  %v7385_v38 = vpack.c.bf16 %v7384_v35, %v7384_v35  ;;  %v7466_v15 = vpack.c.bf16 %v7465_v14, %v7465_v14  ;;  %v7627_v6 = vld [vmem:[#allocation3 + $0xc] sm:$0x1]  ;;  %v12448_v34 = vld [vmem:[%s16652_s7 + $0x458] sm:$0xff] }
 0x9af   : > { %7533 = vmatpush.bf16.msra.mxu0 %v12395_v0  ;;  %7614 = vmatpush.bf16.msrb.mxu1 %v12403_v19  ;;  %v7547_v2 = vpack.c.bf16 %v7546_v1, %v7546_v1  ;;  %v12407_v50 = vld [vmem:[%s16652_s7 + $0x310] sm:$0xff]  ;;  %v12456_v35 = vld [vmem:[%s16652_s7 + $0x498] sm:$0xff] }
 0x9b0   : > { %v12415_v24 = vld [vmem:[%s16652_s7 + $0x350] sm:$0xff] }
 0x9b1   : > { %7372 = vmatpush.bf16.msra.mxu2 %v12378_v5  ;;  %7453 = vmatpush.bf16.msra.mxu3 %v12386_v54  ;;  %v12423_v0 = vld [vmem:[%s16652_s7 + $0x390] sm:$0xff]  ;;  %v12406_v5 = vld [vmem:[%s16652_s7 + $0x308] sm:$0xff] }
 0x9b2   : > { %v12431_v19 = vld [vmem:[%s16652_s7 + $0x3d0] sm:$0xff]  ;;  %v12414_v54 = vld [vmem:[%s16652_s7 + $0x348] sm:$0xff] }
 0x9b3   : > { %7534 = vmatpush.bf16.msra.mxu0 %v12394_v31  ;;  %7615 = vmatpush.bf16.msrb.mxu1 %v12402_v49  ;;  %v6630_v31 = vpop.f32.mrf.mxu2  ;;  %v6649_v49 = vpop.f32.mrf.mxu3  ;;  %v12447_v14 = vld [vmem:[%s16652_s7 + $0x450] sm:$0xff] }
 0x9b4   : > { %v12455_v1 = vld [vmem:[%s16652_s7 + $0x490] sm:$0xff] }
 0x9b5   : > { %7373 = vmatpush.bf16.msra.mxu2 %v12377_v13  ;;  %7454 = vmatpush.bf16.msra.mxu3 %v12385_v3  ;;  %v12422_v13 = vld [vmem:[%s16652_s7 + $0x388] sm:$0xff] }
 0x9b6   : > { %v12430_v3 = vld [vmem:[%s16652_s7 + $0x3c8] sm:$0xff] }
 0x9b7   : > { %7535 = vmatpush.bf16.msra.mxu0 %v12393_v37  ;;  %7616 = vmatpush.bf16.msrb.mxu1 %v12401_v42  ;;  %v6650_v37 = vadd.f32 %v6649_v49, %v6630_v31  ;;  %v12413_v42 = vld [vmem:[%s16652_s7 + $0x340] sm:$0xff] }
 0x9b8   : > { %7054 = vmatmul.bf16.vlgmr.msrb.gmra.mxu2 %v6980_v59  ;;  %7135 = vmatmul.bf16.vlgmr.msrb.gmra.mxu3 %v7061_v60  ;;  %v12460_v59 = vld [vmem:[%s16652_s7 + $0x4b8] sm:$0xff] }
 0x9b9   : > { %7374 = vmatpush.bf16.msra.mxu2 %v12376_v7  ;;  %7455 = vmatpush.bf16.msra.mxu3 %v12384_v20  ;;  %6656 = vst [vmem:[#allocation3 + $0x10] sm:$0xff] %v6650_v37  ;;  %v12452_v7 = vld [vmem:[%s16652_s7 + $0x478] sm:$0xff]  ;;  %v12421_v20 = vld [vmem:[%s16652_s7 + $0x380] sm:$0xff]  ;;  %v12474_v37 = vld [vmem:[%s16652_s7 + $0x528] sm:$0xff] }
 0x9ba   : > { %7216 = vmatmul.bf16.vlgmr.msrb.gmra.mxu0 %v7142_v58  ;;  %7297 = vmatmul.bf16.vlgmr.msra.gmra.mxu1 %v7223_v48  ;;  %v12468_v60 = vld [vmem:[%s16652_s7 + $0x4f8] sm:$0xff]  ;;  %v12443_v58 = vld [vmem:[%s16652_s7 + $0x430] sm:$0xff] }
 0x9bb   : > { %7536 = vmatpush.bf16.msra.mxu0 %v12392_v16  ;;  %7617 = vmatpush.bf16.msrb.mxu1 %v12400_v18  ;;  %v7708_v16 = vld [vmem:[#allocation3 + $0xd] sm:$0x1]  ;;  %v7789_v18 = vld [vmem:[#allocation3 + $0xe] sm:$0x1] }
 0x9bc   : > { %v12451_v48 = vld [vmem:[%s16652_s7 + $0x470] sm:$0xff] }
 0x9bd   : > { %7375 = vmatpush.bf16.msra.mxu2 %v12375_v33  ;;  %7456 = vmatpush.bf16.msra.mxu3 %v12383_v39  ;;  %v7870_v33 = vld [vmem:[#allocation3 + $0xf] sm:$0x1]  ;;  %v7628_v39 = vpack.c.bf16 %v7627_v6, %v7627_v6  ;;  %v12497_v6 = vld [vmem:[%s16652_s7 + $0x5e0] sm:$0xff] }
 0x9bf   : > { %7537 = vmatpush.bf16.msra.mxu0 %v12391_v51  ;;  %7618 = vmatpush.bf16.msrb.mxu1 %v12399_v9  ;;  %v7709_v51 = vpack.c.bf16 %v7708_v16, %v7708_v16  ;;  %v12459_v9 = vld [vmem:[%s16652_s7 + $0x4b0] sm:$0xff]  ;;  %v12488_v16 = vld [vmem:[%s16652_s7 + $0x598] sm:$0xff] }
 0x9c1   : > { %7376 = vmatpush.bf16.msra.mxu2 %v12374_v32  ;;  %7457 = vmatpush.bf16.msra.mxu3 %v12382_v61  ;;  %v12467_v32 = vld [vmem:[%s16652_s7 + $0x4f0] sm:$0xff]  ;;  %v7790_v61 = vpack.c.bf16 %v7789_v18, %v7789_v18  ;;  %v12496_v18 = vld [vmem:[%s16652_s7 + $0x5d8] sm:$0xff] }
 0x9c3   : > { %7538 = vmatpush.bf16.msra.mxu0 %v12390_v10  ;;  %7619 = vmatpush.bf16.msrb.mxu1 %v12398_v52  ;;  %v7871_v10 = vpack.c.bf16 %v7870_v33, %v7870_v33  ;;  %v12442_v52 = vld [vmem:[%s16652_s7 + $0x428] sm:$0xff]  ;;  %v12487_v33 = vld [vmem:[%s16652_s7 + $0x590] sm:$0xff] }
 0x9c5   : > { %7377 = vmatpush.bf16.msra.mxu2 %v12373_v4  ;;  %7458 = vmatpush.bf16.msra.mxu3 %v12381_v8  ;;  %v12450_v4 = vld [vmem:[%s16652_s7 + $0x468] sm:$0xff] }
 0x9c6   : > { %v12458_v8 = vld [vmem:[%s16652_s7 + $0x4a8] sm:$0xff] }
 0x9c7   : > { %7539 = vmatpush.bf16.msra.mxu0 %v12389_v47  ;;  %7620 = vmatpush.bf16.msrb.mxu1 %v12397_v36  ;;  %v12449_v47 = vld [vmem:[%s16652_s7 + $0x460] sm:$0xff] }
 0x9c8   : > { %7378 = vmatmul.bf16.vlgmr.msra.gmra.mxu2 %v7304_v21  ;;  %7459 = vmatmul.bf16.vlgmr.msra.gmra.mxu3 %v7385_v38  ;;  %v12465_v36 = vld [vmem:[%s16652_s7 + $0x4e0] sm:$0xff]  ;;  %v12463_v21 = vld [vmem:[%s16652_s7 + $0x4d0] sm:$0xff]  ;;  %v6632_v38 = vpop.f32.mrf.mxu2 }
 0x9c9   : > { %7694 = vmatpush.bf16.msrb.mxu2 %v12412_v17  ;;  %7775 = vmatpush.bf16.msrb.mxu3 %v12420_v22  ;;  %v12466_v17 = vld [vmem:[%s16652_s7 + $0x4e8] sm:$0xff]  ;;  %v12441_v22 = vld [vmem:[%s16652_s7 + $0x420] sm:$0xff] }
 0x9ca   : > { %7540 = vmatmul.bf16.vlgmr.msra.gmra.mxu0 %v7466_v15  ;;  %7621 = vmatmul.bf16.vlgmr.msrb.gmra.mxu1 %v7547_v2  ;;  %v12438_v15 = vld [vmem:[%s16652_s7 + $0x408] sm:$0xff] }
 0x9cb   : > { %7856 = vmatpush.bf16.msrb.mxu0 %v12428_v62  ;;  %7937 = vmatpush.bf16.msra.mxu1 %v12436_v43  ;;  %v12457_v62 = vld [vmem:[%s16652_s7 + $0x4a0] sm:$0xff]  ;;  %v12440_v43 = vld [vmem:[%s16652_s7 + $0x418] sm:$0xff]  ;;  %v12446_v2 = vld [vmem:[%s16652_s7 + $0x448] sm:$0xff] }
 0x9cd   : > { %7695 = vmatpush.bf16.msrb.mxu2 %v12411_v26  ;;  %7776 = vmatpush.bf16.msrb.mxu3 %v12419_v44  ;;  %v12464_v26 = vld [vmem:[%s16652_s7 + $0x4d8] sm:$0xff]  ;;  %v12439_v44 = vld [vmem:[%s16652_s7 + $0x410] sm:$0xff] }
 0x9cf   : > { %7857 = vmatpush.bf16.msrb.mxu0 %v12427_v28  ;;  %7938 = vmatpush.bf16.msra.mxu1 %v12435_v23  ;;  %v6651_v28 = vpop.f32.mrf.mxu3 }
 0x9d0   : > { %v6652_v23 = vadd.f32 %v6651_v28, %v6632_v38  ;;  %v12504_v28 = vld [vmem:[%s16652_s7 + $0x618] sm:$0xff] }
 0x9d1   : > { %7696 = vmatpush.bf16.msrb.mxu2 %v12410_v55  ;;  %7777 = vmatpush.bf16.msrb.mxu3 %v12418_v30  ;;  %v12454_v55 = vld [vmem:[%s16652_s7 + $0x488] sm:$0xff] }
 0x9d2   : > { %6657 = vst [vmem:[#allocation3 + $0x18] sm:$0x1] %v6652_v23  ;;  %v12462_v30 = vld [vmem:[%s16652_s7 + $0x4c8] sm:$0xff] }
 0x9d3   : > { %7858 = vmatpush.bf16.msrb.mxu0 %v12426_v46  ;;  %7939 = vmatpush.bf16.msra.mxu1 %v12434_v25  ;;  %v12437_v46 = vld [vmem:[%s16652_s7 + $0x400] sm:$0xff]  ;;  %v12476_v25 = vld [vmem:[%s16652_s7 + $0x538] sm:$0xff] }
 0x9d5   : > { %7697 = vmatpush.bf16.msrb.mxu2 %v12409_v45  ;;  %7778 = vmatpush.bf16.msrb.mxu3 %v12417_v29  ;;  %v12445_v45 = vld [vmem:[%s16652_s7 + $0x440] sm:$0xff]  ;;  %v12484_v29 = vld [vmem:[%s16652_s7 + $0x578] sm:$0xff] }
 0x9d7   : > { %7859 = vmatpush.bf16.msrb.mxu0 %v12425_v27  ;;  %7940 = vmatpush.bf16.msra.mxu1 %v12433_v40  ;;  %v7951_v27 = vld [vmem:[#allocation3 + $0x10] sm:$0x1]  ;;  %v8032_v40 = vld [vmem:[#allocation3 + $0x11] sm:$0x1] }
 0x9d9   : > { %7698 = vmatpush.bf16.msrb.mxu2 %v12408_v56  ;;  %7779 = vmatpush.bf16.msrb.mxu3 %v12416_v12  ;;  %v12453_v56 = vld [vmem:[%s16652_s7 + $0x480] sm:$0xff]  ;;  %v12492_v12 = vld [vmem:[%s16652_s7 + $0x5b8] sm:$0xff] }
 0x9db   : > { %7860 = vmatpush.bf16.msrb.mxu0 %v12424_v41  ;;  %7941 = vmatpush.bf16.msra.mxu1 %v12432_v11  ;;  %v12461_v41 = vld [vmem:[%s16652_s7 + $0x4c0] sm:$0xff]  ;;  %v12500_v11 = vld [vmem:[%s16652_s7 + $0x5f8] sm:$0xff] }
 0x9dd   : > { %7699 = vmatpush.bf16.msrb.mxu2 %v12407_v50  ;;  %7780 = vmatpush.bf16.msrb.mxu3 %v12415_v24  ;;  %v8113_v50 = vld [vmem:[#allocation3 + $0x12] sm:$0x1]  ;;  %v8194_v24 = vld [vmem:[#allocation3 + $0x13] sm:$0x1] }
 0x9de   : > { %v8114_v31 = vpack.c.bf16 %v8113_v50, %v8113_v50  ;;  %v8195_v49 = vpack.c.bf16 %v8194_v24, %v8194_v24 }
 0x9df   : > { %7861 = vmatpush.bf16.msrb.mxu0 %v12423_v0  ;;  %7942 = vmatpush.bf16.msra.mxu1 %v12431_v19  ;;  %v7952_v0 = vpack.c.bf16 %v7951_v27, %v7951_v27  ;;  %v8033_v19 = vpack.c.bf16 %v8032_v40, %v8032_v40 }
 0x9e1   : > { %7700 = vmatpush.bf16.msrb.mxu2 %v12406_v5  ;;  %7781 = vmatpush.bf16.msrb.mxu3 %v12414_v54  ;;  %v12475_v5 = vld [vmem:[%s16652_s7 + $0x530] sm:$0xff] }
 0x9e2   : > { %v12483_v54 = vld [vmem:[%s16652_s7 + $0x570] sm:$0xff] }
 0x9e3   : > { %7862 = vmatpush.bf16.msrb.mxu0 %v12422_v13  ;;  %7943 = vmatpush.bf16.msra.mxu1 %v12430_v3  ;;  %v12491_v13 = vld [vmem:[%s16652_s7 + $0x5b0] sm:$0xff] }
 0x9e4   : > { %v12499_v3 = vld [vmem:[%s16652_s7 + $0x5f0] sm:$0xff] }
 0x9e5   : > { %7701 = vmatpush.bf16.msrb.mxu2 %v12405_v57  ;;  %7782 = vmatpush.bf16.msrb.mxu3 %v12413_v42  ;;  %v12482_v57 = vld [vmem:[%s16652_s7 + $0x568] sm:$0xff] }
 0x9e6   : > { %v12490_v42 = vld [vmem:[%s16652_s7 + $0x5a8] sm:$0xff] }
 0x9e7   : > { %7863 = vmatpush.bf16.msrb.mxu0 %v12421_v20  ;;  %7944 = vmatpush.bf16.msra.mxu1 %v12429_v53  ;;  %v12481_v20 = vld [vmem:[%s16652_s7 + $0x560] sm:$0xff] }
 0x9e8   : > { %7702 = vmatmul.bf16.vlgmr.msrb.gmra.mxu2 %v7628_v39  ;;  %7783 = vmatmul.bf16.vlgmr.msrb.gmra.mxu3 %v7709_v51  ;;  %v12489_v53 = vld [vmem:[%s16652_s7 + $0x5a0] sm:$0xff]  ;;  %v12495_v39 = vld [vmem:[%s16652_s7 + $0x5d0] sm:$0xff]  ;;  %v12470_v51 = vld [vmem:[%s16652_s7 + $0x508] sm:$0xff] }
 0x9e9   : > { %8018 = vmatpush.bf16.msra.mxu2 %v12444_v63  ;;  %8099 = vmatpush.bf16.msra.mxu3 %v12452_v7  ;;  %v12498_v63 = vld [vmem:[%s16652_s7 + $0x5e8] sm:$0xff]  ;;  %v12473_v7 = vld [vmem:[%s16652_s7 + $0x520] sm:$0xff] }
 0x9ea   : > { %7864 = vmatmul.bf16.vlgmr.msrb.gmra.mxu0 %v7790_v61  ;;  %7945 = vmatmul.bf16.vlgmr.msra.gmra.mxu1 %v7871_v10  ;;  %v12494_v61 = vld [vmem:[%s16652_s7 + $0x5c8] sm:$0xff]  ;;  %v12469_v10 = vld [vmem:[%s16652_s7 + $0x500] sm:$0xff] }
 0x9eb   : > { %8180 = vmatpush.bf16.msra.mxu0 %v12460_v59  ;;  %8261 = vmatpush.bf16.msrb.mxu1 %v12468_v60  ;;  %v12472_v59 = vld [vmem:[%s16652_s7 + $0x518] sm:$0xff] }
 0x9ec   : > { %v12480_v60 = vld [vmem:[%s16652_s7 + $0x558] sm:$0xff] }
 0x9ed   : > { %8019 = vmatpush.bf16.msra.mxu2 %v12443_v58  ;;  %8100 = vmatpush.bf16.msra.mxu3 %v12451_v48  ;;  %v12471_v58 = vld [vmem:[%s16652_s7 + $0x510] sm:$0xff] }
 0x9ee   : > { %v12479_v48 = vld [vmem:[%s16652_s7 + $0x550] sm:$0xff] }
 0x9ef   : > { %8181 = vmatpush.bf16.msra.mxu0 %v12459_v9  ;;  %8262 = vmatpush.bf16.msrb.mxu1 %v12467_v32  ;;  %v12478_v9 = vld [vmem:[%s16652_s7 + $0x548] sm:$0xff] }
 0x9f0   : > { %v12486_v32 = vld [vmem:[%s16652_s7 + $0x588] sm:$0xff] }
 0x9f1   : > { %8020 = vmatpush.bf16.msra.mxu2 %v12442_v52  ;;  %8101 = vmatpush.bf16.msra.mxu3 %v12450_v4  ;;  %v12477_v52 = vld [vmem:[%s16652_s7 + $0x540] sm:$0xff]  ;;  %v12508_v4 = vld [vmem:[%s16652_s7 + $0x638] sm:$0xff] }
 0x9f3   : > { %8182 = vmatpush.bf16.msra.mxu0 %v12458_v8  ;;  %8263 = vmatpush.bf16.msrb.mxu1 %v12466_v17  ;;  %v8275_v8 = vld [vmem:[#allocation3 + $0x14] sm:$0x1]  ;;  %v8356_v17 = vld [vmem:[#allocation3 + $0x15] sm:$0x1] }
 0x9f5   : > { %8021 = vmatpush.bf16.msra.mxu2 %v12441_v22  ;;  %8102 = vmatpush.bf16.msra.mxu3 %v12449_v47  ;;  %v12485_v22 = vld [vmem:[%s16652_s7 + $0x580] sm:$0xff] }
 0x9f6   : > { %v12493_v47 = vld [vmem:[%s16652_s7 + $0x5c0] sm:$0xff] }
 0x9f7   : > { %8183 = vmatpush.bf16.msra.mxu0 %v12457_v62  ;;  %8264 = vmatpush.bf16.msrb.mxu1 %v12465_v36  ;;  %v8437_v62 = vld [vmem:[#allocation3 + $0x16] sm:$0x1]  ;;  %v12507_v36 = vld [vmem:[%s16652_s7 + $0x630] sm:$0xff] }
 0x9f9   : > { %8022 = vmatpush.bf16.msra.mxu2 %v12440_v43  ;;  %8103 = vmatpush.bf16.msra.mxu3 %v12448_v34  ;;  %v8276_v43 = vpack.c.bf16 %v8275_v8, %v8275_v8  ;;  %v8357_v34 = vpack.c.bf16 %v8356_v17, %v8356_v17  ;;  %v12515_v17 = vld [vmem:[%s16654_s9 + $0x30] sm:$0xff] }
 0x9fb   : > { %8184 = vmatpush.bf16.msra.mxu0 %v12456_v35  ;;  %8265 = vmatpush.bf16.msrb.mxu1 %v12464_v26  ;;  %v8518_v35 = vld [vmem:[#allocation3 + $0x17] sm:$0x1]  ;;  %v8438_v26 = vpack.c.bf16 %v8437_v62, %v8437_v62 }
 0x9fd   : > { %8023 = vmatpush.bf16.msra.mxu2 %v12439_v44  ;;  %8104 = vmatpush.bf16.msra.mxu3 %v12447_v14  ;;  %v8519_v44 = vpack.c.bf16 %v8518_v35, %v8518_v35  ;;  %v12506_v14 = vld [vmem:[%s16652_s7 + $0x628] sm:$0xff] }
 0x9ff   : > { %8185 = vmatpush.bf16.msra.mxu0 %v12455_v1  ;;  %8266 = vmatpush.bf16.msrb.mxu1 %v12463_v21  ;;  %v12505_v1 = vld [vmem:[%s16652_s7 + $0x620] sm:$0xff] }
 0xa01   : > { %8024 = vmatpush.bf16.msra.mxu2 %v12438_v15  ;;  %8105 = vmatpush.bf16.msra.mxu3 %v12446_v2 }
 0xa03   : > { %8186 = vmatpush.bf16.msra.mxu0 %v12454_v55  ;;  %8267 = vmatpush.bf16.msrb.mxu1 %v12462_v30  ;;  %v12503_v55 = vld [vmem:[%s16652_s7 + $0x610] sm:$0xff] }
 0xa05   : > { %8025 = vmatpush.bf16.msra.mxu2 %v12437_v46  ;;  %8106 = vmatpush.bf16.msra.mxu3 %v12445_v45 }
 0xa07   : > { %8187 = vmatpush.bf16.msra.mxu0 %v12453_v56  ;;  %8268 = vmatpush.bf16.msrb.mxu1 %v12461_v41  ;;  %v12501_v56 = vld [vmem:[%s16652_s7 + $0x600] sm:$0xff] }
 0xa08   : > { %8026 = vmatmul.bf16.vlgmr.msra.gmra.mxu2 %v7952_v0  ;;  %8107 = vmatmul.bf16.vlgmr.msra.gmra.mxu3 %v8033_v19 }
 0xa09   : > { %8342 = vmatpush.bf16.msrb.mxu2 %v12476_v25  ;;  %8423 = vmatpush.bf16.msrb.mxu3 %v12484_v29  ;;  %v12502_v29 = vld [vmem:[%s16652_s7 + $0x608] sm:$0xff] }
 0xa0a   : > { %8188 = vmatmul.bf16.vlgmr.msra.gmra.mxu0 %v8114_v31  ;;  %8269 = vmatmul.bf16.vlgmr.msrb.gmra.mxu1 %v8195_v49 }
 0xa0b   : > { %8504 = vmatpush.bf16.msrb.mxu0 %v12492_v12  ;;  %8585 = vmatpush.bf16.msra.mxu1 %v12500_v11  ;;  %v8599_v12 = vld [vmem:[#allocation3 + $0x18] sm:$0x1] }
 0xa0c   : > { %v8600_v50 = vpack.c.bf16 %v8599_v12, %v8599_v12 }
 0xa0d   : > { %8343 = vmatpush.bf16.msrb.mxu2 %v12475_v5  ;;  %8424 = vmatpush.bf16.msrb.mxu3 %v12483_v54 }
 0xa0f   : > { %8505 = vmatpush.bf16.msrb.mxu0 %v12491_v13  ;;  %8586 = vmatpush.bf16.msra.mxu1 %v12499_v3 }
 0xa11   : > { %8344 = vmatpush.bf16.msrb.mxu2 %v12474_v37  ;;  %8425 = vmatpush.bf16.msrb.mxu3 %v12482_v57 }
 0xa13   : > { %8506 = vmatpush.bf16.msrb.mxu0 %v12490_v42  ;;  %8587 = vmatpush.bf16.msra.mxu1 %v12498_v63 }
 0xa15   : > { %8345 = vmatpush.bf16.msrb.mxu2 %v12473_v7  ;;  %8426 = vmatpush.bf16.msrb.mxu3 %v12481_v20 }
 0xa17   : > { %8507 = vmatpush.bf16.msrb.mxu0 %v12489_v53  ;;  %8588 = vmatpush.bf16.msra.mxu1 %v12497_v6 }
 0xa19   : > { %8346 = vmatpush.bf16.msrb.mxu2 %v12472_v59  ;;  %8427 = vmatpush.bf16.msrb.mxu3 %v12480_v60 }
 0xa1b   : > { %8508 = vmatpush.bf16.msrb.mxu0 %v12488_v16  ;;  %8589 = vmatpush.bf16.msra.mxu1 %v12496_v18 }
 0xa1d   : > { %8347 = vmatpush.bf16.msrb.mxu2 %v12471_v58  ;;  %8428 = vmatpush.bf16.msrb.mxu3 %v12479_v48 }
 0xa1f   : > { %8509 = vmatpush.bf16.msrb.mxu0 %v12487_v33  ;;  %8590 = vmatpush.bf16.msra.mxu1 %v12495_v39 }
 0xa21   : > { %8348 = vmatpush.bf16.msrb.mxu2 %v12470_v51  ;;  %8429 = vmatpush.bf16.msrb.mxu3 %v12478_v9 }
 0xa23   : > { %8510 = vmatpush.bf16.msrb.mxu0 %v12486_v32  ;;  %8591 = vmatpush.bf16.msra.mxu1 %v12494_v61 }
 0xa25   : > { %8349 = vmatpush.bf16.msrb.mxu2 %v12469_v10  ;;  %8430 = vmatpush.bf16.msrb.mxu3 %v12477_v52 }
 0xa27   : > { %8511 = vmatpush.bf16.msrb.mxu0 %v12485_v22  ;;  %8592 = vmatpush.bf16.msra.mxu1 %v12493_v47  ;;  %v6893_v21 = vpop.f32.mrf.mxu0  ;;  %v6974_v38 = vpop.f32.mrf.mxu1 }
 0xa28   : > { %8350 = vmatmul.bf16.vlgmr.msrb.gmra.mxu2 %v8276_v43  ;;  %8431 = vmatmul.bf16.vlgmr.msrb.gmra.mxu3 %v8357_v34  ;;  %v12514_v43 = vld [vmem:[%s16654_s9 + $0x28] sm:$0xff] }
 0xa29   : > { %8666 = vmatpush.bf16.msra.mxu2 %v12508_v4  ;;  %v12516_v4 = vld [vmem:[%s16654_s9 + $0x38] sm:$0xff] }
 0xa2a   : > { %8512 = vmatmul.bf16.vlgmr.msrb.gmra.mxu0 %v8438_v26  ;;  %8593 = vmatmul.bf16.vlgmr.msra.gmra.mxu1 %v8519_v44  ;;  %v12513_v26 = vld [vmem:[%s16654_s9 + $0x20] sm:$0xff] }
 0xa2b   : > { %v6752_v23 = vpop.f32.mrf.mxu2  ;;  %v6813_v15 = vpop.f32.mrf.mxu3  ;;  %8749 = vmatpush.bf16.msra.mxu3 %v12516_v4 }
 0xa2c   : > { %v6814_v2 = vadd.f32 %v6813_v15, %v6752_v23 }
 0xa2d   : > { %8667 = vmatpush.bf16.msra.mxu2 %v12507_v36 }
 0xa2e   : > { %v6897_v30 = vadd.f32 %v6893_v21, %v6814_v2 }
 0xa2f   : > { %v6895_v46 = vpop.f32.mrf.mxu0  ;;  %v6976_v25 = vpop.f32.mrf.mxu1  ;;  %8750 = vmatpush.bf16.msra.mxu3 %v12515_v17 }
 0xa30   : > { %v6978_v45 = vadd.f32 %v6974_v38, %v6897_v30  ;;  %v12510_v46 = vld [vmem:[%s16654_s9 + $0x8] sm:$0xff] }
 0xa31   : > { %8668 = vmatpush.bf16.msra.mxu2 %v12506_v14 }
 0xa33   : > { %v6754_v27 = vpop.f32.mrf.mxu2  ;;  %v6815_v40 = vpop.f32.mrf.mxu3  ;;  %8751 = vmatpush.bf16.msra.mxu3 %v12514_v43 }
 0xa34   : > { %v12524_v40 = vld [vmem:[%s16656_s11 + $0x38] sm:$0xff] }
 0xa35   : > { %8669 = vmatpush.bf16.msra.mxu2 %v12505_v1  ;;  %v12512_v1 = vld [vmem:[%s16654_s9 + $0x18] sm:$0xff]  ;;  %8829 = vmatpush.bf16.msra.mxu0 %v12524_v40 }
 0xa37   : > { %v7217_v41 = vpop.f32.mrf.mxu0  ;;  %v7298_v11 = vpop.f32.mrf.mxu1  ;;  %8752 = vmatpush.bf16.msra.mxu3 %v12513_v26 }
 0xa39   : > { %8670 = vmatpush.bf16.msra.mxu2 %v12504_v28  ;;  %v12511_v28 = vld [vmem:[%s16654_s9 + $0x10] sm:$0xff] }
 0xa3b   : > { %v7055_v24 = vpop.f32.mrf.mxu2  ;;  %v7136_v0 = vpop.f32.mrf.mxu3  ;;  %8753 = vmatpush.bf16.msra.mxu3 %v12512_v1 }
 0xa3c   : > { %v7059_v19 = vadd.f32 %v7055_v24, %v6978_v45  ;;  %v12509_v45 = vld [vmem:[%s16654_s9] sm:$0xff] }
 0xa3d   : > { %8671 = vmatpush.bf16.msra.mxu2 %v12503_v55 }
 0xa3e   : > { %v7140_v5 = vadd.f32 %v7136_v0, %v7059_v19  ;;  %v12521_v19 = vld [vmem:[%s16656_s11 + $0x20] sm:$0xff] }
 0xa3f   : > { %v7219_v54 = vpop.f32.mrf.mxu0  ;;  %v7300_v31 = vpop.f32.mrf.mxu1  ;;  %8754 = vmatpush.bf16.msra.mxu3 %v12511_v28 }
 0xa40   : > { %v7221_v49 = vadd.f32 %v7217_v41, %v7140_v5  ;;  %v12523_v41 = vld [vmem:[%s16656_s11 + $0x30] sm:$0xff]  ;;  %v12520_v54 = vld [vmem:[%s16656_s11 + $0x18] sm:$0xff] }
 0xa41   : > { %8672 = vmatpush.bf16.msra.mxu2 %v12502_v29  ;;  %8830 = vmatpush.bf16.msra.mxu0 %v12523_v41 }
 0xa42   : > { %v7302_v13 = vadd.f32 %v7298_v11, %v7221_v49  ;;  %v12519_v49 = vld [vmem:[%s16656_s11 + $0x10] sm:$0xff] }
 0xa43   : > { %v7057_v3 = vpop.f32.mrf.mxu2  ;;  %v7138_v37 = vpop.f32.mrf.mxu3  ;;  %8755 = vmatpush.bf16.msra.mxu3 %v12510_v46 }
 0xa44   : > { %v8680_v37 = vld [vmem:[%s16653_s8] sm:$0x1] }
 0xa45   : > { %8673 = vmatpush.bf16.msra.mxu2 %v12501_v56 }
 0xa47   : > { %v7541_v57 = vpop.f32.mrf.mxu0  ;;  %v7622_v42 = vpop.f32.mrf.mxu1  ;;  %8756 = vmatpush.bf16.msra.mxu3 %v12509_v45 }
 0xa48   : > { %8674 = vmatmul.bf16.vlgmr.msra.gmra.mxu2 %v8600_v50  ;;  %v12522_v50 = vld [vmem:[%s16656_s11 + $0x28] sm:$0xff] }
 0xa49   : > { %8831 = vmatpush.bf16.msra.mxu0 %v12522_v50 }
 0xa4b   : > { %v7379_v63 = vpop.f32.mrf.mxu2  ;;  %v7460_v7 = vpop.f32.mrf.mxu3 }
 0xa4c   : > { %v7383_v20 = vadd.f32 %v7379_v63, %v7302_v13 }
 0xa4d   : > { %8832 = vmatpush.bf16.msra.mxu0 %v12521_v19 }
 0xa4e   : > { %v7464_v53 = vadd.f32 %v7460_v7, %v7383_v20 }
 0xa4f   : > { %v7543_v6 = vpop.f32.mrf.mxu0  ;;  %v7624_v59 = vpop.f32.mrf.mxu1 }
 0xa50   : > { %v7545_v60 = vadd.f32 %v7541_v57, %v7464_v53  ;;  %v12518_v53 = vld [vmem:[%s16656_s11 + $0x8] sm:$0xff]  ;;  %v12517_v6 = vld [vmem:[%s16656_s11] sm:$0xff] }
 0xa51   : > { %8833 = vmatpush.bf16.msra.mxu0 %v12520_v54  ;;  %v8700_v59 = vld [vmem:[%s16655_s10] sm:$0x1] }
 0xa52   : > { %v7626_v16 = vadd.f32 %v7622_v42, %v7545_v60 }
 0xa53   : > { %v7381_v18 = vpop.f32.mrf.mxu2  ;;  %v7462_v58 = vpop.f32.mrf.mxu3 }
 0xa55   : > { %8834 = vmatpush.bf16.msra.mxu0 %v12519_v49 }
 0xa59   : > { %8835 = vmatpush.bf16.msra.mxu0 %v12518_v53 }
 0xa5d   : > { %8836 = vmatpush.bf16.msra.mxu0 %v12517_v6 }
 0xa67   : > { %v7865_v48 = vpop.f32.mrf.mxu0  ;;  %v7946_v33 = vpop.f32.mrf.mxu1 }
 0xa6b   : > { %v7703_v39 = vpop.f32.mrf.mxu2  ;;  %v7784_v51 = vpop.f32.mrf.mxu3 }
 0xa6c   : > { %v7707_v9 = vadd.f32 %v7703_v39, %v7626_v16 }
 0xa6e   : > { %v7788_v32 = vadd.f32 %v7784_v51, %v7707_v9 }
 0xa6f   : > { %v7867_v61 = vpop.f32.mrf.mxu0  ;;  %v7948_v10 = vpop.f32.mrf.mxu1 }
 0xa70   : > { %v7869_v52 = vadd.f32 %v7865_v48, %v7788_v32 }
 0xa72   : > { %v7950_v8 = vadd.f32 %v7946_v33, %v7869_v52  ;;  %v8780_v33 = vld [vmem:[%s16657_s12] sm:$0x1] }
 0xa73   : > { %v7705_v22 = vpop.f32.mrf.mxu2  ;;  %v7786_v47 = vpop.f32.mrf.mxu3 }
 0xa87   : > { %v8189_v62 = vpop.f32.mrf.mxu0  ;;  %v8270_v36 = vpop.f32.mrf.mxu1 }
 0xa8b   : > { %v8027_v34 = vpop.f32.mrf.mxu2  ;;  %v8108_v35 = vpop.f32.mrf.mxu3 }
 0xa8c   : > { %v8031_v30 = vadd.f32 %v8027_v34, %v7950_v8 }
 0xa8e   : > { %v8112_v27 = vadd.f32 %v8108_v35, %v8031_v30 }
 0xa8f   : > { %v8191_v44 = vpop.f32.mrf.mxu0  ;;  %v8272_v14 = vpop.f32.mrf.mxu1 }
 0xa90   : > { %v8193_v11 = vadd.f32 %v8189_v62, %v8112_v27 }
 0xa92   : > { %v8274_v24 = vadd.f32 %v8270_v36, %v8193_v11 }
 0xa93   : > { %v8029_v21 = vpop.f32.mrf.mxu2  ;;  %v8110_v38 = vpop.f32.mrf.mxu3 }
 0xaa7   : > { %v8513_v23 = vpop.f32.mrf.mxu0  ;;  %v8594_v15 = vpop.f32.mrf.mxu1 }
 0xaab   : > { %v8351_v2 = vpop.f32.mrf.mxu2  ;;  %v8432_v55 = vpop.f32.mrf.mxu3 }
 0xaac   : > { %v8355_v0 = vadd.f32 %v8351_v2, %v8274_v24 }
 0xaae   : > { %v8436_v5 = vadd.f32 %v8432_v55, %v8355_v0 }
 0xaaf   : > { %v8515_v25 = vpop.f32.mrf.mxu0  ;;  %v8596_v29 = vpop.f32.mrf.mxu1 }
 0xab0   : > { %v8517_v31 = vadd.f32 %v8513_v23, %v8436_v5 }
 0xab2   : > { %v8598_v13 = vadd.f32 %v8594_v15, %v8517_v31 }
 0xab3   : > { %v8353_v56 = vpop.f32.mrf.mxu2  ;;  %v8434_v12 = vpop.f32.mrf.mxu3 }
 0xacb   : > { %v8675_v3 = vpop.f32.mrf.mxu2 }
 0xacc   : > { %v8679_v57 = vadd.f32 %v8675_v3, %v8598_v13 }
 0xace   : > { %v8681_v42 = vadd.f32 %v8680_v37, %v8679_v57 }
 0xad0   : > { %v8682_v63 = vmax.f32 %v8681_v42, 0.0 }
 0xad2   : > { %v8683_v7 = vpack.c.bf16 %v8682_v63, %v8682_v63 }
 0xad3   : > { %v8677_v20 = vpop.f32.mrf.mxu2 }
 0xad4   : > { %8757 = vmatmul.bf16.vlgmr.msra.gmra.mxu3 %v8683_v7 }
 0xb57   : > { %v8758_v60 = vpop.f32.mrf.mxu3 }
 0xb58   : > { %v8759_v16 = vadd.f32 %v8758_v60, %v8700_v59 }
 0xb5a   : > { %v8762_v18 = vmax.f32 %v8759_v16, 0.0 }
 0xb5c   : > { %v8763_v58 = vpack.c.bf16 %v8762_v18, %v8762_v18 }
 0xb5e   : > { %8837 = vmatmul.bf16.vlgmr.msra.gmra.mxu0 %v8763_v58 }
 0xb5f   : > { %v8760_v48 = vpop.f32.mrf.mxu3 }
 0xbdb   : > { %v8838_v39 = vpop.f32.mrf.mxu0 }
 0xbdc   : > { %v8839_v51 = vadd.f32 %v8838_v39, %v8780_v33 }
 0xbde   : > { %8842 = vst [vmem:[%s432_s20] sm:$0x1] %v8839_v51 }
 0xbdf   : > { %12595 = shalt.err (!%p12592_p3)
}
 0xbe0   : > { %12526 = dma.vmem_to_hbm [thread:$0]  (%p12740_p5), %s8855_s21, 16, %s8857_s22, %s8844_s23  }
 0xbe3   : > { %v8840_v9 = vpop.f32.mrf.mxu0 }
 0xbe4 PF: > { %p12532_p4 = scmp.ge.s32.totalorder %s12630_s28, 2  ;;  %s8868_s1 = sand.u32 1, %s12618_s25  }
 0xbe5   : > { %s8869_s30 = scalar_lea.sflag [#allocation5], %s8868_s1 }
 0xbe6   : > { %p12529_p7 = pnand %p12532_p4, %p12744_p6 }
 0xbe8   : > { %p12530_p8 = pneg %p12529_p7 }
 0xbea   : > { %12613 = dma.done.wait (%p12530_p8), %s8869_s30, 16  }
 0xbeb   : > { %12615 = vsyncadd (%p12530_p8), %s8869_s30, 4294967280  ;;  %s16890_s2 = sld [smem:[#allocation7_spill]]  ;;  %p23_p9 = scmp.ge.s32.totalorder %s12727_s14, 4  }
 0xbec   : > { %s16891_s25 = smov %s12622_s26  ;;  %s16892_s26 = smov %s12626_s27 }
 0xbed   : > { %s16894_s28 = smov %s12727_s14  ;;  %25 = sbr.rel (!%p23_p9) target bundleno = 7 (0x7), region = 155 }
 0xbf1   : > { %s16893_s27 = smov %s16890_s2 }
 0xbf2   :  { %8874 = vsyncpa [#allocation5], 1 }
 0xbf3   :  { %8876 = vsyncpa [#allocation5 + $0x1], 1 }

</bundles_post_ra>
